<compile_context>
chip_gen: v7x
topology: tpu7x:2x2x1
jax: 0.10.0
libtpu: 0.0.40
codegen_flags: <defaults>
</compile_context>

<pallas_src>
import math

import jax
import jax.numpy as jnp
from jax import lax
from jax.experimental import pallas as pl
from jax.experimental.pallas import tpu as pltpu


# ----------------------------- model hyper-params -----------------------------
IN_VOCAB = 50
OUT_VOCAB = 128          # multiple of 128 -> lane-dense logits store
D_MODEL = 32
NUM_LAYERS = 2
HEADS = 4
D_K = D_MODEL // HEADS
FWD_EXP = 4
HIDDEN = D_MODEL * FWD_EXP   # 128
MAX_LEN = 16
BATCH = 2
SRC_LEN = 8
TGT_LEN = 8
PAD_IDX = 0
EPS = 1e-5               # PyTorch LayerNorm default eps
NEG_INF = -1.0e9
INV_SQRT_DK = 1.0 / math.sqrt(D_K)


# Fixed order of the (stacked, head-split) parameter arrays fed to the kernel.
PARAM_NAMES = (
    "enc_emb", "enc_pos", "dec_emb", "dec_pos", "fc_w", "fc_b",
    # encoder layers (stacked on axis 0)
    "e_wq", "e_bq", "e_wk", "e_bk", "e_wv", "e_bv", "e_wo", "e_bo",
    "e_g1", "e_be1", "e_w1", "e_b1", "e_w2", "e_b2", "e_g2", "e_be2",
    # decoder self-attention + its LayerNorm
    "d_swq", "d_sbq", "d_swk", "d_sbk", "d_swv", "d_sbv", "d_swo", "d_sbo",
    "d_sg", "d_sbe",
    # decoder cross-attention transformer block
    "d_cwq", "d_cbq", "d_cwk", "d_cbk", "d_cwv", "d_cbv", "d_cwo", "d_cbo",
    "d_g1", "d_be1", "d_w1", "d_b1", "d_w2", "d_b2", "d_g2", "d_be2",
)


# ------------------------------- Pallas kernel --------------------------------
def transformer_kernel(enc_tok_ref, dec_tok_ref, src_bias_ref, *refs):
    assert len(refs) == len(PARAM_NAMES) + 1
    out_ref = refs[-1]
    p = dict(zip(PARAM_NAMES, refs[:-1]))

    enc_tok = enc_tok_ref[0]       # (S, 1) int32
    dec_tok = dec_tok_ref[0]       # (T, 1) int32
    src_bias = src_bias_ref[0]     # (1, S) f32 additive key bias (0 keep / -1e9 mask)

    def layernorm(a, g, b):
        m = jnp.mean(a, axis=-1, keepdims=True)
        v = jnp.mean((a - m) ** 2, axis=-1, keepdims=True)   # biased, like torch
        return (a - m) * lax.rsqrt(v + EPS) * g + b

    def mha(xq, xkv, wq, bq, wk, bk, wv, bv, wo, bo, bias):
        # wq/wk/wv: (H, D, d_k); bq/bk/bv: (H, 1, d_k); wo: (H, d_k, D); bo: (1, D)
        lq, lk = xq.shape[0], xkv.shape[0]
        xq_b = jnp.broadcast_to(xq[None], (HEADS, lq, D_MODEL))
        xkv_b = jnp.broadcast_to(xkv[None], (HEADS, lk, D_MODEL))
        q = jnp.einsum("hld,hdk->hlk", xq_b, wq,
                       preferred_element_type=jnp.float32) + bq
        k = jnp.einsum("hld,hdk->hlk", xkv_b, wk,
                       preferred_element_type=jnp.float32) + bk
        v = jnp.einsum("hld,hdk->hlk", xkv_b, wv,
                       preferred_element_type=jnp.float32) + bv
        s = jnp.einsum("hqk,hmk->hqm", q, k,
                       preferred_element_type=jnp.float32) * INV_SQRT_DK
        s = s + bias                                        # additive mask bias
        s = s - jnp.max(s, axis=-1, keepdims=True)
        e = jnp.exp(s)
        pr = e * pl.reciprocal(jnp.sum(e, axis=-1, keepdims=True), approx=True)
        o = jnp.einsum("hqm,hmk->hqk", pr, v, preferred_element_type=jnp.float32)
        proj = jnp.einsum("hqk,hkd->hqd", o, wo, preferred_element_type=jnp.float32)
        return jnp.sum(proj, axis=0) + bo                   # (Lq, D)

    def ffn(a, w1, b1, w2, b2):
        h = jnp.maximum(jnp.dot(a, w1, preferred_element_type=jnp.float32) + b1, 0.0)
        return jnp.dot(h, w2, preferred_element_type=jnp.float32) + b2

    # ---------------- encoder: embedding (one-hot matmul) + layers ----------------
    enc_oh = (enc_tok == lax.broadcasted_iota(jnp.int32, (SRC_LEN, IN_VOCAB), 1)
              ).astype(jnp.float32)
    x = jnp.dot(enc_oh, p["enc_emb"][...], preferred_element_type=jnp.float32)
    x = x + p["enc_pos"][...]

    for l in range(NUM_LAYERS):
        attn = mha(x, x,
                   p["e_wq"][l], p["e_bq"][l], p["e_wk"][l], p["e_bk"][l],
                   p["e_wv"][l], p["e_bv"][l], p["e_wo"][l], p["e_bo"][l],
                   src_bias)
        reg = layernorm(attn + x, p["e_g1"][l], p["e_be1"][l])
        ff = ffn(reg, p["e_w1"][l], p["e_b1"][l], p["e_w2"][l], p["e_b2"][l])
        x = layernorm(ff + reg, p["e_g2"][l], p["e_be2"][l])
    enc_out = x

    # ---------------- decoder: embedding, causal self-attn, cross-attn ------------
    dec_oh = (dec_tok == lax.broadcasted_iota(jnp.int32, (TGT_LEN, OUT_VOCAB), 1)
              ).astype(jnp.float32)
    y = jnp.dot(dec_oh, p["dec_emb"][...], preferred_element_type=jnp.float32)
    y = y + p["dec_pos"][...]

    row = lax.broadcasted_iota(jnp.int32, (TGT_LEN, TGT_LEN), 0)
    col = lax.broadcasted_iota(jnp.int32, (TGT_LEN, TGT_LEN), 1)
    causal_bias = jnp.where(row >= col, 0.0, NEG_INF).astype(jnp.float32)

    for l in range(NUM_LAYERS):
        sa = mha(y, y,
                 p["d_swq"][l], p["d_sbq"][l], p["d_swk"][l], p["d_sbk"][l],
                 p["d_swv"][l], p["d_sbv"][l], p["d_swo"][l], p["d_sbo"][l],
                 causal_bias)
        yq = layernorm(sa + y, p["d_sg"][l], p["d_sbe"][l])
        ca = mha(yq, enc_out,
                 p["d_cwq"][l], p["d_cbq"][l], p["d_cwk"][l], p["d_cbk"][l],
                 p["d_cwv"][l], p["d_cbv"][l], p["d_cwo"][l], p["d_cbo"][l],
                 src_bias)
        reg = layernorm(ca + yq, p["d_g1"][l], p["d_be1"][l])
        ff = ffn(reg, p["d_w1"][l], p["d_b1"][l], p["d_w2"][l], p["d_b2"][l])
        y = layernorm(ff + reg, p["d_g2"][l], p["d_be2"][l])

    logits = jnp.dot(y, p["fc_w"][...], preferred_element_type=jnp.float32) + p["fc_b"][...]
    out_ref[0] = logits.astype(out_ref.dtype)                # (T, OUT_VOCAB), lane-dense


# --------------------------------- wrapper --------------------------------------
def transformer_forward(src_tokens, tgt_tokens, kparams):
    """src_tokens: (N, S) int32, tgt_tokens: (N, T) int32 -> logits (N, T, OUT_VOCAB)."""
    N = src_tokens.shape[0]
    src_bias = jnp.where(src_tokens != PAD_IDX, 0.0, NEG_INF
                         ).astype(jnp.float32)[:, None, :]          # (N, 1, S)
    enc_tok3 = src_tokens[:, :, None].astype(jnp.int32)             # (N, S, 1)
    dec_tok3 = tgt_tokens[:, :, None].astype(jnp.int32)             # (N, T, 1)

    param_list = [kparams[n] for n in PARAM_NAMES]

    def full_spec(a):
        nd = a.ndim
        return pl.BlockSpec(a.shape, lambda b, _nd=nd: (0,) * _nd)

    in_specs = [
        pl.BlockSpec((1, SRC_LEN, 1), lambda b: (b, 0, 0)),          # enc tokens
        pl.BlockSpec((1, TGT_LEN, 1), lambda b: (b, 0, 0)),          # dec tokens
        pl.BlockSpec((1, 1, SRC_LEN), lambda b: (b, 0, 0)),          # src pad bias
    ] + [full_spec(a) for a in param_list]

    return pl.pallas_call(
        transformer_kernel,
        out_shape=jax.ShapeDtypeStruct((N, TGT_LEN, OUT_VOCAB), jnp.float32),
        grid_spec=pltpu.PrefetchScalarGridSpec(
            num_scalar_prefetch=0,
            grid=(N,),
            in_specs=in_specs,
            out_specs=pl.BlockSpec((1, TGT_LEN, OUT_VOCAB), lambda b: (b, 0, 0)),
        ),
        compiler_params=pltpu.CompilerParams(dimension_semantics=("parallel",)),
    )(enc_tok3, dec_tok3, src_bias, *param_list)


# ------------------------------ parameter setup ----------------------------------
def init_params(key):
    ks = jax.random.split(key, 6 + 2 * NUM_LAYERS)
    s = 0.05

    def dense(k, shape):
        return (s * jax.random.normal(k, shape)).astype(jnp.float32)

    def vec(k, n, scale=0.02):
        return (scale * jax.random.normal(k, (n,))).astype(jnp.float32)

    def attn_params(k):
        kk = jax.random.split(k, 8)
        return dict(
            wq=dense(kk[0], (D_MODEL, D_MODEL)), bq=vec(kk[1], D_MODEL),
            wk=dense(kk[2], (D_MODEL, D_MODEL)), bk=vec(kk[3], D_MODEL),
            wv=dense(kk[4], (D_MODEL, D_MODEL)), bv=vec(kk[5], D_MODEL),
            wo=dense(kk[6], (D_MODEL, D_MODEL)), bo=vec(kk[7], D_MODEL),
        )

    def block_params(k):
        kk = jax.random.split(k, 9)
        return dict(
            attn=attn_params(kk[0]),
            g1=1.0 + vec(kk[1], D_MODEL, 0.1), be1=vec(kk[2], D_MODEL, 0.1),
            w1=dense(kk[3], (D_MODEL, HIDDEN)), b1=vec(kk[4], HIDDEN),
            w2=dense(kk[5], (HIDDEN, D_MODEL)), b2=vec(kk[6], D_MODEL),
            g2=1.0 + vec(kk[7], D_MODEL, 0.1), be2=vec(kk[8], D_MODEL, 0.1),
        )

    def dec_layer_params(k):
        kk = jax.random.split(k, 4)
        return dict(
            self_attn=attn_params(kk[0]),
            sg=1.0 + vec(kk[1], D_MODEL, 0.1), sbe=vec(kk[2], D_MODEL, 0.1),
            block=block_params(kk[3]),
        )

    return dict(
        enc_emb=jax.random.normal(ks[0], (IN_VOCAB, D_MODEL), jnp.float32),
        dec_emb=jax.random.normal(ks[1], (OUT_VOCAB, D_MODEL), jnp.float32),
        enc_pos=(0.02 * jax.random.normal(ks[2], (1, MAX_LEN, D_MODEL))).astype(jnp.float32),
        dec_pos=(0.02 * jax.random.normal(ks[3], (1, MAX_LEN, D_MODEL))).astype(jnp.float32),
        fc_w=dense(ks[4], (D_MODEL, OUT_VOCAB)),
        fc_b=vec(ks[5], OUT_VOCAB),
        enc_layers=[block_params(ks[6 + i]) for i in range(NUM_LAYERS)],
        dec_layers=[dec_layer_params(ks[6 + NUM_LAYERS + i]) for i in range(NUM_LAYERS)],
    )


def build_kernel_params(canon):
    """Host-side repack: stack layers, split attention weights per head."""
    def split_w(w):   # (D, D) -> (H, D, d_k)
        return w.reshape(D_MODEL, HEADS, D_K).transpose(1, 0, 2)

    def split_b(b):   # (D,) -> (H, 1, d_k)
        return b.reshape(HEADS, D_K)[:, None, :]

    def row(v):       # (n,) -> (1, n)
        return v.reshape(1, -1)

    p = {
        "enc_emb": canon["enc_emb"],
        "enc_pos": canon["enc_pos"][0, :SRC_LEN, :],
        "dec_emb": canon["dec_emb"],
        "dec_pos": canon["dec_pos"][0, :TGT_LEN, :],
        "fc_w": canon["fc_w"],
        "fc_b": row(canon["fc_b"]),
    }

    def attn_stacked(prefix, attn_list):
        p[prefix + "wq"] = jnp.stack([split_w(a["wq"]) for a in attn_list])
        p[prefix + "bq"] = jnp.stack([split_b(a["bq"]) for a in attn_list])
        p[prefix + "wk"] = jnp.stack([split_w(a["wk"]) for a in attn_list])
        p[prefix + "bk"] = jnp.stack([split_b(a["bk"]) for a in attn_list])
        p[prefix + "wv"] = jnp.stack([split_w(a["wv"]) for a in attn_list])
        p[prefix + "bv"] = jnp.stack([split_b(a["bv"]) for a in attn_list])
        p[prefix + "wo"] = jnp.stack([a["wo"].reshape(HEADS, D_K, D_MODEL) for a in attn_list])
        p[prefix + "bo"] = jnp.stack([row(a["bo"]) for a in attn_list])

    def ffln_stacked(prefix, blk_list):
        p[prefix + "g1"] = jnp.stack([row(b["g1"]) for b in blk_list])
        p[prefix + "be1"] = jnp.stack([row(b["be1"]) for b in blk_list])
        p[prefix + "w1"] = jnp.stack([b["w1"] for b in blk_list])
        p[prefix + "b1"] = jnp.stack([row(b["b1"]) for b in blk_list])
        p[prefix + "w2"] = jnp.stack([b["w2"] for b in blk_list])
        p[prefix + "b2"] = jnp.stack([row(b["b2"]) for b in blk_list])
        p[prefix + "g2"] = jnp.stack([row(b["g2"]) for b in blk_list])
        p[prefix + "be2"] = jnp.stack([row(b["be2"]) for b in blk_list])

    enc = canon["enc_layers"]
    attn_stacked("e_", [b["attn"] for b in enc])
    ffln_stacked("e_", enc)

    dec = canon["dec_layers"]
    attn_stacked("d_s", [l["self_attn"] for l in dec])
    p["d_sg"] = jnp.stack([row(l["sg"]) for l in dec])
    p["d_sbe"] = jnp.stack([row(l["sbe"]) for l in dec])
    attn_stacked("d_c", [l["block"]["attn"] for l in dec])
    ffln_stacked("d_", [l["block"] for l in dec])
    return p


# ---------------------------- pure-JAX reference ----------------------------------
def _ref_ln(a, g, b):
    m = jnp.mean(a, -1, keepdims=True)
    v = jnp.mean((a - m) ** 2, -1, keepdims=True)
    return (a - m) / jnp.sqrt(v + EPS) * g + b


def _ref_mha(q_in, kv_in, a, mask):
    q = q_in @ a["wq"] + a["bq"]
    k = kv_in @ a["wk"] + a["bk"]
    v = kv_in @ a["wv"] + a["bv"]

    def split(t):
        return t.reshape(t.shape[0], t.shape[1], HEADS, D_K).transpose(0, 2, 1, 3)

    qh, kh, vh = split(q), split(k), split(v)
    s = jnp.einsum("nhqd,nhkd->nhqk", qh, kh) / math.sqrt(D_K)
    s = jnp.where(mask == 0.0, NEG_INF, s)
    pr = jax.nn.softmax(s, axis=-1)
    o = jnp.einsum("nhqk,nhkd->nhqd", pr, vh).transpose(0, 2, 1, 3)
    o = o.reshape(q_in.shape[0], q_in.shape[1], D_MODEL)
    return o @ a["wo"] + a["bo"]


def _ref_tblock(q, kv, blk, mask):
    attn = _ref_mha(q, kv, blk["attn"], mask)
    reg = _ref_ln(attn + q, blk["g1"], blk["be1"])
    h = jnp.maximum(reg @ blk["w1"] + blk["b1"], 0.0)
    ff = h @ blk["w2"] + blk["b2"]
    return _ref_ln(ff + reg, blk["g2"], blk["be2"])


def transformer_ref(src, tgt, canon):
    pad_mask = (src != PAD_IDX).astype(jnp.float32)[:, None, None, :]       # (N,1,1,S)
    T = tgt.shape[1]
    trg_mask = jnp.tril(jnp.ones((T, T), jnp.float32))[None, None, :, :]    # (1,1,T,T)

    x = canon["enc_emb"][src] + canon["enc_pos"][:, : src.shape[1], :]
    for blk in canon["enc_layers"]:
        x = _ref_tblock(x, x, blk, pad_mask)

    y = canon["dec_emb"][tgt] + canon["dec_pos"][:, :T, :]
    for lay in canon["dec_layers"]:
        sa = _ref_mha(y, y, lay["self_attn"], trg_mask)
        yq = _ref_ln(sa + y, lay["sg"], lay["sbe"])
        y = _ref_tblock(yq, x, lay["block"], pad_mask)
    return y @ canon["fc_w"] + canon["fc_b"]


# ----------------------------------- main ------------------------------------------
if __name__ == "__main__":
    key = jax.random.PRNGKey(0)
    k_par, k_src, k_tgt = jax.random.split(key, 3)

    canon = init_params(k_par)
    kparams = build_kernel_params(canon)

    src = jax.random.randint(k_src, (BATCH, SRC_LEN), 1, IN_VOCAB, dtype=jnp.int32)
    src = src.at[1, SRC_LEN - 2 :].set(PAD_IDX)      # second sequence: last 2 tokens are padding
    tgt = jax.random.randint(k_tgt, (BATCH, TGT_LEN), 0, OUT_VOCAB, dtype=jnp.int32)

    out = transformer_forward(src, tgt, kparams)
    out = jax.block_until_ready(out)

    ref = transformer_ref(src, tgt, canon)
    assert out.shape == (BATCH, TGT_LEN, OUT_VOCAB)
    assert jnp.allclose(out, ref, rtol=2e-3, atol=2e-3), "Pallas output mismatch vs reference"

    print("KERNEL_OK")
</pallas_src>

<mosaic_0001>
module attributes {stable_mosaic.version = 11 : i64} {
  func.func @transformer_kernel(%arg0: i32, %arg1: memref<1x8x1xi32, #tpu.memory_space<vmem>>, %arg2: memref<1x8x1xi32, #tpu.memory_space<vmem>>, %arg3: memref<1x1x8xf32, #tpu.memory_space<vmem>>, %arg4: memref<50x32xf32, #tpu.memory_space<vmem>>, %arg5: memref<8x32xf32, #tpu.memory_space<vmem>>, %arg6: memref<128x32xf32, #tpu.memory_space<vmem>>, %arg7: memref<8x32xf32, #tpu.memory_space<vmem>>, %arg8: memref<32x128xf32, #tpu.memory_space<vmem>>, %arg9: memref<1x128xf32, #tpu.memory_space<vmem>>, %arg10: memref<2x4x32x8xf32, #tpu.memory_space<vmem>>, %arg11: memref<2x4x1x8xf32, #tpu.memory_space<vmem>>, %arg12: memref<2x4x32x8xf32, #tpu.memory_space<vmem>>, %arg13: memref<2x4x1x8xf32, #tpu.memory_space<vmem>>, %arg14: memref<2x4x32x8xf32, #tpu.memory_space<vmem>>, %arg15: memref<2x4x1x8xf32, #tpu.memory_space<vmem>>, %arg16: memref<2x4x8x32xf32, #tpu.memory_space<vmem>>, %arg17: memref<2x1x32xf32, #tpu.memory_space<vmem>>, %arg18: memref<2x1x32xf32, #tpu.memory_space<vmem>>, %arg19: memref<2x1x32xf32, #tpu.memory_space<vmem>>, %arg20: memref<2x32x128xf32, #tpu.memory_space<vmem>>, %arg21: memref<2x1x128xf32, #tpu.memory_space<vmem>>, %arg22: memref<2x128x32xf32, #tpu.memory_space<vmem>>, %arg23: memref<2x1x32xf32, #tpu.memory_space<vmem>>, %arg24: memref<2x1x32xf32, #tpu.memory_space<vmem>>, %arg25: memref<2x1x32xf32, #tpu.memory_space<vmem>>, %arg26: memref<2x4x32x8xf32, #tpu.memory_space<vmem>>, %arg27: memref<2x4x1x8xf32, #tpu.memory_space<vmem>>, %arg28: memref<2x4x32x8xf32, #tpu.memory_space<vmem>>, %arg29: memref<2x4x1x8xf32, #tpu.memory_space<vmem>>, %arg30: memref<2x4x32x8xf32, #tpu.memory_space<vmem>>, %arg31: memref<2x4x1x8xf32, #tpu.memory_space<vmem>>, %arg32: memref<2x4x8x32xf32, #tpu.memory_space<vmem>>, %arg33: memref<2x1x32xf32, #tpu.memory_space<vmem>>, %arg34: memref<2x1x32xf32, #tpu.memory_space<vmem>>, %arg35: memref<2x1x32xf32, #tpu.memory_space<vmem>>, %arg36: memref<2x4x32x8xf32, #tpu.memory_space<vmem>>, %arg37: memref<2x4x1x8xf32, #tpu.memory_space<vmem>>, %arg38: memref<2x4x32x8xf32, #tpu.memory_space<vmem>>, %arg39: memref<2x4x1x8xf32, #tpu.memory_space<vmem>>, %arg40: memref<2x4x32x8xf32, #tpu.memory_space<vmem>>, %arg41: memref<2x4x1x8xf32, #tpu.memory_space<vmem>>, %arg42: memref<2x4x8x32xf32, #tpu.memory_space<vmem>>, %arg43: memref<2x1x32xf32, #tpu.memory_space<vmem>>, %arg44: memref<2x1x32xf32, #tpu.memory_space<vmem>>, %arg45: memref<2x1x32xf32, #tpu.memory_space<vmem>>, %arg46: memref<2x32x128xf32, #tpu.memory_space<vmem>>, %arg47: memref<2x1x128xf32, #tpu.memory_space<vmem>>, %arg48: memref<2x128x32xf32, #tpu.memory_space<vmem>>, %arg49: memref<2x1x32xf32, #tpu.memory_space<vmem>>, %arg50: memref<2x1x32xf32, #tpu.memory_space<vmem>>, %arg51: memref<2x1x32xf32, #tpu.memory_space<vmem>>, %arg52: memref<1x8x128xf32, #tpu.memory_space<vmem>>) attributes {dimension_semantics = [#tpu.dimension_semantics<parallel>], iteration_bounds = array<i64: 2>, scalar_prefetch = 0 : i64, scratch_operands = 0 : i64, tpu.core_type = #tpu.core_type<tc>, window_params = [{transform_indices = @transform_0, window_bounds = array<i64: 1, 8, 1>}, {transform_indices = @transform_1, window_bounds = array<i64: 1, 8, 1>}, {transform_indices = @transform_2, window_bounds = array<i64: 1, 1, 8>}, {pipeline_mode = #tpu.pipeline_mode<synchronous>, transform_indices = @transform_3, window_bounds = array<i64: 50, 32>}, {pipeline_mode = #tpu.pipeline_mode<synchronous>, transform_indices = @transform_4, window_bounds = array<i64: 8, 32>}, {pipeline_mode = #tpu.pipeline_mode<synchronous>, transform_indices = @transform_5, window_bounds = array<i64: 128, 32>}, {pipeline_mode = #tpu.pipeline_mode<synchronous>, transform_indices = @transform_6, window_bounds = array<i64: 8, 32>}, {pipeline_mode = #tpu.pipeline_mode<synchronous>, transform_indices = @transform_7, window_bounds = array<i64: 32, 128>}, {pipeline_mode = #tpu.pipeline_mode<synchronous>, transform_indices = @transform_8, window_bounds = array<i64: 1, 128>}, {pipeline_mode = #tpu.pipeline_mode<synchronous>, transform_indices = @transform_9, window_bounds = array<i64: 2, 4, 32, 8>}, {pipeline_mode = #tpu.pipeline_mode<synchronous>, transform_indices = @transform_10, window_bounds = array<i64: 2, 4, 1, 8>}, {pipeline_mode = #tpu.pipeline_mode<synchronous>, transform_indices = @transform_11, window_bounds = array<i64: 2, 4, 32, 8>}, {pipeline_mode = #tpu.pipeline_mode<synchronous>, transform_indices = @transform_12, window_bounds = array<i64: 2, 4, 1, 8>}, {pipeline_mode = #tpu.pipeline_mode<synchronous>, transform_indices = @transform_13, window_bounds = array<i64: 2, 4, 32, 8>}, {pipeline_mode = #tpu.pipeline_mode<synchronous>, transform_indices = @transform_14, window_bounds = array<i64: 2, 4, 1, 8>}, {pipeline_mode = #tpu.pipeline_mode<synchronous>, transform_indices = @transform_15, window_bounds = array<i64: 2, 4, 8, 32>}, {pipeline_mode = #tpu.pipeline_mode<synchronous>, transform_indices = @transform_16, window_bounds = array<i64: 2, 1, 32>}, {pipeline_mode = #tpu.pipeline_mode<synchronous>, transform_indices = @transform_17, window_bounds = array<i64: 2, 1, 32>}, {pipeline_mode = #tpu.pipeline_mode<synchronous>, transform_indices = @transform_18, window_bounds = array<i64: 2, 1, 32>}, {pipeline_mode = #tpu.pipeline_mode<synchronous>, transform_indices = @transform_19, window_bounds = array<i64: 2, 32, 128>}, {pipeline_mode = #tpu.pipeline_mode<synchronous>, transform_indices = @transform_20, window_bounds = array<i64: 2, 1, 128>}, {pipeline_mode = #tpu.pipeline_mode<synchronous>, transform_indices = @transform_21, window_bounds = array<i64: 2, 128, 32>}, {pipeline_mode = #tpu.pipeline_mode<synchronous>, transform_indices = @transform_22, window_bounds = array<i64: 2, 1, 32>}, {pipeline_mode = #tpu.pipeline_mode<synchronous>, transform_indices = @transform_23, window_bounds = array<i64: 2, 1, 32>}, {pipeline_mode = #tpu.pipeline_mode<synchronous>, transform_indices = @transform_24, window_bounds = array<i64: 2, 1, 32>}, {pipeline_mode = #tpu.pipeline_mode<synchronous>, transform_indices = @transform_25, window_bounds = array<i64: 2, 4, 32, 8>}, {pipeline_mode = #tpu.pipeline_mode<synchronous>, transform_indices = @transform_26, window_bounds = array<i64: 2, 4, 1, 8>}, {pipeline_mode = #tpu.pipeline_mode<synchronous>, transform_indices = @transform_27, window_bounds = array<i64: 2, 4, 32, 8>}, {pipeline_mode = #tpu.pipeline_mode<synchronous>, transform_indices = @transform_28, window_bounds = array<i64: 2, 4, 1, 8>}, {pipeline_mode = #tpu.pipeline_mode<synchronous>, transform_indices = @transform_29, window_bounds = array<i64: 2, 4, 32, 8>}, {pipeline_mode = #tpu.pipeline_mode<synchronous>, transform_indices = @transform_30, window_bounds = array<i64: 2, 4, 1, 8>}, {pipeline_mode = #tpu.pipeline_mode<synchronous>, transform_indices = @transform_31, window_bounds = array<i64: 2, 4, 8, 32>}, {pipeline_mode = #tpu.pipeline_mode<synchronous>, transform_indices = @transform_32, window_bounds = array<i64: 2, 1, 32>}, {pipeline_mode = #tpu.pipeline_mode<synchronous>, transform_indices = @transform_33, window_bounds = array<i64: 2, 1, 32>}, {pipeline_mode = #tpu.pipeline_mode<synchronous>, transform_indices = @transform_34, window_bounds = array<i64: 2, 1, 32>}, {pipeline_mode = #tpu.pipeline_mode<synchronous>, transform_indices = @transform_35, window_bounds = array<i64: 2, 4, 32, 8>}, {pipeline_mode = #tpu.pipeline_mode<synchronous>, transform_indices = @transform_36, window_bounds = array<i64: 2, 4, 1, 8>}, {pipeline_mode = #tpu.pipeline_mode<synchronous>, transform_indices = @transform_37, window_bounds = array<i64: 2, 4, 32, 8>}, {pipeline_mode = #tpu.pipeline_mode<synchronous>, transform_indices = @transform_38, window_bounds = array<i64: 2, 4, 1, 8>}, {pipeline_mode = #tpu.pipeline_mode<synchronous>, transform_indices = @transform_39, window_bounds = array<i64: 2, 4, 32, 8>}, {pipeline_mode = #tpu.pipeline_mode<synchronous>, transform_indices = @transform_40, window_bounds = array<i64: 2, 4, 1, 8>}, {pipeline_mode = #tpu.pipeline_mode<synchronous>, transform_indices = @transform_41, window_bounds = array<i64: 2, 4, 8, 32>}, {pipeline_mode = #tpu.pipeline_mode<synchronous>, transform_indices = @transform_42, window_bounds = array<i64: 2, 1, 32>}, {pipeline_mode = #tpu.pipeline_mode<synchronous>, transform_indices = @transform_43, window_bounds = array<i64: 2, 1, 32>}, {pipeline_mode = #tpu.pipeline_mode<synchronous>, transform_indices = @transform_44, window_bounds = array<i64: 2, 1, 32>}, {pipeline_mode = #tpu.pipeline_mode<synchronous>, transform_indices = @transform_45, window_bounds = array<i64: 2, 32, 128>}, {pipeline_mode = #tpu.pipeline_mode<synchronous>, transform_indices = @transform_46, window_bounds = array<i64: 2, 1, 128>}, {pipeline_mode = #tpu.pipeline_mode<synchronous>, transform_indices = @transform_47, window_bounds = array<i64: 2, 128, 32>}, {pipeline_mode = #tpu.pipeline_mode<synchronous>, transform_indices = @transform_48, window_bounds = array<i64: 2, 1, 32>}, {pipeline_mode = #tpu.pipeline_mode<synchronous>, transform_indices = @transform_49, window_bounds = array<i64: 2, 1, 32>}, {pipeline_mode = #tpu.pipeline_mode<synchronous>, transform_indices = @transform_50, window_bounds = array<i64: 2, 1, 32>}, {transform_indices = @transform_51, window_bounds = array<i64: 1, 8, 128>}]} {
    %c0 = arith.constant 0 : index
    %c0_0 = arith.constant 0 : index
    %c0_1 = arith.constant 0 : index
    %0 = vector.load %arg1[%c0, %c0_0, %c0_1] : memref<1x8x1xi32, #tpu.memory_space<vmem>>, vector<1x8x1xi32>
    %1 = vector.shape_cast %0 : vector<1x8x1xi32> to vector<8x1xi32>
    %c0_2 = arith.constant 0 : index
    %c0_3 = arith.constant 0 : index
    %c0_4 = arith.constant 0 : index
    %2 = vector.load %arg2[%c0_2, %c0_3, %c0_4] : memref<1x8x1xi32, #tpu.memory_space<vmem>>, vector<1x8x1xi32>
    %3 = vector.shape_cast %2 : vector<1x8x1xi32> to vector<8x1xi32>
    %c0_5 = arith.constant 0 : index
    %c0_6 = arith.constant 0 : index
    %c0_7 = arith.constant 0 : index
    %4 = vector.load %arg3[%c0_5, %c0_6, %c0_7] : memref<1x1x8xf32, #tpu.memory_space<vmem>>, vector<1x1x8xf32>
    %5 = vector.shape_cast %4 : vector<1x1x8xf32> to vector<1x8xf32>
    %6 = tpu.iota {dimensions = array<i32: 1>} : vector<8x50xi32>
    %7 = vector.broadcast %1 : vector<8x1xi32> to vector<8x50xi32>
    %8 = arith.cmpi eq, %7, %6 : vector<8x50xi32>
    %9 = arith.extui %8 : vector<8x50xi1> to vector<8x50xi32>
    %10 = arith.sitofp %9 : vector<8x50xi32> to vector<8x50xf32>
    %c0_8 = arith.constant 0 : index
    %c0_9 = arith.constant 0 : index
    %11 = vector.load %arg4[%c0_8, %c0_9] : memref<50x32xf32, #tpu.memory_space<vmem>>, vector<50x32xf32>
    %cst = arith.constant dense<0.000000e+00> : vector<8x32xf32>
    %12 = tpu.matmul %10, %11, %cst {dimension_numbers = #tpu.dot_dimension_numbers<[1], [0], [0], [1], [0, 0, 1, 1], [], []>} : vector<8x50xf32>, vector<50x32xf32>, vector<8x32xf32> -> vector<8x32xf32>
    %c0_10 = arith.constant 0 : index
    %c0_11 = arith.constant 0 : index
    %13 = vector.load %arg5[%c0_10, %c0_11] : memref<8x32xf32, #tpu.memory_space<vmem>>, vector<8x32xf32>
    %14 = arith.addf %12, %13 : vector<8x32xf32>
    %c0_12 = arith.constant 0 : index
    %c0_13 = arith.constant 0 : index
    %c0_14 = arith.constant 0 : index
    %c0_15 = arith.constant 0 : index
    %15 = vector.load %arg10[%c0_12, %c0_13, %c0_14, %c0_15] : memref<2x4x32x8xf32, #tpu.memory_space<vmem>>, vector<1x4x32x8xf32>
    %16 = vector.shape_cast %15 : vector<1x4x32x8xf32> to vector<4x32x8xf32>
    %c0_16 = arith.constant 0 : index
    %c0_17 = arith.constant 0 : index
    %c0_18 = arith.constant 0 : index
    %c0_19 = arith.constant 0 : index
    %17 = vector.load %arg11[%c0_16, %c0_17, %c0_18, %c0_19] : memref<2x4x1x8xf32, #tpu.memory_space<vmem>>, vector<1x4x1x8xf32>
    %18 = vector.shape_cast %17 : vector<1x4x1x8xf32> to vector<4x1x8xf32>
    %c0_20 = arith.constant 0 : index
    %c0_21 = arith.constant 0 : index
    %c0_22 = arith.constant 0 : index
    %c0_23 = arith.constant 0 : index
    %19 = vector.load %arg12[%c0_20, %c0_21, %c0_22, %c0_23] : memref<2x4x32x8xf32, #tpu.memory_space<vmem>>, vector<1x4x32x8xf32>
    %20 = vector.shape_cast %19 : vector<1x4x32x8xf32> to vector<4x32x8xf32>
    %c0_24 = arith.constant 0 : index
    %c0_25 = arith.constant 0 : index
    %c0_26 = arith.constant 0 : index
    %c0_27 = arith.constant 0 : index
    %21 = vector.load %arg13[%c0_24, %c0_25, %c0_26, %c0_27] : memref<2x4x1x8xf32, #tpu.memory_space<vmem>>, vector<1x4x1x8xf32>
    %22 = vector.shape_cast %21 : vector<1x4x1x8xf32> to vector<4x1x8xf32>
    %c0_28 = arith.constant 0 : index
    %c0_29 = arith.constant 0 : index
    %c0_30 = arith.constant 0 : index
    %c0_31 = arith.constant 0 : index
    %23 = vector.load %arg14[%c0_28, %c0_29, %c0_30, %c0_31] : memref<2x4x32x8xf32, #tpu.memory_space<vmem>>, vector<1x4x32x8xf32>
    %24 = vector.shape_cast %23 : vector<1x4x32x8xf32> to vector<4x32x8xf32>
    %c0_32 = arith.constant 0 : index
    %c0_33 = arith.constant 0 : index
    %c0_34 = arith.constant 0 : index
    %c0_35 = arith.constant 0 : index
    %25 = vector.load %arg15[%c0_32, %c0_33, %c0_34, %c0_35] : memref<2x4x1x8xf32, #tpu.memory_space<vmem>>, vector<1x4x1x8xf32>
    %26 = vector.shape_cast %25 : vector<1x4x1x8xf32> to vector<4x1x8xf32>
    %c0_36 = arith.constant 0 : index
    %c0_37 = arith.constant 0 : index
    %c0_38 = arith.constant 0 : index
    %c0_39 = arith.constant 0 : index
    %27 = vector.load %arg16[%c0_36, %c0_37, %c0_38, %c0_39] : memref<2x4x8x32xf32, #tpu.memory_space<vmem>>, vector<1x4x8x32xf32>
    %28 = vector.shape_cast %27 : vector<1x4x8x32xf32> to vector<4x8x32xf32>
    %c0_40 = arith.constant 0 : index
    %c0_41 = arith.constant 0 : index
    %c0_42 = arith.constant 0 : index
    %29 = vector.load %arg17[%c0_40, %c0_41, %c0_42] : memref<2x1x32xf32, #tpu.memory_space<vmem>>, vector<1x1x32xf32>
    %30 = vector.shape_cast %29 : vector<1x1x32xf32> to vector<1x32xf32>
    %31 = vector.shape_cast %14 : vector<8x32xf32> to vector<1x8x32xf32>
    %32 = vector.shape_cast %31 : vector<1x8x32xf32> to vector<1x8x32xf32>
    %33 = vector.broadcast %32 : vector<1x8x32xf32> to vector<4x8x32xf32>
    %34 = vector.shape_cast %14 : vector<8x32xf32> to vector<1x8x32xf32>
    %35 = vector.shape_cast %34 : vector<1x8x32xf32> to vector<1x8x32xf32>
    %36 = vector.broadcast %35 : vector<1x8x32xf32> to vector<4x8x32xf32>
    "tpu.trace_start"() <{level = 10 : i32, message = "hld,hdk->hlk"}> : () -> ()
    %cst_43 = arith.constant dense<0.000000e+00> : vector<4x8x8xf32>
    %37 = tpu.matmul %33, %16, %cst_43 {dimension_numbers = #tpu.dot_dimension_numbers<[2], [1], [1], [2], [0, 0, 0, 1, 1, 2], [0], [0]>} : vector<4x8x32xf32>, vector<4x32x8xf32>, vector<4x8x8xf32> -> vector<4x8x8xf32>
    "tpu.trace_stop"() : () -> ()
    %38 = vector.broadcast %18 : vector<4x1x8xf32> to vector<4x8x8xf32>
    %39 = arith.addf %37, %38 : vector<4x8x8xf32>
    "tpu.trace_start"() <{level = 10 : i32, message = "hld,hdk->hlk"}> : () -> ()
    %cst_44 = arith.constant dense<0.000000e+00> : vector<4x8x8xf32>
    %40 = tpu.matmul %36, %20, %cst_44 {dimension_numbers = #tpu.dot_dimension_numbers<[2], [1], [1], [2], [0, 0, 0, 1, 1, 2], [0], [0]>} : vector<4x8x32xf32>, vector<4x32x8xf32>, vector<4x8x8xf32> -> vector<4x8x8xf32>
    "tpu.trace_stop"() : () -> ()
    %41 = vector.broadcast %22 : vector<4x1x8xf32> to vector<4x8x8xf32>
    %42 = arith.addf %40, %41 : vector<4x8x8xf32>
    "tpu.trace_start"() <{level = 10 : i32, message = "hld,hdk->hlk"}> : () -> ()
    %cst_45 = arith.constant dense<0.000000e+00> : vector<4x8x8xf32>
    %43 = tpu.matmul %36, %24, %cst_45 {dimension_numbers = #tpu.dot_dimension_numbers<[2], [1], [1], [2], [0, 0, 0, 1, 1, 2], [0], [0]>} : vector<4x8x32xf32>, vector<4x32x8xf32>, vector<4x8x8xf32> -> vector<4x8x8xf32>
    "tpu.trace_stop"() : () -> ()
    %44 = vector.broadcast %26 : vector<4x1x8xf32> to vector<4x8x8xf32>
    %45 = arith.addf %43, %44 : vector<4x8x8xf32>
    "tpu.trace_start"() <{level = 10 : i32, message = "hqk,hmk->hqm"}> : () -> ()
    %cst_46 = arith.constant dense<0.000000e+00> : vector<4x8x8xf32>
    %46 = tpu.matmul %39, %42, %cst_46 {dimension_numbers = #tpu.dot_dimension_numbers<[2], [2], [1], [1], [0, 0, 0, 1, 1, 1], [0], [0]>} : vector<4x8x8xf32>, vector<4x8x8xf32>, vector<4x8x8xf32> -> vector<4x8x8xf32>
    "tpu.trace_stop"() : () -> ()
    %cst_47 = arith.constant 0.353553385 : f32
    %47 = vector.broadcast %cst_47 : f32 to vector<4x8x8xf32>
    %48 = arith.mulf %46, %47 : vector<4x8x8xf32>
    %49 = vector.shape_cast %5 : vector<1x8xf32> to vector<1x1x8xf32>
    %50 = vector.broadcast %49 : vector<1x1x8xf32> to vector<4x8x8xf32>
    %51 = arith.addf %48, %50 : vector<4x8x8xf32>
    %cst_48 = arith.constant dense<0xFF800000> : vector<4x8xf32>
    %52 = vector.multi_reduction <maximumf>, %51, %cst_48 [2] : vector<4x8x8xf32> to vector<4x8xf32>
    %53 = vector.shape_cast %52 : vector<4x8xf32> to vector<4x8x1xf32>
    %54 = vector.broadcast %53 : vector<4x8x1xf32> to vector<4x8x8xf32>
    %55 = arith.subf %51, %54 : vector<4x8x8xf32>
    %56 = math.exp %55 : vector<4x8x8xf32>
    %cst_49 = arith.constant dense<0.000000e+00> : vector<4x8xf32>
    %57 = vector.multi_reduction <add>, %56, %cst_49 [2] : vector<4x8x8xf32> to vector<4x8xf32>
    %58 = vector.shape_cast %57 : vector<4x8xf32> to vector<4x8x1xf32>
    %59 = tpu.reciprocal %58 {approx = true} : vector<4x8x1xf32> -> vector<4x8x1xf32>
    %60 = vector.broadcast %59 : vector<4x8x1xf32> to vector<4x8x8xf32>
    %61 = arith.mulf %56, %60 : vector<4x8x8xf32>
    "tpu.trace_start"() <{level = 10 : i32, message = "hqm,hmk->hqk"}> : () -> ()
    %cst_50 = arith.constant dense<0.000000e+00> : vector<4x8x8xf32>
    %62 = tpu.matmul %61, %45, %cst_50 {dimension_numbers = #tpu.dot_dimension_numbers<[2], [1], [1], [2], [0, 0, 0, 1, 1, 2], [0], [0]>} : vector<4x8x8xf32>, vector<4x8x8xf32>, vector<4x8x8xf32> -> vector<4x8x8xf32>
    "tpu.trace_stop"() : () -> ()
    "tpu.trace_start"() <{level = 10 : i32, message = "hqk,hkd->hqd"}> : () -> ()
    %cst_51 = arith.constant dense<0.000000e+00> : vector<4x8x32xf32>
    %63 = tpu.matmul %62, %28, %cst_51 {dimension_numbers = #tpu.dot_dimension_numbers<[2], [1], [1], [2], [0, 0, 0, 1, 1, 2], [0], [0]>} : vector<4x8x8xf32>, vector<4x8x32xf32>, vector<4x8x32xf32> -> vector<4x8x32xf32>
    "tpu.trace_stop"() : () -> ()
    %cst_52 = arith.constant dense<0.000000e+00> : vector<8x32xf32>
    %64 = vector.multi_reduction <add>, %63, %cst_52 [0] : vector<4x8x32xf32> to vector<8x32xf32>
    %65 = vector.broadcast %30 : vector<1x32xf32> to vector<8x32xf32>
    %66 = arith.addf %64, %65 : vector<8x32xf32>
    %67 = arith.addf %66, %14 : vector<8x32xf32>
    %c0_53 = arith.constant 0 : index
    %c0_54 = arith.constant 0 : index
    %c0_55 = arith.constant 0 : index
    %68 = vector.load %arg18[%c0_53, %c0_54, %c0_55] : memref<2x1x32xf32, #tpu.memory_space<vmem>>, vector<1x1x32xf32>
    %69 = vector.shape_cast %68 : vector<1x1x32xf32> to vector<1x32xf32>
    %c0_56 = arith.constant 0 : index
    %c0_57 = arith.constant 0 : index
    %c0_58 = arith.constant 0 : index
    %70 = vector.load %arg19[%c0_56, %c0_57, %c0_58] : memref<2x1x32xf32, #tpu.memory_space<vmem>>, vector<1x1x32xf32>
    %71 = vector.shape_cast %70 : vector<1x1x32xf32> to vector<1x32xf32>
    %cst_59 = arith.constant dense<0.000000e+00> : vector<8xf32>
    %72 = vector.multi_reduction <add>, %67, %cst_59 [1] : vector<8x32xf32> to vector<8xf32>
    %73 = vector.shape_cast %72 : vector<8xf32> to vector<8x1xf32>
    %cst_60 = arith.constant 3.200000e+01 : f32
    %74 = vector.broadcast %cst_60 : f32 to vector<8x1xf32>
    %75 = arith.divf %73, %74 : vector<8x1xf32>
    %76 = vector.broadcast %75 : vector<8x1xf32> to vector<8x32xf32>
    %77 = arith.subf %67, %76 : vector<8x32xf32>
    %78 = arith.mulf %77, %77 : vector<8x32xf32>
    %cst_61 = arith.constant dense<0.000000e+00> : vector<8xf32>
    %79 = vector.multi_reduction <add>, %78, %cst_61 [1] : vector<8x32xf32> to vector<8xf32>
    %80 = vector.shape_cast %79 : vector<8xf32> to vector<8x1xf32>
    %cst_62 = arith.constant 3.200000e+01 : f32
    %81 = vector.broadcast %cst_62 : f32 to vector<8x1xf32>
    %82 = arith.divf %80, %81 : vector<8x1xf32>
    %83 = vector.broadcast %75 : vector<8x1xf32> to vector<8x32xf32>
    %84 = arith.subf %67, %83 : vector<8x32xf32>
    %cst_63 = arith.constant 9.99999974E-6 : f32
    %85 = vector.broadcast %cst_63 : f32 to vector<8x1xf32>
    %86 = arith.addf %82, %85 : vector<8x1xf32>
    %87 = math.rsqrt %86 : vector<8x1xf32>
    %88 = vector.broadcast %87 : vector<8x1xf32> to vector<8x32xf32>
    %89 = arith.mulf %84, %88 : vector<8x32xf32>
    %90 = vector.broadcast %69 : vector<1x32xf32> to vector<8x32xf32>
    %91 = arith.mulf %89, %90 : vector<8x32xf32>
    %92 = vector.broadcast %71 : vector<1x32xf32> to vector<8x32xf32>
    %93 = arith.addf %91, %92 : vector<8x32xf32>
    %c0_64 = arith.constant 0 : index
    %c0_65 = arith.constant 0 : index
    %c0_66 = arith.constant 0 : index
    %94 = vector.load %arg20[%c0_64, %c0_65, %c0_66] : memref<2x32x128xf32, #tpu.memory_space<vmem>>, vector<1x32x128xf32>
    %95 = vector.shape_cast %94 : vector<1x32x128xf32> to vector<32x128xf32>
    %c0_67 = arith.constant 0 : index
    %c0_68 = arith.constant 0 : index
    %c0_69 = arith.constant 0 : index
    %96 = vector.load %arg21[%c0_67, %c0_68, %c0_69] : memref<2x1x128xf32, #tpu.memory_space<vmem>>, vector<1x1x128xf32>
    %97 = vector.shape_cast %96 : vector<1x1x128xf32> to vector<1x128xf32>
    %c0_70 = arith.constant 0 : index
    %c0_71 = arith.constant 0 : index
    %c0_72 = arith.constant 0 : index
    %98 = vector.load %arg22[%c0_70, %c0_71, %c0_72] : memref<2x128x32xf32, #tpu.memory_space<vmem>>, vector<1x128x32xf32>
    %99 = vector.shape_cast %98 : vector<1x128x32xf32> to vector<128x32xf32>
    %c0_73 = arith.constant 0 : index
    %c0_74 = arith.constant 0 : index
    %c0_75 = arith.constant 0 : index
    %100 = vector.load %arg23[%c0_73, %c0_74, %c0_75] : memref<2x1x32xf32, #tpu.memory_space<vmem>>, vector<1x1x32xf32>
    %101 = vector.shape_cast %100 : vector<1x1x32xf32> to vector<1x32xf32>
    %cst_76 = arith.constant dense<0.000000e+00> : vector<8x128xf32>
    %102 = tpu.matmul %93, %95, %cst_76 {dimension_numbers = #tpu.dot_dimension_numbers<[1], [0], [0], [1], [0, 0, 1, 1], [], []>} : vector<8x32xf32>, vector<32x128xf32>, vector<8x128xf32> -> vector<8x128xf32>
    %103 = vector.broadcast %97 : vector<1x128xf32> to vector<8x128xf32>
    %104 = arith.addf %102, %103 : vector<8x128xf32>
    %cst_77 = arith.constant 0.000000e+00 : f32
    %105 = vector.broadcast %cst_77 : f32 to vector<8x128xf32>
    %106 = arith.maximumf %104, %105 : vector<8x128xf32>
    %cst_78 = arith.constant dense<0.000000e+00> : vector<8x32xf32>
    %107 = tpu.matmul %106, %99, %cst_78 {dimension_numbers = #tpu.dot_dimension_numbers<[1], [0], [0], [1], [0, 0, 1, 1], [], []>} : vector<8x128xf32>, vector<128x32xf32>, vector<8x32xf32> -> vector<8x32xf32>
    %108 = vector.broadcast %101 : vector<1x32xf32> to vector<8x32xf32>
    %109 = arith.addf %107, %108 : vector<8x32xf32>
    %110 = arith.addf %109, %93 : vector<8x32xf32>
    %c0_79 = arith.constant 0 : index
    %c0_80 = arith.constant 0 : index
    %c0_81 = arith.constant 0 : index
    %111 = vector.load %arg24[%c0_79, %c0_80, %c0_81] : memref<2x1x32xf32, #tpu.memory_space<vmem>>, vector<1x1x32xf32>
    %112 = vector.shape_cast %111 : vector<1x1x32xf32> to vector<1x32xf32>
    %c0_82 = arith.constant 0 : index
    %c0_83 = arith.constant 0 : index
    %c0_84 = arith.constant 0 : index
    %113 = vector.load %arg25[%c0_82, %c0_83, %c0_84] : memref<2x1x32xf32, #tpu.memory_space<vmem>>, vector<1x1x32xf32>
    %114 = vector.shape_cast %113 : vector<1x1x32xf32> to vector<1x32xf32>
    %cst_85 = arith.constant dense<0.000000e+00> : vector<8xf32>
    %115 = vector.multi_reduction <add>, %110, %cst_85 [1] : vector<8x32xf32> to vector<8xf32>
    %116 = vector.shape_cast %115 : vector<8xf32> to vector<8x1xf32>
    %cst_86 = arith.constant 3.200000e+01 : f32
    %117 = vector.broadcast %cst_86 : f32 to vector<8x1xf32>
    %118 = arith.divf %116, %117 : vector<8x1xf32>
    %119 = vector.broadcast %118 : vector<8x1xf32> to vector<8x32xf32>
    %120 = arith.subf %110, %119 : vector<8x32xf32>
    %121 = arith.mulf %120, %120 : vector<8x32xf32>
    %cst_87 = arith.constant dense<0.000000e+00> : vector<8xf32>
    %122 = vector.multi_reduction <add>, %121, %cst_87 [1] : vector<8x32xf32> to vector<8xf32>
    %123 = vector.shape_cast %122 : vector<8xf32> to vector<8x1xf32>
    %cst_88 = arith.constant 3.200000e+01 : f32
    %124 = vector.broadcast %cst_88 : f32 to vector<8x1xf32>
    %125 = arith.divf %123, %124 : vector<8x1xf32>
    %126 = vector.broadcast %118 : vector<8x1xf32> to vector<8x32xf32>
    %127 = arith.subf %110, %126 : vector<8x32xf32>
    %cst_89 = arith.constant 9.99999974E-6 : f32
    %128 = vector.broadcast %cst_89 : f32 to vector<8x1xf32>
    %129 = arith.addf %125, %128 : vector<8x1xf32>
    %130 = math.rsqrt %129 : vector<8x1xf32>
    %131 = vector.broadcast %130 : vector<8x1xf32> to vector<8x32xf32>
    %132 = arith.mulf %127, %131 : vector<8x32xf32>
    %133 = vector.broadcast %112 : vector<1x32xf32> to vector<8x32xf32>
    %134 = arith.mulf %132, %133 : vector<8x32xf32>
    %135 = vector.broadcast %114 : vector<1x32xf32> to vector<8x32xf32>
    %136 = arith.addf %134, %135 : vector<8x32xf32>
    %c1 = arith.constant 1 : index
    %c0_90 = arith.constant 0 : index
    %c0_91 = arith.constant 0 : index
    %c0_92 = arith.constant 0 : index
    %137 = vector.load %arg10[%c1, %c0_90, %c0_91, %c0_92] : memref<2x4x32x8xf32, #tpu.memory_space<vmem>>, vector<1x4x32x8xf32>
    %138 = vector.shape_cast %137 : vector<1x4x32x8xf32> to vector<4x32x8xf32>
    %c1_93 = arith.constant 1 : index
    %c0_94 = arith.constant 0 : index
    %c0_95 = arith.constant 0 : index
    %c0_96 = arith.constant 0 : index
    %139 = vector.load %arg11[%c1_93, %c0_94, %c0_95, %c0_96] : memref<2x4x1x8xf32, #tpu.memory_space<vmem>>, vector<1x4x1x8xf32>
    %140 = vector.shape_cast %139 : vector<1x4x1x8xf32> to vector<4x1x8xf32>
    %c1_97 = arith.constant 1 : index
    %c0_98 = arith.constant 0 : index
    %c0_99 = arith.constant 0 : index
    %c0_100 = arith.constant 0 : index
    %141 = vector.load %arg12[%c1_97, %c0_98, %c0_99, %c0_100] : memref<2x4x32x8xf32, #tpu.memory_space<vmem>>, vector<1x4x32x8xf32>
    %142 = vector.shape_cast %141 : vector<1x4x32x8xf32> to vector<4x32x8xf32>
    %c1_101 = arith.constant 1 : index
    %c0_102 = arith.constant 0 : index
    %c0_103 = arith.constant 0 : index
    %c0_104 = arith.constant 0 : index
    %143 = vector.load %arg13[%c1_101, %c0_102, %c0_103, %c0_104] : memref<2x4x1x8xf32, #tpu.memory_space<vmem>>, vector<1x4x1x8xf32>
    %144 = vector.shape_cast %143 : vector<1x4x1x8xf32> to vector<4x1x8xf32>
    %c1_105 = arith.constant 1 : index
    %c0_106 = arith.constant 0 : index
    %c0_107 = arith.constant 0 : index
    %c0_108 = arith.constant 0 : index
    %145 = vector.load %arg14[%c1_105, %c0_106, %c0_107, %c0_108] : memref<2x4x32x8xf32, #tpu.memory_space<vmem>>, vector<1x4x32x8xf32>
    %146 = vector.shape_cast %145 : vector<1x4x32x8xf32> to vector<4x32x8xf32>
    %c1_109 = arith.constant 1 : index
    %c0_110 = arith.constant 0 : index
    %c0_111 = arith.constant 0 : index
    %c0_112 = arith.constant 0 : index
    %147 = vector.load %arg15[%c1_109, %c0_110, %c0_111, %c0_112] : memref<2x4x1x8xf32, #tpu.memory_space<vmem>>, vector<1x4x1x8xf32>
    %148 = vector.shape_cast %147 : vector<1x4x1x8xf32> to vector<4x1x8xf32>
    %c1_113 = arith.constant 1 : index
    %c0_114 = arith.constant 0 : index
    %c0_115 = arith.constant 0 : index
    %c0_116 = arith.constant 0 : index
    %149 = vector.load %arg16[%c1_113, %c0_114, %c0_115, %c0_116] : memref<2x4x8x32xf32, #tpu.memory_space<vmem>>, vector<1x4x8x32xf32>
    %150 = vector.shape_cast %149 : vector<1x4x8x32xf32> to vector<4x8x32xf32>
    %c1_117 = arith.constant 1 : index
    %c0_118 = arith.constant 0 : index
    %c0_119 = arith.constant 0 : index
    %151 = vector.load %arg17[%c1_117, %c0_118, %c0_119] : memref<2x1x32xf32, #tpu.memory_space<vmem>>, vector<1x1x32xf32>
    %152 = vector.shape_cast %151 : vector<1x1x32xf32> to vector<1x32xf32>
    %153 = vector.shape_cast %136 : vector<8x32xf32> to vector<1x8x32xf32>
    %154 = vector.shape_cast %153 : vector<1x8x32xf32> to vector<1x8x32xf32>
    %155 = vector.broadcast %154 : vector<1x8x32xf32> to vector<4x8x32xf32>
    %156 = vector.shape_cast %136 : vector<8x32xf32> to vector<1x8x32xf32>
    %157 = vector.shape_cast %156 : vector<1x8x32xf32> to vector<1x8x32xf32>
    %158 = vector.broadcast %157 : vector<1x8x32xf32> to vector<4x8x32xf32>
    "tpu.trace_start"() <{level = 10 : i32, message = "hld,hdk->hlk"}> : () -> ()
    %cst_120 = arith.constant dense<0.000000e+00> : vector<4x8x8xf32>
    %159 = tpu.matmul %155, %138, %cst_120 {dimension_numbers = #tpu.dot_dimension_numbers<[2], [1], [1], [2], [0, 0, 0, 1, 1, 2], [0], [0]>} : vector<4x8x32xf32>, vector<4x32x8xf32>, vector<4x8x8xf32> -> vector<4x8x8xf32>
    "tpu.trace_stop"() : () -> ()
    %160 = vector.broadcast %140 : vector<4x1x8xf32> to vector<4x8x8xf32>
    %161 = arith.addf %159, %160 : vector<4x8x8xf32>
    "tpu.trace_start"() <{level = 10 : i32, message = "hld,hdk->hlk"}> : () -> ()
    %cst_121 = arith.constant dense<0.000000e+00> : vector<4x8x8xf32>
    %162 = tpu.matmul %158, %142, %cst_121 {dimension_numbers = #tpu.dot_dimension_numbers<[2], [1], [1], [2], [0, 0, 0, 1, 1, 2], [0], [0]>} : vector<4x8x32xf32>, vector<4x32x8xf32>, vector<4x8x8xf32> -> vector<4x8x8xf32>
    "tpu.trace_stop"() : () -> ()
    %163 = vector.broadcast %144 : vector<4x1x8xf32> to vector<4x8x8xf32>
    %164 = arith.addf %162, %163 : vector<4x8x8xf32>
    "tpu.trace_start"() <{level = 10 : i32, message = "hld,hdk->hlk"}> : () -> ()
    %cst_122 = arith.constant dense<0.000000e+00> : vector<4x8x8xf32>
    %165 = tpu.matmul %158, %146, %cst_122 {dimension_numbers = #tpu.dot_dimension_numbers<[2], [1], [1], [2], [0, 0, 0, 1, 1, 2], [0], [0]>} : vector<4x8x32xf32>, vector<4x32x8xf32>, vector<4x8x8xf32> -> vector<4x8x8xf32>
    "tpu.trace_stop"() : () -> ()
    %166 = vector.broadcast %148 : vector<4x1x8xf32> to vector<4x8x8xf32>
    %167 = arith.addf %165, %166 : vector<4x8x8xf32>
    "tpu.trace_start"() <{level = 10 : i32, message = "hqk,hmk->hqm"}> : () -> ()
    %cst_123 = arith.constant dense<0.000000e+00> : vector<4x8x8xf32>
    %168 = tpu.matmul %161, %164, %cst_123 {dimension_numbers = #tpu.dot_dimension_numbers<[2], [2], [1], [1], [0, 0, 0, 1, 1, 1], [0], [0]>} : vector<4x8x8xf32>, vector<4x8x8xf32>, vector<4x8x8xf32> -> vector<4x8x8xf32>
    "tpu.trace_stop"() : () -> ()
    %cst_124 = arith.constant 0.353553385 : f32
    %169 = vector.broadcast %cst_124 : f32 to vector<4x8x8xf32>
    %170 = arith.mulf %168, %169 : vector<4x8x8xf32>
    %171 = vector.shape_cast %5 : vector<1x8xf32> to vector<1x1x8xf32>
    %172 = vector.broadcast %171 : vector<1x1x8xf32> to vector<4x8x8xf32>
    %173 = arith.addf %170, %172 : vector<4x8x8xf32>
    %cst_125 = arith.constant dense<0xFF800000> : vector<4x8xf32>
    %174 = vector.multi_reduction <maximumf>, %173, %cst_125 [2] : vector<4x8x8xf32> to vector<4x8xf32>
    %175 = vector.shape_cast %174 : vector<4x8xf32> to vector<4x8x1xf32>
    %176 = vector.broadcast %175 : vector<4x8x1xf32> to vector<4x8x8xf32>
    %177 = arith.subf %173, %176 : vector<4x8x8xf32>
    %178 = math.exp %177 : vector<4x8x8xf32>
    %cst_126 = arith.constant dense<0.000000e+00> : vector<4x8xf32>
    %179 = vector.multi_reduction <add>, %178, %cst_126 [2] : vector<4x8x8xf32> to vector<4x8xf32>
    %180 = vector.shape_cast %179 : vector<4x8xf32> to vector<4x8x1xf32>
    %181 = tpu.reciprocal %180 {approx = true} : vector<4x8x1xf32> -> vector<4x8x1xf32>
    %182 = vector.broadcast %181 : vector<4x8x1xf32> to vector<4x8x8xf32>
    %183 = arith.mulf %178, %182 : vector<4x8x8xf32>
    "tpu.trace_start"() <{level = 10 : i32, message = "hqm,hmk->hqk"}> : () -> ()
    %cst_127 = arith.constant dense<0.000000e+00> : vector<4x8x8xf32>
    %184 = tpu.matmul %183, %167, %cst_127 {dimension_numbers = #tpu.dot_dimension_numbers<[2], [1], [1], [2], [0, 0, 0, 1, 1, 2], [0], [0]>} : vector<4x8x8xf32>, vector<4x8x8xf32>, vector<4x8x8xf32> -> vector<4x8x8xf32>
    "tpu.trace_stop"() : () -> ()
    "tpu.trace_start"() <{level = 10 : i32, message = "hqk,hkd->hqd"}> : () -> ()
    %cst_128 = arith.constant dense<0.000000e+00> : vector<4x8x32xf32>
    %185 = tpu.matmul %184, %150, %cst_128 {dimension_numbers = #tpu.dot_dimension_numbers<[2], [1], [1], [2], [0, 0, 0, 1, 1, 2], [0], [0]>} : vector<4x8x8xf32>, vector<4x8x32xf32>, vector<4x8x32xf32> -> vector<4x8x32xf32>
    "tpu.trace_stop"() : () -> ()
    %cst_129 = arith.constant dense<0.000000e+00> : vector<8x32xf32>
    %186 = vector.multi_reduction <add>, %185, %cst_129 [0] : vector<4x8x32xf32> to vector<8x32xf32>
    %187 = vector.broadcast %152 : vector<1x32xf32> to vector<8x32xf32>
    %188 = arith.addf %186, %187 : vector<8x32xf32>
    %189 = arith.addf %188, %136 : vector<8x32xf32>
    %c1_130 = arith.constant 1 : index
    %c0_131 = arith.constant 0 : index
    %c0_132 = arith.constant 0 : index
    %190 = vector.load %arg18[%c1_130, %c0_131, %c0_132] : memref<2x1x32xf32, #tpu.memory_space<vmem>>, vector<1x1x32xf32>
    %191 = vector.shape_cast %190 : vector<1x1x32xf32> to vector<1x32xf32>
    %c1_133 = arith.constant 1 : index
    %c0_134 = arith.constant 0 : index
    %c0_135 = arith.constant 0 : index
    %192 = vector.load %arg19[%c1_133, %c0_134, %c0_135] : memref<2x1x32xf32, #tpu.memory_space<vmem>>, vector<1x1x32xf32>
    %193 = vector.shape_cast %192 : vector<1x1x32xf32> to vector<1x32xf32>
    %cst_136 = arith.constant dense<0.000000e+00> : vector<8xf32>
    %194 = vector.multi_reduction <add>, %189, %cst_136 [1] : vector<8x32xf32> to vector<8xf32>
    %195 = vector.shape_cast %194 : vector<8xf32> to vector<8x1xf32>
    %cst_137 = arith.constant 3.200000e+01 : f32
    %196 = vector.broadcast %cst_137 : f32 to vector<8x1xf32>
    %197 = arith.divf %195, %196 : vector<8x1xf32>
    %198 = vector.broadcast %197 : vector<8x1xf32> to vector<8x32xf32>
    %199 = arith.subf %189, %198 : vector<8x32xf32>
    %200 = arith.mulf %199, %199 : vector<8x32xf32>
    %cst_138 = arith.constant dense<0.000000e+00> : vector<8xf32>
    %201 = vector.multi_reduction <add>, %200, %cst_138 [1] : vector<8x32xf32> to vector<8xf32>
    %202 = vector.shape_cast %201 : vector<8xf32> to vector<8x1xf32>
    %cst_139 = arith.constant 3.200000e+01 : f32
    %203 = vector.broadcast %cst_139 : f32 to vector<8x1xf32>
    %204 = arith.divf %202, %203 : vector<8x1xf32>
    %205 = vector.broadcast %197 : vector<8x1xf32> to vector<8x32xf32>
    %206 = arith.subf %189, %205 : vector<8x32xf32>
    %cst_140 = arith.constant 9.99999974E-6 : f32
    %207 = vector.broadcast %cst_140 : f32 to vector<8x1xf32>
    %208 = arith.addf %204, %207 : vector<8x1xf32>
    %209 = math.rsqrt %208 : vector<8x1xf32>
    %210 = vector.broadcast %209 : vector<8x1xf32> to vector<8x32xf32>
    %211 = arith.mulf %206, %210 : vector<8x32xf32>
    %212 = vector.broadcast %191 : vector<1x32xf32> to vector<8x32xf32>
    %213 = arith.mulf %211, %212 : vector<8x32xf32>
    %214 = vector.broadcast %193 : vector<1x32xf32> to vector<8x32xf32>
    %215 = arith.addf %213, %214 : vector<8x32xf32>
    %c1_141 = arith.constant 1 : index
    %c0_142 = arith.constant 0 : index
    %c0_143 = arith.constant 0 : index
    %216 = vector.load %arg20[%c1_141, %c0_142, %c0_143] : memref<2x32x128xf32, #tpu.memory_space<vmem>>, vector<1x32x128xf32>
    %217 = vector.shape_cast %216 : vector<1x32x128xf32> to vector<32x128xf32>
    %c1_144 = arith.constant 1 : index
    %c0_145 = arith.constant 0 : index
    %c0_146 = arith.constant 0 : index
    %218 = vector.load %arg21[%c1_144, %c0_145, %c0_146] : memref<2x1x128xf32, #tpu.memory_space<vmem>>, vector<1x1x128xf32>
    %219 = vector.shape_cast %218 : vector<1x1x128xf32> to vector<1x128xf32>
    %c1_147 = arith.constant 1 : index
    %c0_148 = arith.constant 0 : index
    %c0_149 = arith.constant 0 : index
    %220 = vector.load %arg22[%c1_147, %c0_148, %c0_149] : memref<2x128x32xf32, #tpu.memory_space<vmem>>, vector<1x128x32xf32>
    %221 = vector.shape_cast %220 : vector<1x128x32xf32> to vector<128x32xf32>
    %c1_150 = arith.constant 1 : index
    %c0_151 = arith.constant 0 : index
    %c0_152 = arith.constant 0 : index
    %222 = vector.load %arg23[%c1_150, %c0_151, %c0_152] : memref<2x1x32xf32, #tpu.memory_space<vmem>>, vector<1x1x32xf32>
    %223 = vector.shape_cast %222 : vector<1x1x32xf32> to vector<1x32xf32>
    %cst_153 = arith.constant dense<0.000000e+00> : vector<8x128xf32>
    %224 = tpu.matmul %215, %217, %cst_153 {dimension_numbers = #tpu.dot_dimension_numbers<[1], [0], [0], [1], [0, 0, 1, 1], [], []>} : vector<8x32xf32>, vector<32x128xf32>, vector<8x128xf32> -> vector<8x128xf32>
    %225 = vector.broadcast %219 : vector<1x128xf32> to vector<8x128xf32>
    %226 = arith.addf %224, %225 : vector<8x128xf32>
    %cst_154 = arith.constant 0.000000e+00 : f32
    %227 = vector.broadcast %cst_154 : f32 to vector<8x128xf32>
    %228 = arith.maximumf %226, %227 : vector<8x128xf32>
    %cst_155 = arith.constant dense<0.000000e+00> : vector<8x32xf32>
    %229 = tpu.matmul %228, %221, %cst_155 {dimension_numbers = #tpu.dot_dimension_numbers<[1], [0], [0], [1], [0, 0, 1, 1], [], []>} : vector<8x128xf32>, vector<128x32xf32>, vector<8x32xf32> -> vector<8x32xf32>
    %230 = vector.broadcast %223 : vector<1x32xf32> to vector<8x32xf32>
    %231 = arith.addf %229, %230 : vector<8x32xf32>
    %232 = arith.addf %231, %215 : vector<8x32xf32>
    %c1_156 = arith.constant 1 : index
    %c0_157 = arith.constant 0 : index
    %c0_158 = arith.constant 0 : index
    %233 = vector.load %arg24[%c1_156, %c0_157, %c0_158] : memref<2x1x32xf32, #tpu.memory_space<vmem>>, vector<1x1x32xf32>
    %234 = vector.shape_cast %233 : vector<1x1x32xf32> to vector<1x32xf32>
    %c1_159 = arith.constant 1 : index
    %c0_160 = arith.constant 0 : index
    %c0_161 = arith.constant 0 : index
    %235 = vector.load %arg25[%c1_159, %c0_160, %c0_161] : memref<2x1x32xf32, #tpu.memory_space<vmem>>, vector<1x1x32xf32>
    %236 = vector.shape_cast %235 : vector<1x1x32xf32> to vector<1x32xf32>
    %cst_162 = arith.constant dense<0.000000e+00> : vector<8xf32>
    %237 = vector.multi_reduction <add>, %232, %cst_162 [1] : vector<8x32xf32> to vector<8xf32>
    %238 = vector.shape_cast %237 : vector<8xf32> to vector<8x1xf32>
    %cst_163 = arith.constant 3.200000e+01 : f32
    %239 = vector.broadcast %cst_163 : f32 to vector<8x1xf32>
    %240 = arith.divf %238, %239 : vector<8x1xf32>
    %241 = vector.broadcast %240 : vector<8x1xf32> to vector<8x32xf32>
    %242 = arith.subf %232, %241 : vector<8x32xf32>
    %243 = arith.mulf %242, %242 : vector<8x32xf32>
    %cst_164 = arith.constant dense<0.000000e+00> : vector<8xf32>
    %244 = vector.multi_reduction <add>, %243, %cst_164 [1] : vector<8x32xf32> to vector<8xf32>
    %245 = vector.shape_cast %244 : vector<8xf32> to vector<8x1xf32>
    %cst_165 = arith.constant 3.200000e+01 : f32
    %246 = vector.broadcast %cst_165 : f32 to vector<8x1xf32>
    %247 = arith.divf %245, %246 : vector<8x1xf32>
    %248 = vector.broadcast %240 : vector<8x1xf32> to vector<8x32xf32>
    %249 = arith.subf %232, %248 : vector<8x32xf32>
    %cst_166 = arith.constant 9.99999974E-6 : f32
    %250 = vector.broadcast %cst_166 : f32 to vector<8x1xf32>
    %251 = arith.addf %247, %250 : vector<8x1xf32>
    %252 = math.rsqrt %251 : vector<8x1xf32>
    %253 = vector.broadcast %252 : vector<8x1xf32> to vector<8x32xf32>
    %254 = arith.mulf %249, %253 : vector<8x32xf32>
    %255 = vector.broadcast %234 : vector<1x32xf32> to vector<8x32xf32>
    %256 = arith.mulf %254, %255 : vector<8x32xf32>
    %257 = vector.broadcast %236 : vector<1x32xf32> to vector<8x32xf32>
    %258 = arith.addf %256, %257 : vector<8x32xf32>
    %259 = tpu.iota {dimensions = array<i32: 1>} : vector<8x128xi32>
    %260 = vector.broadcast %3 : vector<8x1xi32> to vector<8x128xi32>
    %261 = arith.cmpi eq, %260, %259 : vector<8x128xi32>
    %262 = arith.extui %261 : vector<8x128xi1> to vector<8x128xi32>
    %263 = arith.sitofp %262 : vector<8x128xi32> to vector<8x128xf32>
    %c0_167 = arith.constant 0 : index
    %c0_168 = arith.constant 0 : index
    %264 = vector.load %arg6[%c0_167, %c0_168] : memref<128x32xf32, #tpu.memory_space<vmem>>, vector<128x32xf32>
    %cst_169 = arith.constant dense<0.000000e+00> : vector<8x32xf32>
    %265 = tpu.matmul %263, %264, %cst_169 {dimension_numbers = #tpu.dot_dimension_numbers<[1], [0], [0], [1], [0, 0, 1, 1], [], []>} : vector<8x128xf32>, vector<128x32xf32>, vector<8x32xf32> -> vector<8x32xf32>
    %c0_170 = arith.constant 0 : index
    %c0_171 = arith.constant 0 : index
    %266 = vector.load %arg7[%c0_170, %c0_171] : memref<8x32xf32, #tpu.memory_space<vmem>>, vector<8x32xf32>
    %267 = arith.addf %265, %266 : vector<8x32xf32>
    %268 = tpu.iota {dimensions = array<i32: 0>} : vector<8x8xi32>
    %269 = tpu.iota {dimensions = array<i32: 1>} : vector<8x8xi32>
    %270 = arith.cmpi sge, %268, %269 : vector<8x8xi32>
    %cst_172 = arith.constant 0.000000e+00 : f32
    %cst_173 = arith.constant -1.000000e+09 : f32
    %271 = vector.broadcast %cst_172 : f32 to vector<8x8xf32>
    %272 = vector.broadcast %cst_173 : f32 to vector<8x8xf32>
    %273 = arith.select %270, %271, %272 : vector<8x8xi1>, vector<8x8xf32>
    %c0_174 = arith.constant 0 : index
    %c0_175 = arith.constant 0 : index
    %c0_176 = arith.constant 0 : index
    %c0_177 = arith.constant 0 : index
    %274 = vector.load %arg26[%c0_174, %c0_175, %c0_176, %c0_177] : memref<2x4x32x8xf32, #tpu.memory_space<vmem>>, vector<1x4x32x8xf32>
    %275 = vector.shape_cast %274 : vector<1x4x32x8xf32> to vector<4x32x8xf32>
    %c0_178 = arith.constant 0 : index
    %c0_179 = arith.constant 0 : index
    %c0_180 = arith.constant 0 : index
    %c0_181 = arith.constant 0 : index
    %276 = vector.load %arg27[%c0_178, %c0_179, %c0_180, %c0_181] : memref<2x4x1x8xf32, #tpu.memory_space<vmem>>, vector<1x4x1x8xf32>
    %277 = vector.shape_cast %276 : vector<1x4x1x8xf32> to vector<4x1x8xf32>
    %c0_182 = arith.constant 0 : index
    %c0_183 = arith.constant 0 : index
    %c0_184 = arith.constant 0 : index
    %c0_185 = arith.constant 0 : index
    %278 = vector.load %arg28[%c0_182, %c0_183, %c0_184, %c0_185] : memref<2x4x32x8xf32, #tpu.memory_space<vmem>>, vector<1x4x32x8xf32>
    %279 = vector.shape_cast %278 : vector<1x4x32x8xf32> to vector<4x32x8xf32>
    %c0_186 = arith.constant 0 : index
    %c0_187 = arith.constant 0 : index
    %c0_188 = arith.constant 0 : index
    %c0_189 = arith.constant 0 : index
    %280 = vector.load %arg29[%c0_186, %c0_187, %c0_188, %c0_189] : memref<2x4x1x8xf32, #tpu.memory_space<vmem>>, vector<1x4x1x8xf32>
    %281 = vector.shape_cast %280 : vector<1x4x1x8xf32> to vector<4x1x8xf32>
    %c0_190 = arith.constant 0 : index
    %c0_191 = arith.constant 0 : index
    %c0_192 = arith.constant 0 : index
    %c0_193 = arith.constant 0 : index
    %282 = vector.load %arg30[%c0_190, %c0_191, %c0_192, %c0_193] : memref<2x4x32x8xf32, #tpu.memory_space<vmem>>, vector<1x4x32x8xf32>
    %283 = vector.shape_cast %282 : vector<1x4x32x8xf32> to vector<4x32x8xf32>
    %c0_194 = arith.constant 0 : index
    %c0_195 = arith.constant 0 : index
    %c0_196 = arith.constant 0 : index
    %c0_197 = arith.constant 0 : index
    %284 = vector.load %arg31[%c0_194, %c0_195, %c0_196, %c0_197] : memref<2x4x1x8xf32, #tpu.memory_space<vmem>>, vector<1x4x1x8xf32>
    %285 = vector.shape_cast %284 : vector<1x4x1x8xf32> to vector<4x1x8xf32>
    %c0_198 = arith.constant 0 : index
    %c0_199 = arith.constant 0 : index
    %c0_200 = arith.constant 0 : index
    %c0_201 = arith.constant 0 : index
    %286 = vector.load %arg32[%c0_198, %c0_199, %c0_200, %c0_201] : memref<2x4x8x32xf32, #tpu.memory_space<vmem>>, vector<1x4x8x32xf32>
    %287 = vector.shape_cast %286 : vector<1x4x8x32xf32> to vector<4x8x32xf32>
    %c0_202 = arith.constant 0 : index
    %c0_203 = arith.constant 0 : index
    %c0_204 = arith.constant 0 : index
    %288 = vector.load %arg33[%c0_202, %c0_203, %c0_204] : memref<2x1x32xf32, #tpu.memory_space<vmem>>, vector<1x1x32xf32>
    %289 = vector.shape_cast %288 : vector<1x1x32xf32> to vector<1x32xf32>
    %290 = vector.shape_cast %267 : vector<8x32xf32> to vector<1x8x32xf32>
    %291 = vector.shape_cast %290 : vector<1x8x32xf32> to vector<1x8x32xf32>
    %292 = vector.broadcast %291 : vector<1x8x32xf32> to vector<4x8x32xf32>
    %293 = vector.shape_cast %267 : vector<8x32xf32> to vector<1x8x32xf32>
    %294 = vector.shape_cast %293 : vector<1x8x32xf32> to vector<1x8x32xf32>
    %295 = vector.broadcast %294 : vector<1x8x32xf32> to vector<4x8x32xf32>
    "tpu.trace_start"() <{level = 10 : i32, message = "hld,hdk->hlk"}> : () -> ()
    %cst_205 = arith.constant dense<0.000000e+00> : vector<4x8x8xf32>
    %296 = tpu.matmul %292, %275, %cst_205 {dimension_numbers = #tpu.dot_dimension_numbers<[2], [1], [1], [2], [0, 0, 0, 1, 1, 2], [0], [0]>} : vector<4x8x32xf32>, vector<4x32x8xf32>, vector<4x8x8xf32> -> vector<4x8x8xf32>
    "tpu.trace_stop"() : () -> ()
    %297 = vector.broadcast %277 : vector<4x1x8xf32> to vector<4x8x8xf32>
    %298 = arith.addf %296, %297 : vector<4x8x8xf32>
    "tpu.trace_start"() <{level = 10 : i32, message = "hld,hdk->hlk"}> : () -> ()
    %cst_206 = arith.constant dense<0.000000e+00> : vector<4x8x8xf32>
    %299 = tpu.matmul %295, %279, %cst_206 {dimension_numbers = #tpu.dot_dimension_numbers<[2], [1], [1], [2], [0, 0, 0, 1, 1, 2], [0], [0]>} : vector<4x8x32xf32>, vector<4x32x8xf32>, vector<4x8x8xf32> -> vector<4x8x8xf32>
    "tpu.trace_stop"() : () -> ()
    %300 = vector.broadcast %281 : vector<4x1x8xf32> to vector<4x8x8xf32>
    %301 = arith.addf %299, %300 : vector<4x8x8xf32>
    "tpu.trace_start"() <{level = 10 : i32, message = "hld,hdk->hlk"}> : () -> ()
    %cst_207 = arith.constant dense<0.000000e+00> : vector<4x8x8xf32>
    %302 = tpu.matmul %295, %283, %cst_207 {dimension_numbers = #tpu.dot_dimension_numbers<[2], [1], [1], [2], [0, 0, 0, 1, 1, 2], [0], [0]>} : vector<4x8x32xf32>, vector<4x32x8xf32>, vector<4x8x8xf32> -> vector<4x8x8xf32>
    "tpu.trace_stop"() : () -> ()
    %303 = vector.broadcast %285 : vector<4x1x8xf32> to vector<4x8x8xf32>
    %304 = arith.addf %302, %303 : vector<4x8x8xf32>
    "tpu.trace_start"() <{level = 10 : i32, message = "hqk,hmk->hqm"}> : () -> ()
    %cst_208 = arith.constant dense<0.000000e+00> : vector<4x8x8xf32>
    %305 = tpu.matmul %298, %301, %cst_208 {dimension_numbers = #tpu.dot_dimension_numbers<[2], [2], [1], [1], [0, 0, 0, 1, 1, 1], [0], [0]>} : vector<4x8x8xf32>, vector<4x8x8xf32>, vector<4x8x8xf32> -> vector<4x8x8xf32>
    "tpu.trace_stop"() : () -> ()
    %cst_209 = arith.constant 0.353553385 : f32
    %306 = vector.broadcast %cst_209 : f32 to vector<4x8x8xf32>
    %307 = arith.mulf %305, %306 : vector<4x8x8xf32>
    %308 = vector.shape_cast %273 : vector<8x8xf32> to vector<1x8x8xf32>
    %309 = vector.broadcast %308 : vector<1x8x8xf32> to vector<4x8x8xf32>
    %310 = arith.addf %307, %309 : vector<4x8x8xf32>
    %cst_210 = arith.constant dense<0xFF800000> : vector<4x8xf32>
    %311 = vector.multi_reduction <maximumf>, %310, %cst_210 [2] : vector<4x8x8xf32> to vector<4x8xf32>
    %312 = vector.shape_cast %311 : vector<4x8xf32> to vector<4x8x1xf32>
    %313 = vector.broadcast %312 : vector<4x8x1xf32> to vector<4x8x8xf32>
    %314 = arith.subf %310, %313 : vector<4x8x8xf32>
    %315 = math.exp %314 : vector<4x8x8xf32>
    %cst_211 = arith.constant dense<0.000000e+00> : vector<4x8xf32>
    %316 = vector.multi_reduction <add>, %315, %cst_211 [2] : vector<4x8x8xf32> to vector<4x8xf32>
    %317 = vector.shape_cast %316 : vector<4x8xf32> to vector<4x8x1xf32>
    %318 = tpu.reciprocal %317 {approx = true} : vector<4x8x1xf32> -> vector<4x8x1xf32>
    %319 = vector.broadcast %318 : vector<4x8x1xf32> to vector<4x8x8xf32>
    %320 = arith.mulf %315, %319 : vector<4x8x8xf32>
    "tpu.trace_start"() <{level = 10 : i32, message = "hqm,hmk->hqk"}> : () -> ()
    %cst_212 = arith.constant dense<0.000000e+00> : vector<4x8x8xf32>
    %321 = tpu.matmul %320, %304, %cst_212 {dimension_numbers = #tpu.dot_dimension_numbers<[2], [1], [1], [2], [0, 0, 0, 1, 1, 2], [0], [0]>} : vector<4x8x8xf32>, vector<4x8x8xf32>, vector<4x8x8xf32> -> vector<4x8x8xf32>
    "tpu.trace_stop"() : () -> ()
    "tpu.trace_start"() <{level = 10 : i32, message = "hqk,hkd->hqd"}> : () -> ()
    %cst_213 = arith.constant dense<0.000000e+00> : vector<4x8x32xf32>
    %322 = tpu.matmul %321, %287, %cst_213 {dimension_numbers = #tpu.dot_dimension_numbers<[2], [1], [1], [2], [0, 0, 0, 1, 1, 2], [0], [0]>} : vector<4x8x8xf32>, vector<4x8x32xf32>, vector<4x8x32xf32> -> vector<4x8x32xf32>
    "tpu.trace_stop"() : () -> ()
    %cst_214 = arith.constant dense<0.000000e+00> : vector<8x32xf32>
    %323 = vector.multi_reduction <add>, %322, %cst_214 [0] : vector<4x8x32xf32> to vector<8x32xf32>
    %324 = vector.broadcast %289 : vector<1x32xf32> to vector<8x32xf32>
    %325 = arith.addf %323, %324 : vector<8x32xf32>
    %326 = arith.addf %325, %267 : vector<8x32xf32>
    %c0_215 = arith.constant 0 : index
    %c0_216 = arith.constant 0 : index
    %c0_217 = arith.constant 0 : index
    %327 = vector.load %arg34[%c0_215, %c0_216, %c0_217] : memref<2x1x32xf32, #tpu.memory_space<vmem>>, vector<1x1x32xf32>
    %328 = vector.shape_cast %327 : vector<1x1x32xf32> to vector<1x32xf32>
    %c0_218 = arith.constant 0 : index
    %c0_219 = arith.constant 0 : index
    %c0_220 = arith.constant 0 : index
    %329 = vector.load %arg35[%c0_218, %c0_219, %c0_220] : memref<2x1x32xf32, #tpu.memory_space<vmem>>, vector<1x1x32xf32>
    %330 = vector.shape_cast %329 : vector<1x1x32xf32> to vector<1x32xf32>
    %cst_221 = arith.constant dense<0.000000e+00> : vector<8xf32>
    %331 = vector.multi_reduction <add>, %326, %cst_221 [1] : vector<8x32xf32> to vector<8xf32>
    %332 = vector.shape_cast %331 : vector<8xf32> to vector<8x1xf32>
    %cst_222 = arith.constant 3.200000e+01 : f32
    %333 = vector.broadcast %cst_222 : f32 to vector<8x1xf32>
    %334 = arith.divf %332, %333 : vector<8x1xf32>
    %335 = vector.broadcast %334 : vector<8x1xf32> to vector<8x32xf32>
    %336 = arith.subf %326, %335 : vector<8x32xf32>
    %337 = arith.mulf %336, %336 : vector<8x32xf32>
    %cst_223 = arith.constant dense<0.000000e+00> : vector<8xf32>
    %338 = vector.multi_reduction <add>, %337, %cst_223 [1] : vector<8x32xf32> to vector<8xf32>
    %339 = vector.shape_cast %338 : vector<8xf32> to vector<8x1xf32>
    %cst_224 = arith.constant 3.200000e+01 : f32
    %340 = vector.broadcast %cst_224 : f32 to vector<8x1xf32>
    %341 = arith.divf %339, %340 : vector<8x1xf32>
    %342 = vector.broadcast %334 : vector<8x1xf32> to vector<8x32xf32>
    %343 = arith.subf %326, %342 : vector<8x32xf32>
    %cst_225 = arith.constant 9.99999974E-6 : f32
    %344 = vector.broadcast %cst_225 : f32 to vector<8x1xf32>
    %345 = arith.addf %341, %344 : vector<8x1xf32>
    %346 = math.rsqrt %345 : vector<8x1xf32>
    %347 = vector.broadcast %346 : vector<8x1xf32> to vector<8x32xf32>
    %348 = arith.mulf %343, %347 : vector<8x32xf32>
    %349 = vector.broadcast %328 : vector<1x32xf32> to vector<8x32xf32>
    %350 = arith.mulf %348, %349 : vector<8x32xf32>
    %351 = vector.broadcast %330 : vector<1x32xf32> to vector<8x32xf32>
    %352 = arith.addf %350, %351 : vector<8x32xf32>
    %c0_226 = arith.constant 0 : index
    %c0_227 = arith.constant 0 : index
    %c0_228 = arith.constant 0 : index
    %c0_229 = arith.constant 0 : index
    %353 = vector.load %arg36[%c0_226, %c0_227, %c0_228, %c0_229] : memref<2x4x32x8xf32, #tpu.memory_space<vmem>>, vector<1x4x32x8xf32>
    %354 = vector.shape_cast %353 : vector<1x4x32x8xf32> to vector<4x32x8xf32>
    %c0_230 = arith.constant 0 : index
    %c0_231 = arith.constant 0 : index
    %c0_232 = arith.constant 0 : index
    %c0_233 = arith.constant 0 : index
    %355 = vector.load %arg37[%c0_230, %c0_231, %c0_232, %c0_233] : memref<2x4x1x8xf32, #tpu.memory_space<vmem>>, vector<1x4x1x8xf32>
    %356 = vector.shape_cast %355 : vector<1x4x1x8xf32> to vector<4x1x8xf32>
    %c0_234 = arith.constant 0 : index
    %c0_235 = arith.constant 0 : index
    %c0_236 = arith.constant 0 : index
    %c0_237 = arith.constant 0 : index
    %357 = vector.load %arg38[%c0_234, %c0_235, %c0_236, %c0_237] : memref<2x4x32x8xf32, #tpu.memory_space<vmem>>, vector<1x4x32x8xf32>
    %358 = vector.shape_cast %357 : vector<1x4x32x8xf32> to vector<4x32x8xf32>
    %c0_238 = arith.constant 0 : index
    %c0_239 = arith.constant 0 : index
    %c0_240 = arith.constant 0 : index
    %c0_241 = arith.constant 0 : index
    %359 = vector.load %arg39[%c0_238, %c0_239, %c0_240, %c0_241] : memref<2x4x1x8xf32, #tpu.memory_space<vmem>>, vector<1x4x1x8xf32>
    %360 = vector.shape_cast %359 : vector<1x4x1x8xf32> to vector<4x1x8xf32>
    %c0_242 = arith.constant 0 : index
    %c0_243 = arith.constant 0 : index
    %c0_244 = arith.constant 0 : index
    %c0_245 = arith.constant 0 : index
    %361 = vector.load %arg40[%c0_242, %c0_243, %c0_244, %c0_245] : memref<2x4x32x8xf32, #tpu.memory_space<vmem>>, vector<1x4x32x8xf32>
    %362 = vector.shape_cast %361 : vector<1x4x32x8xf32> to vector<4x32x8xf32>
    %c0_246 = arith.constant 0 : index
    %c0_247 = arith.constant 0 : index
    %c0_248 = arith.constant 0 : index
    %c0_249 = arith.constant 0 : index
    %363 = vector.load %arg41[%c0_246, %c0_247, %c0_248, %c0_249] : memref<2x4x1x8xf32, #tpu.memory_space<vmem>>, vector<1x4x1x8xf32>
    %364 = vector.shape_cast %363 : vector<1x4x1x8xf32> to vector<4x1x8xf32>
    %c0_250 = arith.constant 0 : index
    %c0_251 = arith.constant 0 : index
    %c0_252 = arith.constant 0 : index
    %c0_253 = arith.constant 0 : index
    %365 = vector.load %arg42[%c0_250, %c0_251, %c0_252, %c0_253] : memref<2x4x8x32xf32, #tpu.memory_space<vmem>>, vector<1x4x8x32xf32>
    %366 = vector.shape_cast %365 : vector<1x4x8x32xf32> to vector<4x8x32xf32>
    %c0_254 = arith.constant 0 : index
    %c0_255 = arith.constant 0 : index
    %c0_256 = arith.constant 0 : index
    %367 = vector.load %arg43[%c0_254, %c0_255, %c0_256] : memref<2x1x32xf32, #tpu.memory_space<vmem>>, vector<1x1x32xf32>
    %368 = vector.shape_cast %367 : vector<1x1x32xf32> to vector<1x32xf32>
    %369 = vector.shape_cast %352 : vector<8x32xf32> to vector<1x8x32xf32>
    %370 = vector.shape_cast %369 : vector<1x8x32xf32> to vector<1x8x32xf32>
    %371 = vector.broadcast %370 : vector<1x8x32xf32> to vector<4x8x32xf32>
    %372 = vector.shape_cast %258 : vector<8x32xf32> to vector<1x8x32xf32>
    %373 = vector.shape_cast %372 : vector<1x8x32xf32> to vector<1x8x32xf32>
    %374 = vector.broadcast %373 : vector<1x8x32xf32> to vector<4x8x32xf32>
    "tpu.trace_start"() <{level = 10 : i32, message = "hld,hdk->hlk"}> : () -> ()
    %cst_257 = arith.constant dense<0.000000e+00> : vector<4x8x8xf32>
    %375 = tpu.matmul %371, %354, %cst_257 {dimension_numbers = #tpu.dot_dimension_numbers<[2], [1], [1], [2], [0, 0, 0, 1, 1, 2], [0], [0]>} : vector<4x8x32xf32>, vector<4x32x8xf32>, vector<4x8x8xf32> -> vector<4x8x8xf32>
    "tpu.trace_stop"() : () -> ()
    %376 = vector.broadcast %356 : vector<4x1x8xf32> to vector<4x8x8xf32>
    %377 = arith.addf %375, %376 : vector<4x8x8xf32>
    "tpu.trace_start"() <{level = 10 : i32, message = "hld,hdk->hlk"}> : () -> ()
    %cst_258 = arith.constant dense<0.000000e+00> : vector<4x8x8xf32>
    %378 = tpu.matmul %374, %358, %cst_258 {dimension_numbers = #tpu.dot_dimension_numbers<[2], [1], [1], [2], [0, 0, 0, 1, 1, 2], [0], [0]>} : vector<4x8x32xf32>, vector<4x32x8xf32>, vector<4x8x8xf32> -> vector<4x8x8xf32>
    "tpu.trace_stop"() : () -> ()
    %379 = vector.broadcast %360 : vector<4x1x8xf32> to vector<4x8x8xf32>
    %380 = arith.addf %378, %379 : vector<4x8x8xf32>
    "tpu.trace_start"() <{level = 10 : i32, message = "hld,hdk->hlk"}> : () -> ()
    %cst_259 = arith.constant dense<0.000000e+00> : vector<4x8x8xf32>
    %381 = tpu.matmul %374, %362, %cst_259 {dimension_numbers = #tpu.dot_dimension_numbers<[2], [1], [1], [2], [0, 0, 0, 1, 1, 2], [0], [0]>} : vector<4x8x32xf32>, vector<4x32x8xf32>, vector<4x8x8xf32> -> vector<4x8x8xf32>
    "tpu.trace_stop"() : () -> ()
    %382 = vector.broadcast %364 : vector<4x1x8xf32> to vector<4x8x8xf32>
    %383 = arith.addf %381, %382 : vector<4x8x8xf32>
    "tpu.trace_start"() <{level = 10 : i32, message = "hqk,hmk->hqm"}> : () -> ()
    %cst_260 = arith.constant dense<0.000000e+00> : vector<4x8x8xf32>
    %384 = tpu.matmul %377, %380, %cst_260 {dimension_numbers = #tpu.dot_dimension_numbers<[2], [2], [1], [1], [0, 0, 0, 1, 1, 1], [0], [0]>} : vector<4x8x8xf32>, vector<4x8x8xf32>, vector<4x8x8xf32> -> vector<4x8x8xf32>
    "tpu.trace_stop"() : () -> ()
    %cst_261 = arith.constant 0.353553385 : f32
    %385 = vector.broadcast %cst_261 : f32 to vector<4x8x8xf32>
    %386 = arith.mulf %384, %385 : vector<4x8x8xf32>
    %387 = vector.shape_cast %5 : vector<1x8xf32> to vector<1x1x8xf32>
    %388 = vector.broadcast %387 : vector<1x1x8xf32> to vector<4x8x8xf32>
    %389 = arith.addf %386, %388 : vector<4x8x8xf32>
    %cst_262 = arith.constant dense<0xFF800000> : vector<4x8xf32>
    %390 = vector.multi_reduction <maximumf>, %389, %cst_262 [2] : vector<4x8x8xf32> to vector<4x8xf32>
    %391 = vector.shape_cast %390 : vector<4x8xf32> to vector<4x8x1xf32>
    %392 = vector.broadcast %391 : vector<4x8x1xf32> to vector<4x8x8xf32>
    %393 = arith.subf %389, %392 : vector<4x8x8xf32>
    %394 = math.exp %393 : vector<4x8x8xf32>
    %cst_263 = arith.constant dense<0.000000e+00> : vector<4x8xf32>
    %395 = vector.multi_reduction <add>, %394, %cst_263 [2] : vector<4x8x8xf32> to vector<4x8xf32>
    %396 = vector.shape_cast %395 : vector<4x8xf32> to vector<4x8x1xf32>
    %397 = tpu.reciprocal %396 {approx = true} : vector<4x8x1xf32> -> vector<4x8x1xf32>
    %398 = vector.broadcast %397 : vector<4x8x1xf32> to vector<4x8x8xf32>
    %399 = arith.mulf %394, %398 : vector<4x8x8xf32>
    "tpu.trace_start"() <{level = 10 : i32, message = "hqm,hmk->hqk"}> : () -> ()
    %cst_264 = arith.constant dense<0.000000e+00> : vector<4x8x8xf32>
    %400 = tpu.matmul %399, %383, %cst_264 {dimension_numbers = #tpu.dot_dimension_numbers<[2], [1], [1], [2], [0, 0, 0, 1, 1, 2], [0], [0]>} : vector<4x8x8xf32>, vector<4x8x8xf32>, vector<4x8x8xf32> -> vector<4x8x8xf32>
    "tpu.trace_stop"() : () -> ()
    "tpu.trace_start"() <{level = 10 : i32, message = "hqk,hkd->hqd"}> : () -> ()
    %cst_265 = arith.constant dense<0.000000e+00> : vector<4x8x32xf32>
    %401 = tpu.matmul %400, %366, %cst_265 {dimension_numbers = #tpu.dot_dimension_numbers<[2], [1], [1], [2], [0, 0, 0, 1, 1, 2], [0], [0]>} : vector<4x8x8xf32>, vector<4x8x32xf32>, vector<4x8x32xf32> -> vector<4x8x32xf32>
    "tpu.trace_stop"() : () -> ()
    %cst_266 = arith.constant dense<0.000000e+00> : vector<8x32xf32>
    %402 = vector.multi_reduction <add>, %401, %cst_266 [0] : vector<4x8x32xf32> to vector<8x32xf32>
    %403 = vector.broadcast %368 : vector<1x32xf32> to vector<8x32xf32>
    %404 = arith.addf %402, %403 : vector<8x32xf32>
    %405 = arith.addf %404, %352 : vector<8x32xf32>
    %c0_267 = arith.constant 0 : index
    %c0_268 = arith.constant 0 : index
    %c0_269 = arith.constant 0 : index
    %406 = vector.load %arg44[%c0_267, %c0_268, %c0_269] : memref<2x1x32xf32, #tpu.memory_space<vmem>>, vector<1x1x32xf32>
    %407 = vector.shape_cast %406 : vector<1x1x32xf32> to vector<1x32xf32>
    %c0_270 = arith.constant 0 : index
    %c0_271 = arith.constant 0 : index
    %c0_272 = arith.constant 0 : index
    %408 = vector.load %arg45[%c0_270, %c0_271, %c0_272] : memref<2x1x32xf32, #tpu.memory_space<vmem>>, vector<1x1x32xf32>
    %409 = vector.shape_cast %408 : vector<1x1x32xf32> to vector<1x32xf32>
    %cst_273 = arith.constant dense<0.000000e+00> : vector<8xf32>
    %410 = vector.multi_reduction <add>, %405, %cst_273 [1] : vector<8x32xf32> to vector<8xf32>
    %411 = vector.shape_cast %410 : vector<8xf32> to vector<8x1xf32>
    %cst_274 = arith.constant 3.200000e+01 : f32
    %412 = vector.broadcast %cst_274 : f32 to vector<8x1xf32>
    %413 = arith.divf %411, %412 : vector<8x1xf32>
    %414 = vector.broadcast %413 : vector<8x1xf32> to vector<8x32xf32>
    %415 = arith.subf %405, %414 : vector<8x32xf32>
    %416 = arith.mulf %415, %415 : vector<8x32xf32>
    %cst_275 = arith.constant dense<0.000000e+00> : vector<8xf32>
    %417 = vector.multi_reduction <add>, %416, %cst_275 [1] : vector<8x32xf32> to vector<8xf32>
    %418 = vector.shape_cast %417 : vector<8xf32> to vector<8x1xf32>
    %cst_276 = arith.constant 3.200000e+01 : f32
    %419 = vector.broadcast %cst_276 : f32 to vector<8x1xf32>
    %420 = arith.divf %418, %419 : vector<8x1xf32>
    %421 = vector.broadcast %413 : vector<8x1xf32> to vector<8x32xf32>
    %422 = arith.subf %405, %421 : vector<8x32xf32>
    %cst_277 = arith.constant 9.99999974E-6 : f32
    %423 = vector.broadcast %cst_277 : f32 to vector<8x1xf32>
    %424 = arith.addf %420, %423 : vector<8x1xf32>
    %425 = math.rsqrt %424 : vector<8x1xf32>
    %426 = vector.broadcast %425 : vector<8x1xf32> to vector<8x32xf32>
    %427 = arith.mulf %422, %426 : vector<8x32xf32>
    %428 = vector.broadcast %407 : vector<1x32xf32> to vector<8x32xf32>
    %429 = arith.mulf %427, %428 : vector<8x32xf32>
    %430 = vector.broadcast %409 : vector<1x32xf32> to vector<8x32xf32>
    %431 = arith.addf %429, %430 : vector<8x32xf32>
    %c0_278 = arith.constant 0 : index
    %c0_279 = arith.constant 0 : index
    %c0_280 = arith.constant 0 : index
    %432 = vector.load %arg46[%c0_278, %c0_279, %c0_280] : memref<2x32x128xf32, #tpu.memory_space<vmem>>, vector<1x32x128xf32>
    %433 = vector.shape_cast %432 : vector<1x32x128xf32> to vector<32x128xf32>
    %c0_281 = arith.constant 0 : index
    %c0_282 = arith.constant 0 : index
    %c0_283 = arith.constant 0 : index
    %434 = vector.load %arg47[%c0_281, %c0_282, %c0_283] : memref<2x1x128xf32, #tpu.memory_space<vmem>>, vector<1x1x128xf32>
    %435 = vector.shape_cast %434 : vector<1x1x128xf32> to vector<1x128xf32>
    %c0_284 = arith.constant 0 : index
    %c0_285 = arith.constant 0 : index
    %c0_286 = arith.constant 0 : index
    %436 = vector.load %arg48[%c0_284, %c0_285, %c0_286] : memref<2x128x32xf32, #tpu.memory_space<vmem>>, vector<1x128x32xf32>
    %437 = vector.shape_cast %436 : vector<1x128x32xf32> to vector<128x32xf32>
    %c0_287 = arith.constant 0 : index
    %c0_288 = arith.constant 0 : index
    %c0_289 = arith.constant 0 : index
    %438 = vector.load %arg49[%c0_287, %c0_288, %c0_289] : memref<2x1x32xf32, #tpu.memory_space<vmem>>, vector<1x1x32xf32>
    %439 = vector.shape_cast %438 : vector<1x1x32xf32> to vector<1x32xf32>
    %cst_290 = arith.constant dense<0.000000e+00> : vector<8x128xf32>
    %440 = tpu.matmul %431, %433, %cst_290 {dimension_numbers = #tpu.dot_dimension_numbers<[1], [0], [0], [1], [0, 0, 1, 1], [], []>} : vector<8x32xf32>, vector<32x128xf32>, vector<8x128xf32> -> vector<8x128xf32>
    %441 = vector.broadcast %435 : vector<1x128xf32> to vector<8x128xf32>
    %442 = arith.addf %440, %441 : vector<8x128xf32>
    %cst_291 = arith.constant 0.000000e+00 : f32
    %443 = vector.broadcast %cst_291 : f32 to vector<8x128xf32>
    %444 = arith.maximumf %442, %443 : vector<8x128xf32>
    %cst_292 = arith.constant dense<0.000000e+00> : vector<8x32xf32>
    %445 = tpu.matmul %444, %437, %cst_292 {dimension_numbers = #tpu.dot_dimension_numbers<[1], [0], [0], [1], [0, 0, 1, 1], [], []>} : vector<8x128xf32>, vector<128x32xf32>, vector<8x32xf32> -> vector<8x32xf32>
    %446 = vector.broadcast %439 : vector<1x32xf32> to vector<8x32xf32>
    %447 = arith.addf %445, %446 : vector<8x32xf32>
    %448 = arith.addf %447, %431 : vector<8x32xf32>
    %c0_293 = arith.constant 0 : index
    %c0_294 = arith.constant 0 : index
    %c0_295 = arith.constant 0 : index
    %449 = vector.load %arg50[%c0_293, %c0_294, %c0_295] : memref<2x1x32xf32, #tpu.memory_space<vmem>>, vector<1x1x32xf32>
    %450 = vector.shape_cast %449 : vector<1x1x32xf32> to vector<1x32xf32>
    %c0_296 = arith.constant 0 : index
    %c0_297 = arith.constant 0 : index
    %c0_298 = arith.constant 0 : index
    %451 = vector.load %arg51[%c0_296, %c0_297, %c0_298] : memref<2x1x32xf32, #tpu.memory_space<vmem>>, vector<1x1x32xf32>
    %452 = vector.shape_cast %451 : vector<1x1x32xf32> to vector<1x32xf32>
    %cst_299 = arith.constant dense<0.000000e+00> : vector<8xf32>
    %453 = vector.multi_reduction <add>, %448, %cst_299 [1] : vector<8x32xf32> to vector<8xf32>
    %454 = vector.shape_cast %453 : vector<8xf32> to vector<8x1xf32>
    %cst_300 = arith.constant 3.200000e+01 : f32
    %455 = vector.broadcast %cst_300 : f32 to vector<8x1xf32>
    %456 = arith.divf %454, %455 : vector<8x1xf32>
    %457 = vector.broadcast %456 : vector<8x1xf32> to vector<8x32xf32>
    %458 = arith.subf %448, %457 : vector<8x32xf32>
    %459 = arith.mulf %458, %458 : vector<8x32xf32>
    %cst_301 = arith.constant dense<0.000000e+00> : vector<8xf32>
    %460 = vector.multi_reduction <add>, %459, %cst_301 [1] : vector<8x32xf32> to vector<8xf32>
    %461 = vector.shape_cast %460 : vector<8xf32> to vector<8x1xf32>
    %cst_302 = arith.constant 3.200000e+01 : f32
    %462 = vector.broadcast %cst_302 : f32 to vector<8x1xf32>
    %463 = arith.divf %461, %462 : vector<8x1xf32>
    %464 = vector.broadcast %456 : vector<8x1xf32> to vector<8x32xf32>
    %465 = arith.subf %448, %464 : vector<8x32xf32>
    %cst_303 = arith.constant 9.99999974E-6 : f32
    %466 = vector.broadcast %cst_303 : f32 to vector<8x1xf32>
    %467 = arith.addf %463, %466 : vector<8x1xf32>
    %468 = math.rsqrt %467 : vector<8x1xf32>
    %469 = vector.broadcast %468 : vector<8x1xf32> to vector<8x32xf32>
    %470 = arith.mulf %465, %469 : vector<8x32xf32>
    %471 = vector.broadcast %450 : vector<1x32xf32> to vector<8x32xf32>
    %472 = arith.mulf %470, %471 : vector<8x32xf32>
    %473 = vector.broadcast %452 : vector<1x32xf32> to vector<8x32xf32>
    %474 = arith.addf %472, %473 : vector<8x32xf32>
    %c1_304 = arith.constant 1 : index
    %c0_305 = arith.constant 0 : index
    %c0_306 = arith.constant 0 : index
    %c0_307 = arith.constant 0 : index
    %475 = vector.load %arg26[%c1_304, %c0_305, %c0_306, %c0_307] : memref<2x4x32x8xf32, #tpu.memory_space<vmem>>, vector<1x4x32x8xf32>
    %476 = vector.shape_cast %475 : vector<1x4x32x8xf32> to vector<4x32x8xf32>
    %c1_308 = arith.constant 1 : index
    %c0_309 = arith.constant 0 : index
    %c0_310 = arith.constant 0 : index
    %c0_311 = arith.constant 0 : index
    %477 = vector.load %arg27[%c1_308, %c0_309, %c0_310, %c0_311] : memref<2x4x1x8xf32, #tpu.memory_space<vmem>>, vector<1x4x1x8xf32>
    %478 = vector.shape_cast %477 : vector<1x4x1x8xf32> to vector<4x1x8xf32>
    %c1_312 = arith.constant 1 : index
    %c0_313 = arith.constant 0 : index
    %c0_314 = arith.constant 0 : index
    %c0_315 = arith.constant 0 : index
    %479 = vector.load %arg28[%c1_312, %c0_313, %c0_314, %c0_315] : memref<2x4x32x8xf32, #tpu.memory_space<vmem>>, vector<1x4x32x8xf32>
    %480 = vector.shape_cast %479 : vector<1x4x32x8xf32> to vector<4x32x8xf32>
    %c1_316 = arith.constant 1 : index
    %c0_317 = arith.constant 0 : index
    %c0_318 = arith.constant 0 : index
    %c0_319 = arith.constant 0 : index
    %481 = vector.load %arg29[%c1_316, %c0_317, %c0_318, %c0_319] : memref<2x4x1x8xf32, #tpu.memory_space<vmem>>, vector<1x4x1x8xf32>
    %482 = vector.shape_cast %481 : vector<1x4x1x8xf32> to vector<4x1x8xf32>
    %c1_320 = arith.constant 1 : index
    %c0_321 = arith.constant 0 : index
    %c0_322 = arith.constant 0 : index
    %c0_323 = arith.constant 0 : index
    %483 = vector.load %arg30[%c1_320, %c0_321, %c0_322, %c0_323] : memref<2x4x32x8xf32, #tpu.memory_space<vmem>>, vector<1x4x32x8xf32>
    %484 = vector.shape_cast %483 : vector<1x4x32x8xf32> to vector<4x32x8xf32>
    %c1_324 = arith.constant 1 : index
    %c0_325 = arith.constant 0 : index
    %c0_326 = arith.constant 0 : index
    %c0_327 = arith.constant 0 : index
    %485 = vector.load %arg31[%c1_324, %c0_325, %c0_326, %c0_327] : memref<2x4x1x8xf32, #tpu.memory_space<vmem>>, vector<1x4x1x8xf32>
    %486 = vector.shape_cast %485 : vector<1x4x1x8xf32> to vector<4x1x8xf32>
    %c1_328 = arith.constant 1 : index
    %c0_329 = arith.constant 0 : index
    %c0_330 = arith.constant 0 : index
    %c0_331 = arith.constant 0 : index
    %487 = vector.load %arg32[%c1_328, %c0_329, %c0_330, %c0_331] : memref<2x4x8x32xf32, #tpu.memory_space<vmem>>, vector<1x4x8x32xf32>
    %488 = vector.shape_cast %487 : vector<1x4x8x32xf32> to vector<4x8x32xf32>
    %c1_332 = arith.constant 1 : index
    %c0_333 = arith.constant 0 : index
    %c0_334 = arith.constant 0 : index
    %489 = vector.load %arg33[%c1_332, %c0_333, %c0_334] : memref<2x1x32xf32, #tpu.memory_space<vmem>>, vector<1x1x32xf32>
    %490 = vector.shape_cast %489 : vector<1x1x32xf32> to vector<1x32xf32>
    %491 = vector.shape_cast %474 : vector<8x32xf32> to vector<1x8x32xf32>
    %492 = vector.shape_cast %491 : vector<1x8x32xf32> to vector<1x8x32xf32>
    %493 = vector.broadcast %492 : vector<1x8x32xf32> to vector<4x8x32xf32>
    %494 = vector.shape_cast %474 : vector<8x32xf32> to vector<1x8x32xf32>
    %495 = vector.shape_cast %494 : vector<1x8x32xf32> to vector<1x8x32xf32>
    %496 = vector.broadcast %495 : vector<1x8x32xf32> to vector<4x8x32xf32>
    "tpu.trace_start"() <{level = 10 : i32, message = "hld,hdk->hlk"}> : () -> ()
    %cst_335 = arith.constant dense<0.000000e+00> : vector<4x8x8xf32>
    %497 = tpu.matmul %493, %476, %cst_335 {dimension_numbers = #tpu.dot_dimension_numbers<[2], [1], [1], [2], [0, 0, 0, 1, 1, 2], [0], [0]>} : vector<4x8x32xf32>, vector<4x32x8xf32>, vector<4x8x8xf32> -> vector<4x8x8xf32>
    "tpu.trace_stop"() : () -> ()
    %498 = vector.broadcast %478 : vector<4x1x8xf32> to vector<4x8x8xf32>
    %499 = arith.addf %497, %498 : vector<4x8x8xf32>
    "tpu.trace_start"() <{level = 10 : i32, message = "hld,hdk->hlk"}> : () -> ()
    %cst_336 = arith.constant dense<0.000000e+00> : vector<4x8x8xf32>
    %500 = tpu.matmul %496, %480, %cst_336 {dimension_numbers = #tpu.dot_dimension_numbers<[2], [1], [1], [2], [0, 0, 0, 1, 1, 2], [0], [0]>} : vector<4x8x32xf32>, vector<4x32x8xf32>, vector<4x8x8xf32> -> vector<4x8x8xf32>
    "tpu.trace_stop"() : () -> ()
    %501 = vector.broadcast %482 : vector<4x1x8xf32> to vector<4x8x8xf32>
    %502 = arith.addf %500, %501 : vector<4x8x8xf32>
    "tpu.trace_start"() <{level = 10 : i32, message = "hld,hdk->hlk"}> : () -> ()
    %cst_337 = arith.constant dense<0.000000e+00> : vector<4x8x8xf32>
    %503 = tpu.matmul %496, %484, %cst_337 {dimension_numbers = #tpu.dot_dimension_numbers<[2], [1], [1], [2], [0, 0, 0, 1, 1, 2], [0], [0]>} : vector<4x8x32xf32>, vector<4x32x8xf32>, vector<4x8x8xf32> -> vector<4x8x8xf32>
    "tpu.trace_stop"() : () -> ()
    %504 = vector.broadcast %486 : vector<4x1x8xf32> to vector<4x8x8xf32>
    %505 = arith.addf %503, %504 : vector<4x8x8xf32>
    "tpu.trace_start"() <{level = 10 : i32, message = "hqk,hmk->hqm"}> : () -> ()
    %cst_338 = arith.constant dense<0.000000e+00> : vector<4x8x8xf32>
    %506 = tpu.matmul %499, %502, %cst_338 {dimension_numbers = #tpu.dot_dimension_numbers<[2], [2], [1], [1], [0, 0, 0, 1, 1, 1], [0], [0]>} : vector<4x8x8xf32>, vector<4x8x8xf32>, vector<4x8x8xf32> -> vector<4x8x8xf32>
    "tpu.trace_stop"() : () -> ()
    %cst_339 = arith.constant 0.353553385 : f32
    %507 = vector.broadcast %cst_339 : f32 to vector<4x8x8xf32>
    %508 = arith.mulf %506, %507 : vector<4x8x8xf32>
    %509 = vector.shape_cast %273 : vector<8x8xf32> to vector<1x8x8xf32>
    %510 = vector.broadcast %509 : vector<1x8x8xf32> to vector<4x8x8xf32>
    %511 = arith.addf %508, %510 : vector<4x8x8xf32>
    %cst_340 = arith.constant dense<0xFF800000> : vector<4x8xf32>
    %512 = vector.multi_reduction <maximumf>, %511, %cst_340 [2] : vector<4x8x8xf32> to vector<4x8xf32>
    %513 = vector.shape_cast %512 : vector<4x8xf32> to vector<4x8x1xf32>
    %514 = vector.broadcast %513 : vector<4x8x1xf32> to vector<4x8x8xf32>
    %515 = arith.subf %511, %514 : vector<4x8x8xf32>
    %516 = math.exp %515 : vector<4x8x8xf32>
    %cst_341 = arith.constant dense<0.000000e+00> : vector<4x8xf32>
    %517 = vector.multi_reduction <add>, %516, %cst_341 [2] : vector<4x8x8xf32> to vector<4x8xf32>
    %518 = vector.shape_cast %517 : vector<4x8xf32> to vector<4x8x1xf32>
    %519 = tpu.reciprocal %518 {approx = true} : vector<4x8x1xf32> -> vector<4x8x1xf32>
    %520 = vector.broadcast %519 : vector<4x8x1xf32> to vector<4x8x8xf32>
    %521 = arith.mulf %516, %520 : vector<4x8x8xf32>
    "tpu.trace_start"() <{level = 10 : i32, message = "hqm,hmk->hqk"}> : () -> ()
    %cst_342 = arith.constant dense<0.000000e+00> : vector<4x8x8xf32>
    %522 = tpu.matmul %521, %505, %cst_342 {dimension_numbers = #tpu.dot_dimension_numbers<[2], [1], [1], [2], [0, 0, 0, 1, 1, 2], [0], [0]>} : vector<4x8x8xf32>, vector<4x8x8xf32>, vector<4x8x8xf32> -> vector<4x8x8xf32>
    "tpu.trace_stop"() : () -> ()
    "tpu.trace_start"() <{level = 10 : i32, message = "hqk,hkd->hqd"}> : () -> ()
    %cst_343 = arith.constant dense<0.000000e+00> : vector<4x8x32xf32>
    %523 = tpu.matmul %522, %488, %cst_343 {dimension_numbers = #tpu.dot_dimension_numbers<[2], [1], [1], [2], [0, 0, 0, 1, 1, 2], [0], [0]>} : vector<4x8x8xf32>, vector<4x8x32xf32>, vector<4x8x32xf32> -> vector<4x8x32xf32>
    "tpu.trace_stop"() : () -> ()
    %cst_344 = arith.constant dense<0.000000e+00> : vector<8x32xf32>
    %524 = vector.multi_reduction <add>, %523, %cst_344 [0] : vector<4x8x32xf32> to vector<8x32xf32>
    %525 = vector.broadcast %490 : vector<1x32xf32> to vector<8x32xf32>
    %526 = arith.addf %524, %525 : vector<8x32xf32>
    %527 = arith.addf %526, %474 : vector<8x32xf32>
    %c1_345 = arith.constant 1 : index
    %c0_346 = arith.constant 0 : index
    %c0_347 = arith.constant 0 : index
    %528 = vector.load %arg34[%c1_345, %c0_346, %c0_347] : memref<2x1x32xf32, #tpu.memory_space<vmem>>, vector<1x1x32xf32>
    %529 = vector.shape_cast %528 : vector<1x1x32xf32> to vector<1x32xf32>
    %c1_348 = arith.constant 1 : index
    %c0_349 = arith.constant 0 : index
    %c0_350 = arith.constant 0 : index
    %530 = vector.load %arg35[%c1_348, %c0_349, %c0_350] : memref<2x1x32xf32, #tpu.memory_space<vmem>>, vector<1x1x32xf32>
    %531 = vector.shape_cast %530 : vector<1x1x32xf32> to vector<1x32xf32>
    %cst_351 = arith.constant dense<0.000000e+00> : vector<8xf32>
    %532 = vector.multi_reduction <add>, %527, %cst_351 [1] : vector<8x32xf32> to vector<8xf32>
    %533 = vector.shape_cast %532 : vector<8xf32> to vector<8x1xf32>
    %cst_352 = arith.constant 3.200000e+01 : f32
    %534 = vector.broadcast %cst_352 : f32 to vector<8x1xf32>
    %535 = arith.divf %533, %534 : vector<8x1xf32>
    %536 = vector.broadcast %535 : vector<8x1xf32> to vector<8x32xf32>
    %537 = arith.subf %527, %536 : vector<8x32xf32>
    %538 = arith.mulf %537, %537 : vector<8x32xf32>
    %cst_353 = arith.constant dense<0.000000e+00> : vector<8xf32>
    %539 = vector.multi_reduction <add>, %538, %cst_353 [1] : vector<8x32xf32> to vector<8xf32>
    %540 = vector.shape_cast %539 : vector<8xf32> to vector<8x1xf32>
    %cst_354 = arith.constant 3.200000e+01 : f32
    %541 = vector.broadcast %cst_354 : f32 to vector<8x1xf32>
    %542 = arith.divf %540, %541 : vector<8x1xf32>
    %543 = vector.broadcast %535 : vector<8x1xf32> to vector<8x32xf32>
    %544 = arith.subf %527, %543 : vector<8x32xf32>
    %cst_355 = arith.constant 9.99999974E-6 : f32
    %545 = vector.broadcast %cst_355 : f32 to vector<8x1xf32>
    %546 = arith.addf %542, %545 : vector<8x1xf32>
    %547 = math.rsqrt %546 : vector<8x1xf32>
    %548 = vector.broadcast %547 : vector<8x1xf32> to vector<8x32xf32>
    %549 = arith.mulf %544, %548 : vector<8x32xf32>
    %550 = vector.broadcast %529 : vector<1x32xf32> to vector<8x32xf32>
    %551 = arith.mulf %549, %550 : vector<8x32xf32>
    %552 = vector.broadcast %531 : vector<1x32xf32> to vector<8x32xf32>
    %553 = arith.addf %551, %552 : vector<8x32xf32>
    %c1_356 = arith.constant 1 : index
    %c0_357 = arith.constant 0 : index
    %c0_358 = arith.constant 0 : index
    %c0_359 = arith.constant 0 : index
    %554 = vector.load %arg36[%c1_356, %c0_357, %c0_358, %c0_359] : memref<2x4x32x8xf32, #tpu.memory_space<vmem>>, vector<1x4x32x8xf32>
    %555 = vector.shape_cast %554 : vector<1x4x32x8xf32> to vector<4x32x8xf32>
    %c1_360 = arith.constant 1 : index
    %c0_361 = arith.constant 0 : index
    %c0_362 = arith.constant 0 : index
    %c0_363 = arith.constant 0 : index
    %556 = vector.load %arg37[%c1_360, %c0_361, %c0_362, %c0_363] : memref<2x4x1x8xf32, #tpu.memory_space<vmem>>, vector<1x4x1x8xf32>
    %557 = vector.shape_cast %556 : vector<1x4x1x8xf32> to vector<4x1x8xf32>
    %c1_364 = arith.constant 1 : index
    %c0_365 = arith.constant 0 : index
    %c0_366 = arith.constant 0 : index
    %c0_367 = arith.constant 0 : index
    %558 = vector.load %arg38[%c1_364, %c0_365, %c0_366, %c0_367] : memref<2x4x32x8xf32, #tpu.memory_space<vmem>>, vector<1x4x32x8xf32>
    %559 = vector.shape_cast %558 : vector<1x4x32x8xf32> to vector<4x32x8xf32>
    %c1_368 = arith.constant 1 : index
    %c0_369 = arith.constant 0 : index
    %c0_370 = arith.constant 0 : index
    %c0_371 = arith.constant 0 : index
    %560 = vector.load %arg39[%c1_368, %c0_369, %c0_370, %c0_371] : memref<2x4x1x8xf32, #tpu.memory_space<vmem>>, vector<1x4x1x8xf32>
    %561 = vector.shape_cast %560 : vector<1x4x1x8xf32> to vector<4x1x8xf32>
    %c1_372 = arith.constant 1 : index
    %c0_373 = arith.constant 0 : index
    %c0_374 = arith.constant 0 : index
    %c0_375 = arith.constant 0 : index
    %562 = vector.load %arg40[%c1_372, %c0_373, %c0_374, %c0_375] : memref<2x4x32x8xf32, #tpu.memory_space<vmem>>, vector<1x4x32x8xf32>
    %563 = vector.shape_cast %562 : vector<1x4x32x8xf32> to vector<4x32x8xf32>
    %c1_376 = arith.constant 1 : index
    %c0_377 = arith.constant 0 : index
    %c0_378 = arith.constant 0 : index
    %c0_379 = arith.constant 0 : index
    %564 = vector.load %arg41[%c1_376, %c0_377, %c0_378, %c0_379] : memref<2x4x1x8xf32, #tpu.memory_space<vmem>>, vector<1x4x1x8xf32>
    %565 = vector.shape_cast %564 : vector<1x4x1x8xf32> to vector<4x1x8xf32>
    %c1_380 = arith.constant 1 : index
    %c0_381 = arith.constant 0 : index
    %c0_382 = arith.constant 0 : index
    %c0_383 = arith.constant 0 : index
    %566 = vector.load %arg42[%c1_380, %c0_381, %c0_382, %c0_383] : memref<2x4x8x32xf32, #tpu.memory_space<vmem>>, vector<1x4x8x32xf32>
    %567 = vector.shape_cast %566 : vector<1x4x8x32xf32> to vector<4x8x32xf32>
    %c1_384 = arith.constant 1 : index
    %c0_385 = arith.constant 0 : index
    %c0_386 = arith.constant 0 : index
    %568 = vector.load %arg43[%c1_384, %c0_385, %c0_386] : memref<2x1x32xf32, #tpu.memory_space<vmem>>, vector<1x1x32xf32>
    %569 = vector.shape_cast %568 : vector<1x1x32xf32> to vector<1x32xf32>
    %570 = vector.shape_cast %553 : vector<8x32xf32> to vector<1x8x32xf32>
    %571 = vector.shape_cast %570 : vector<1x8x32xf32> to vector<1x8x32xf32>
    %572 = vector.broadcast %571 : vector<1x8x32xf32> to vector<4x8x32xf32>
    %573 = vector.shape_cast %258 : vector<8x32xf32> to vector<1x8x32xf32>
    %574 = vector.shape_cast %573 : vector<1x8x32xf32> to vector<1x8x32xf32>
    %575 = vector.broadcast %574 : vector<1x8x32xf32> to vector<4x8x32xf32>
    "tpu.trace_start"() <{level = 10 : i32, message = "hld,hdk->hlk"}> : () -> ()
    %cst_387 = arith.constant dense<0.000000e+00> : vector<4x8x8xf32>
    %576 = tpu.matmul %572, %555, %cst_387 {dimension_numbers = #tpu.dot_dimension_numbers<[2], [1], [1], [2], [0, 0, 0, 1, 1, 2], [0], [0]>} : vector<4x8x32xf32>, vector<4x32x8xf32>, vector<4x8x8xf32> -> vector<4x8x8xf32>
    "tpu.trace_stop"() : () -> ()
    %577 = vector.broadcast %557 : vector<4x1x8xf32> to vector<4x8x8xf32>
    %578 = arith.addf %576, %577 : vector<4x8x8xf32>
    "tpu.trace_start"() <{level = 10 : i32, message = "hld,hdk->hlk"}> : () -> ()
    %cst_388 = arith.constant dense<0.000000e+00> : vector<4x8x8xf32>
    %579 = tpu.matmul %575, %559, %cst_388 {dimension_numbers = #tpu.dot_dimension_numbers<[2], [1], [1], [2], [0, 0, 0, 1, 1, 2], [0], [0]>} : vector<4x8x32xf32>, vector<4x32x8xf32>, vector<4x8x8xf32> -> vector<4x8x8xf32>
    "tpu.trace_stop"() : () -> ()
    %580 = vector.broadcast %561 : vector<4x1x8xf32> to vector<4x8x8xf32>
    %581 = arith.addf %579, %580 : vector<4x8x8xf32>
    "tpu.trace_start"() <{level = 10 : i32, message = "hld,hdk->hlk"}> : () -> ()
    %cst_389 = arith.constant dense<0.000000e+00> : vector<4x8x8xf32>
    %582 = tpu.matmul %575, %563, %cst_389 {dimension_numbers = #tpu.dot_dimension_numbers<[2], [1], [1], [2], [0, 0, 0, 1, 1, 2], [0], [0]>} : vector<4x8x32xf32>, vector<4x32x8xf32>, vector<4x8x8xf32> -> vector<4x8x8xf32>
    "tpu.trace_stop"() : () -> ()
    %583 = vector.broadcast %565 : vector<4x1x8xf32> to vector<4x8x8xf32>
    %584 = arith.addf %582, %583 : vector<4x8x8xf32>
    "tpu.trace_start"() <{level = 10 : i32, message = "hqk,hmk->hqm"}> : () -> ()
    %cst_390 = arith.constant dense<0.000000e+00> : vector<4x8x8xf32>
    %585 = tpu.matmul %578, %581, %cst_390 {dimension_numbers = #tpu.dot_dimension_numbers<[2], [2], [1], [1], [0, 0, 0, 1, 1, 1], [0], [0]>} : vector<4x8x8xf32>, vector<4x8x8xf32>, vector<4x8x8xf32> -> vector<4x8x8xf32>
    "tpu.trace_stop"() : () -> ()
    %cst_391 = arith.constant 0.353553385 : f32
    %586 = vector.broadcast %cst_391 : f32 to vector<4x8x8xf32>
    %587 = arith.mulf %585, %586 : vector<4x8x8xf32>
    %588 = vector.shape_cast %5 : vector<1x8xf32> to vector<1x1x8xf32>
    %589 = vector.broadcast %588 : vector<1x1x8xf32> to vector<4x8x8xf32>
    %590 = arith.addf %587, %589 : vector<4x8x8xf32>
    %cst_392 = arith.constant dense<0xFF800000> : vector<4x8xf32>
    %591 = vector.multi_reduction <maximumf>, %590, %cst_392 [2] : vector<4x8x8xf32> to vector<4x8xf32>
    %592 = vector.shape_cast %591 : vector<4x8xf32> to vector<4x8x1xf32>
    %593 = vector.broadcast %592 : vector<4x8x1xf32> to vector<4x8x8xf32>
    %594 = arith.subf %590, %593 : vector<4x8x8xf32>
    %595 = math.exp %594 : vector<4x8x8xf32>
    %cst_393 = arith.constant dense<0.000000e+00> : vector<4x8xf32>
    %596 = vector.multi_reduction <add>, %595, %cst_393 [2] : vector<4x8x8xf32> to vector<4x8xf32>
    %597 = vector.shape_cast %596 : vector<4x8xf32> to vector<4x8x1xf32>
    %598 = tpu.reciprocal %597 {approx = true} : vector<4x8x1xf32> -> vector<4x8x1xf32>
    %599 = vector.broadcast %598 : vector<4x8x1xf32> to vector<4x8x8xf32>
    %600 = arith.mulf %595, %599 : vector<4x8x8xf32>
    "tpu.trace_start"() <{level = 10 : i32, message = "hqm,hmk->hqk"}> : () -> ()
    %cst_394 = arith.constant dense<0.000000e+00> : vector<4x8x8xf32>
    %601 = tpu.matmul %600, %584, %cst_394 {dimension_numbers = #tpu.dot_dimension_numbers<[2], [1], [1], [2], [0, 0, 0, 1, 1, 2], [0], [0]>} : vector<4x8x8xf32>, vector<4x8x8xf32>, vector<4x8x8xf32> -> vector<4x8x8xf32>
    "tpu.trace_stop"() : () -> ()
    "tpu.trace_start"() <{level = 10 : i32, message = "hqk,hkd->hqd"}> : () -> ()
    %cst_395 = arith.constant dense<0.000000e+00> : vector<4x8x32xf32>
    %602 = tpu.matmul %601, %567, %cst_395 {dimension_numbers = #tpu.dot_dimension_numbers<[2], [1], [1], [2], [0, 0, 0, 1, 1, 2], [0], [0]>} : vector<4x8x8xf32>, vector<4x8x32xf32>, vector<4x8x32xf32> -> vector<4x8x32xf32>
    "tpu.trace_stop"() : () -> ()
    %cst_396 = arith.constant dense<0.000000e+00> : vector<8x32xf32>
    %603 = vector.multi_reduction <add>, %602, %cst_396 [0] : vector<4x8x32xf32> to vector<8x32xf32>
    %604 = vector.broadcast %569 : vector<1x32xf32> to vector<8x32xf32>
    %605 = arith.addf %603, %604 : vector<8x32xf32>
    %606 = arith.addf %605, %553 : vector<8x32xf32>
    %c1_397 = arith.constant 1 : index
    %c0_398 = arith.constant 0 : index
    %c0_399 = arith.constant 0 : index
    %607 = vector.load %arg44[%c1_397, %c0_398, %c0_399] : memref<2x1x32xf32, #tpu.memory_space<vmem>>, vector<1x1x32xf32>
    %608 = vector.shape_cast %607 : vector<1x1x32xf32> to vector<1x32xf32>
    %c1_400 = arith.constant 1 : index
    %c0_401 = arith.constant 0 : index
    %c0_402 = arith.constant 0 : index
    %609 = vector.load %arg45[%c1_400, %c0_401, %c0_402] : memref<2x1x32xf32, #tpu.memory_space<vmem>>, vector<1x1x32xf32>
    %610 = vector.shape_cast %609 : vector<1x1x32xf32> to vector<1x32xf32>
    %cst_403 = arith.constant dense<0.000000e+00> : vector<8xf32>
    %611 = vector.multi_reduction <add>, %606, %cst_403 [1] : vector<8x32xf32> to vector<8xf32>
    %612 = vector.shape_cast %611 : vector<8xf32> to vector<8x1xf32>
    %cst_404 = arith.constant 3.200000e+01 : f32
    %613 = vector.broadcast %cst_404 : f32 to vector<8x1xf32>
    %614 = arith.divf %612, %613 : vector<8x1xf32>
    %615 = vector.broadcast %614 : vector<8x1xf32> to vector<8x32xf32>
    %616 = arith.subf %606, %615 : vector<8x32xf32>
    %617 = arith.mulf %616, %616 : vector<8x32xf32>
    %cst_405 = arith.constant dense<0.000000e+00> : vector<8xf32>
    %618 = vector.multi_reduction <add>, %617, %cst_405 [1] : vector<8x32xf32> to vector<8xf32>
    %619 = vector.shape_cast %618 : vector<8xf32> to vector<8x1xf32>
    %cst_406 = arith.constant 3.200000e+01 : f32
    %620 = vector.broadcast %cst_406 : f32 to vector<8x1xf32>
    %621 = arith.divf %619, %620 : vector<8x1xf32>
    %622 = vector.broadcast %614 : vector<8x1xf32> to vector<8x32xf32>
    %623 = arith.subf %606, %622 : vector<8x32xf32>
    %cst_407 = arith.constant 9.99999974E-6 : f32
    %624 = vector.broadcast %cst_407 : f32 to vector<8x1xf32>
    %625 = arith.addf %621, %624 : vector<8x1xf32>
    %626 = math.rsqrt %625 : vector<8x1xf32>
    %627 = vector.broadcast %626 : vector<8x1xf32> to vector<8x32xf32>
    %628 = arith.mulf %623, %627 : vector<8x32xf32>
    %629 = vector.broadcast %608 : vector<1x32xf32> to vector<8x32xf32>
    %630 = arith.mulf %628, %629 : vector<8x32xf32>
    %631 = vector.broadcast %610 : vector<1x32xf32> to vector<8x32xf32>
    %632 = arith.addf %630, %631 : vector<8x32xf32>
    %c1_408 = arith.constant 1 : index
    %c0_409 = arith.constant 0 : index
    %c0_410 = arith.constant 0 : index
    %633 = vector.load %arg46[%c1_408, %c0_409, %c0_410] : memref<2x32x128xf32, #tpu.memory_space<vmem>>, vector<1x32x128xf32>
    %634 = vector.shape_cast %633 : vector<1x32x128xf32> to vector<32x128xf32>
    %c1_411 = arith.constant 1 : index
    %c0_412 = arith.constant 0 : index
    %c0_413 = arith.constant 0 : index
    %635 = vector.load %arg47[%c1_411, %c0_412, %c0_413] : memref<2x1x128xf32, #tpu.memory_space<vmem>>, vector<1x1x128xf32>
    %636 = vector.shape_cast %635 : vector<1x1x128xf32> to vector<1x128xf32>
    %c1_414 = arith.constant 1 : index
    %c0_415 = arith.constant 0 : index
    %c0_416 = arith.constant 0 : index
    %637 = vector.load %arg48[%c1_414, %c0_415, %c0_416] : memref<2x128x32xf32, #tpu.memory_space<vmem>>, vector<1x128x32xf32>
    %638 = vector.shape_cast %637 : vector<1x128x32xf32> to vector<128x32xf32>
    %c1_417 = arith.constant 1 : index
    %c0_418 = arith.constant 0 : index
    %c0_419 = arith.constant 0 : index
    %639 = vector.load %arg49[%c1_417, %c0_418, %c0_419] : memref<2x1x32xf32, #tpu.memory_space<vmem>>, vector<1x1x32xf32>
    %640 = vector.shape_cast %639 : vector<1x1x32xf32> to vector<1x32xf32>
    %cst_420 = arith.constant dense<0.000000e+00> : vector<8x128xf32>
    %641 = tpu.matmul %632, %634, %cst_420 {dimension_numbers = #tpu.dot_dimension_numbers<[1], [0], [0], [1], [0, 0, 1, 1], [], []>} : vector<8x32xf32>, vector<32x128xf32>, vector<8x128xf32> -> vector<8x128xf32>
    %642 = vector.broadcast %636 : vector<1x128xf32> to vector<8x128xf32>
    %643 = arith.addf %641, %642 : vector<8x128xf32>
    %cst_421 = arith.constant 0.000000e+00 : f32
    %644 = vector.broadcast %cst_421 : f32 to vector<8x128xf32>
    %645 = arith.maximumf %643, %644 : vector<8x128xf32>
    %cst_422 = arith.constant dense<0.000000e+00> : vector<8x32xf32>
    %646 = tpu.matmul %645, %638, %cst_422 {dimension_numbers = #tpu.dot_dimension_numbers<[1], [0], [0], [1], [0, 0, 1, 1], [], []>} : vector<8x128xf32>, vector<128x32xf32>, vector<8x32xf32> -> vector<8x32xf32>
    %647 = vector.broadcast %640 : vector<1x32xf32> to vector<8x32xf32>
    %648 = arith.addf %646, %647 : vector<8x32xf32>
    %649 = arith.addf %648, %632 : vector<8x32xf32>
    %c1_423 = arith.constant 1 : index
    %c0_424 = arith.constant 0 : index
    %c0_425 = arith.constant 0 : index
    %650 = vector.load %arg50[%c1_423, %c0_424, %c0_425] : memref<2x1x32xf32, #tpu.memory_space<vmem>>, vector<1x1x32xf32>
    %651 = vector.shape_cast %650 : vector<1x1x32xf32> to vector<1x32xf32>
    %c1_426 = arith.constant 1 : index
    %c0_427 = arith.constant 0 : index
    %c0_428 = arith.constant 0 : index
    %652 = vector.load %arg51[%c1_426, %c0_427, %c0_428] : memref<2x1x32xf32, #tpu.memory_space<vmem>>, vector<1x1x32xf32>
    %653 = vector.shape_cast %652 : vector<1x1x32xf32> to vector<1x32xf32>
    %cst_429 = arith.constant dense<0.000000e+00> : vector<8xf32>
    %654 = vector.multi_reduction <add>, %649, %cst_429 [1] : vector<8x32xf32> to vector<8xf32>
    %655 = vector.shape_cast %654 : vector<8xf32> to vector<8x1xf32>
    %cst_430 = arith.constant 3.200000e+01 : f32
    %656 = vector.broadcast %cst_430 : f32 to vector<8x1xf32>
    %657 = arith.divf %655, %656 : vector<8x1xf32>
    %658 = vector.broadcast %657 : vector<8x1xf32> to vector<8x32xf32>
    %659 = arith.subf %649, %658 : vector<8x32xf32>
    %660 = arith.mulf %659, %659 : vector<8x32xf32>
    %cst_431 = arith.constant dense<0.000000e+00> : vector<8xf32>
    %661 = vector.multi_reduction <add>, %660, %cst_431 [1] : vector<8x32xf32> to vector<8xf32>
    %662 = vector.shape_cast %661 : vector<8xf32> to vector<8x1xf32>
    %cst_432 = arith.constant 3.200000e+01 : f32
    %663 = vector.broadcast %cst_432 : f32 to vector<8x1xf32>
    %664 = arith.divf %662, %663 : vector<8x1xf32>
    %665 = vector.broadcast %657 : vector<8x1xf32> to vector<8x32xf32>
    %666 = arith.subf %649, %665 : vector<8x32xf32>
    %cst_433 = arith.constant 9.99999974E-6 : f32
    %667 = vector.broadcast %cst_433 : f32 to vector<8x1xf32>
    %668 = arith.addf %664, %667 : vector<8x1xf32>
    %669 = math.rsqrt %668 : vector<8x1xf32>
    %670 = vector.broadcast %669 : vector<8x1xf32> to vector<8x32xf32>
    %671 = arith.mulf %666, %670 : vector<8x32xf32>
    %672 = vector.broadcast %651 : vector<1x32xf32> to vector<8x32xf32>
    %673 = arith.mulf %671, %672 : vector<8x32xf32>
    %674 = vector.broadcast %653 : vector<1x32xf32> to vector<8x32xf32>
    %675 = arith.addf %673, %674 : vector<8x32xf32>
    %c0_434 = arith.constant 0 : index
    %c0_435 = arith.constant 0 : index
    %676 = vector.load %arg8[%c0_434, %c0_435] : memref<32x128xf32, #tpu.memory_space<vmem>>, vector<32x128xf32>
    %cst_436 = arith.constant dense<0.000000e+00> : vector<8x128xf32>
    %677 = tpu.matmul %675, %676, %cst_436 {dimension_numbers = #tpu.dot_dimension_numbers<[1], [0], [0], [1], [0, 0, 1, 1], [], []>} : vector<8x32xf32>, vector<32x128xf32>, vector<8x128xf32> -> vector<8x128xf32>
    %c0_437 = arith.constant 0 : index
    %c0_438 = arith.constant 0 : index
    %678 = vector.load %arg9[%c0_437, %c0_438] : memref<1x128xf32, #tpu.memory_space<vmem>>, vector<1x128xf32>
    %679 = vector.broadcast %678 : vector<1x128xf32> to vector<8x128xf32>
    %680 = arith.addf %677, %679 : vector<8x128xf32>
    %c0_439 = arith.constant 0 : index
    %c0_440 = arith.constant 0 : index
    %c0_441 = arith.constant 0 : index
    %681 = vector.load %arg52[%c0_439, %c0_440, %c0_441] : memref<1x8x128xf32, #tpu.memory_space<vmem>>, vector<1x8x128xf32>
    %682 = vector.shape_cast %681 : vector<1x8x128xf32> to vector<8x128xf32>
    %683 = vector.shape_cast %680 : vector<8x128xf32> to vector<1x8x128xf32>
    tpu.vector_store %arg52[%c0_439, %c0_440, %c0_441], %683 {strides = array<i32>} : memref<1x8x128xf32, #tpu.memory_space<vmem>>, vector<1x8x128xf32>,
    return
  }
  func.func @transform_0(%arg0: i32) -> (i32, i32, i32) {
    %c0_i32 = arith.constant 0 : i32
    %c0_i32_0 = arith.constant 0 : i32
    %c0_i32_1 = arith.constant 0 : i32
    return %arg0, %c0_i32, %c0_i32_0 : i32, i32, i32
  }
  func.func @transform_1(%arg0: i32) -> (i32, i32, i32) {
    %c0_i32 = arith.constant 0 : i32
    %c0_i32_0 = arith.constant 0 : i32
    %c0_i32_1 = arith.constant 0 : i32
    return %arg0, %c0_i32, %c0_i32_0 : i32, i32, i32
  }
  func.func @transform_2(%arg0: i32) -> (i32, i32, i32) {
    %c0_i32 = arith.constant 0 : i32
    %c0_i32_0 = arith.constant 0 : i32
    %c0_i32_1 = arith.constant 0 : i32
    return %arg0, %c0_i32, %c0_i32_0 : i32, i32, i32
  }
  func.func @transform_3(%arg0: i32) -> (i32, i32) {
    %c0_i32 = arith.constant 0 : i32
    %c0_i32_0 = arith.constant 0 : i32
    %c0_i32_1 = arith.constant 0 : i32
    return %c0_i32, %c0_i32_0 : i32, i32
  }
  func.func @transform_4(%arg0: i32) -> (i32, i32) {
    %c0_i32 = arith.constant 0 : i32
    %c0_i32_0 = arith.constant 0 : i32
    %c0_i32_1 = arith.constant 0 : i32
    return %c0_i32, %c0_i32_0 : i32, i32
  }
  func.func @transform_5(%arg0: i32) -> (i32, i32) {
    %c0_i32 = arith.constant 0 : i32
    %c0_i32_0 = arith.constant 0 : i32
    %c0_i32_1 = arith.constant 0 : i32
    return %c0_i32, %c0_i32_0 : i32, i32
  }
  func.func @transform_6(%arg0: i32) -> (i32, i32) {
    %c0_i32 = arith.constant 0 : i32
    %c0_i32_0 = arith.constant 0 : i32
    %c0_i32_1 = arith.constant 0 : i32
    return %c0_i32, %c0_i32_0 : i32, i32
  }
  func.func @transform_7(%arg0: i32) -> (i32, i32) {
    %c0_i32 = arith.constant 0 : i32
    %c0_i32_0 = arith.constant 0 : i32
    %c0_i32_1 = arith.constant 0 : i32
    return %c0_i32, %c0_i32_0 : i32, i32
  }
  func.func @transform_8(%arg0: i32) -> (i32, i32) {
    %c0_i32 = arith.constant 0 : i32
    %c0_i32_0 = arith.constant 0 : i32
    %c0_i32_1 = arith.constant 0 : i32
    return %c0_i32, %c0_i32_0 : i32, i32
  }
  func.func @transform_9(%arg0: i32) -> (i32, i32, i32, i32) {
    %c0_i32 = arith.constant 0 : i32
    %c0_i32_0 = arith.constant 0 : i32
    %c0_i32_1 = arith.constant 0 : i32
    %c0_i32_2 = arith.constant 0 : i32
    %c0_i32_3 = arith.constant 0 : i32
    return %c0_i32, %c0_i32_0, %c0_i32_1, %c0_i32_2 : i32, i32, i32, i32
  }
  func.func @transform_10(%arg0: i32) -> (i32, i32, i32, i32) {
    %c0_i32 = arith.constant 0 : i32
    %c0_i32_0 = arith.constant 0 : i32
    %c0_i32_1 = arith.constant 0 : i32
    %c0_i32_2 = arith.constant 0 : i32
    %c0_i32_3 = arith.constant 0 : i32
    return %c0_i32, %c0_i32_0, %c0_i32_1, %c0_i32_2 : i32, i32, i32, i32
  }
  func.func @transform_11(%arg0: i32) -> (i32, i32, i32, i32) {
    %c0_i32 = arith.constant 0 : i32
    %c0_i32_0 = arith.constant 0 : i32
    %c0_i32_1 = arith.constant 0 : i32
    %c0_i32_2 = arith.constant 0 : i32
    %c0_i32_3 = arith.constant 0 : i32
    return %c0_i32, %c0_i32_0, %c0_i32_1, %c0_i32_2 : i32, i32, i32, i32
  }
  func.func @transform_12(%arg0: i32) -> (i32, i32, i32, i32) {
    %c0_i32 = arith.constant 0 : i32
    %c0_i32_0 = arith.constant 0 : i32
    %c0_i32_1 = arith.constant 0 : i32
    %c0_i32_2 = arith.constant 0 : i32
    %c0_i32_3 = arith.constant 0 : i32
    return %c0_i32, %c0_i32_0, %c0_i32_1, %c0_i32_2 : i32, i32, i32, i32
  }
  func.func @transform_13(%arg0: i32) -> (i32, i32, i32, i32) {
    %c0_i32 = arith.constant 0 : i32
    %c0_i32_0 = arith.constant 0 : i32
    %c0_i32_1 = arith.constant 0 : i32
    %c0_i32_2 = arith.constant 0 : i32
    %c0_i32_3 = arith.constant 0 : i32
    return %c0_i32, %c0_i32_0, %c0_i32_1, %c0_i32_2 : i32, i32, i32, i32
  }
  func.func @transform_14(%arg0: i32) -> (i32, i32, i32, i32) {
    %c0_i32 = arith.constant 0 : i32
    %c0_i32_0 = arith.constant 0 : i32
    %c0_i32_1 = arith.constant 0 : i32
    %c0_i32_2 = arith.constant 0 : i32
    %c0_i32_3 = arith.constant 0 : i32
    return %c0_i32, %c0_i32_0, %c0_i32_1, %c0_i32_2 : i32, i32, i32, i32
  }
  func.func @transform_15(%arg0: i32) -> (i32, i32, i32, i32) {
    %c0_i32 = arith.constant 0 : i32
    %c0_i32_0 = arith.constant 0 : i32
    %c0_i32_1 = arith.constant 0 : i32
    %c0_i32_2 = arith.constant 0 : i32
    %c0_i32_3 = arith.constant 0 : i32
    return %c0_i32, %c0_i32_0, %c0_i32_1, %c0_i32_2 : i32, i32, i32, i32
  }
  func.func @transform_16(%arg0: i32) -> (i32, i32, i32) {
    %c0_i32 = arith.constant 0 : i32
    %c0_i32_0 = arith.constant 0 : i32
    %c0_i32_1 = arith.constant 0 : i32
    %c0_i32_2 = arith.constant 0 : i32
    return %c0_i32, %c0_i32_0, %c0_i32_1 : i32, i32, i32
  }
  func.func @transform_17(%arg0: i32) -> (i32, i32, i32) {
    %c0_i32 = arith.constant 0 : i32
    %c0_i32_0 = arith.constant 0 : i32
    %c0_i32_1 = arith.constant 0 : i32
    %c0_i32_2 = arith.constant 0 : i32
    return %c0_i32, %c0_i32_0, %c0_i32_1 : i32, i32, i32
  }
  func.func @transform_18(%arg0: i32) -> (i32, i32, i32) {
    %c0_i32 = arith.constant 0 : i32
    %c0_i32_0 = arith.constant 0 : i32
    %c0_i32_1 = arith.constant 0 : i32
    %c0_i32_2 = arith.constant 0 : i32
    return %c0_i32, %c0_i32_0, %c0_i32_1 : i32, i32, i32
  }
  func.func @transform_19(%arg0: i32) -> (i32, i32, i32) {
    %c0_i32 = arith.constant 0 : i32
    %c0_i32_0 = arith.constant 0 : i32
    %c0_i32_1 = arith.constant 0 : i32
    %c0_i32_2 = arith.constant 0 : i32
    return %c0_i32, %c0_i32_0, %c0_i32_1 : i32, i32, i32
  }
  func.func @transform_20(%arg0: i32) -> (i32, i32, i32) {
    %c0_i32 = arith.constant 0 : i32
    %c0_i32_0 = arith.constant 0 : i32
    %c0_i32_1 = arith.constant 0 : i32
    %c0_i32_2 = arith.constant 0 : i32
    return %c0_i32, %c0_i32_0, %c0_i32_1 : i32, i32, i32
  }
  func.func @transform_21(%arg0: i32) -> (i32, i32, i32) {
    %c0_i32 = arith.constant 0 : i32
    %c0_i32_0 = arith.constant 0 : i32
    %c0_i32_1 = arith.constant 0 : i32
    %c0_i32_2 = arith.constant 0 : i32
    return %c0_i32, %c0_i32_0, %c0_i32_1 : i32, i32, i32
  }
  func.func @transform_22(%arg0: i32) -> (i32, i32, i32) {
    %c0_i32 = arith.constant 0 : i32
    %c0_i32_0 = arith.constant 0 : i32
    %c0_i32_1 = arith.constant 0 : i32
    %c0_i32_2 = arith.constant 0 : i32
    return %c0_i32, %c0_i32_0, %c0_i32_1 : i32, i32, i32
  }
  func.func @transform_23(%arg0: i32) -> (i32, i32, i32) {
    %c0_i32 = arith.constant 0 : i32
    %c0_i32_0 = arith.constant 0 : i32
    %c0_i32_1 = arith.constant 0 : i32
    %c0_i32_2 = arith.constant 0 : i32
    return %c0_i32, %c0_i32_0, %c0_i32_1 : i32, i32, i32
  }
  func.func @transform_24(%arg0: i32) -> (i32, i32, i32) {
    %c0_i32 = arith.constant 0 : i32
    %c0_i32_0 = arith.constant 0 : i32
    %c0_i32_1 = arith.constant 0 : i32
    %c0_i32_2 = arith.constant 0 : i32
    return %c0_i32, %c0_i32_0, %c0_i32_1 : i32, i32, i32
  }
  func.func @transform_25(%arg0: i32) -> (i32, i32, i32, i32) {
    %c0_i32 = arith.constant 0 : i32
    %c0_i32_0 = arith.constant 0 : i32
    %c0_i32_1 = arith.constant 0 : i32
    %c0_i32_2 = arith.constant 0 : i32
    %c0_i32_3 = arith.constant 0 : i32
    return %c0_i32, %c0_i32_0, %c0_i32_1, %c0_i32_2 : i32, i32, i32, i32
  }
  func.func @transform_26(%arg0: i32) -> (i32, i32, i32, i32) {
    %c0_i32 = arith.constant 0 : i32
    %c0_i32_0 = arith.constant 0 : i32
    %c0_i32_1 = arith.constant 0 : i32
    %c0_i32_2 = arith.constant 0 : i32
    %c0_i32_3 = arith.constant 0 : i32
    return %c0_i32, %c0_i32_0, %c0_i32_1, %c0_i32_2 : i32, i32, i32, i32
  }
  func.func @transform_27(%arg0: i32) -> (i32, i32, i32, i32) {
    %c0_i32 = arith.constant 0 : i32
    %c0_i32_0 = arith.constant 0 : i32
    %c0_i32_1 = arith.constant 0 : i32
    %c0_i32_2 = arith.constant 0 : i32
    %c0_i32_3 = arith.constant 0 : i32
    return %c0_i32, %c0_i32_0, %c0_i32_1, %c0_i32_2 : i32, i32, i32, i32
  }
  func.func @transform_28(%arg0: i32) -> (i32, i32, i32, i32) {
    %c0_i32 = arith.constant 0 : i32
    %c0_i32_0 = arith.constant 0 : i32
    %c0_i32_1 = arith.constant 0 : i32
    %c0_i32_2 = arith.constant 0 : i32
    %c0_i32_3 = arith.constant 0 : i32
    return %c0_i32, %c0_i32_0, %c0_i32_1, %c0_i32_2 : i32, i32, i32, i32
  }
  func.func @transform_29(%arg0: i32) -> (i32, i32, i32, i32) {
    %c0_i32 = arith.constant 0 : i32
    %c0_i32_0 = arith.constant 0 : i32
    %c0_i32_1 = arith.constant 0 : i32
    %c0_i32_2 = arith.constant 0 : i32
    %c0_i32_3 = arith.constant 0 : i32
    return %c0_i32, %c0_i32_0, %c0_i32_1, %c0_i32_2 : i32, i32, i32, i32
  }
  func.func @transform_30(%arg0: i32) -> (i32, i32, i32, i32) {
    %c0_i32 = arith.constant 0 : i32
    %c0_i32_0 = arith.constant 0 : i32
    %c0_i32_1 = arith.constant 0 : i32
    %c0_i32_2 = arith.constant 0 : i32
    %c0_i32_3 = arith.constant 0 : i32
    return %c0_i32, %c0_i32_0, %c0_i32_1, %c0_i32_2 : i32, i32, i32, i32
  }
  func.func @transform_31(%arg0: i32) -> (i32, i32, i32, i32) {
    %c0_i32 = arith.constant 0 : i32
    %c0_i32_0 = arith.constant 0 : i32
    %c0_i32_1 = arith.constant 0 : i32
    %c0_i32_2 = arith.constant 0 : i32
    %c0_i32_3 = arith.constant 0 : i32
    return %c0_i32, %c0_i32_0, %c0_i32_1, %c0_i32_2 : i32, i32, i32, i32
  }
  func.func @transform_32(%arg0: i32) -> (i32, i32, i32) {
    %c0_i32 = arith.constant 0 : i32
    %c0_i32_0 = arith.constant 0 : i32
    %c0_i32_1 = arith.constant 0 : i32
    %c0_i32_2 = arith.constant 0 : i32
    return %c0_i32, %c0_i32_0, %c0_i32_1 : i32, i32, i32
  }
  func.func @transform_33(%arg0: i32) -> (i32, i32, i32) {
    %c0_i32 = arith.constant 0 : i32
    %c0_i32_0 = arith.constant 0 : i32
    %c0_i32_1 = arith.constant 0 : i32
    %c0_i32_2 = arith.constant 0 : i32
    return %c0_i32, %c0_i32_0, %c0_i32_1 : i32, i32, i32
  }
  func.func @transform_34(%arg0: i32) -> (i32, i32, i32) {
    %c0_i32 = arith.constant 0 : i32
    %c0_i32_0 = arith.constant 0 : i32
    %c0_i32_1 = arith.constant 0 : i32
    %c0_i32_2 = arith.constant 0 : i32
    return %c0_i32, %c0_i32_0, %c0_i32_1 : i32, i32, i32
  }
  func.func @transform_35(%arg0: i32) -> (i32, i32, i32, i32) {
    %c0_i32 = arith.constant 0 : i32
    %c0_i32_0 = arith.constant 0 : i32
    %c0_i32_1 = arith.constant 0 : i32
    %c0_i32_2 = arith.constant 0 : i32
    %c0_i32_3 = arith.constant 0 : i32
    return %c0_i32, %c0_i32_0, %c0_i32_1, %c0_i32_2 : i32, i32, i32, i32
  }
  func.func @transform_36(%arg0: i32) -> (i32, i32, i32, i32) {
    %c0_i32 = arith.constant 0 : i32
    %c0_i32_0 = arith.constant 0 : i32
    %c0_i32_1 = arith.constant 0 : i32
    %c0_i32_2 = arith.constant 0 : i32
    %c0_i32_3 = arith.constant 0 : i32
    return %c0_i32, %c0_i32_0, %c0_i32_1, %c0_i32_2 : i32, i32, i32, i32
  }
  func.func @transform_37(%arg0: i32) -> (i32, i32, i32, i32) {
    %c0_i32 = arith.constant 0 : i32
    %c0_i32_0 = arith.constant 0 : i32
    %c0_i32_1 = arith.constant 0 : i32
    %c0_i32_2 = arith.constant 0 : i32
    %c0_i32_3 = arith.constant 0 : i32
    return %c0_i32, %c0_i32_0, %c0_i32_1, %c0_i32_2 : i32, i32, i32, i32
  }
  func.func @transform_38(%arg0: i32) -> (i32, i32, i32, i32) {
    %c0_i32 = arith.constant 0 : i32
    %c0_i32_0 = arith.constant 0 : i32
    %c0_i32_1 = arith.constant 0 : i32
    %c0_i32_2 = arith.constant 0 : i32
    %c0_i32_3 = arith.constant 0 : i32
    return %c0_i32, %c0_i32_0, %c0_i32_1, %c0_i32_2 : i32, i32, i32, i32
  }
  func.func @transform_39(%arg0: i32) -> (i32, i32, i32, i32) {
    %c0_i32 = arith.constant 0 : i32
    %c0_i32_0 = arith.constant 0 : i32
    %c0_i32_1 = arith.constant 0 : i32
    %c0_i32_2 = arith.constant 0 : i32
    %c0_i32_3 = arith.constant 0 : i32
    return %c0_i32, %c0_i32_0, %c0_i32_1, %c0_i32_2 : i32, i32, i32, i32
  }
  func.func @transform_40(%arg0: i32) -> (i32, i32, i32, i32) {
    %c0_i32 = arith.constant 0 : i32
    %c0_i32_0 = arith.constant 0 : i32
    %c0_i32_1 = arith.constant 0 : i32
    %c0_i32_2 = arith.constant 0 : i32
    %c0_i32_3 = arith.constant 0 : i32
    return %c0_i32, %c0_i32_0, %c0_i32_1, %c0_i32_2 : i32, i32, i32, i32
  }
  func.func @transform_41(%arg0: i32) -> (i32, i32, i32, i32) {
    %c0_i32 = arith.constant 0 : i32
    %c0_i32_0 = arith.constant 0 : i32
    %c0_i32_1 = arith.constant 0 : i32
    %c0_i32_2 = arith.constant 0 : i32
    %c0_i32_3 = arith.constant 0 : i32
    return %c0_i32, %c0_i32_0, %c0_i32_1, %c0_i32_2 : i32, i32, i32, i32
  }
  func.func @transform_42(%arg0: i32) -> (i32, i32, i32) {
    %c0_i32 = arith.constant 0 : i32
    %c0_i32_0 = arith.constant 0 : i32
    %c0_i32_1 = arith.constant 0 : i32
    %c0_i32_2 = arith.constant 0 : i32
    return %c0_i32, %c0_i32_0, %c0_i32_1 : i32, i32, i32
  }
  func.func @transform_43(%arg0: i32) -> (i32, i32, i32) {
    %c0_i32 = arith.constant 0 : i32
    %c0_i32_0 = arith.constant 0 : i32
    %c0_i32_1 = arith.constant 0 : i32
    %c0_i32_2 = arith.constant 0 : i32
    return %c0_i32, %c0_i32_0, %c0_i32_1 : i32, i32, i32
  }
  func.func @transform_44(%arg0: i32) -> (i32, i32, i32) {
    %c0_i32 = arith.constant 0 : i32
    %c0_i32_0 = arith.constant 0 : i32
    %c0_i32_1 = arith.constant 0 : i32
    %c0_i32_2 = arith.constant 0 : i32
    return %c0_i32, %c0_i32_0, %c0_i32_1 : i32, i32, i32
  }
  func.func @transform_45(%arg0: i32) -> (i32, i32, i32) {
    %c0_i32 = arith.constant 0 : i32
    %c0_i32_0 = arith.constant 0 : i32
    %c0_i32_1 = arith.constant 0 : i32
    %c0_i32_2 = arith.constant 0 : i32
    return %c0_i32, %c0_i32_0, %c0_i32_1 : i32, i32, i32
  }
  func.func @transform_46(%arg0: i32) -> (i32, i32, i32) {
    %c0_i32 = arith.constant 0 : i32
    %c0_i32_0 = arith.constant 0 : i32
    %c0_i32_1 = arith.constant 0 : i32
    %c0_i32_2 = arith.constant 0 : i32
    return %c0_i32, %c0_i32_0, %c0_i32_1 : i32, i32, i32
  }
  func.func @transform_47(%arg0: i32) -> (i32, i32, i32) {
    %c0_i32 = arith.constant 0 : i32
    %c0_i32_0 = arith.constant 0 : i32
    %c0_i32_1 = arith.constant 0 : i32
    %c0_i32_2 = arith.constant 0 : i32
    return %c0_i32, %c0_i32_0, %c0_i32_1 : i32, i32, i32
  }
  func.func @transform_48(%arg0: i32) -> (i32, i32, i32) {
    %c0_i32 = arith.constant 0 : i32
    %c0_i32_0 = arith.constant 0 : i32
    %c0_i32_1 = arith.constant 0 : i32
    %c0_i32_2 = arith.constant 0 : i32
    return %c0_i32, %c0_i32_0, %c0_i32_1 : i32, i32, i32
  }
  func.func @transform_49(%arg0: i32) -> (i32, i32, i32) {
    %c0_i32 = arith.constant 0 : i32
    %c0_i32_0 = arith.constant 0 : i32
    %c0_i32_1 = arith.constant 0 : i32
    %c0_i32_2 = arith.constant 0 : i32
    return %c0_i32, %c0_i32_0, %c0_i32_1 : i32, i32, i32
  }
  func.func @transform_50(%arg0: i32) -> (i32, i32, i32) {
    %c0_i32 = arith.constant 0 : i32
    %c0_i32_0 = arith.constant 0 : i32
    %c0_i32_1 = arith.constant 0 : i32
    %c0_i32_2 = arith.constant 0 : i32
    return %c0_i32, %c0_i32_0, %c0_i32_1 : i32, i32, i32
  }
  func.func @transform_51(%arg0: i32) -> (i32, i32, i32) {
    %c0_i32 = arith.constant 0 : i32
    %c0_i32_0 = arith.constant 0 : i32
    %c0_i32_1 = arith.constant 0 : i32
    return %arg0, %c0_i32, %c0_i32_0 : i32, i32, i32
  }
}

</mosaic_0001>

<bundles_post_ra>
// kernel: tpu_custom_call.1
= control target key start
LH: loop header
LB: loop body
LE: loop exit
PB: predicated region body
PF: predicated region fallthrough
CT: control target
= control target key end

     0   :  { %s18076_s6 = smov 1   ;;  %s18077_s10 = smov 2   ;;  %s20047_s0 = inlined_call_operand.smem [shape: u32[52], index: -1, kind: input, shape index: {}] }
   0x1   :  { %s18142_s5 = sld [smem:[%s20047_s0]]   ;;  %s18078_s14 = smov 3  }
   0x2   :  { %s18147_s9 = sld [smem:[%s20047_s0 + %s18076_s6]]   ;;  %s18079_s18 = smov 4  }
   0x3   :  { %s18152_s13 = sld [smem:[%s20047_s0 + %s18077_s10]]   ;;  %s18080_s22 = smov 5  }
   0x4   :  { %s18157_s17 = sld [smem:[%s20047_s0 + %s18078_s14]]   ;;  %s18081_s26 = smov 6  }
   0x5   :  { %s18162_s21 = sld [smem:[%s20047_s0 + %s18079_s18]]   ;;  %s18082_s30 = smov 7  }
   0x6   :  { %s18167_s25 = sld [smem:[%s20047_s0 + %s18080_s22]]   ;;  %s18083_s4 = smov 8  }
   0x7   :  { %20117 = sst [smem:[#allocation5_spill]] %s18142_s5  ;;  %s18084_s10 = smov 9  }
   0x8   :  { %20118 = sst [smem:[#allocation6_spill]] %s18147_s9  ;;  %s18085_s15 = smov 10  }
   0x9   :  { %20119 = sst [smem:[#allocation7_spill]] %s18152_s13  ;;  %s18086_s20 = smov 11  }
   0xa   :  { %20120 = sst [smem:[#allocation8_spill]] %s18157_s17  ;;  %s18088_s1 = smov 13  }
   0xb   :  { %20121 = sst [smem:[#allocation9_spill]] %s18162_s21  ;;  %s18089_s7 = smov 14  }
   0xc   :  { %20122 = sst [smem:[#allocation10_spill]] %s18167_s25  ;;  %s18091_s22 = smov 16  }
   0xd   :  { %s18172_s29 = sld [smem:[%s20047_s0 + %s18081_s26]]   ;;  %s18087_s26 = smov 12  }
   0xe   :  { %s18177_s3 = sld [smem:[%s20047_s0 + %s18082_s30]]   ;;  %s18092_s28 = smov 17  }
   0xf   :  { %s18182_s8 = sld [smem:[%s20047_s0 + %s18083_s4]]  }
  0x10   :  { %s18187_s14 = sld [smem:[%s20047_s0 + %s18084_s10]]  }
  0x11   :  { %s18192_s19 = sld [smem:[%s20047_s0 + %s18085_s15]]   ;;  %s18090_s15 = smov 15  }
  0x12   :  { %s18197_s24 = sld [smem:[%s20047_s0 + %s18086_s20]]  }
  0x13   :  { %20123 = sst [smem:[#allocation11_spill]] %s18172_s29 }
  0x14   :  { %20124 = sst [smem:[#allocation12_spill]] %s18177_s3 }
  0x15   :  { %20125 = sst [smem:[#allocation13_spill]] %s18182_s8 }
  0x16   :  { %20126 = sst [smem:[#allocation14_spill]] %s18187_s14 }
  0x17   :  { %20127 = sst [smem:[#allocation15_spill]] %s18192_s19 }
  0x18   :  { %20128 = sst [smem:[#allocation16_spill]] %s18197_s24 }
  0x19   :  { %s18202_s30 = sld [smem:[%s20047_s0 + %s18087_s26]]  }
  0x1a   :  { %s18207_s6 = sld [smem:[%s20047_s0 + %s18088_s1]]  }
  0x1b   :  { %s18212_s12 = sld [smem:[%s20047_s0 + %s18089_s7]]   ;;  %s18093_s7 = smov 18  }
  0x1c   :  { %s18217_s20 = sld [smem:[%s20047_s0 + %s18090_s15]]   ;;  %s18094_s15 = smov 19  }
  0x1d   :  { %s18222_s27 = sld [smem:[%s20047_s0 + %s18091_s22]]   ;;  %s18095_s22 = smov 20  }
  0x1e   :  { %s18227_s4 = sld [smem:[%s20047_s0 + %s18092_s28]]   ;;  %s18096_s28 = smov 21  }
  0x1f   :  { %20129 = sst [smem:[#allocation17_spill]] %s18202_s30 }
  0x20   :  { %20130 = sst [smem:[#allocation18_spill]] %s18207_s6 }
  0x21   :  { %20131 = sst [smem:[#allocation19_spill]] %s18212_s12 }
  0x22   :  { %20132 = sst [smem:[#allocation20_spill]] %s18217_s20 }
  0x23   :  { %20133 = sst [smem:[#allocation21_spill]] %s18222_s27 }
  0x24   :  { %20134 = sst [smem:[#allocation22_spill]] %s18227_s4 }
  0x25   :  { %s18232_s8 = sld [smem:[%s20047_s0 + %s18093_s7]]   ;;  %s18097_s7 = smov 22  }
  0x26   :  { %s18237_s3 = sld [smem:[%s20047_s0 + %s18094_s15]]   ;;  %s18098_s15 = smov 23  }
  0x27   :  { %s18242_s29 = sld [smem:[%s20047_s0 + %s18095_s22]]   ;;  %s18099_s22 = smov 24  }
  0x28   :  { %s18247_s25 = sld [smem:[%s20047_s0 + %s18096_s28]]   ;;  %s18100_s28 = smov 25  }
  0x29   :  { %s18252_s9 = sld [smem:[%s20047_s0 + %s18097_s7]]   ;;  %s18101_s7 = smov 26  }
  0x2a   :  { %s18267_s4 = sld [smem:[%s20047_s0 + %s18100_s28]]   ;;  %s18104_s28 = smov 29  }
  0x2b   :  { %20135 = sst [smem:[#allocation23_spill]] %s18232_s8 }
  0x2c   :  { %20136 = sst [smem:[#allocation24_spill]] %s18237_s3 }
  0x2d   :  { %20137 = sst [smem:[#allocation25_spill]] %s18242_s29 }
  0x2e   :  { %20138 = sst [smem:[#allocation26_spill]] %s18247_s25 }
  0x2f   :  { %20139 = sst [smem:[#allocation27_spill]] %s18252_s9 }
  0x30   :  { %s18257_s8 = sld [smem:[%s20047_s0 + %s18098_s15]]   ;;  %s18102_s15 = smov 27  }
  0x31   :  { %s18262_s29 = sld [smem:[%s20047_s0 + %s18099_s22]]   ;;  %s18103_s22 = smov 28  }
  0x32   :  { %20142 = sst [smem:[#allocation30_spill]] %s18267_s4 }
  0x33   :  { %s18272_s9 = sld [smem:[%s20047_s0 + %s18101_s7]]   ;;  %s18105_s7 = smov 30  }
  0x34   :  { %s18287_s4 = sld [smem:[%s20047_s0 + %s18104_s28]]   ;;  %s18108_s28 = smov 33  }
  0x36   :  { %20140 = sst [smem:[#allocation28_spill]] %s18257_s8 }
  0x37   :  { %20141 = sst [smem:[#allocation29_spill]] %s18262_s29 }
  0x38   :  { %s18277_s8 = sld [smem:[%s20047_s0 + %s18102_s15]]   ;;  %s18106_s15 = smov 31  }
  0x39   :  { %20143 = sst [smem:[#allocation31_spill]] %s18272_s9 }
  0x3a   :  { %s18282_s29 = sld [smem:[%s20047_s0 + %s18103_s22]]   ;;  %s18107_s22 = smov 32  }
  0x3b   :  { %20146 = sst [smem:[#allocation34_spill]] %s18287_s4 }
  0x3c   :  { %s18292_s9 = sld [smem:[%s20047_s0 + %s18105_s7]]   ;;  %s18109_s7 = smov 34  }
  0x3d   :  { %s18307_s4 = sld [smem:[%s20047_s0 + %s18108_s28]]   ;;  %s18112_s28 = smov 37  }
  0x3e   :  { %20144 = sst [smem:[#allocation32_spill]] %s18277_s8 }
  0x3f   :  { %s18297_s8 = sld [smem:[%s20047_s0 + %s18106_s15]]   ;;  %s18110_s15 = smov 35  }
  0x40   :  { %20145 = sst [smem:[#allocation33_spill]] %s18282_s29 }
  0x41   :  { %s18302_s29 = sld [smem:[%s20047_s0 + %s18107_s22]]   ;;  %s18111_s22 = smov 36  }
  0x42   :  { %20147 = sst [smem:[#allocation35_spill]] %s18292_s9 }
  0x43   :  { %20150 = sst [smem:[#allocation38_spill]] %s18307_s4 }
  0x44   :  { %s18312_s9 = sld [smem:[%s20047_s0 + %s18109_s7]]   ;;  %s18113_s7 = smov 38  }
  0x45   :  { %20148 = sst [smem:[#allocation36_spill]] %s18297_s8 }
  0x46   :  { %s18317_s8 = sld [smem:[%s20047_s0 + %s18110_s15]]   ;;  %s18114_s15 = smov 39  }
  0x47   :  { %20149 = sst [smem:[#allocation37_spill]] %s18302_s29 }
  0x48   :  { %s18322_s29 = sld [smem:[%s20047_s0 + %s18111_s22]]   ;;  %s18115_s22 = smov 40  }
  0x49   :  { %s18327_s4 = sld [smem:[%s20047_s0 + %s18112_s28]]   ;;  %s18116_s28 = smov 41  }
  0x4a   :  { %20151 = sst [smem:[#allocation39_spill]] %s18312_s9 }
  0x4b   :  { %s18332_s9 = sld [smem:[%s20047_s0 + %s18113_s7]]   ;;  %s18117_s7 = smov 42  }
  0x4c   :  { %20152 = sst [smem:[#allocation40_spill]] %s18317_s8 }
  0x4d   :  { %s18337_s8 = sld [smem:[%s20047_s0 + %s18114_s15]]   ;;  %s18118_s15 = smov 43  }
  0x4e   :  { %20153 = sst [smem:[#allocation41_spill]] %s18322_s29 }
  0x4f   :  { %20154 = sst [smem:[#allocation42_spill]] %s18327_s4 }
  0x50   :  { %s18342_s29 = sld [smem:[%s20047_s0 + %s18115_s22]]   ;;  %s18119_s22 = smov 44  }
  0x51   :  { %20155 = sst [smem:[#allocation43_spill]] %s18332_s9 }
  0x52   :  { %s18347_s4 = sld [smem:[%s20047_s0 + %s18116_s28]]   ;;  %s18120_s28 = smov 45  }
  0x53   :  { %20156 = sst [smem:[#allocation44_spill]] %s18337_s8 }
  0x54   :  { %s18352_s9 = sld [smem:[%s20047_s0 + %s18117_s7]]   ;;  %s18121_s7 = smov 46  }
  0x55   :  { %s18357_s8 = sld [smem:[%s20047_s0 + %s18118_s15]]   ;;  %s18122_s15 = smov 47  }
  0x56   :  { %20157 = sst [smem:[#allocation45_spill]] %s18342_s29 }
  0x57   :  { %s18362_s29 = sld [smem:[%s20047_s0 + %s18119_s22]]   ;;  %s18123_s22 = smov 48  }
  0x58   :  { %20158 = sst [smem:[#allocation46_spill]] %s18347_s4 }
  0x59   :  { %s18367_s4 = sld [smem:[%s20047_s0 + %s18120_s28]]   ;;  %s18124_s28 = smov 49  }
  0x5a   :  { %20159 = sst [smem:[#allocation47_spill]] %s18352_s9 }
  0x5b   :  { %20160 = sst [smem:[#allocation48_spill]] %s18357_s8 }
  0x5c   :  { %s18372_s9 = sld [smem:[%s20047_s0 + %s18121_s7]]   ;;  %s18125_s7 = smov 50  }
  0x5d   :  { %20161 = sst [smem:[#allocation49_spill]] %s18362_s29 }
  0x5e   :  { %s18377_s8 = sld [smem:[%s20047_s0 + %s18122_s15]]   ;;  %s18126_s15 = smov 51  }
  0x5f   :  { %20162 = sst [smem:[#allocation50_spill]] %s18367_s4 }
  0x60   :  { %s18382_s29 = sld [smem:[%s20047_s0 + %s18123_s22]]  }
  0x61   :  { %s18387_s4 = sld [smem:[%s20047_s0 + %s18124_s28]]  }
  0x62   :  { %20163 = sst [smem:[#allocation51_spill]] %s18372_s9 }
  0x63   :  { %s18392_s9 = sld [smem:[%s20047_s0 + %s18125_s7]]  }
  0x64   :  { %20164 = sst [smem:[#allocation52_spill]] %s18377_s8 }
  0x65   :  { %s18397_s8 = sld [smem:[%s20047_s0 + %s18126_s15]]  }
  0x67   :  { %20165 = sst [smem:[#allocation53_spill]] %s18387_s4 }
  0x6b   :  { %20166 = sst [smem:[#allocation54_spill]] %s18397_s8 }
  0x6c   :  { %108 = vsyncpa [#allocation3], 0 }
  0x6d   :  { %110 = vsyncpa [#allocation3 + $0x1], 0  ;;  %s18399_s22 = smov 0   ;;  %s18401_s23 = smov 0  }
  0x6e   :  { %s18403_s26 = smov 0   ;;  %s18405_s28 = smov 0  }
  0x6f LB: > { %s20167_s4 = sld [smem:[#allocation53_spill]]  ;;  %s20168_s30 = sld [smem:[#allocation17_spill]]  ;;  %s18074_s28 = sphi %s18405_s28, %s20238_s28   ;;  %s18070_s26 = sphi %s18403_s26, %s20240_s26   ;;  %s18066_s23 = sphi %s18401_s23, %s20242_s23   ;;  %s18062_s22 = sphi %s18399_s22, %s20241_s22  }
  0x70   : > { %s20169_s27 = sld [smem:[#allocation21_spill]]  ;;  %s20170_s25 = sld [smem:[#allocation26_spill]] }
  0x71   : > { %s20171_s24 = sld [smem:[#allocation16_spill]]  ;;  %s20172_s20 = sld [smem:[#allocation20_spill]] }
  0x72   : > { %s20173_s19 = sld [smem:[#allocation15_spill]]  ;;  %s20174_s3 = sld [smem:[#allocation24_spill]] }
  0x73   : > { %s20175_s14 = sld [smem:[#allocation14_spill]]  ;;  %s20176_s12 = sld [smem:[#allocation19_spill]] }
  0x74   : > { %s20177_s6 = sld [smem:[#allocation18_spill]]  ;;  %s20178_s17 = sld [smem:[#allocation8_spill]] }
  0x75   : > { %20179 = sst [smem:[#allocation55_spill]] %s18062_s22  ;;  %s18420_s0 = sadd.s32 4294967295, %s18074_s28  }
  0x76   : > { %20180 = sst [smem:[#allocation56_spill]] %s18070_s26  ;;  %s14639_s1 = sadd.s32 4294967294, %s18074_s28  }
  0x77   : > { %20181 = sst [smem:[#allocation57_spill]] %s18074_s28  ;;  %s18424_s2 = sadd.s32 1, %s18074_s28  }
  0x78   : > { %20182 = sst [smem:[#allocation58_spill]] %s18420_s0  ;;  %s1209_s7 = sadd.s32 1, %s18070_s26 }
  0x79   : > { %20183 = sst [smem:[#allocation59_spill]] %s18424_s2  ;;  %s1206_s10 = ssub.s32 %s18074_s28, %s18424_s2 }
  0x7a   : > { %p1219_p0 = scmp.ne.s32.totalorder %s18070_s26, %s18066_s23  ;;  %p1207_p1 = scmp.eq.s32.totalorder %s1206_s10, 0 }
  0x7b   : > { %p1220_p2 = scmp.eq.s32.totalorder %s18420_s0, 1  ;;  %p1225_p3 = scmp.ne.s32.totalorder %s18066_s23, %s18062_s22 }
  0x7c   : > { %p1226_p4 = scmp.eq.s32.totalorder %s14639_s1, 1  ;;  %p14642_p7 = scmp.ge.s32.totalorder %s18074_s28, 1 }
  0x7d   : > { %s18435_s11 = scalar_select %p1207_p1, %s18070_s26, %s1209_s7  }
  0x7e   : > { %p18437_p5 = por %p1220_p2, %p1219_p0  ;;  %p18441_p6 = por %p1226_p4, %p1225_p3 }
  0x7f   : > { %20184 = sst [smem:[#allocation60_spill]] %s18435_s11  ;;  %p1408_p8 = scmp.lt.s32.totalorder %s18074_s28, 3 }
  0x80   : > { %s20185_s15 = scalar_select %p18437_p5, 1, 0 }
  0x81   : > { %s20187_s16 = scalar_select %p18441_p6, 1, 0 }
  0x82   : > { %20186 = sst [smem:[#allocation61_spill]] %s20185_s15  ;;  %p1409_p9 = pnand %p14642_p7, %p1408_p8 }
  0x83   : > { %20188 = sst [smem:[#allocation62_spill]] %s20187_s16  ;;  %p1534_p10 = scmp.lt.s32.totalorder (!%p1409_p9), %s18420_s0, 1  ;;  %v1556_v0 = vld [vmem:[%s20178_s17] sm:$0xff] (!%p1409_p9)  ;;  %v1557_v1 = vld [vmem:[%s20178_s17 + $0x8] sm:$0xff] (!%p1409_p9)  ;;  %v1558_v2 = vld [vmem:[%s20178_s17 + $0x10] sm:$0xff] (!%p1409_p9)  ;;  %v18127_v3 = vmov (!%p1409_p9), 0   ;;  %v1548_v20 = vlaneseq (!%p1409_p9) }
  0x84   : > { %1412 = sbr.rel (%p1409_p9) target bundleno = 12334 (0x302e), region = 224  ;;  %s20189_s5 = sld [smem:[#allocation5_spill]] (!%p1409_p9)  ;;  %17893 = vset.pattern.permute.xlu0 (!%p1409_p9), %v18127_v3  ;;  %v18128_v4 = vmov (!%p1409_p9), 0.0|0.0   ;;  %v17207_v5 = vpack.c.bf16 (!%p1409_p9), %v1557_v1, %v1556_v0  ;;  %v1559_v6 = vld [vmem:[%s20178_s17 + $0x18] sm:$0xff] (!%p1409_p9)  ;;  %v1560_v8 = vld [vmem:[%s20178_s17 + $0x20] sm:$0xff] (!%p1409_p9)  ;;  %v1561_v9 = vld [vmem:[%s20178_s17 + $0x28] sm:$0xff] (!%p1409_p9) }
  0x85   : > { %17206 = vmatprep.subr.bf16.mxu0 (!%p1409_p9), %v18128_v4  ;;  %17221 = vmatprep.subr.bf16.mxu1 (!%p1409_p9), %v18128_v4  ;;  %v17210_v7 = vpack.c.bf16 (!%p1409_p9), %v1559_v6, %v1558_v2  ;;  %v17213_v11 = vpack.c.bf16 (!%p1409_p9), %v1561_v9, %v1560_v8  ;;  %vm18129_vm0 = vmmov (!%p1409_p9), 0   ;;  %v18130_v12 = vmov (!%p1409_p9), 0.0   ;;  %v1646_v13 = vld [vmem:[%s20175_s14 + $0x20] sm:$0xff] (!%p1409_p9)  ;;  %v1647_v14 = vld [vmem:[%s20175_s14 + $0x28] sm:$0xff] (!%p1409_p9)  ;;  %v1562_v16 = vld [vmem:[%s20178_s17 + $0x30] sm:$0x3] (!%p1409_p9) }
  0x86   : > { %17208 = vmatpush3.bf16.msra.mxu0 (!%p1409_p9), %v17207_v5  ;;  %15821 = vmatprep.mubr.msk.f32.mxu0 (!%p1409_p9), %vm18129_vm0, %v18130_v12  ;;  %v17222_v15 = vpack.c.bf16 (!%p1409_p9), %v1647_v14, %v1646_v13  ;;  %vm1568_vm1 = vcmask (!%p1409_p9), 1041408   ;;  %v1648_v17 = vld [vmem:[%s20175_s14 + $0x30] sm:$0xff] (!%p1409_p9)  ;;  %v1649_v18 = vld [vmem:[%s20175_s14 + $0x38] sm:$0xff] (!%p1409_p9)  ;;  %v18479_v21 = vand.u32 (!%p1409_p9), 127, %v1548_v20  ;;  %v1642_v22 = vld [vmem:[%s20175_s14] sm:$0xff] (!%p1409_p9)  ;;  %vm1564_vm2 = vcmask (!%p1409_p9), 408576  }
  0x87   : > { %17209 = vmatprep.subr.bf16.mxu0 (!%p1409_p9), %v18128_v4  ;;  %15843 = vmatprep.mubr.msk.f32.mxu1 (!%p1409_p9), %vm18129_vm0, %v18130_v12  ;;  %v17225_v19 = vpack.c.bf16 (!%p1409_p9), %v1649_v18, %v1648_v17  ;;  %v1643_v23 = vld [vmem:[%s20175_s14 + $0x8] sm:$0xff] (!%p1409_p9)  ;;  %s20190_s21 = sld [smem:[#allocation9_spill]] (!%p1409_p9)  ;;  %v1644_v26 = vld [vmem:[%s20175_s14 + $0x10] sm:$0xff] (!%p1409_p9)  ;;  %v1645_v27 = vld [vmem:[%s20175_s14 + $0x18] sm:$0xff] (!%p1409_p9)  ;;  %vm1731_vm4 = vcmask (!%p1409_p9), 261120   ;;  %vm2623_vm5 = vcmask (!%p1409_p9), 64512  }
  0x88   : > { %17223 = vmatpush3.bf16.msra.mxu1 (!%p1409_p9), %v17222_v15  ;;  %v17216_v25 = vpack.c.bf16 (!%p1409_p9), %v1643_v23, %v1642_v22  ;;  %v17219_v29 = vpack.c.bf16 (!%p1409_p9), %v1645_v27, %v1644_v26  ;;  %v1650_v30 = vld [vmem:[%s20175_s14 + $0x40] sm:$0xff] (!%p1409_p9)  ;;  %v1651_v31 = vld [vmem:[%s20175_s14 + $0x48] sm:$0xff] (!%p1409_p9)  ;;  %v1652_v38 = vld [vmem:[%s20175_s14 + $0x50] sm:$0xff] (!%p1409_p9)  ;;  %s20191_s13 = sld [smem:[#allocation7_spill]] (!%p1409_p9)  ;;  %s20196_s17 = sld [smem:[#allocation28_spill]] (!%p1409_p9) }
  0x89   : > { %17224 = vmatprep.subr.bf16.mxu1 (!%p1409_p9), %v18128_v4  ;;  %v1654_v32 = vld [vmem:[%s20175_s14 + $0x60] sm:$0xff] (!%p1409_p9)  ;;  %v1655_v33 = vld [vmem:[%s20175_s14 + $0x68] sm:$0xff] (!%p1409_p9)  ;;  %v17228_v36 = vpack.c.bf16 (!%p1409_p9), %v1651_v31, %v1650_v30  ;;  %v1653_v41 = vld [vmem:[%s20175_s14 + $0x58] sm:$0xff] (!%p1409_p9)  ;;  %s20219_s11 = sld [smem:[#allocation47_spill]] (!%p1409_p9)  ;;  %s20220_s26 = sld [smem:[#allocation50_spill]] (!%p1409_p9) }
  0x8a   : > { %17211 = vmatpush3.bf16.msra.mxu0 (!%p1409_p9), %v17210_v7  ;;  %v17234_v37 = vpack.c.bf16 (!%p1409_p9), %v1655_v33, %v1654_v32  ;;  %v1656_v42 = vld [vmem:[%s20175_s14 + $0x70] sm:$0xff] (!%p1409_p9)  ;;  %v1657_v43 = vld [vmem:[%s20175_s14 + $0x78] sm:$0xff] (!%p1409_p9)  ;;  %v17231_v44 = vpack.c.bf16 (!%p1409_p9), %v1653_v41, %v1652_v38  ;;  %v1662_v46 = vld [vmem:[%s20171_s24] sm:$0xff] (!%p1409_p9)  ;;  %s20222_s16 = sld [smem:[#allocation52_spill]] (!%p1409_p9)  ;;  %s20225_s22 = sld [smem:[#allocation49_spill]] (!%p1409_p9) }
  0x8b   : > { %s18454_s18 = scalar_select %p1534_p10, %s18420_s0, 1  ;;  %17212 = vmatprep.subr.bf16.mxu0 %v18128_v4  ;;  %v17237_v45 = vpack.c.bf16 %v1657_v43, %v1656_v42  ;;  %v1663_v47 = vld [vmem:[%s20171_s24 + $0x8] sm:$0xff]  ;;  %v1666_v48 = vld [vmem:[%s20171_s24 + $0x20] sm:$0xff]  ;;  %v1664_v52 = vld [vmem:[%s20171_s24 + $0x10] sm:$0xff] }
  0x8c   : > { %17226 = vmatpush3.bf16.msra.mxu1 %v17225_v19  ;;  %v1667_v49 = vld [vmem:[%s20171_s24 + $0x28] sm:$0xff]  ;;  %v17240_v50 = vpack.c.bf16 %v1663_v47, %v1662_v46  ;;  %v1665_v53 = vld [vmem:[%s20171_s24 + $0x18] sm:$0xff]  ;;  %v1668_v54 = vld [vmem:[%s20171_s24 + $0x30] sm:$0xff]  ;;  %s20227_s28 = sld [smem:[#allocation51_spill]] }
  0x8d   : > { %s20079_s1 = sshll.u32 %s18454_s18, 3  ;;  %17233 = vmatprep.subr.bf16.mxu1 %v18128_v4  ;;  %v1563_v34 = vld [vmem:[%s20190_s21] sm:$0xff]  ;;  %v17246_v51 = vpack.c.bf16 %v1667_v49, %v1666_v48  ;;  %v1669_v55 = vld [vmem:[%s20171_s24 + $0x38] sm:$0xff]  ;;  %v17243_v56 = vpack.c.bf16 %v1665_v53, %v1664_v52  ;;  %v1671_v59 = vld [vmem:[%s20171_s24 + $0x48] sm:$0xff]  ;;  %s20197_s21 = sld [smem:[#allocation29_spill]] }
  0x8e   : > { %s1537_s7 = scalar_lea.vmem %s20189_s5, %s20079_s1  ;;  %17214 = vmatpush3.bf16.msra.mxu0 %v17213_v11  ;;  %v17249_v57 = vpack.c.bf16 %v1669_v55, %v1668_v54  ;;  %v1670_v58 = vld [vmem:[%s20171_s24 + $0x40] sm:$0xff]  ;;  %v1675_v61 = vld [vmem:[%s20171_s24 + $0x68] sm:$0xff]  ;;  %v1672_v0 = vld [vmem:[%s20171_s24 + $0x50] sm:$0xff]  ;;  %s18640_s10 = scalar_lea.vmem %s20191_s13, %s18454_s18 }
  0x8f   : > { %v1545_v10 = vld [vmem:[%s1537_s7] sm:$0xff]  ;;  %15819 = vmatprep.subr.mxu0 %v18130_v12  ;;  %v17252_v62 = vpack.c.bf16 %v1671_v59, %v1670_v58  ;;  %v1673_v1 = vld [vmem:[%s20171_s24 + $0x58] sm:$0xff]  ;;  %v1676_v2 = vld [vmem:[%s20171_s24 + $0x70] sm:$0xff]  ;;  %s20192_s7 = sld [smem:[#allocation22_spill]]  ;;  %s20193_s1 = sld [smem:[#allocation23_spill]] }
  0x90   : > { %1551 = vperm.xlu0 %17893, %v1545_v10   ;;  %v1674_v60 = vld [vmem:[%s20171_s24 + $0x60] sm:$0xff]  ;;  %v1677_v3 = vld [vmem:[%s20171_s24 + $0x78] sm:$0xff]  ;;  %v17255_v5 = vpack.c.bf16 %v1673_v1, %v1672_v0  ;;  %v1683_v8 = vld [vmem:[%s20177_s6 + $0x8] sm:$0xff]  ;;  %s20194_s5 = sld [smem:[#allocation25_spill]]  ;;  %s20195_s13 = sld [smem:[#allocation27_spill]] }
  0x91   : > { %v17258_v63 = vpack.c.bf16 %v1675_v61, %v1674_v60  ;;  %v17261_v6 = vpack.c.bf16 %v1677_v3, %v1676_v2  ;;  %v1682_v7 = vld [vmem:[%s20177_s6] sm:$0xff]  ;;  %v1687_v10 = vld [vmem:[%s20177_s6 + $0x28] sm:$0xff]  ;;  %v1684_v14 = vld [vmem:[%s20177_s6 + $0x10] sm:$0xff]  ;;  %s20221_s2 = smov %s20220_s26  ;;  %s20226_s8 = smov %s20225_s22 }
  0x92   : > { %15820 = vmatpush3.msk.msra.mxu0 %vm1568_vm1, %v1562_v16  ;;  %v1686_v9 = vld [vmem:[%s20177_s6 + $0x20] sm:$0xff]  ;;  %v17264_v11 = vpack.c.bf16 %v1683_v8, %v1682_v7  ;;  %v1685_v15 = vld [vmem:[%s20177_s6 + $0x18] sm:$0xff]  ;;  %v1688_v16 = vld [vmem:[%s20177_s6 + $0x30] sm:$0xff]  ;;  %s20228_s0 = smov %s20227_s28 }
  0x93   : > { %17215 = vmatprep.subr.bf16.mxu0 %v18128_v4  ;;  %v17270_v13 = vpack.c.bf16 %v1687_v10, %v1686_v9  ;;  %v1689_v17 = vld [vmem:[%s20177_s6 + $0x38] sm:$0xff]  ;;  %v17267_v18 = vpack.c.bf16 %v1685_v15, %v1684_v14  ;;  %v1690_v22 = vld [vmem:[%s20177_s6 + $0x40] sm:$0xff]  ;;  %v1691_v23 = vld [vmem:[%s20177_s6 + $0x48] sm:$0xff] }
  0x94   : > { %v17273_v19 = vpack.c.bf16 %v1689_v17, %v1688_v16  ;;  %v17276_v26 = vpack.c.bf16 %v1691_v23, %v1690_v22  ;;  %v1696_v30 = vld [vmem:[%s20177_s6 + $0x70] sm:$0xff]  ;;  %v1697_v31 = vld [vmem:[%s20177_s6 + $0x78] sm:$0xff]  ;;  %v14657_v43 = vld [vmem:[%s20168_s30] ss:$0 sm:$0xff] }
  0x95   : > { %v17285_v33 = vpack.c.bf16 %v1697_v31, %v1696_v30  ;;  %v14649_v47 = vld [vmem:[%s20173_s19] ss:$0 sm:$0xff]  ;;  %v14650_v48 = vld [vmem:[%s20173_s19 + $0x1] ss:$0 sm:$0xff]  ;;  %v14659_v55 = vld [vmem:[%s20168_s30 + $0x2] ss:$0 sm:$0xff] }
  0x96   : > { %v14651_v59 = vld [vmem:[%s20173_s19 + $0x2] ss:$0 sm:$0xff]  ;;  %v14652_v60 = vld [vmem:[%s20173_s19 + $0x3] ss:$0 sm:$0xff]  ;;  %v14665_v3 = vld [vmem:[%s20176_s12] ss:$0 sm:$0xff] }
  0x97   : > { %v18643_v17 = vld [vmem:[%s18640_s10] ss:$0 sm:$0xff] }
 0x10f   : > { %v1552_v24 = vpop.permute.xlu0 %1551 }
 0x110   : > { %vm1553_vm3 = vcmp.eq.s32.totalorder %v1552_v24, %v18479_v21  ;;  %v1694_v24 = vld [vmem:[%s20177_s6 + $0x60] sm:$0xff] }
 0x111   : > { %v14646_v28 = vsel %vm1553_vm3, 1.0, %v18130_v12 }
 0x112   : > { %15822 = vmatmul.mubr.msk.f32.vlgmr.msra.gmra.mrb[0].mxu0 %vm1564_vm2, %v14646_v28  ;;  %v1692_v28 = vld [vmem:[%s20177_s6 + $0x50] sm:$0xff] }
 0x113   : > { %17217 = vmatpush3.bf16.msra.mxu0 %v17216_v25  ;;  %15832 = vmatprep.mubr.msk.f32.mxu0 %vm18129_vm0, %v18130_v12  ;;  %v1695_v25 = vld [vmem:[%s20177_s6 + $0x68] sm:$0xff] }
 0x114   : > { %17218 = vmatprep.subr.bf16.mxu0 %v18128_v4  ;;  %v17282_v27 = vpack.c.bf16 %v1695_v25, %v1694_v24 }
 0x117   : > { %17220 = vmatpush3.bf16.msra.mxu0 %v17219_v29  ;;  %v1693_v29 = vld [vmem:[%s20177_s6 + $0x58] sm:$0xff] }
 0x118   : > { %17227 = vmatprep.subr.bf16.mxu0 %v18128_v4  ;;  %v17279_v32 = vpack.c.bf16 %v1693_v29, %v1692_v28 }
 0x1e5   : > { %v1638_v35 = vpop.f32.mrb[0].mxu0 }
 0x1e6   : > { %v18497_v39 = vadd.f32 %v1638_v35, %v1563_v34  ;;  %v15823_v40 = vpop.f32.mrb[1].mxu0 }
 0x1e8   : > { %15833 = vmatmul.mubr.msk.f32.vlgmr.msra.gmra.mrb[2].mxu0 %vm1731_vm4, %v18497_v39  ;;  %15844 = vmatmul.mubr.msk.f32.vlgmr.msra.gmra.mrb[0].mxu1 %vm1731_vm4, %v18497_v39 }
 0x1e9   : > { %17229 = vmatpush3.bf16.msra.mxu0 %v17228_v36  ;;  %17235 = vmatpush3.bf16.msra.mxu1 %v17234_v37 }
 0x1ea   : > { %17230 = vmatprep.subr.bf16.mxu0 %v18128_v4  ;;  %17236 = vmatprep.subr.bf16.mxu1 %v18128_v4 }
 0x1eb   : > { %15854 = vmatprep.mubr.msk.f32.mxu0 %vm18129_vm0, %v18130_v12  ;;  %15865 = vmatprep.mubr.msk.f32.mxu1 %vm18129_vm0, %v18130_v12 }
 0x1ed   : > { %17232 = vmatpush3.bf16.msra.mxu0 %v17231_v44  ;;  %17238 = vmatpush3.bf16.msra.mxu1 %v17237_v45  ;;  %v14658_v44 = vld [vmem:[%s20168_s30 + $0x1] ss:$0 sm:$0xff] }
 0x1ee   : > { %17239 = vmatprep.subr.bf16.mxu0 %v18128_v4  ;;  %17245 = vmatprep.subr.bf16.mxu1 %v18128_v4 }
 0x1f0   : > { %15855 = vmatmul.mubr.msk.f32.vlgmr.msra.gmra.mrb[4].mxu0 %vm1731_vm4, %v18497_v39  ;;  %15866 = vmatmul.mubr.msk.f32.vlgmr.msra.gmra.mrb[2].mxu1 %vm1731_vm4, %v18497_v39 }
 0x1f1   : > { %17241 = vmatpush3.bf16.msra.mxu0 %v17240_v50  ;;  %17247 = vmatpush3.bf16.msra.mxu1 %v17246_v51 }
 0x1f2   : > { %17242 = vmatprep.subr.bf16.mxu0 %v18128_v4  ;;  %17248 = vmatprep.subr.bf16.mxu1 %v18128_v4 }
 0x1f3   : > { %15876 = vmatprep.mubr.msk.f32.mxu0 %vm18129_vm0, %v18130_v12  ;;  %15887 = vmatprep.mubr.msk.f32.mxu1 %vm18129_vm0, %v18130_v12 }
 0x1f5   : > { %17244 = vmatpush3.bf16.msra.mxu0 %v17243_v56  ;;  %17250 = vmatpush3.bf16.msra.mxu1 %v17249_v57  ;;  %v14660_v56 = vld [vmem:[%s20168_s30 + $0x3] ss:$0 sm:$0xff] }
 0x1f6   : > { %17251 = vmatprep.subr.bf16.mxu0 %v18128_v4  ;;  %17257 = vmatprep.subr.bf16.mxu1 %v18128_v4 }
 0x1f8   : > { %15877 = vmatmul.mubr.msk.f32.vlgmr.msra.gmra.mrb[6].mxu0 %vm1731_vm4, %v18497_v39  ;;  %15888 = vmatmul.mubr.msk.f32.vlgmr.msra.gmra.mrb[4].mxu1 %vm1731_vm4, %v18497_v39 }
 0x1f9   : > { %17253 = vmatpush3.bf16.msra.mxu0 %v17252_v62  ;;  %17259 = vmatpush3.bf16.msra.mxu1 %v17258_v63 }
 0x1fa   : > { %17254 = vmatprep.subr.bf16.mxu0 %v18128_v4  ;;  %17260 = vmatprep.subr.bf16.mxu1 %v18128_v4 }
 0x1fb   : > { %15898 = vmatprep.mubr.msk.f32.mxu0 %vm18129_vm0, %v18130_v12  ;;  %15909 = vmatprep.mubr.msk.f32.mxu1 %vm18129_vm0, %v18130_v12 }
 0x1fd   : > { %17256 = vmatpush3.bf16.msra.mxu0 %v17255_v5  ;;  %17262 = vmatpush3.bf16.msra.mxu1 %v17261_v6  ;;  %v14666_v5 = vld [vmem:[%s20176_s12 + $0x1] ss:$0 sm:$0xff] }
 0x1fe   : > { %17263 = vmatprep.subr.bf16.mxu0 %v18128_v4  ;;  %17269 = vmatprep.subr.bf16.mxu1 %v18128_v4 }
 0x200   : > { %15899 = vmatmul.mubr.msk.f32.vlgmr.msra.gmra.mrb[8].mxu0 %vm1731_vm4, %v18497_v39  ;;  %15910 = vmatmul.mubr.msk.f32.vlgmr.msra.gmra.mrb[6].mxu1 %vm1731_vm4, %v18497_v39 }
 0x201   : > { %17265 = vmatpush3.bf16.msra.mxu0 %v17264_v11  ;;  %17271 = vmatpush3.bf16.msra.mxu1 %v17270_v13 }
 0x202   : > { %17266 = vmatprep.subr.bf16.mxu0 %v18128_v4  ;;  %17272 = vmatprep.subr.bf16.mxu1 %v18128_v4 }
 0x203   : > { %15920 = vmatprep.mubr.msk.f32.mxu0 %vm18129_vm0, %v18130_v12  ;;  %15931 = vmatprep.mubr.msk.f32.mxu1 %vm18129_vm0, %v18130_v12 }
 0x205   : > { %17268 = vmatpush3.bf16.msra.mxu0 %v17267_v18  ;;  %17274 = vmatpush3.bf16.msra.mxu1 %v17273_v19 }
 0x206   : > { %17275 = vmatprep.subr.bf16.mxu0 %v18128_v4  ;;  %17281 = vmatprep.subr.bf16.mxu1 %v18128_v4 }
 0x208   : > { %15921 = vmatmul.mubr.msk.f32.vlgmr.msra.gmra.mrb[10].mxu0 %vm1731_vm4, %v18497_v39  ;;  %15932 = vmatmul.mubr.msk.f32.vlgmr.msra.gmra.mrb[8].mxu1 %vm1731_vm4, %v18497_v39 }
 0x209   : > { %17277 = vmatpush3.bf16.msra.mxu0 %v17276_v26  ;;  %17283 = vmatpush3.bf16.msra.mxu1 %v17282_v27 }
 0x20a   : > { %17278 = vmatprep.subr.bf16.mxu0 %v18128_v4  ;;  %17284 = vmatprep.subr.bf16.mxu1 %v18128_v4 }
 0x20b   : > { %15942 = vmatprep.mubr.msk.f32.mxu0 %vm18129_vm0, %v18130_v12  ;;  %15953 = vmatprep.mubr.msk.f32.mxu1 %vm18129_vm0, %v18130_v12 }
 0x20d   : > { %17280 = vmatpush3.bf16.msra.mxu0 %v17279_v32  ;;  %17286 = vmatpush3.bf16.msra.mxu1 %v17285_v33 }
 0x20e   : > { %15956 = vmatprep.subr.mxu0 %v18130_v12  ;;  %15961 = vmatprep.subr.mxu1 %v18130_v12 }
 0x210   : > { %15943 = vmatmul.mubr.msk.f32.vlgmr.msra.gmra.mrb[12].mxu0 %vm1731_vm4, %v18497_v39  ;;  %15954 = vmatmul.mubr.msk.f32.vlgmr.msra.gmra.mrb[10].mxu1 %vm1731_vm4, %v18497_v39 }
 0x211   : > { %15958 = vmatprep.mubr.msk.f32.mxu0 %vm18129_vm0, %v18130_v12  ;;  %15963 = vmatprep.mubr.msk.f32.mxu1 %vm18129_vm0, %v18130_v12 }
 0x2bb   : > { %v1801_v34 = vpop.f32.mrb[2].mxu0  ;;  %v1871_v35 = vpop.f32.mrb[0].mxu1 }
 0x2bc   : > { %v15834_v36 = vpop.f32.mrb[3].mxu0  ;;  %v15845_v37 = vpop.f32.mrb[1].mxu1  ;;  %v1802_v53 = vadd.f32 %v14649_v47, %v1801_v34  ;;  %v1872_v54 = vadd.f32 %v14650_v48, %v1871_v35 }
 0x2c3   : > { %v1941_v38 = vpop.f32.mrb[4].mxu0  ;;  %v2011_v40 = vpop.f32.mrb[2].mxu1 }
 0x2c4   : > { %v15856_v41 = vpop.f32.mrb[5].mxu0  ;;  %v15867_v42 = vpop.f32.mrb[3].mxu1  ;;  %v1942_v1 = vadd.f32 %v14651_v59, %v1941_v38  ;;  %v2012_v2 = vadd.f32 %v14652_v60, %v2011_v40 }
 0x2cb   : > { %v2105_v45 = vpop.f32.mrb[6].mxu0  ;;  %v2175_v46 = vpop.f32.mrb[4].mxu1 }
 0x2cc   : > { %v2106_v49 = vadd.f32 %v14657_v43, %v2105_v45  ;;  %v2176_v50 = vadd.f32 %v14658_v44, %v2175_v46  ;;  %v15878_v51 = vpop.f32.mrb[7].mxu0  ;;  %v15889_v52 = vpop.f32.mrb[5].mxu1 }
 0x2ce   : > { %15957 = vmatpush3.xpose.msk.msra.mxu0 %vm2623_vm5, %v2106_v49  ;;  %15962 = vmatpush3.xpose.msk.msra.mxu1 %vm2623_vm5, %v2176_v50 }
 0x2cf   : > { %15966 = vmatprep.subr.mxu0 %v18130_v12  ;;  %15971 = vmatprep.subr.mxu1 %v18130_v12 }
 0x2d1   : > { %15959 = vmatmul.mubr.msk.f32.vlgmr.msra.gmra.mrb[14].mxu0 %vm2623_vm5, %v1802_v53  ;;  %15964 = vmatmul.mubr.msk.f32.vlgmr.msra.gmra.mrb[12].mxu1 %vm2623_vm5, %v1872_v54 }
 0x2d2   : > { %15968 = vmatprep.mubr.msk.f32.mxu0 %vm18129_vm0, %v18130_v12  ;;  %15973 = vmatprep.mubr.msk.f32.mxu1 %vm18129_vm0, %v18130_v12 }
 0x2d3   : > { %v2245_v57 = vpop.f32.mrb[8].mxu0  ;;  %v2315_v58 = vpop.f32.mrb[6].mxu1 }
 0x2d4   : > { %v2246_v61 = vadd.f32 %v14659_v55, %v2245_v57  ;;  %v2316_v62 = vadd.f32 %v14660_v56, %v2315_v58  ;;  %v15900_v63 = vpop.f32.mrb[9].mxu0  ;;  %v15911_v0 = vpop.f32.mrb[7].mxu1 }
 0x2d5   : > { %v14667_v0 = vld [vmem:[%s20176_s12 + $0x2] ss:$0 sm:$0xff] }
 0x2d6   : > { %15967 = vmatpush3.xpose.msk.msra.mxu0 %vm2623_vm5, %v2246_v61  ;;  %15972 = vmatpush3.xpose.msk.msra.mxu1 %vm2623_vm5, %v2316_v62 }
 0x2d7   : > { %15976 = vmatprep.subr.mxu0 %v18130_v12  ;;  %15981 = vmatprep.subr.mxu1 %v18130_v12 }
 0x2d9   : > { %15969 = vmatmul.mubr.msk.f32.vlgmr.msra.gmra.mrb[16].mxu0 %vm2623_vm5, %v1942_v1  ;;  %15974 = vmatmul.mubr.msk.f32.vlgmr.msra.gmra.mrb[14].mxu1 %vm2623_vm5, %v2012_v2 }
 0x2da   : > { %15978 = vmatprep.mubr.msk.f32.mxu0 %vm18129_vm0, %v18130_v12  ;;  %15983 = vmatprep.mubr.msk.f32.mxu1 %vm18129_vm0, %v18130_v12 }
 0x2db   : > { %v2409_v6 = vpop.f32.mrb[10].mxu0  ;;  %v2479_v7 = vpop.f32.mrb[8].mxu1 }
 0x2dc   : > { %v2410_v8 = vadd.f32 %v14665_v3, %v2409_v6  ;;  %v2480_v9 = vadd.f32 %v14666_v5, %v2479_v7  ;;  %v15922_v10 = vpop.f32.mrb[11].mxu0  ;;  %v15933_v11 = vpop.f32.mrb[9].mxu1  ;;  %v14668_v6 = vld [vmem:[%s20176_s12 + $0x3] ss:$0 sm:$0xff] }
 0x2de   : > { %15977 = vmatpush3.msra.mxu0 %v2410_v8  ;;  %15982 = vmatpush3.msra.mxu1 %v2480_v9 }
 0x2df   : > { %15986 = vmatprep.subr.mxu0 %v18130_v12  ;;  %15991 = vmatprep.subr.mxu1 %v18130_v12 }
 0x2e3   : > { %v18634_v13 = vpop.f32.mrb[12].mxu0  ;;  %v18636_v14 = vpop.f32.mrb[10].mxu1 }
 0x2e4   : > { %v15944_v15 = vpop.f32.mrb[13].mxu0  ;;  %v15955_v16 = vpop.f32.mrb[11].mxu1  ;;  %v2550_v5 = vadd.f32 %v14667_v0, %v18634_v13  ;;  %v2620_v9 = vadd.f32 %v14668_v6, %v18636_v14  ;;  %v3623_v0 = vld [vmem:[%s20170_s25 + $0x18] sm:$0xff]  ;;  %v3626_v6 = vld [vmem:[%s20170_s25 + $0x30] sm:$0xff] }
 0x2e5   : > { %v1702_v15 = vld [vmem:[%s20172_s20] sm:$0xff]  ;;  %v1703_v16 = vld [vmem:[%s20172_s20 + $0x8] sm:$0xff] }
 0x3a4   : > { %v2696_v18 = vpop.f32.mrb[14].mxu0  ;;  %v2772_v19 = vpop.f32.mrb[12].mxu1 }
 0x3a5   : > { %v2928_v22 = vmul.f32 0.35355338, %v2696_v18  ;;  %v2929_v23 = vmul.f32 0.35355338, %v2772_v19  ;;  %v15960_v24 = vpop.f32.mrb[15].mxu0  ;;  %v15965_v25 = vpop.f32.mrb[13].mxu1 }
 0x3a6   : > { %v1704_v18 = vld [vmem:[%s20172_s20 + $0x10] sm:$0xff] }
 0x3a7   : > { %v2939_v26 = vadd.f32 %v18643_v17, %v2929_v23  ;;  %v2938_v27 = vadd.f32 %v18643_v17, %v2928_v22  ;;  %v1705_v23 = vld [vmem:[%s20172_s20 + $0x18] sm:$0xff] }
 0x3a9   : > { %v2945_v28 = vsel %vm2623_vm5, %v2939_v26, -inf  ;;  %v2942_v29 = vsel %vm2623_vm5, %v2938_v27, -inf }
 0x3aa   : > { %2946 = vmax.xlane.f32.xlu1 %v2945_v28  ;;  %2943 = vmax.xlane.f32.xlu0 %v2942_v29 }
 0x3ac   : > { %v2848_v30 = vpop.f32.mrb[16].mxu0  ;;  %v2924_v31 = vpop.f32.mrb[14].mxu1 }
 0x3ad   : > { %v2930_v32 = vmul.f32 0.35355338, %v2848_v30  ;;  %v2931_v33 = vmul.f32 0.35355338, %v2924_v31  ;;  %v15970_v34 = vpop.f32.mrb[17].mxu0  ;;  %v15975_v35 = vpop.f32.mrb[15].mxu1 }
 0x3af   : > { %v2940_v36 = vadd.f32 %v18643_v17, %v2930_v32  ;;  %v2941_v38 = vadd.f32 %v18643_v17, %v2931_v33 }
 0x3b1   : > { %v2948_v37 = vsel %vm2623_vm5, %v2940_v36, -inf  ;;  %v2951_v40 = vsel %vm2623_vm5, %v2941_v38, -inf }
 0x3b2   : > { %2949 = vmax.xlane.f32.xlu1 %v2948_v37 }
 0x3b6   : > { %2952 = vmax.xlane.f32.xlu1 %v2951_v40 }
 0x437   : > { %v2947_v41 = vpop.xlane.xlu1 %2946  ;;  %v2944_v42 = vpop.xlane.xlu0 %2943 }
 0x438   : > { %v2955_v43 = vsub.f32 %v2939_v26, %v2947_v41  ;;  %v2954_v44 = vsub.f32 %v2938_v27, %v2944_v42 }
 0x43a   : > { %v2958_v45 = vmul.f32 1.442695, %v2954_v44  ;;  %v2960_v46 = vmul.f32 1.442695, %v2955_v43  ;;  %v14690_v43 = vld [vmem:[%s20169_s27] ss:$0 sm:$0xff] }
 0x43c   : > { %17894 = vpow2.f32 %v2958_v45 }
 0x43d   : > { %17896 = vpow2.f32 %v2960_v46 }
 0x43f   : > { %v2950_v47 = vpop.xlane.xlu1 %2949 }
 0x440   : > { %v2956_v48 = vsub.f32 %v2940_v36, %v2950_v47 }
 0x442   : > { %v2962_v49 = vmul.f32 1.442695, %v2956_v48 }
 0x443   : > { %v2953_v50 = vpop.xlane.xlu1 %2952 }
 0x444   : > { %17898 = vpow2.f32 %v2962_v49  ;;  %v2957_v51 = vsub.f32 %v2941_v38, %v2953_v50 }
 0x446   : > { %v2964_v52 = vmul.f32 1.442695, %v2957_v51  ;;  %v17895_v53 = vpop.eup %17894 }
 0x447   : > { %v2966_v54 = vsel %vm2623_vm5, %v17895_v53, 0.0  ;;  %v17897_v55 = vpop.eup %17896 }
 0x448   : > { %17900 = vpow2.f32 %v2964_v52  ;;  %2967 = vadd.xlane.f32.xlu1 %v2966_v54  ;;  %v2969_v56 = vsel %vm2623_vm5, %v17897_v55, 0.0 }
 0x44c   : > { %2970 = vadd.xlane.f32.xlu1 %v2969_v56  ;;  %v3616_v56 = vld [vmem:[%s20174_s3 + $0x8] sm:$0xff] }
 0x44e   : > { %v17899_v57 = vpop.eup %17898 }
 0x44f   : > { %v2972_v58 = vsel %vm2623_vm5, %v17899_v57, 0.0 }
 0x450   : > { %2973 = vadd.xlane.f32.xlu1 %v2972_v58  ;;  %v3618_v58 = vld [vmem:[%s20174_s3 + $0x18] sm:$0xff] }
 0x452   : > { %v17901_v59 = vpop.eup %17900 }
 0x453   : > { %v2975_v60 = vsel %vm2623_vm5, %v17901_v59, 0.0 }
 0x454   : > { %2976 = vadd.xlane.f32.xlu1 %v2975_v60  ;;  %v3620_v60 = vld [vmem:[%s20170_s25] sm:$0xff] }
 0x4d5   : > { %v2968_v61 = vpop.xlane.xlu1 %2967 }
 0x4d6   : > { %17902 = vrcp.f32 %v2968_v61  ;;  %v3621_v61 = vld [vmem:[%s20170_s25 + $0x8] sm:$0xff] }
 0x4d9   : > { %v2971_v62 = vpop.xlane.xlu1 %2970 }
 0x4da   : > { %17904 = vrcp.f32 %v2971_v62  ;;  %v3622_v62 = vld [vmem:[%s20170_s25 + $0x10] sm:$0xff] }
 0x4dd   : > { %v2974_v63 = vpop.xlane.xlu1 %2973 }
 0x4de   : > { %17906 = vrcp.f32 %v2974_v63  ;;  %v17294_v63 = vpack.c.bf16 %v3621_v61, %v3620_v60  ;;  %v14721_v60 = vld [vmem:[%s20171_s24 + $0x98] sm:$0xff] }
 0x4e0   : > { %v17903_v1 = vpop.eup %17902 }
 0x4e1   : > { %v2982_v2 = vmul.f32 %v17903_v1, %v17895_v53  ;;  %v2977_v3 = vpop.xlane.xlu1 %2976  ;;  %v17297_v1 = vpack.c.bf16 %v3623_v0, %v3622_v62 }
 0x4e2   : > { %17908 = vrcp.f32 %v2977_v3  ;;  %v3625_v3 = vld [vmem:[%s20170_s25 + $0x28] sm:$0xff] }
 0x4e3   : > { %15979 = vmatmul.mubr.msk.f32.vlgmr.msra.gmra.mrb[18].mxu0 %vm2623_vm5, %v2982_v2  ;;  %v3624_v2 = vld [vmem:[%s20170_s25 + $0x20] sm:$0xff] }
 0x4e4   : > { %v17905_v7 = vpop.eup %17904  ;;  %15987 = vmatpush3.msra.mxu0 %v2550_v5  ;;  %15988 = vmatprep.mubr.msk.f32.mxu0 %vm18129_vm0, %v18130_v12  ;;  %v17300_v5 = vpack.c.bf16 %v3625_v3, %v3624_v2  ;;  %v14696_v2 = vld [vmem:[%s20196_s17] ss:$0 sm:$0xff] }
 0x4e5   : > { %v2983_v8 = vmul.f32 %v17905_v7, %v17897_v55  ;;  %15996 = vmatprep.subr.mxu0 %v18130_v12  ;;  %v3615_v55 = vld [vmem:[%s20174_s3] sm:$0xff]  ;;  %v3627_v7 = vld [vmem:[%s20170_s25 + $0x38] sm:$0xff] }
 0x4e6   : > { %v14702_v3 = vld [vmem:[%s20175_s14 + $0xa0] sm:$0xff] }
 0x4e7   : > { %15984 = vmatmul.mubr.msk.f32.vlgmr.msra.gmra.mrb[16].mxu1 %vm2623_vm5, %v2983_v8  ;;  %v17303_v8 = vpack.c.bf16 %v3627_v7, %v3626_v6  ;;  %v14703_v6 = vld [vmem:[%s20175_s14 + $0xa8] sm:$0xff]  ;;  %v14726_v7 = vld [vmem:[%s20171_s24 + $0xc0] sm:$0xff] }
 0x4e8   : > { %v17907_v10 = vpop.eup %17906  ;;  %15992 = vmatpush3.msra.mxu1 %v2620_v9  ;;  %15993 = vmatprep.mubr.msk.f32.mxu1 %vm18129_vm0, %v18130_v12  ;;  %v3628_v9 = vld [vmem:[%s20170_s25 + $0x40] sm:$0xff] }
 0x4e9   : > { %v2984_v11 = vmul.f32 %v17907_v10, %v17899_v57  ;;  %16001 = vmatprep.subr.mxu1 %v18130_v12  ;;  %v17288_v57 = vpack.c.bf16 %v3616_v56, %v3615_v55  ;;  %v3629_v10 = vld [vmem:[%s20170_s25 + $0x48] sm:$0xff] }
 0x4ea   : > { %v14719_v55 = vld [vmem:[%s20171_s24 + $0x88] sm:$0xff] }
 0x4eb   : > { %15989 = vmatmul.mubr.msk.f32.vlgmr.msra.gmra.mrb[20].mxu0 %vm2623_vm5, %v2984_v11  ;;  %v17306_v11 = vpack.c.bf16 %v3629_v10, %v3628_v9  ;;  %v14697_v9 = vld [vmem:[%s20197_s21] ss:$0 sm:$0xff] }
 0x4ec   : > { %v17909_v13 = vpop.eup %17908  ;;  %15998 = vmatprep.mubr.msk.f32.mxu0 %vm18129_vm0, %v18130_v12  ;;  %15997 = vmatpush3.msra.mxu0 %v1702_v15 }
 0x4ed   : > { %v2985_v14 = vmul.f32 %v17909_v13, %v17901_v59  ;;  %16006 = vmatprep.subr.mxu0 %v18130_v12  ;;  %v3630_v13 = vld [vmem:[%s20170_s25 + $0x50] sm:$0xff] }
 0x4ef   : > { %15994 = vmatmul.mubr.msk.f32.vlgmr.msra.gmra.mrb[18].mxu1 %vm2623_vm5, %v2985_v14  ;;  %v3631_v14 = vld [vmem:[%s20170_s25 + $0x58] sm:$0xff] }
 0x4f0   : > { %16003 = vmatprep.mubr.msk.f32.mxu1 %vm18129_vm0, %v18130_v12  ;;  %16002 = vmatpush3.msra.mxu1 %v1703_v16  ;;  %v17309_v15 = vpack.c.bf16 %v3631_v14, %v3630_v13  ;;  %v3632_v16 = vld [vmem:[%s20170_s25 + $0x60] sm:$0xff]  ;;  %v14704_v14 = vld [vmem:[%s20175_s14 + $0xb0] sm:$0xff] }
 0x4f1   : > { %16011 = vmatprep.subr.mxu1 %v18130_v12 }
 0x5b6   : > { %v3055_v19 = vpop.f32.mrb[18].mxu0 }
 0x5b7   : > { %v15980_v22 = vpop.f32.mrb[19].mxu0  ;;  %15999 = vmatmul.mubr.msk.f32.vlgmr.msra.gmra.mrb[22].mxu0 %vm2623_vm5, %v3055_v19 }
 0x5b8   : > { %16007 = vmatpush3.msra.mxu0 %v1704_v18  ;;  %16008 = vmatprep.mubr.msk.f32.mxu0 %vm18129_vm0, %v18130_v12  ;;  %v3633_v18 = vld [vmem:[%s20170_s25 + $0x68] sm:$0xff] }
 0x5b9   : > { %17287 = vmatprep.subr.bf16.mxu0 %v18128_v4  ;;  %v17312_v19 = vpack.c.bf16 %v3633_v18, %v3632_v16  ;;  %v14705_v16 = vld [vmem:[%s20175_s14 + $0xb8] sm:$0xff]  ;;  %v14728_v18 = vld [vmem:[%s20171_s24 + $0xd0] sm:$0xff] }
 0x5ba   : > { %v3128_v24 = vpop.f32.mrb[16].mxu1 }
 0x5bb   : > { %v15985_v25 = vpop.f32.mrb[17].mxu1  ;;  %16004 = vmatmul.mubr.msk.f32.vlgmr.msra.gmra.mrb[20].mxu1 %vm2623_vm5, %v3128_v24 }
 0x5bc   : > { %16012 = vmatpush3.msra.mxu1 %v1705_v23  ;;  %16013 = vmatprep.mubr.msk.f32.mxu1 %vm18129_vm0, %v18130_v12 }
 0x5bd   : > { %17293 = vmatprep.subr.bf16.mxu1 %v18128_v4 }
 0x5be   : > { %v3201_v26 = vpop.f32.mrb[20].mxu0 }
 0x5bf   : > { %v15990_v27 = vpop.f32.mrb[21].mxu0  ;;  %16009 = vmatmul.mubr.msk.f32.vlgmr.msra.gmra.mrb[24].mxu0 %vm2623_vm5, %v3201_v26  ;;  %v14691_v26 = vld [vmem:[%s20192_s7] ss:$0 sm:$0xff] }
 0x5c0   : > { %16024 = vmatprep.mubr.msk.f32.mxu0 %vm18129_vm0, %v18130_v12  ;;  %17289 = vmatpush3.bf16.msra.mxu0 %v17288_v57  ;;  %v14700_v57 = vld [vmem:[%s20175_s14 + $0x90] sm:$0xff] }
 0x5c1   : > { %17290 = vmatprep.subr.bf16.mxu0 %v18128_v4 }
 0x5c2   : > { %v3274_v28 = vpop.f32.mrb[18].mxu1 }
 0x5c3   : > { %v15995_v29 = vpop.f32.mrb[19].mxu1  ;;  %16014 = vmatmul.mubr.msk.f32.vlgmr.msra.gmra.mrb[22].mxu1 %vm2623_vm5, %v3274_v28  ;;  %v14692_v28 = vld [vmem:[%s20193_s1] ss:$0 sm:$0xff] }
 0x5c4   : > { %16059 = vmatprep.mubr.msk.f32.mxu1 %vm18129_vm0, %v18130_v12  ;;  %17295 = vmatpush3.bf16.msra.mxu1 %v17294_v63 }
 0x5c5   : > { %17296 = vmatprep.subr.bf16.mxu1 %v18128_v4 }
 0x5c8   : > { %17298 = vmatpush3.bf16.msra.mxu1 %v17297_v1 }
 0x5c9   : > { %17299 = vmatprep.subr.bf16.mxu1 %v18128_v4 }
 0x5cc   : > { %17301 = vmatpush3.bf16.msra.mxu1 %v17300_v5 }
 0x5cd   : > { %17302 = vmatprep.subr.bf16.mxu1 %v18128_v4 }
 0x5d0   : > { %17304 = vmatpush3.bf16.msra.mxu1 %v17303_v8  ;;  %v14727_v8 = vld [vmem:[%s20171_s24 + $0xc8] sm:$0xff] }
 0x5d1   : > { %17305 = vmatprep.subr.bf16.mxu1 %v18128_v4  ;;  %v17354_v13 = vpack.c.bf16 %v14727_v8, %v14726_v7  ;;  %v14753_v7 = vld [vmem:[%s20177_s6 + $0xf8] sm:$0xff] }
 0x5d4   : > { %17307 = vmatpush3.bf16.msra.mxu1 %v17306_v11  ;;  %v17324_v11 = vpack.c.bf16 %v14703_v6, %v14702_v3  ;;  %v14751_v3 = vld [vmem:[%s20177_s6 + $0xe8] sm:$0xff]  ;;  %v14752_v6 = vld [vmem:[%s20177_s6 + $0xf0] sm:$0xff] }
 0x5d5   : > { %17308 = vmatprep.subr.bf16.mxu1 %v18128_v4  ;;  %v17387_v8 = vpack.c.bf16 %v14753_v7, %v14752_v6 }
 0x5d8   : > { %17310 = vmatpush3.bf16.msra.mxu1 %v17309_v15 }
 0x5d9   : > { %17311 = vmatprep.subr.bf16.mxu1 %v18128_v4 }
 0x5dc   : > { %17313 = vmatpush3.bf16.msra.mxu1 %v17312_v19  ;;  %v14729_v19 = vld [vmem:[%s20171_s24 + $0xd8] sm:$0xff] }
 0x5dd   : > { %17314 = vmatprep.subr.bf16.mxu1 %v18128_v4 }
 0x68a   : > { %v3347_v30 = vpop.f32.mrb[22].mxu0 }
 0x68b   : > { %v16000_v31 = vpop.f32.mrb[23].mxu0  ;;  %v3570_v33 = vsel %vm1731_vm4, %v3347_v30, 0.0 }
 0x68c   : > { %v3634_v31 = vld [vmem:[%s20170_s25 + $0x70] sm:$0xff] }
 0x68e   : > { %v3420_v32 = vpop.f32.mrb[20].mxu1 }
 0x68f   : > { %v3571_v34 = vsel %vm1731_vm4, %v3420_v32, 0.0  ;;  %v16005_v35 = vpop.f32.mrb[21].mxu1  ;;  %v3635_v32 = vld [vmem:[%s20170_s25 + $0x78] sm:$0xff] }
 0x690   : > { %v3572_v36 = vadd.f32 %v3571_v34, %v3570_v33  ;;  %v17315_v33 = vpack.c.bf16 %v3635_v32, %v3634_v31  ;;  %v14693_v34 = vld [vmem:[%s20194_s5] ss:$0 sm:$0xff]  ;;  %v14709_v31 = vld [vmem:[%s20175_s14 + $0xd8] sm:$0xff]  ;;  %v14740_v32 = vld [vmem:[%s20177_s6 + $0x90] sm:$0xff] }
 0x692   : > { %v3493_v37 = vpop.f32.mrb[24].mxu0  ;;  %17316 = vmatpush3.bf16.msra.mxu1 %v17315_v33  ;;  %v14741_v33 = vld [vmem:[%s20177_s6 + $0x98] sm:$0xff] }
 0x693   : > { %v3573_v38 = vsel %vm1731_vm4, %v3493_v37, 0.0  ;;  %v16010_v40 = vpop.f32.mrb[25].mxu0  ;;  %17341 = vmatprep.subr.bf16.mxu1 %v18128_v4 }
 0x694   : > { %v3574_v41 = vadd.f32 %v3573_v38, %v3572_v36  ;;  %v14695_v40 = vld [vmem:[%s20195_s13] ss:$0 sm:$0xff] }
 0x696   : > { %v3566_v42 = vpop.f32.mrb[22].mxu1 }
 0x697   : > { %v3575_v44 = vsel %vm1731_vm4, %v3566_v42, 0.0  ;;  %v16015_v45 = vpop.f32.mrb[23].mxu1 }
 0x698   : > { %v3576_v46 = vadd.f32 %v3575_v44, %v3574_v41 }
 0x69a   : > { %v3583_v47 = vadd.f32 %v14690_v43, %v3576_v46 }
 0x69c   : > { %v3584_v48 = vadd.f32 %v3583_v47, %v18497_v39  ;;  %v3617_v39 = vld [vmem:[%s20174_s3 + $0x10] sm:$0xff] }
 0x69d   : > { %v17291_v59 = vpack.c.bf16 %v3618_v58, %v3617_v39  ;;  %v14701_v39 = vld [vmem:[%s20175_s14 + $0x98] sm:$0xff]  ;;  %v14720_v58 = vld [vmem:[%s20171_s24 + $0x90] sm:$0xff] }
 0x69e   : > { %v3587_v49 = vsel %vm1731_vm4, %v3584_v48, 0.0  ;;  %v17345_v61 = vpack.c.bf16 %v14721_v60, %v14720_v58  ;;  %v14733_v58 = vld [vmem:[%s20171_s24 + $0xf8] sm:$0xff]  ;;  %v14742_v60 = vld [vmem:[%s20177_s6 + $0xa0] sm:$0xff] }
 0x69f   : > { %3588 = vadd.xlane.f32.xlu1 %v3587_v49  ;;  %17292 = vmatpush3.bf16.msra.mxu0 %v17291_v59  ;;  %v17321_v59 = vpack.c.bf16 %v14701_v39, %v14700_v57  ;;  %v14732_v39 = vld [vmem:[%s20171_s24 + $0xf0] sm:$0xff] }
 0x6a0   : > { %17317 = vmatprep.subr.bf16.mxu0 %v18128_v4 }
 0x72c   : > { %v3589_v50 = vpop.xlane.xlu1 %3588 }
 0x72d   : > { %v3591_v51 = vmul.f32 0.03125, %v3589_v50 }
 0x72f   : > { %v3592_v52 = vsub.f32 %v3584_v48, %v3591_v51  ;;  %v14698_v51 = vld [vmem:[%s20175_s14 + $0x80] sm:$0xff] }
 0x731   : > { %v3593_v53 = vmul.f32 %v3592_v52, %v3592_v52 }
 0x733   : > { %v3594_v54 = vsel %vm1731_vm4, %v3593_v53, 0.0  ;;  %v14718_v53 = vld [vmem:[%s20171_s24 + $0x80] sm:$0xff] }
 0x734   : > { %3595 = vadd.xlane.f32.xlu1 %v3594_v54  ;;  %v17342_v56 = vpack.c.bf16 %v14719_v55, %v14718_v53  ;;  %v14725_v53 = vld [vmem:[%s20171_s24 + $0xb8] sm:$0xff]  ;;  %v14730_v55 = vld [vmem:[%s20171_s24 + $0xe0] sm:$0xff] }
 0x7c1   : > { %v3596_v22 = vpop.xlane.xlu1 %3595 }
 0x7c2   : > { %v3597_v23 = vmul.f32 0.03125, %v3596_v22  ;;  %v17327_v22 = vpack.c.bf16 %v14705_v16, %v14704_v14 }
 0x7c4   : > { %v3598_v24 = vadd.f32 1e-05, %v3597_v23  ;;  %v17357_v23 = vpack.c.bf16 %v14729_v19, %v14728_v18 }
 0x7c6   : > { %17910 = vrsqrt.f32 %v3598_v24  ;;  %v14706_v24 = vld [vmem:[%s20175_s14 + $0xc0] sm:$0xff] }
 0x7d0   : > { %v17911_v25 = vpop.eup %17910 }
 0x7d1   : > { %v3600_v27 = vmul.f32 %v17911_v25, %v3592_v52  ;;  %v14699_v52 = vld [vmem:[%s20175_s14 + $0x88] sm:$0xff] }
 0x7d2   : > { %v17318_v54 = vpack.c.bf16 %v14699_v52, %v14698_v51  ;;  %v14707_v25 = vld [vmem:[%s20175_s14 + $0xc8] sm:$0xff]  ;;  %v14724_v52 = vld [vmem:[%s20171_s24 + $0xb0] sm:$0xff] }
 0x7d3   : > { %v3607_v29 = vmul.f32 %v14691_v26, %v3600_v27  ;;  %v14738_v26 = vld [vmem:[%s20177_s6 + $0x80] sm:$0xff]  ;;  %v14739_v27 = vld [vmem:[%s20177_s6 + $0x88] sm:$0xff] }
 0x7d5   : > { %v3614_v30 = vadd.f32 %v14692_v28, %v3607_v29  ;;  %v17330_v28 = vpack.c.bf16 %v14707_v25, %v14706_v24  ;;  %v17366_v29 = vpack.c.bf16 %v14739_v27, %v14738_v26 }
 0x7d7   : > { %16025 = vmatmul.mubr.msk.f32.vlgmr.msra.gmra.mrb[26].mxu0 %vm1731_vm4, %v3614_v30 }
 0x7d8   : > { %16070 = vmatprep.mubr.msk.f32.mxu0 %vm18129_vm0, %v18130_v12  ;;  %17319 = vmatpush3.bf16.msra.mxu0 %v17318_v54  ;;  %v17351_v54 = vpack.c.bf16 %v14725_v53, %v14724_v52  ;;  %v14780_v53 = vld [vmem:[%s20176_s12 + $0x5] ss:$0 sm:$0xff] }
 0x7d9   : > { %17320 = vmatprep.subr.bf16.mxu0 %v18128_v4 }
 0x7dc   : > { %17322 = vmatpush3.bf16.msra.mxu0 %v17321_v59  ;;  %v17363_v59 = vpack.c.bf16 %v14733_v58, %v14732_v39 }
 0x7dd   : > { %17323 = vmatprep.subr.bf16.mxu0 %v18128_v4 }
 0x8aa   : > { %v3712_v35 = vpop.f32.mrb[26].mxu0 }
 0x8ab   : > { %v3713_v36 = vadd.f32 %v14693_v34, %v3712_v35  ;;  %v16026_v37 = vpop.f32.mrb[27].mxu0  ;;  %v17369_v35 = vpack.c.bf16 %v14741_v33, %v14740_v32 }
 0x8ac   : > { %v14711_v37 = vld [vmem:[%s20175_s14 + $0xe8] sm:$0xff] }
 0x8ad   : > { %v3716_v38 = vmax.f32 %v3713_v36, 0.0  ;;  %v14710_v36 = vld [vmem:[%s20175_s14 + $0xe0] sm:$0xff] }
 0x8af   : > { %16060 = vmatmul.mubr.f32.vlgmr.msra.gmra.mrb[24].mxu1 %v3716_v38  ;;  %v14746_v38 = vld [vmem:[%s20177_s6 + $0xc0] sm:$0xff] }
 0x8b0   : > { %16114 = vmatprep.mubr.msk.f32.mxu1 %vm18129_vm0, %v18130_v12  ;;  %17343 = vmatpush3.bf16.msra.mxu1 %v17342_v56  ;;  %v14731_v56 = vld [vmem:[%s20171_s24 + $0xe8] sm:$0xff] }
 0x8b1   : > { %17344 = vmatprep.subr.bf16.mxu1 %v18128_v4  ;;  %v17360_v57 = vpack.c.bf16 %v14731_v56, %v14730_v55 }
 0x8b4   : > { %17346 = vmatpush3.bf16.msra.mxu1 %v17345_v61  ;;  %v14743_v61 = vld [vmem:[%s20177_s6 + $0xa8] sm:$0xff] }
 0x8b5   : > { %17353 = vmatprep.subr.bf16.mxu1 %v18128_v4 }
 0x982   : > { %v3789_v41 = vpop.f32.mrb[24].mxu1 }
 0x983   : > { %v3790_v42 = vadd.f32 %v14695_v40, %v3789_v41  ;;  %v16061_v43 = vpop.f32.mrb[25].mxu1  ;;  %v14747_v40 = vld [vmem:[%s20177_s6 + $0xc8] sm:$0xff]  ;;  %v17336_v41 = vpack.c.bf16 %v14711_v37, %v14710_v36 }
 0x984   : > { %v14712_v43 = vld [vmem:[%s20175_s14 + $0xf0] sm:$0xff] }
 0x985   : > { %v3793_v44 = vadd.f32 %v3790_v42, %v3614_v30  ;;  %v14708_v30 = vld [vmem:[%s20175_s14 + $0xd0] sm:$0xff]  ;;  %v17378_v42 = vpack.c.bf16 %v14747_v40, %v14746_v38 }
 0x986   : > { %v17333_v34 = vpack.c.bf16 %v14709_v31, %v14708_v30 }
 0x987   : > { %v3796_v45 = vsel %vm1731_vm4, %v3793_v44, 0.0 }
 0x988   : > { %3797 = vadd.xlane.f32.xlu0 %v3796_v45  ;;  %v14748_v45 = vld [vmem:[%s20177_s6 + $0xd0] sm:$0xff] }
 0xa15   : > { %v3798_v46 = vpop.xlane.xlu0 %3797 }
 0xa16   : > { %v3799_v47 = vmul.f32 0.03125, %v3798_v46  ;;  %v14749_v46 = vld [vmem:[%s20177_s6 + $0xd8] sm:$0xff] }
 0xa18   : > { %v3800_v48 = vsub.f32 %v3793_v44, %v3799_v47  ;;  %v14713_v44 = vld [vmem:[%s20175_s14 + $0xf8] sm:$0xff] }
 0xa19   : > { %v17339_v47 = vpack.c.bf16 %v14713_v44, %v14712_v43  ;;  %v14764_v43 = vld [vmem:[%s20173_s19 + $0x5] ss:$0 sm:$0xff] }
 0xa1a   : > { %v3801_v49 = vmul.f32 %v3800_v48, %v3800_v48 }
 0xa1c   : > { %v3802_v50 = vsel %vm1731_vm4, %v3801_v49, 0.0  ;;  %v14722_v49 = vld [vmem:[%s20171_s24 + $0xa0] sm:$0xff] }
 0xa1d   : > { %3803 = vadd.xlane.f32.xlu1 %v3802_v50  ;;  %v14723_v50 = vld [vmem:[%s20171_s24 + $0xa8] sm:$0xff]  ;;  %s20213_s24 = sld [smem:[#allocation42_spill]] }
 0xa1e   : > { %v17348_v51 = vpack.c.bf16 %v14723_v50, %v14722_v49  ;;  %v14766_v49 = vld [vmem:[%s20173_s19 + $0x7] ss:$0 sm:$0xff] }
 0xaaa   : > { %v3804_v62 = vpop.xlane.xlu1 %3803 }
 0xaab   : > { %v3805_v63 = vmul.f32 0.03125, %v3804_v62  ;;  %v17372_v62 = vpack.c.bf16 %v14743_v61, %v14742_v60 }
 0xaad   : > { %v3806_v0 = vadd.f32 1e-05, %v3805_v63  ;;  %v14744_v63 = vld [vmem:[%s20177_s6 + $0xb0] sm:$0xff] }
 0xaaf   : > { %17912 = vrsqrt.f32 %v3806_v0  ;;  %v14745_v0 = vld [vmem:[%s20177_s6 + $0xb8] sm:$0xff] }
 0xab9   : > { %v17913_v1 = vpop.eup %17912 }
 0xaba   : > { %v3808_v5 = vmul.f32 %v17913_v1, %v3800_v48  ;;  %v17381_v48 = vpack.c.bf16 %v14749_v46, %v14748_v45  ;;  %v17375_v1 = vpack.c.bf16 %v14745_v0, %v14744_v63 }
 0xabc   : > { %v3815_v10 = vmul.f32 %v14696_v2, %v3808_v5  ;;  %v14750_v2 = vld [vmem:[%s20177_s6 + $0xe0] sm:$0xff]  ;;  %s20198_s6 = sld [smem:[#allocation6_spill]] }
 0xabd   : > { %v17384_v5 = vpack.c.bf16 %v14751_v3, %v14750_v2 }
 0xabe   : > { %v18763_v15 = vadd.f32 %v14697_v9, %v3815_v10  ;;  %v14771_v9 = vld [vmem:[%s20168_s30 + $0x4] ss:$0 sm:$0xff] }
 0xac0   : > { %16071 = vmatmul.mubr.msk.f32.vlgmr.msra.gmra.mrb[28].mxu0 %vm1731_vm4, %v18763_v15  ;;  %16115 = vmatmul.mubr.msk.f32.vlgmr.msra.gmra.mrb[26].mxu1 %vm1731_vm4, %v18763_v15 }
 0xac1   : > { %17325 = vmatpush3.bf16.msra.mxu0 %v17324_v11  ;;  %17355 = vmatpush3.bf16.msra.mxu1 %v17354_v13  ;;  %v14763_v13 = vld [vmem:[%s20173_s19 + $0x4] ss:$0 sm:$0xff] }
 0xac2   : > { %17326 = vmatprep.subr.bf16.mxu0 %v18128_v4  ;;  %17356 = vmatprep.subr.bf16.mxu1 %v18128_v4 }
 0xac3   : > { %16081 = vmatprep.mubr.msk.f32.mxu0 %vm18129_vm0, %v18130_v12  ;;  %16136 = vmatprep.mubr.msk.f32.mxu1 %vm18129_vm0, %v18130_v12 }
 0xac5   : > { %17328 = vmatpush3.bf16.msra.mxu0 %v17327_v22  ;;  %17358 = vmatpush3.bf16.msra.mxu1 %v17357_v23  ;;  %v14773_v22 = vld [vmem:[%s20168_s30 + $0x6] ss:$0 sm:$0xff] }
 0xac6   : > { %17329 = vmatprep.subr.bf16.mxu0 %v18128_v4  ;;  %17365 = vmatprep.subr.bf16.mxu1 %v18128_v4 }
 0xac8   : > { %16082 = vmatmul.mubr.msk.f32.vlgmr.msra.gmra.mrb[30].mxu0 %vm1731_vm4, %v18763_v15  ;;  %16137 = vmatmul.mubr.msk.f32.vlgmr.msra.gmra.mrb[28].mxu1 %vm1731_vm4, %v18763_v15 }
 0xac9   : > { %17331 = vmatpush3.bf16.msra.mxu0 %v17330_v28  ;;  %17367 = vmatpush3.bf16.msra.mxu1 %v17366_v29  ;;  %v14765_v28 = vld [vmem:[%s20173_s19 + $0x6] ss:$0 sm:$0xff]  ;;  %v14779_v29 = vld [vmem:[%s20176_s12 + $0x4] ss:$0 sm:$0xff]  ;;  %s20210_s19 = sld [smem:[#allocation40_spill]] }
 0xaca   : > { %17332 = vmatprep.subr.bf16.mxu0 %v18128_v4  ;;  %17368 = vmatprep.subr.bf16.mxu1 %v18128_v4 }
 0xacb   : > { %16092 = vmatprep.mubr.msk.f32.mxu0 %vm18129_vm0, %v18130_v12  ;;  %16158 = vmatprep.mubr.msk.f32.mxu1 %vm18129_vm0, %v18130_v12 }
 0xacd   : > { %17334 = vmatpush3.bf16.msra.mxu0 %v17333_v34  ;;  %17370 = vmatpush3.bf16.msra.mxu1 %v17369_v35 }
 0xace   : > { %17335 = vmatprep.subr.bf16.mxu0 %v18128_v4  ;;  %17377 = vmatprep.subr.bf16.mxu1 %v18128_v4 }
 0xad0   : > { %16093 = vmatmul.mubr.msk.f32.vlgmr.msra.gmra.mrb[32].mxu0 %vm1731_vm4, %v18763_v15  ;;  %16159 = vmatmul.mubr.msk.f32.vlgmr.msra.gmra.mrb[30].mxu1 %vm1731_vm4, %v18763_v15 }
 0xad1   : > { %17337 = vmatpush3.bf16.msra.mxu0 %v17336_v41  ;;  %17379 = vmatpush3.bf16.msra.mxu1 %v17378_v42  ;;  %v14772_v41 = vld [vmem:[%s20168_s30 + $0x5] ss:$0 sm:$0xff] }
 0xad2   : > { %17338 = vmatprep.subr.bf16.mxu0 %v18128_v4  ;;  %17380 = vmatprep.subr.bf16.mxu1 %v18128_v4 }
 0xad3   : > { %16103 = vmatprep.mubr.msk.f32.mxu0 %vm18129_vm0, %v18130_v12  ;;  %16180 = vmatprep.mubr.msk.f32.mxu1 %vm18129_vm0, %v18130_v12 }
 0xad5   : > { %17340 = vmatpush3.bf16.msra.mxu0 %v17339_v47  ;;  %17382 = vmatpush3.bf16.msra.mxu1 %v17381_v48  ;;  %v14774_v47 = vld [vmem:[%s20168_s30 + $0x7] ss:$0 sm:$0xff]  ;;  %s20218_s30 = sld [smem:[#allocation46_spill]] }
 0xad6   : > { %17347 = vmatprep.subr.bf16.mxu0 %v18128_v4  ;;  %16194 = vmatprep.subr.mxu1 %v18130_v12 }
 0xad8   : > { %16104 = vmatmul.mubr.msk.f32.vlgmr.msra.gmra.mrb[34].mxu0 %vm1731_vm4, %v18763_v15  ;;  %16181 = vmatmul.mubr.msk.f32.vlgmr.msra.gmra.mrb[32].mxu1 %vm1731_vm4, %v18763_v15 }
 0xad9   : > { %17349 = vmatpush3.bf16.msra.mxu0 %v17348_v51  ;;  %16125 = vmatprep.mubr.msk.f32.mxu0 %vm18129_vm0, %v18130_v12 }
 0xada   : > { %17350 = vmatprep.subr.bf16.mxu0 %v18128_v4  ;;  %16196 = vmatprep.mubr.msk.f32.mxu1 %vm18129_vm0, %v18130_v12 }
 0xadd   : > { %17352 = vmatpush3.bf16.msra.mxu0 %v17351_v54 }
 0xade   : > { %17359 = vmatprep.subr.bf16.mxu0 %v18128_v4 }
 0xae0   : > { %16126 = vmatmul.mubr.msk.f32.vlgmr.msra.gmra.mrb[36].mxu0 %vm1731_vm4, %v18763_v15 }
 0xae1   : > { %17361 = vmatpush3.bf16.msra.mxu0 %v17360_v57  ;;  %16147 = vmatprep.mubr.msk.f32.mxu0 %vm18129_vm0, %v18130_v12 }
 0xae2   : > { %17362 = vmatprep.subr.bf16.mxu0 %v18128_v4 }
 0xae5   : > { %17364 = vmatpush3.bf16.msra.mxu0 %v17363_v59 }
 0xae6   : > { %17371 = vmatprep.subr.bf16.mxu0 %v18128_v4 }
 0xae8   : > { %16148 = vmatmul.mubr.msk.f32.vlgmr.msra.gmra.mrb[38].mxu0 %vm1731_vm4, %v18763_v15 }
 0xae9   : > { %17373 = vmatpush3.bf16.msra.mxu0 %v17372_v62  ;;  %16169 = vmatprep.mubr.msk.f32.mxu0 %vm18129_vm0, %v18130_v12 }
 0xaea   : > { %17374 = vmatprep.subr.bf16.mxu0 %v18128_v4 }
 0xaed   : > { %17376 = vmatpush3.bf16.msra.mxu0 %v17375_v1 }
 0xaee   : > { %17383 = vmatprep.subr.bf16.mxu0 %v18128_v4 }
 0xaf0   : > { %16170 = vmatmul.mubr.msk.f32.vlgmr.msra.gmra.mrb[40].mxu0 %vm1731_vm4, %v18763_v15 }
 0xaf1   : > { %17385 = vmatpush3.bf16.msra.mxu0 %v17384_v5  ;;  %16191 = vmatprep.mubr.msk.f32.mxu0 %vm18129_vm0, %v18130_v12 }
 0xaf2   : > { %17386 = vmatprep.subr.bf16.mxu0 %v18128_v4 }
 0xaf5   : > { %17388 = vmatpush3.bf16.msra.mxu0 %v17387_v8 }
 0xaf6   : > { %16204 = vmatprep.subr.mxu0 %v18130_v12 }
 0xaf8   : > { %16192 = vmatmul.mubr.msk.f32.vlgmr.msra.gmra.mrb[42].mxu0 %vm1731_vm4, %v18763_v15 }
 0xaf9   : > { %16206 = vmatprep.mubr.msk.f32.mxu0 %vm18129_vm0, %v18130_v12 }
 0xb93   : > { %v3989_v10 = vpop.f32.mrb[28].mxu0  ;;  %v4293_v11 = vpop.f32.mrb[26].mxu1 }
 0xb94   : > { %v4294_v14 = vadd.f32 %v14771_v9, %v4293_v11  ;;  %v16072_v16 = vpop.f32.mrb[29].mxu0  ;;  %v16116_v18 = vpop.f32.mrb[27].mxu1  ;;  %v3990_v19 = vadd.f32 %v14763_v13, %v3989_v10 }
 0xb96   : > { %16195 = vmatpush3.xpose.msk.msra.mxu1 %vm2623_vm5, %v4294_v14 }
 0xb97   : > { %16199 = vmatprep.subr.mxu1 %v18130_v12 }
 0xb99   : > { %16197 = vmatmul.mubr.msk.f32.vlgmr.msra.gmra.mrb[34].mxu1 %vm2623_vm5, %v3990_v19 }
 0xb9a   : > { %16201 = vmatprep.mubr.msk.f32.mxu1 %vm18129_vm0, %v18130_v12 }
 0xb9b   : > { %v4059_v23 = vpop.f32.mrb[30].mxu0  ;;  %v4433_v24 = vpop.f32.mrb[28].mxu1 }
 0xb9c   : > { %v4434_v25 = vadd.f32 %v14773_v22, %v4433_v24  ;;  %v16083_v26 = vpop.f32.mrb[31].mxu0  ;;  %v16138_v27 = vpop.f32.mrb[29].mxu1  ;;  %v4060_v46 = vadd.f32 %v14764_v43, %v4059_v23 }
 0xb9e   : > { %16205 = vmatpush3.xpose.msk.msra.mxu0 %vm2623_vm5, %v4434_v25 }
 0xb9f   : > { %16214 = vmatprep.subr.mxu0 %v18130_v12 }
 0xba3   : > { %v4129_v30 = vpop.f32.mrb[32].mxu0  ;;  %v4597_v31 = vpop.f32.mrb[30].mxu1 }
 0xba4   : > { %v4130_v32 = vadd.f32 %v14765_v28, %v4129_v30  ;;  %v4598_v33 = vadd.f32 %v14779_v29, %v4597_v31  ;;  %v16094_v34 = vpop.f32.mrb[33].mxu0  ;;  %v16160_v35 = vpop.f32.mrb[31].mxu1 }
 0xba6   : > { %16207 = vmatmul.mubr.msk.f32.vlgmr.msra.gmra.mrb[44].mxu0 %vm2623_vm5, %v4130_v32 }
 0xba7   : > { %16215 = vmatpush3.msra.mxu0 %v4598_v33  ;;  %16216 = vmatprep.mubr.msk.f32.mxu0 %vm18129_vm0, %v18130_v12 }
 0xba8   : > { %16224 = vmatprep.subr.mxu0 %v18130_v12 }
 0xbab   : > { %v4199_v36 = vpop.f32.mrb[34].mxu0  ;;  %v18884_v37 = vpop.f32.mrb[32].mxu1 }
 0xbac   : > { %v16105_v38 = vpop.f32.mrb[35].mxu0  ;;  %v16182_v40 = vpop.f32.mrb[33].mxu1  ;;  %v4200_v52 = vadd.f32 %v14766_v49, %v4199_v36 }
 0xbb3   : > { %v4363_v42 = vpop.f32.mrb[36].mxu0 }
 0xbb4   : > { %v4364_v44 = vadd.f32 %v14772_v41, %v4363_v42  ;;  %v16127_v45 = vpop.f32.mrb[37].mxu0  ;;  %v14781_v42 = vld [vmem:[%s20176_s12 + $0x6] ss:$0 sm:$0xff] }
 0xbb5   : > { %v4738_v45 = vadd.f32 %v14781_v42, %v18884_v37  ;;  %v14815_v42 = vld [vmem:[%s20170_s25 + $0x90] sm:$0xff] }
 0xbb6   : > { %16200 = vmatpush3.xpose.msk.msra.mxu1 %vm2623_vm5, %v4364_v44 }
 0xbb7   : > { %16209 = vmatprep.subr.mxu1 %v18130_v12 }
 0xbb9   : > { %16202 = vmatmul.mubr.msk.f32.vlgmr.msra.gmra.mrb[36].mxu1 %vm2623_vm5, %v4060_v46 }
 0xbba   : > { %16211 = vmatprep.mubr.msk.f32.mxu1 %vm18129_vm0, %v18130_v12 }
 0xbbb   : > { %v4503_v48 = vpop.f32.mrb[38].mxu0 }
 0xbbc   : > { %v4504_v50 = vadd.f32 %v14774_v47, %v4503_v48  ;;  %v16149_v51 = vpop.f32.mrb[39].mxu0 }
 0xbbe   : > { %16210 = vmatpush3.xpose.msk.msra.mxu1 %vm2623_vm5, %v4504_v50  ;;  %v14782_v50 = vld [vmem:[%s20176_s12 + $0x7] ss:$0 sm:$0xff]  ;;  %s20199_s12 = sshll.u32 %s18454_s18, 3  ;;  %s20203_s18 = sld [smem:[#allocation32_spill]] }
 0xbbf   : > { %16219 = vmatprep.subr.mxu1 %v18130_v12  ;;  %s1541_s14 = scalar_lea.vmem %s20198_s6, %s20199_s12  ;;  %s20201_s6 = sld [smem:[#allocation30_spill]] }
 0xbc0   : > { %s20202_s12 = sld [smem:[#allocation11_spill]] }
 0xbc1   : > { %16212 = vmatmul.mubr.msk.f32.vlgmr.msra.gmra.mrb[38].mxu1 %vm2623_vm5, %v4200_v52 }
 0xbc2   : > { %16221 = vmatprep.mubr.msk.f32.mxu1 %vm18129_vm0, %v18130_v12 }
 0xbc3   : > { %v4667_v54 = vpop.f32.mrb[40].mxu0 }
 0xbc4   : > { %v4668_v55 = vadd.f32 %v14780_v53, %v4667_v54  ;;  %v16171_v56 = vpop.f32.mrb[41].mxu0 }
 0xbc5   : > { %v14758_v56 = vld [vmem:[%s20172_s20 + $0x20] sm:$0xff] }
 0xbc6   : > { %16220 = vmatpush3.msra.mxu1 %v4668_v55 }
 0xbc7   : > { %16229 = vmatprep.subr.mxu1 %v18130_v12 }
 0xbcb   : > { %v18902_v57 = vpop.f32.mrb[42].mxu0 }
 0xbcc   : > { %v16193_v39 = vpop.f32.mrb[43].mxu0  ;;  %v4808_v53 = vadd.f32 %v14782_v50, %v18902_v57  ;;  %v14759_v57 = vld [vmem:[%s20172_s20 + $0x28] sm:$0xff] }
 0xbcd   : > { %v14760_v39 = vld [vmem:[%s20172_s20 + $0x30] sm:$0xff] }
 0xc6c   : > { %v4883_v58 = vpop.f32.mrb[34].mxu1 }
 0xc6d   : > { %v5115_v59 = vmul.f32 0.35355338, %v4883_v58  ;;  %v16198_v60 = vpop.f32.mrb[35].mxu1 }
 0xc6f   : > { %v5119_v61 = vadd.f32 %v18643_v17, %v5115_v59 }
 0xc71   : > { %v5123_v62 = vsel %vm2623_vm5, %v5119_v61, -inf }
 0xc72   : > { %5124 = vmax.xlane.f32.xlu0 %v5123_v62  ;;  %v14761_v62 = vld [vmem:[%s20172_s20 + $0x38] sm:$0xff]  ;;  %s20212_s20 = sld [smem:[#allocation39_spill]] }
 0xc79   : > { %v5035_v63 = vpop.f32.mrb[44].mxu0 }
 0xc7a   : > { %v5117_v0 = vmul.f32 0.35355338, %v5035_v63  ;;  %v16208_v1 = vpop.f32.mrb[45].mxu0 }
 0xc7c   : > { %v5121_v2 = vadd.f32 %v18643_v17, %v5117_v0 }
 0xc7e   : > { %v5129_v3 = vsel %vm2623_vm5, %v5121_v2, -inf }
 0xc7f   : > { %5130 = vmax.xlane.f32.xlu0 %v5129_v3 }
 0xc8c   : > { %v4959_v5 = vpop.f32.mrb[36].mxu1 }
 0xc8d   : > { %v5116_v6 = vmul.f32 0.35355338, %v4959_v5  ;;  %v16203_v7 = vpop.f32.mrb[37].mxu1 }
 0xc8f   : > { %v5120_v8 = vadd.f32 %v18643_v17, %v5116_v6 }
 0xc91   : > { %v5126_v9 = vsel %vm2623_vm5, %v5120_v8, -inf }
 0xc92   : > { %5127 = vmax.xlane.f32.xlu1 %v5126_v9 }
 0xc94   : > { %v5111_v10 = vpop.f32.mrb[38].mxu1 }
 0xc95   : > { %v5118_v11 = vmul.f32 0.35355338, %v5111_v10  ;;  %v16213_v13 = vpop.f32.mrb[39].mxu1 }
 0xc97   : > { %v5122_v14 = vadd.f32 %v18643_v17, %v5118_v11 }
 0xc99   : > { %v5132_v16 = vsel %vm2623_vm5, %v5122_v14, -inf }
 0xc9a   : > { %5133 = vmax.xlane.f32.xlu1 %v5132_v16 }
 0xcff   : > { %v5125_v18 = vpop.xlane.xlu0 %5124 }
 0xd00   : > { %v5135_v19 = vsub.f32 %v5119_v61, %v5125_v18 }
 0xd02   : > { %v5139_v22 = vmul.f32 1.442695, %v5135_v19  ;;  %v14803_v19 = vld [vmem:[%s20169_s27 + $0x1] ss:$0 sm:$0xff]  ;;  %s20217_s27 = sld [smem:[#allocation45_spill]] }
 0xd04   : > { %17914 = vpow2.f32 %v5139_v22 }
 0xd0c   : > { %v5131_v23 = vpop.xlane.xlu0 %5130 }
 0xd0d   : > { %v5137_v24 = vsub.f32 %v5121_v2, %v5131_v23 }
 0xd0e   : > { %v17915_v25 = vpop.eup %17914 }
 0xd0f   : > { %v5143_v26 = vmul.f32 1.442695, %v5137_v24  ;;  %v5147_v27 = vsel %vm2623_vm5, %v17915_v25, 0.0 }
 0xd10   : > { %5148 = vadd.xlane.f32.xlu0 %v5147_v27 }
 0xd11   : > { %17916 = vpow2.f32 %v5143_v26 }
 0xd1b   : > { %v17917_v28 = vpop.eup %17916 }
 0xd1c   : > { %v5153_v29 = vsel %vm2623_vm5, %v17917_v28, 0.0 }
 0xd1d   : > { %5154 = vadd.xlane.f32.xlu0 %v5153_v29 }
 0xd1f   : > { %v5128_v17 = vpop.xlane.xlu1 %5127 }
 0xd20   : > { %v5136_v30 = vsub.f32 %v5120_v8, %v5128_v17 }
 0xd22   : > { %v5141_v31 = vmul.f32 1.442695, %v5136_v30 }
 0xd24   : > { %17918 = vpow2.f32 %v5141_v31 }
 0xd27   : > { %v5134_v32 = vpop.xlane.xlu1 %5133 }
 0xd28   : > { %v5138_v33 = vsub.f32 %v5122_v14, %v5134_v32 }
 0xd2a   : > { %v5145_v34 = vmul.f32 1.442695, %v5138_v33  ;;  %v14809_v33 = vld [vmem:[%s20174_s3 + $0x28] sm:$0xff] }
 0xd2c   : > { %17920 = vpow2.f32 %v5145_v34 }
 0xd2e   : > { %v17919_v35 = vpop.eup %17918 }
 0xd2f   : > { %v5150_v36 = vsel %vm2623_vm5, %v17919_v35, 0.0 }
 0xd30   : > { %5151 = vadd.xlane.f32.xlu1 %v5150_v36  ;;  %v14811_v36 = vld [vmem:[%s20174_s3 + $0x38] sm:$0xff] }
 0xd36   : > { %v17921_v38 = vpop.eup %17920 }
 0xd37   : > { %v5156_v40 = vsel %vm2623_vm5, %v17921_v38, 0.0 }
 0xd38   : > { %5157 = vadd.xlane.f32.xlu1 %v5156_v40  ;;  %v14813_v40 = vld [vmem:[%s20170_s25 + $0x80] sm:$0xff] }
 0xd9d   : > { %v5149_v41 = vpop.xlane.xlu0 %5148 }
 0xd9e   : > { %17922 = vrcp.f32 %v5149_v41  ;;  %v14814_v41 = vld [vmem:[%s20170_s25 + $0x88] sm:$0xff] }
 0xda8   : > { %v17923_v43 = vpop.eup %17922 }
 0xda9   : > { %v5163_v44 = vmul.f32 %v17923_v43, %v17915_v25  ;;  %v17396_v43 = vpack.c.bf16 %v14814_v41, %v14813_v40  ;;  %v6113_v40 = vld [vmem:[%s20201_s6 + $0x28] sm:$0xff] }
 0xdaa   : > { %v5155_v46 = vpop.xlane.xlu0 %5154 }
 0xdab   : > { %17924 = vrcp.f32 %v5155_v46  ;;  %16217 = vmatmul.mubr.msk.f32.vlgmr.msra.gmra.mrb[46].mxu0 %vm2623_vm5, %v5163_v44  ;;  %v14816_v44 = vld [vmem:[%s20170_s25 + $0x98] sm:$0xff]  ;;  %v14817_v46 = vld [vmem:[%s20170_s25 + $0xa0] sm:$0xff] }
 0xdac   : > { %16225 = vmatpush3.msra.mxu0 %v4738_v45  ;;  %16226 = vmatprep.mubr.msk.f32.mxu0 %vm18129_vm0, %v18130_v12  ;;  %v17399_v45 = vpack.c.bf16 %v14816_v44, %v14815_v42  ;;  %v6114_v42 = vld [vmem:[%s20201_s6 + $0x30] sm:$0xff] }
 0xdad   : > { %16234 = vmatprep.subr.mxu0 %v18130_v12 }
 0xdb5   : > { %v17925_v47 = vpop.eup %17924 }
 0xdb6   : > { %v5165_v48 = vmul.f32 %v17925_v47, %v17917_v28  ;;  %v1546_v28 = vld [vmem:[%s1541_s14] sm:$0xff]  ;;  %v14818_v47 = vld [vmem:[%s20170_s25 + $0xa8] sm:$0xff]  ;;  %s20200_s14 = sld [smem:[#allocation10_spill]] }
 0xdb8   : > { %16227 = vmatmul.mubr.msk.f32.vlgmr.msra.gmra.mrb[48].mxu0 %vm2623_vm5, %v5165_v48  ;;  %v17402_v48 = vpack.c.bf16 %v14818_v47, %v14817_v46  ;;  %v6108_v46 = vld [vmem:[%s20201_s6] sm:$0xff]  ;;  %v6109_v47 = vld [vmem:[%s20201_s6 + $0x8] sm:$0xff] }
 0xdb9   : > { %16236 = vmatprep.mubr.msk.f32.mxu0 %vm18129_vm0, %v18130_v12  ;;  %16235 = vmatpush3.msra.mxu0 %v14758_v56 }
 0xdba   : > { %16244 = vmatprep.subr.mxu0 %v18130_v12 }
 0xdbd   : > { %v5152_v49 = vpop.xlane.xlu1 %5151 }
 0xdbe   : > { %17926 = vrcp.f32 %v5152_v49  ;;  %v14819_v49 = vld [vmem:[%s20170_s25 + $0xb0] sm:$0xff] }
 0xdc5   : > { %v5158_v37 = vpop.xlane.xlu1 %5157 }
 0xdc6   : > { %17928 = vrcp.f32 %v5158_v37  ;;  %v14820_v37 = vld [vmem:[%s20170_s25 + $0xb8] sm:$0xff] }
 0xdc7   : > { %v17405_v50 = vpack.c.bf16 %v14820_v37, %v14819_v49 }
 0xdc8   : > { %v17927_v51 = vpop.eup %17926 }
 0xdc9   : > { %v5164_v52 = vmul.f32 %v17927_v51, %v17919_v35  ;;  %v14810_v35 = vld [vmem:[%s20174_s3 + $0x30] sm:$0xff]  ;;  %v14821_v51 = vld [vmem:[%s20170_s25 + $0xc0] sm:$0xff] }
 0xdcb   : > { %16222 = vmatmul.mubr.msk.f32.vlgmr.msra.gmra.mrb[40].mxu1 %vm2623_vm5, %v5164_v52  ;;  %v14822_v52 = vld [vmem:[%s20170_s25 + $0xc8] sm:$0xff] }
 0xdcc   : > { %16230 = vmatpush3.msra.mxu1 %v4808_v53  ;;  %16231 = vmatprep.mubr.msk.f32.mxu1 %vm18129_vm0, %v18130_v12  ;;  %v17408_v53 = vpack.c.bf16 %v14822_v52, %v14821_v51  ;;  %v6110_v52 = vld [vmem:[%s20201_s6 + $0x10] sm:$0xff] }
 0xdcd   : > { %16239 = vmatprep.subr.mxu1 %v18130_v12 }
 0xdd0   : > { %v17929_v54 = vpop.eup %17928 }
 0xdd1   : > { %v5166_v55 = vmul.f32 %v17929_v54, %v17921_v38  ;;  %v17393_v38 = vpack.c.bf16 %v14811_v36, %v14810_v35  ;;  %v14823_v54 = vld [vmem:[%s20170_s25 + $0xd0] sm:$0xff]  ;;  %v14828_v35 = vld [vmem:[%s20170_s25 + $0xf8] sm:$0xff] }
 0xdd3   : > { %16232 = vmatmul.mubr.msk.f32.vlgmr.msra.gmra.mrb[42].mxu1 %vm2623_vm5, %v5166_v55  ;;  %v14824_v55 = vld [vmem:[%s20170_s25 + $0xd8] sm:$0xff] }
 0xdd4   : > { %16241 = vmatprep.mubr.msk.f32.mxu1 %vm18129_vm0, %v18130_v12  ;;  %16240 = vmatpush3.msra.mxu1 %v14759_v57  ;;  %v17411_v56 = vpack.c.bf16 %v14824_v55, %v14823_v54  ;;  %v14825_v57 = vld [vmem:[%s20170_s25 + $0xe0] sm:$0xff] }
 0xdd5   : > { %16249 = vmatprep.subr.mxu1 %v18130_v12  ;;  %v6116_v55 = vld [vmem:[%s20201_s6 + $0x40] sm:$0xff] }
 0xe7e   : > { %v5236_v58 = vpop.f32.mrb[46].mxu0 }
 0xe7f   : > { %v16218_v59 = vpop.f32.mrb[47].mxu0  ;;  %16237 = vmatmul.mubr.msk.f32.vlgmr.msra.gmra.mrb[50].mxu0 %vm2623_vm5, %v5236_v58 }
 0xe80   : > { %16245 = vmatpush3.msra.mxu0 %v14760_v39  ;;  %16246 = vmatprep.mubr.msk.f32.mxu0 %vm18129_vm0, %v18130_v12  ;;  %v14826_v39 = vld [vmem:[%s20170_s25 + $0xe8] sm:$0xff] }
 0xe81   : > { %17389 = vmatprep.subr.bf16.mxu0 %v18128_v4  ;;  %v17414_v58 = vpack.c.bf16 %v14826_v39, %v14825_v57  ;;  %v6120_v57 = vld [vmem:[%s20201_s6 + $0x60] sm:$0xff]  ;;  %v6121_v39 = vld [vmem:[%s20201_s6 + $0x68] sm:$0xff] }
 0xe8b   : > { %v5382_v60 = vpop.f32.mrb[48].mxu0 }
 0xe8c   : > { %v16228_v61 = vpop.f32.mrb[49].mxu0  ;;  %16247 = vmatmul.mubr.msk.f32.vlgmr.msra.gmra.mrb[52].mxu0 %vm2623_vm5, %v5382_v60 }
 0xe8d   : > { %16262 = vmatprep.mubr.msk.f32.mxu0 %vm18129_vm0, %v18130_v12 }
 0xe9e   : > { %v5309_v63 = vpop.f32.mrb[40].mxu1 }
 0xe9f   : > { %v16223_v0 = vpop.f32.mrb[41].mxu1  ;;  %16242 = vmatmul.mubr.msk.f32.vlgmr.msra.gmra.mrb[44].mxu1 %vm2623_vm5, %v5309_v63  ;;  %v14806_v63 = vld [vmem:[%s20192_s7 + $0x1] ss:$0 sm:$0xff]  ;;  %s20208_s7 = sld [smem:[#allocation36_spill]] }
 0xea0   : > { %16250 = vmatpush3.msra.mxu1 %v14761_v62  ;;  %16251 = vmatprep.mubr.msk.f32.mxu1 %vm18129_vm0, %v18130_v12 }
 0xea1   : > { %17395 = vmatprep.subr.bf16.mxu1 %v18128_v4 }
 0xea6   : > { %v5455_v1 = vpop.f32.mrb[42].mxu1 }
 0xea7   : > { %v16233_v2 = vpop.f32.mrb[43].mxu1  ;;  %16252 = vmatmul.mubr.msk.f32.vlgmr.msra.gmra.mrb[46].mxu1 %vm2623_vm5, %v5455_v1  ;;  %v6017_v1 = vld [vmem:[%s20200_s14] sm:$0xff] }
 0xea8   : > { %16297 = vmatprep.mubr.msk.f32.mxu1 %vm18129_vm0, %v18130_v12  ;;  %17397 = vmatpush3.bf16.msra.mxu1 %v17396_v43  ;;  %v6018_v2 = vld [vmem:[%s20200_s14 + $0x8] sm:$0xff]  ;;  %v6115_v43 = vld [vmem:[%s20201_s6 + $0x38] sm:$0xff] }
 0xea9   : > { %17398 = vmatprep.subr.bf16.mxu1 %v18128_v4  ;;  %v17453_v44 = vpack.c.bf16 %v6115_v43, %v6114_v42 }
 0xeac   : > { %17400 = vmatpush3.bf16.msra.mxu1 %v17399_v45  ;;  %v14830_v45 = vld [vmem:[%s20194_s5 + $0x1] ss:$0 sm:$0xff]  ;;  %s20207_s5 = sld [smem:[#allocation35_spill]] }
 0xead   : > { %17401 = vmatprep.subr.bf16.mxu1 %v18128_v4 }
 0xeb0   : > { %17403 = vmatpush3.bf16.msra.mxu1 %v17402_v48 }
 0xeb1   : > { %17404 = vmatprep.subr.bf16.mxu1 %v18128_v4 }
 0xeb4   : > { %17406 = vmatpush3.bf16.msra.mxu1 %v17405_v50  ;;  %v17444_v50 = vpack.c.bf16 %v6109_v47, %v6108_v46 }
 0xeb5   : > { %17407 = vmatprep.subr.bf16.mxu1 %v18128_v4 }
 0xeb8   : > { %17409 = vmatpush3.bf16.msra.mxu1 %v17408_v53  ;;  %v6111_v53 = vld [vmem:[%s20201_s6 + $0x18] sm:$0xff] }
 0xeb9   : > { %17410 = vmatprep.subr.bf16.mxu1 %v18128_v4  ;;  %v17447_v54 = vpack.c.bf16 %v6111_v53, %v6110_v52 }
 0xebc   : > { %17412 = vmatpush3.bf16.msra.mxu1 %v17411_v56  ;;  %v6117_v56 = vld [vmem:[%s20201_s6 + $0x48] sm:$0xff] }
 0xebd   : > { %17413 = vmatprep.subr.bf16.mxu1 %v18128_v4 }
 0xec0   : > { %17415 = vmatpush3.bf16.msra.mxu1 %v17414_v58  ;;  %v6033_v58 = vld [vmem:[%s20202_s12] sm:$0xff]  ;;  %s20204_s12 = sld [smem:[#allocation34_spill]] }
 0xec1   : > { %17416 = vmatprep.subr.bf16.mxu1 %v18128_v4 }
 0xec6   : > { %v6150_v43 = vld [vmem:[%s20204_s12 + $0x10] sm:$0xff]  ;;  %v6155_v46 = vld [vmem:[%s20204_s12 + $0x38] sm:$0xff] }
 0xf52   : > { %v5528_v3 = vpop.f32.mrb[50].mxu0 }
 0xf53   : > { %v16238_v5 = vpop.f32.mrb[51].mxu0  ;;  %v5751_v9 = vsel %vm1731_vm4, %v5528_v3, 0.0  ;;  %v14807_v3 = vld [vmem:[%s20193_s1 + $0x1] ss:$0 sm:$0xff]  ;;  %s20205_s1 = sld [smem:[#allocation33_spill]] }
 0xf5f   : > { %v5674_v6 = vpop.f32.mrb[52].mxu0 }
 0xf60   : > { %v16248_v7 = vpop.f32.mrb[53].mxu0  ;;  %v5754_v14 = vsel %vm1731_vm4, %v5674_v6, 0.0  ;;  %v17420_v6 = vpack.c.bf16 %v6018_v2, %v6017_v1  ;;  %v6119_v1 = vld [vmem:[%s20201_s6 + $0x58] sm:$0xff]  ;;  %v6122_v2 = vld [vmem:[%s20201_s6 + $0x70] sm:$0xff] }
 0xf72   : > { %v5601_v8 = vpop.f32.mrb[44].mxu1 }
 0xf73   : > { %v5752_v10 = vsel %vm1731_vm4, %v5601_v8, 0.0  ;;  %v16243_v11 = vpop.f32.mrb[45].mxu1  ;;  %v6019_v8 = vld [vmem:[%s20200_s14 + $0x10] sm:$0xff] }
 0xf74   : > { %v5753_v13 = vadd.f32 %v5752_v10, %v5751_v9  ;;  %v6020_v9 = vld [vmem:[%s20200_s14 + $0x18] sm:$0xff]  ;;  %v6021_v11 = vld [vmem:[%s20200_s14 + $0x20] sm:$0xff] }
 0xf75   : > { %v17423_v10 = vpack.c.bf16 %v6020_v9, %v6019_v8  ;;  %v6128_v8 = vld [vmem:[%s20203_s18] sm:$0xff]  ;;  %v6129_v9 = vld [vmem:[%s20203_s18 + $0x8] sm:$0xff] }
 0xf76   : > { %v5755_v16 = vadd.f32 %v5754_v14, %v5753_v13  ;;  %v6022_v13 = vld [vmem:[%s20200_s14 + $0x28] sm:$0xff] }
 0xf77   : > { %v17426_v14 = vpack.c.bf16 %v6022_v13, %v6021_v11  ;;  %v6133_v11 = vld [vmem:[%s20203_s18 + $0x28] sm:$0xff]  ;;  %v17468_v13 = vpack.c.bf16 %v6129_v9, %v6128_v8  ;;  %v14847_v8 = vld [vmem:[%s20205_s1] ss:$0 sm:$0xff] }
 0xf7a   : > { %v5747_v18 = vpop.f32.mrb[46].mxu1 }
 0xf7b   : > { %v5756_v22 = vsel %vm1731_vm4, %v5747_v18, 0.0  ;;  %v16253_v23 = vpop.f32.mrb[47].mxu1  ;;  %v6024_v18 = vld [vmem:[%s20200_s14 + $0x38] sm:$0xff] }
 0xf7c   : > { %v5757_v24 = vadd.f32 %v5756_v22, %v5755_v16  ;;  %v6023_v16 = vld [vmem:[%s20200_s14 + $0x30] sm:$0xff]  ;;  %v6025_v22 = vld [vmem:[%s20200_s14 + $0x40] sm:$0xff]  ;;  %v6026_v23 = vld [vmem:[%s20200_s14 + $0x48] sm:$0xff] }
 0xf7e   : > { %v5764_v25 = vadd.f32 %v14803_v19, %v5757_v24  ;;  %v17429_v19 = vpack.c.bf16 %v6024_v18, %v6023_v16  ;;  %v17432_v24 = vpack.c.bf16 %v6026_v23, %v6025_v22  ;;  %v6130_v16 = vld [vmem:[%s20203_s18 + $0x10] sm:$0xff]  ;;  %v6131_v18 = vld [vmem:[%s20203_s18 + $0x18] sm:$0xff] }
 0xf7f   : > { %v6135_v22 = vld [vmem:[%s20203_s18 + $0x38] sm:$0xff]  ;;  %v17471_v23 = vpack.c.bf16 %v6131_v18, %v6130_v16  ;;  %v14848_v18 = vld [vmem:[%s20205_s1 + $0x1] ss:$0 sm:$0xff] }
 0xf80   : > { %v5765_v26 = vadd.f32 %v5764_v25, %v18763_v15  ;;  %v14808_v15 = vld [vmem:[%s20174_s3 + $0x20] sm:$0xff]  ;;  %v6027_v25 = vld [vmem:[%s20200_s14 + $0x50] sm:$0xff]  ;;  %s20206_s3 = sld [smem:[#allocation31_spill]] }
 0xf81   : > { %v17390_v34 = vpack.c.bf16 %v14809_v33, %v14808_v15  ;;  %v18131_v33 = vmov 1.0  }
 0xf82   : > { %v5770_v27 = vsel %vm1731_vm4, %v5765_v26, 0.0 }
 0xf83   : > { %5771 = vadd.xlane.f32.xlu0 %v5770_v27  ;;  %17391 = vmatpush3.bf16.msra.mxu0 %v17390_v34  ;;  %v14827_v34 = vld [vmem:[%s20170_s25 + $0xf0] sm:$0xff]  ;;  %s20216_s25 = sld [smem:[#allocation41_spill]] }
 0xf84   : > { %17392 = vmatprep.subr.bf16.mxu0 %v18128_v4  ;;  %v17417_v36 = vpack.c.bf16 %v14828_v35, %v14827_v34  ;;  %v6148_v35 = vld [vmem:[%s20204_s12] sm:$0xff] }
 0xf86   : > { %17418 = vmatpush3.bf16.msra.mxu1 %v17417_v36  ;;  %v6149_v36 = vld [vmem:[%s20204_s12 + $0x8] sm:$0xff] }
 0xf87   : > { %17394 = vmatpush3.bf16.msra.mxu0 %v17393_v38  ;;  %17443 = vmatprep.subr.bf16.mxu1 %v18128_v4  ;;  %v6112_v38 = vld [vmem:[%s20201_s6 + $0x20] sm:$0xff] }
 0xf88   : > { %17419 = vmatprep.subr.bf16.mxu0 %v18128_v4  ;;  %v17450_v41 = vpack.c.bf16 %v6113_v40, %v6112_v38  ;;  %v6152_v38 = vld [vmem:[%s20204_s12 + $0x20] sm:$0xff]  ;;  %v6153_v40 = vld [vmem:[%s20204_s12 + $0x28] sm:$0xff] }
 0xf89   : > { %v17498_v42 = vpack.c.bf16 %v6153_v40, %v6152_v38 }
 0xf99   : > { %6012 = vperm.xlu0 %17893, %v1546_v28   ;;  %v6029_v28 = vld [vmem:[%s20200_s14 + $0x60] sm:$0xff] }
0x1010   : > { %v5772_v29 = vpop.xlane.xlu0 %5771 }
0x1011   : > { %v5773_v17 = vmul.f32 0.03125, %v5772_v29  ;;  %v6030_v29 = vld [vmem:[%s20200_s14 + $0x68] sm:$0xff] }
0x1013   : > { %v5774_v30 = vsub.f32 %v5765_v26, %v5773_v17  ;;  %v6028_v26 = vld [vmem:[%s20200_s14 + $0x58] sm:$0xff]  ;;  %v17438_v17 = vpack.c.bf16 %v6030_v29, %v6029_v28  ;;  %v6141_v28 = vld [vmem:[%s20203_s18 + $0x68] sm:$0xff] }
0x1014   : > { %v17435_v27 = vpack.c.bf16 %v6028_v26, %v6027_v25  ;;  %v6136_v25 = vld [vmem:[%s20203_s18 + $0x40] sm:$0xff]  ;;  %v6137_v26 = vld [vmem:[%s20203_s18 + $0x48] sm:$0xff] }
0x1015   : > { %v5775_v31 = vmul.f32 %v5774_v30, %v5774_v30  ;;  %v17480_v29 = vpack.c.bf16 %v6137_v26, %v6136_v25  ;;  %v14850_v25 = vld [vmem:[%s20205_s1 + $0x3] ss:$0 sm:$0xff] }
0x1017   : > { %v5776_v32 = vsel %vm1731_vm4, %v5775_v31, 0.0  ;;  %v6032_v31 = vld [vmem:[%s20200_s14 + $0x78] sm:$0xff] }
0x1018   : > { %5777 = vadd.xlane.f32.xlu1 %v5776_v32  ;;  %v6013_v15 = vpop.permute.xlu0 %6012 }
0x1019   : > { %vm6014_vm6 = vcmp.eq.s32.totalorder %v6013_v15, %v18479_v21  ;;  %v6143_v15 = vld [vmem:[%s20203_s18 + $0x78] sm:$0xff] }
0x10a5   : > { %v5778_v59 = vpop.xlane.xlu1 %5777 }
0x10a6   : > { %v5779_v60 = vmul.f32 0.03125, %v5778_v59 }
0x10a8   : > { %v5780_v61 = vadd.f32 1e-05, %v5779_v60  ;;  %v17456_v60 = vpack.c.bf16 %v6117_v56, %v6116_v55  ;;  %v6159_v55 = vld [vmem:[%s20204_s12 + $0x58] sm:$0xff]  ;;  %v6162_v56 = vld [vmem:[%s20204_s12 + $0x70] sm:$0xff] }
0x10aa   : > { %17930 = vrsqrt.f32 %v5780_v61  ;;  %v17462_v61 = vpack.c.bf16 %v6121_v39, %v6120_v57  ;;  %v6163_v57 = vld [vmem:[%s20204_s12 + $0x78] sm:$0xff] }
0x10b4   : > { %v17931_v62 = vpop.eup %17930 }
0x10b5   : > { %v5782_v0 = vmul.f32 %v17931_v62, %v5774_v30  ;;  %v6031_v30 = vld [vmem:[%s20200_s14 + $0x70] sm:$0xff]  ;;  %s20209_s14 = sld [smem:[#allocation37_spill]] }
0x10b6   : > { %v17441_v32 = vpack.c.bf16 %v6032_v31, %v6031_v30  ;;  %v6118_v62 = vld [vmem:[%s20201_s6 + $0x50] sm:$0xff]  ;;  %v6139_v31 = vld [vmem:[%s20203_s18 + $0x58] sm:$0xff] }
0x10b7   : > { %v5789_v5 = vmul.f32 %v14806_v63, %v5782_v0  ;;  %v6138_v30 = vld [vmem:[%s20203_s18 + $0x50] sm:$0xff] }
0x10b9   : > { %v18996_v7 = vadd.f32 %v14807_v3, %v5789_v5  ;;  %v6123_v3 = vld [vmem:[%s20201_s6 + $0x78] sm:$0xff]  ;;  %v17459_v5 = vpack.c.bf16 %v6119_v1, %v6118_v62 }
0x10bb   : > { %16263 = vmatmul.mubr.msk.f32.vlgmr.msra.gmra.mrb[54].mxu0 %vm1731_vm4, %v18996_v7 }
0x10bc   : > { %17421 = vmatpush3.bf16.msra.mxu0 %v17420_v6  ;;  %16332 = vmatprep.mubr.msk.f32.mxu0 %vm18129_vm0, %v18130_v12  ;;  %v17465_v6 = vpack.c.bf16 %v6123_v3, %v6122_v2 }
0x10bd   : > { %17422 = vmatprep.subr.bf16.mxu0 %v18128_v4 }
0x10c0   : > { %17424 = vmatpush3.bf16.msra.mxu0 %v17423_v10  ;;  %v6132_v10 = vld [vmem:[%s20203_s18 + $0x20] sm:$0xff] }
0x10c1   : > { %17425 = vmatprep.subr.bf16.mxu0 %v18128_v4 }
0x10c4   : > { %17427 = vmatpush3.bf16.msra.mxu0 %v17426_v14  ;;  %v17474_v14 = vpack.c.bf16 %v6133_v11, %v6132_v10  ;;  %v14839_v11 = vld [vmem:[%s20206_s3] ss:$0 sm:$0xff] }
0x10c5   : > { %17428 = vmatprep.subr.bf16.mxu0 %v18128_v4 }
0x10c8   : > { %17430 = vmatpush3.bf16.msra.mxu0 %v17429_v19  ;;  %v6134_v19 = vld [vmem:[%s20203_s18 + $0x30] sm:$0xff] }
0x10c9   : > { %17431 = vmatprep.subr.bf16.mxu0 %v18128_v4 }
0x10cc   : > { %17433 = vmatpush3.bf16.msra.mxu0 %v17432_v24  ;;  %v17477_v24 = vpack.c.bf16 %v6135_v22, %v6134_v19  ;;  %v14840_v22 = vld [vmem:[%s20206_s3 + $0x1] ss:$0 sm:$0xff] }
0x10cd   : > { %17434 = vmatprep.subr.bf16.mxu0 %v18128_v4 }
0x10d0   : > { %17436 = vmatpush3.bf16.msra.mxu0 %v17435_v27  ;;  %v6140_v27 = vld [vmem:[%s20203_s18 + $0x60] sm:$0xff] }
0x10d1   : > { %17437 = vmatprep.subr.bf16.mxu0 %v18128_v4 }
0x10d4   : > { %17439 = vmatpush3.bf16.msra.mxu0 %v17438_v17  ;;  %v17486_v17 = vpack.c.bf16 %v6141_v28, %v6140_v27 }
0x10d5   : > { %17440 = vmatprep.subr.bf16.mxu0 %v18128_v4 }
0x10d8   : > { %17442 = vmatpush3.bf16.msra.mxu0 %v17441_v32  ;;  %v6142_v32 = vld [vmem:[%s20203_s18 + $0x70] sm:$0xff] }
0x10d9   : > { %17449 = vmatprep.subr.bf16.mxu0 %v18128_v4  ;;  %v17489_v34 = vpack.c.bf16 %v6143_v15, %v6142_v32 }
0x10db   : > { %16333 = vmatmul.mubr.msk.f32.vlgmr.msra.gmra.mrb[56].mxu0 %vm6014_vm6, %v18131_v33  ;;  %v17483_v33 = vpack.c.bf16 %v6139_v31, %v6138_v30 }
0x10dc   : > { %16354 = vmatprep.mubr.msk.f32.mxu0 %vm18129_vm0, %v18130_v12  ;;  %17451 = vmatpush3.bf16.msra.mxu0 %v17450_v41  ;;  %v17492_v41 = vpack.c.bf16 %v6149_v36, %v6148_v35  ;;  %v14855_v35 = vld [vmem:[%s20207_s5] ss:$0 sm:$0xff]  ;;  %v14856_v36 = vld [vmem:[%s20207_s5 + $0x1] ss:$0 sm:$0xff] }
0x10dd   : > { %17452 = vmatprep.subr.bf16.mxu0 %v18128_v4 }
0x10e0   : > { %17454 = vmatpush3.bf16.msra.mxu0 %v17453_v44  ;;  %v6151_v44 = vld [vmem:[%s20204_s12 + $0x18] sm:$0xff] }
0x10e1   : > { %17461 = vmatprep.subr.bf16.mxu0 %v18128_v4  ;;  %v17495_v47 = vpack.c.bf16 %v6151_v44, %v6150_v43 }
0x118e   : > { %v5898_v48 = vpop.f32.mrb[54].mxu0 }
0x118f   : > { %v5899_v49 = vadd.f32 %v14830_v45, %v5898_v48  ;;  %v16264_v37 = vpop.f32.mrb[55].mxu0  ;;  %v6154_v45 = vld [vmem:[%s20204_s12 + $0x30] sm:$0xff] }
0x1190   : > { %v17501_v48 = vpack.c.bf16 %v6155_v46, %v6154_v45  ;;  %v6157_v37 = vld [vmem:[%s20204_s12 + $0x48] sm:$0xff] }
0x1191   : > { %v5902_v51 = vmax.f32 %v5899_v49, 0.0  ;;  %v6156_v49 = vld [vmem:[%s20204_s12 + $0x40] sm:$0xff] }
0x1192   : > { %v17504_v52 = vpack.c.bf16 %v6157_v37, %v6156_v49  ;;  %v6105_v49 = vshrl.u32 %v1548_v20, 7  ;;  %v18132_v37 = vmov -1e+09  }
0x1193   : > { %16298 = vmatmul.mubr.f32.vlgmr.msra.gmra.mrb[48].mxu1 %v5902_v51  ;;  %v6161_v51 = vld [vmem:[%s20204_s12 + $0x68] sm:$0xff] }
0x1194   : > { %17445 = vmatpush3.bf16.msra.mxu1 %v17444_v50  ;;  %16343 = vmatprep.mubr.msk.f32.mxu1 %vm18129_vm0, %v18130_v12  ;;  %v6160_v50 = vld [vmem:[%s20204_s12 + $0x60] sm:$0xff]  ;;  %vm6106_vm7 = vcmp.ge.s32.totalorder %v6105_v49, %v18479_v21 }
0x1195   : > { %17446 = vmatprep.subr.bf16.mxu1 %v18128_v4  ;;  %v17510_v53 = vpack.c.bf16 %v6161_v51, %v6160_v50  ;;  %v19196_v50 = vsel %vm6106_vm7, 0.0, %v18132_v37  ;;  %v6169_v37 = vld [vmem:[%s20208_s7 + $0x8] sm:$0xff] }
0x1198   : > { %17448 = vmatpush3.bf16.msra.mxu1 %v17447_v54  ;;  %v6158_v54 = vld [vmem:[%s20204_s12 + $0x50] sm:$0xff] }
0x1199   : > { %17455 = vmatprep.subr.bf16.mxu1 %v18128_v4  ;;  %v17507_v39 = vpack.c.bf16 %v6159_v55, %v6158_v54 }
0x11ae   : > { %v6100_v59 = vpop.f32.mrb[56].mxu0 }
0x11af   : > { %v19051_v63 = vadd.f32 %v6100_v59, %v6033_v58  ;;  %v16334_v0 = vpop.f32.mrb[57].mxu0  ;;  %v17513_v58 = vpack.c.bf16 %v6163_v57, %v6162_v56 }
0x11b1   : > { %16344 = vmatmul.mubr.msk.f32.vlgmr.msra.gmra.mrb[50].mxu1 %vm1731_vm4, %v19051_v63  ;;  %16355 = vmatmul.mubr.msk.f32.vlgmr.msra.gmra.mrb[58].mxu0 %vm1731_vm4, %v19051_v63 }
0x11b2   : > { %17457 = vmatpush3.bf16.msra.mxu1 %v17456_v60  ;;  %17463 = vmatpush3.bf16.msra.mxu0 %v17462_v61 }
0x11b3   : > { %17458 = vmatprep.subr.bf16.mxu1 %v18128_v4  ;;  %17464 = vmatprep.subr.bf16.mxu0 %v18128_v4 }
0x11b4   : > { %16365 = vmatprep.mubr.msk.f32.mxu1 %vm18129_vm0, %v18130_v12  ;;  %16376 = vmatprep.mubr.msk.f32.mxu0 %vm18129_vm0, %v18130_v12 }
0x11b6   : > { %17460 = vmatpush3.bf16.msra.mxu1 %v17459_v5  ;;  %17466 = vmatpush3.bf16.msra.mxu0 %v17465_v6 }
0x11b7   : > { %17467 = vmatprep.subr.bf16.mxu1 %v18128_v4  ;;  %17473 = vmatprep.subr.bf16.mxu0 %v18128_v4 }
0x11b9   : > { %16366 = vmatmul.mubr.msk.f32.vlgmr.msra.gmra.mrb[52].mxu1 %vm1731_vm4, %v19051_v63  ;;  %16377 = vmatmul.mubr.msk.f32.vlgmr.msra.gmra.mrb[60].mxu0 %vm1731_vm4, %v19051_v63 }
0x11ba   : > { %17469 = vmatpush3.bf16.msra.mxu1 %v17468_v13  ;;  %17475 = vmatpush3.bf16.msra.mxu0 %v17474_v14 }
0x11bb   : > { %17470 = vmatprep.subr.bf16.mxu1 %v18128_v4  ;;  %17476 = vmatprep.subr.bf16.mxu0 %v18128_v4 }
0x11bc   : > { %16387 = vmatprep.mubr.msk.f32.mxu1 %vm18129_vm0, %v18130_v12  ;;  %16398 = vmatprep.mubr.msk.f32.mxu0 %vm18129_vm0, %v18130_v12 }
0x11be   : > { %17472 = vmatpush3.bf16.msra.mxu1 %v17471_v23  ;;  %17478 = vmatpush3.bf16.msra.mxu0 %v17477_v24  ;;  %v14849_v24 = vld [vmem:[%s20205_s1 + $0x2] ss:$0 sm:$0xff] }
0x11bf   : > { %17479 = vmatprep.subr.bf16.mxu1 %v18128_v4  ;;  %17485 = vmatprep.subr.bf16.mxu0 %v18128_v4 }
0x11c1   : > { %16388 = vmatmul.mubr.msk.f32.vlgmr.msra.gmra.mrb[54].mxu1 %vm1731_vm4, %v19051_v63  ;;  %16399 = vmatmul.mubr.msk.f32.vlgmr.msra.gmra.mrb[62].mxu0 %vm1731_vm4, %v19051_v63 }
0x11c2   : > { %17481 = vmatpush3.bf16.msra.mxu1 %v17480_v29  ;;  %17487 = vmatpush3.bf16.msra.mxu0 %v17486_v17  ;;  %v14841_v29 = vld [vmem:[%s20206_s3 + $0x2] ss:$0 sm:$0xff]  ;;  %v14842_v17 = vld [vmem:[%s20206_s3 + $0x3] ss:$0 sm:$0xff] }
0x11c3   : > { %17482 = vmatprep.subr.bf16.mxu1 %v18128_v4  ;;  %17488 = vmatprep.subr.bf16.mxu0 %v18128_v4 }
0x11c4   : > { %16409 = vmatprep.mubr.msk.f32.mxu1 %vm18129_vm0, %v18130_v12  ;;  %16420 = vmatprep.mubr.msk.f32.mxu0 %vm18129_vm0, %v18130_v12 }
0x11c6   : > { %17484 = vmatpush3.bf16.msra.mxu1 %v17483_v33  ;;  %17490 = vmatpush3.bf16.msra.mxu0 %v17489_v34 }
0x11c7   : > { %17491 = vmatprep.subr.bf16.mxu1 %v18128_v4  ;;  %17497 = vmatprep.subr.bf16.mxu0 %v18128_v4 }
0x11c9   : > { %16410 = vmatmul.mubr.msk.f32.vlgmr.msra.gmra.mrb[56].mxu1 %vm1731_vm4, %v19051_v63  ;;  %16421 = vmatmul.mubr.msk.f32.vlgmr.msra.gmra.mrb[64].mxu0 %vm1731_vm4, %v19051_v63 }
0x11ca   : > { %17493 = vmatpush3.bf16.msra.mxu1 %v17492_v41  ;;  %17499 = vmatpush3.bf16.msra.mxu0 %v17498_v42 }
0x11cb   : > { %17494 = vmatprep.subr.bf16.mxu1 %v18128_v4  ;;  %17500 = vmatprep.subr.bf16.mxu0 %v18128_v4 }
0x11cc   : > { %16431 = vmatprep.mubr.msk.f32.mxu1 %vm18129_vm0, %v18130_v12  ;;  %16442 = vmatprep.mubr.msk.f32.mxu0 %vm18129_vm0, %v18130_v12 }
0x11ce   : > { %17496 = vmatpush3.bf16.msra.mxu1 %v17495_v47  ;;  %17502 = vmatpush3.bf16.msra.mxu0 %v17501_v48 }
0x11cf   : > { %17503 = vmatprep.subr.bf16.mxu1 %v18128_v4  ;;  %17509 = vmatprep.subr.bf16.mxu0 %v18128_v4 }
0x11d1   : > { %16432 = vmatmul.mubr.msk.f32.vlgmr.msra.gmra.mrb[58].mxu1 %vm1731_vm4, %v19051_v63  ;;  %16443 = vmatmul.mubr.msk.f32.vlgmr.msra.gmra.mrb[66].mxu0 %vm1731_vm4, %v19051_v63 }
0x11d2   : > { %17505 = vmatpush3.bf16.msra.mxu1 %v17504_v52  ;;  %17511 = vmatpush3.bf16.msra.mxu0 %v17510_v53 }
0x11d3   : > { %17506 = vmatprep.subr.bf16.mxu1 %v18128_v4  ;;  %17512 = vmatprep.subr.bf16.mxu0 %v18128_v4 }
0x11d4   : > { %16453 = vmatprep.mubr.msk.f32.mxu1 %vm18129_vm0, %v18130_v12  ;;  %16464 = vmatprep.mubr.msk.f32.mxu0 %vm18129_vm0, %v18130_v12 }
0x11d6   : > { %17508 = vmatpush3.bf16.msra.mxu1 %v17507_v39  ;;  %17514 = vmatpush3.bf16.msra.mxu0 %v17513_v58 }
0x11d7   : > { %16467 = vmatprep.subr.mxu1 %v18130_v12  ;;  %16477 = vmatprep.subr.mxu0 %v18130_v12 }
0x11d9   : > { %16454 = vmatmul.mubr.msk.f32.vlgmr.msra.gmra.mrb[60].mxu1 %vm1731_vm4, %v19051_v63  ;;  %16465 = vmatmul.mubr.msk.f32.vlgmr.msra.gmra.mrb[68].mxu0 %vm1731_vm4, %v19051_v63 }
0x11da   : > { %16469 = vmatprep.mubr.msk.f32.mxu1 %vm18129_vm0, %v18130_v12  ;;  %16479 = vmatprep.mubr.msk.f32.mxu0 %vm18129_vm0, %v18130_v12 }
0x1266   : > { %v19156_v59 = vpop.f32.mrb[48].mxu1 }
0x1267   : > { %v16299_v60 = vpop.f32.mrb[49].mxu1 }
0x1284   : > { %v6266_v61 = vpop.f32.mrb[50].mxu1  ;;  %v6336_v62 = vpop.f32.mrb[58].mxu0 }
0x1285   : > { %v16345_v0 = vpop.f32.mrb[51].mxu1  ;;  %v16356_v1 = vpop.f32.mrb[59].mxu0  ;;  %v6267_v19 = vadd.f32 %v14839_v11, %v6266_v61  ;;  %v6337_v26 = vadd.f32 %v14840_v22, %v6336_v62 }
0x128c   : > { %v6406_v2 = vpop.f32.mrb[52].mxu1  ;;  %v6476_v3 = vpop.f32.mrb[60].mxu0 }
0x128d   : > { %v16367_v5 = vpop.f32.mrb[53].mxu1  ;;  %v16378_v6 = vpop.f32.mrb[61].mxu0  ;;  %v6407_v33 = vadd.f32 %v14841_v29, %v6406_v2  ;;  %v6477_v34 = vadd.f32 %v14842_v17, %v6476_v3 }
0x1294   : > { %v6570_v9 = vpop.f32.mrb[54].mxu1  ;;  %v6640_v10 = vpop.f32.mrb[62].mxu0 }
0x1295   : > { %v6571_v13 = vadd.f32 %v14847_v8, %v6570_v9  ;;  %v16389_v14 = vpop.f32.mrb[55].mxu1  ;;  %v16400_v16 = vpop.f32.mrb[63].mxu0  ;;  %v6641_v23 = vadd.f32 %v14848_v18, %v6640_v10 }
0x1297   : > { %16468 = vmatpush3.xpose.msk.msra.mxu1 %vm2623_vm5, %v6571_v13 }
0x1298   : > { %16472 = vmatprep.subr.mxu1 %v18130_v12 }
0x129a   : > { %16470 = vmatmul.mubr.msk.f32.vlgmr.msra.gmra.mrb[62].mxu1 %vm2623_vm5, %v6267_v19 }
0x129b   : > { %16473 = vmatpush3.xpose.msk.msra.mxu1 %vm2623_vm5, %v6641_v23  ;;  %16474 = vmatprep.mubr.msk.f32.mxu1 %vm18129_vm0, %v18130_v12 }
0x129c   : > { %v6710_v27 = vpop.f32.mrb[56].mxu1  ;;  %v6780_v28 = vpop.f32.mrb[64].mxu0  ;;  %16482 = vmatprep.subr.mxu1 %v18130_v12 }
0x129d   : > { %v6711_v30 = vadd.f32 %v14849_v24, %v6710_v27  ;;  %v6781_v31 = vadd.f32 %v14850_v25, %v6780_v28  ;;  %v16411_v32 = vpop.f32.mrb[57].mxu1  ;;  %v16422_v15 = vpop.f32.mrb[65].mxu0 }
0x129e   : > { %16475 = vmatmul.mubr.msk.f32.vlgmr.msra.gmra.mrb[64].mxu1 %vm2623_vm5, %v6337_v26 }
0x129f   : > { %16478 = vmatpush3.xpose.msk.msra.mxu0 %vm2623_vm5, %v6711_v30  ;;  %16483 = vmatpush3.xpose.msk.msra.mxu1 %vm2623_vm5, %v6781_v31 }
0x12a0   : > { %16484 = vmatprep.mubr.msk.f32.mxu1 %vm18129_vm0, %v18130_v12  ;;  %16487 = vmatprep.subr.mxu0 %v18130_v12 }
0x12a1   : > { %16492 = vmatprep.subr.mxu1 %v18130_v12 }
0x12a2   : > { %16480 = vmatmul.mubr.msk.f32.vlgmr.msra.gmra.mrb[70].mxu0 %vm2623_vm5, %v6407_v33  ;;  %16485 = vmatmul.mubr.msk.f32.vlgmr.msra.gmra.mrb[66].mxu1 %vm2623_vm5, %v6477_v34  ;;  %v14857_v34 = vld [vmem:[%s20207_s5 + $0x2] ss:$0 sm:$0xff] }
0x12a3   : > { %16489 = vmatprep.mubr.msk.f32.mxu0 %vm18129_vm0, %v18130_v12  ;;  %16494 = vmatprep.mubr.msk.f32.mxu1 %vm18129_vm0, %v18130_v12 }
0x12a4   : > { %v6874_v38 = vpop.f32.mrb[58].mxu1  ;;  %v6944_v40 = vpop.f32.mrb[66].mxu0 }
0x12a5   : > { %v6875_v41 = vadd.f32 %v14855_v35, %v6874_v38  ;;  %v6945_v42 = vadd.f32 %v14856_v36, %v6944_v40  ;;  %v16433_v43 = vpop.f32.mrb[59].mxu1  ;;  %v16444_v44 = vpop.f32.mrb[67].mxu0 }
0x12a7   : > { %16488 = vmatpush3.msra.mxu0 %v6875_v41  ;;  %16493 = vmatpush3.msra.mxu1 %v6945_v42  ;;  %v14858_v41 = vld [vmem:[%s20207_s5 + $0x3] ss:$0 sm:$0xff] }
0x12a8   : > { %16497 = vmatprep.subr.mxu0 %v18130_v12  ;;  %16502 = vmatprep.subr.mxu1 %v18130_v12 }
0x12ac   : > { %v19190_v45 = vpop.f32.mrb[60].mxu1  ;;  %v19192_v46 = vpop.f32.mrb[68].mxu0 }
0x12ad   : > { %v16455_v47 = vpop.f32.mrb[61].mxu1  ;;  %v16466_v48 = vpop.f32.mrb[69].mxu0  ;;  %v7015_v38 = vadd.f32 %v14857_v34, %v19190_v45  ;;  %v7085_v44 = vadd.f32 %v14858_v41, %v19192_v46  ;;  %v6168_v46 = vld [vmem:[%s20208_s7] sm:$0xff]  ;;  %v8078_v41 = vld [vmem:[%s20210_s19 + $0x30] sm:$0xff] }
0x136d   : > { %v7160_v51 = vpop.f32.mrb[62].mxu1 }
0x136e   : > { %v7392_v52 = vmul.f32 0.35355338, %v7160_v51  ;;  %v16471_v53 = vpop.f32.mrb[63].mxu1  ;;  %v6170_v51 = vld [vmem:[%s20208_s7 + $0x10] sm:$0xff] }
0x1370   : > { %v7396_v54 = vadd.f32 %v7392_v52, %v19196_v50 }
0x1371   : > { %v7236_v55 = vpop.f32.mrb[64].mxu1 }
0x1372   : > { %v7393_v56 = vmul.f32 0.35355338, %v7236_v55  ;;  %v16476_v57 = vpop.f32.mrb[65].mxu1  ;;  %v7400_v39 = vsel %vm2623_vm5, %v7396_v54, -inf }
0x1373   : > { %7401 = vmax.xlane.f32.xlu1 %v7400_v39 }
0x1374   : > { %v7397_v58 = vadd.f32 %v7393_v56, %v19196_v50 }
0x1375   : > { %v7312_v60 = vpop.f32.mrb[70].mxu0  ;;  %v7388_v20 = vpop.f32.mrb[66].mxu1 }
0x1376   : > { %v7394_v61 = vmul.f32 0.35355338, %v7312_v60  ;;  %v16481_v21 = vpop.f32.mrb[71].mxu0  ;;  %v16486_v62 = vpop.f32.mrb[67].mxu1  ;;  %v7395_v0 = vmul.f32 0.35355338, %v7388_v20 }
0x1377   : > { %v7403_v1 = vsel %vm2623_vm5, %v7397_v58, -inf }
0x1378   : > { %7404 = vmax.xlane.f32.xlu1 %v7403_v1  ;;  %v7398_v2 = vadd.f32 %v7394_v61, %v19196_v50  ;;  %v7399_v5 = vadd.f32 %v7395_v0, %v19196_v50 }
0x137a   : > { %v7406_v3 = vsel %vm2623_vm5, %v7398_v2, -inf  ;;  %v7409_v6 = vsel %vm2623_vm5, %v7399_v5, -inf }
0x137c   : > { %7407 = vmax.xlane.f32.xlu1 %v7406_v3 }
0x1380   : > { %7410 = vmax.xlane.f32.xlu1 %v7409_v6 }
0x1400   : > { %v7402_v8 = vpop.xlane.xlu1 %7401 }
0x1401   : > { %v7412_v9 = vsub.f32 %v7396_v54, %v7402_v8  ;;  %v6171_v54 = vld [vmem:[%s20208_s7 + $0x18] sm:$0xff] }
0x1403   : > { %v7416_v10 = vmul.f32 1.442695, %v7412_v9 }
0x1405   : > { %17932 = vpow2.f32 %v7416_v10  ;;  %v7405_v11 = vpop.xlane.xlu1 %7404  ;;  %v14832_v10 = vld [vmem:[%s20195_s13 + $0x1] ss:$0 sm:$0xff]  ;;  %s20211_s13 = sld [smem:[#allocation38_spill]] }
0x1406   : > { %v7413_v13 = vsub.f32 %v7397_v58, %v7405_v11  ;;  %v14879_v11 = vld [vmem:[%s20209_s14] ss:$0 sm:$0xff] }
0x1408   : > { %v7418_v14 = vmul.f32 1.442695, %v7413_v13 }
0x1409   : > { %v7408_v16 = vpop.xlane.xlu1 %7407 }
0x140a   : > { %17934 = vpow2.f32 %v7418_v14  ;;  %v7414_v18 = vsub.f32 %v7398_v2, %v7408_v16 }
0x140c   : > { %v7420_v19 = vmul.f32 1.442695, %v7414_v18  ;;  %v5976_v18 = vadd.f32 %v14832_v10, %v19156_v59 }
0x140d   : > { %v7411_v22 = vpop.xlane.xlu1 %7410 }
0x140e   : > { %17936 = vpow2.f32 %v7420_v19  ;;  %v7415_v23 = vsub.f32 %v7399_v5, %v7411_v22 }
0x140f   : > { %v17933_v24 = vpop.eup %17932 }
0x1410   : > { %v7422_v25 = vmul.f32 1.442695, %v7415_v23  ;;  %v7424_v26 = vsel %vm2623_vm5, %v17933_v24, 0.0 }
0x1411   : > { %7425 = vadd.xlane.f32.xlu1 %v7424_v26 }
0x1412   : > { %17938 = vpow2.f32 %v7422_v25 }
0x1414   : > { %v17935_v27 = vpop.eup %17934 }
0x1415   : > { %v7427_v28 = vsel %vm2623_vm5, %v17935_v27, 0.0 }
0x1416   : > { %7428 = vadd.xlane.f32.xlu1 %v7427_v28 }
0x1418   : > { %v17937_v29 = vpop.eup %17936 }
0x1419   : > { %v7430_v17 = vsel %vm2623_vm5, %v17937_v29, 0.0 }
0x141a   : > { %7431 = vadd.xlane.f32.xlu0 %v7430_v17 }
0x141c   : > { %v17939_v30 = vpop.eup %17938 }
0x141d   : > { %v7433_v31 = vsel %vm2623_vm5, %v17939_v30, 0.0 }
0x141e   : > { %7434 = vadd.xlane.f32.xlu1 %v7433_v31 }
0x149e   : > { %v7426_v32 = vpop.xlane.xlu1 %7425 }
0x149f   : > { %17940 = vrcp.f32 %v7426_v32  ;;  %v8072_v32 = vld [vmem:[%s20210_s19] sm:$0xff] }
0x14a3   : > { %v7429_v15 = vpop.xlane.xlu1 %7428 }
0x14a4   : > { %17942 = vrcp.f32 %v7429_v15  ;;  %v8073_v15 = vld [vmem:[%s20210_s19 + $0x8] sm:$0xff] }
0x14a5   : > { %v17516_v34 = vpack.c.bf16 %v8073_v15, %v8072_v32  ;;  %v8103_v32 = vld [vmem:[%s20213_s24 + $0x58] sm:$0xff]  ;;  %v8106_v15 = vld [vmem:[%s20213_s24 + $0x70] sm:$0xff] }
0x14a7   : > { %v7432_v33 = vpop.xlane.xlu0 %7431 }
0x14a8   : > { %17944 = vrcp.f32 %v7432_v33  ;;  %v8076_v33 = vld [vmem:[%s20210_s19 + $0x20] sm:$0xff] }
0x14a9   : > { %v17941_v35 = vpop.eup %17940 }
0x14aa   : > { %v7440_v36 = vmul.f32 %v17941_v35, %v17933_v24  ;;  %v5979_v24 = vadd.f32 %v5976_v18, %v18996_v7  ;;  %v8077_v35 = vld [vmem:[%s20210_s19 + $0x28] sm:$0xff]  ;;  %v8095_v18 = vld [vmem:[%s20213_s24 + $0x18] sm:$0xff] }
0x14ab   : > { %v7435_v40 = vpop.xlane.xlu1 %7434 }
0x14ac   : > { %17946 = vrcp.f32 %v7435_v40  ;;  %16490 = vmatmul.mubr.msk.f32.vlgmr.msra.gmra.mrb[72].mxu0 %vm2623_vm5, %v7440_v36  ;;  %v5984_v25 = vsel %vm1731_vm4, %v5979_v24, 0.0  ;;  %v17522_v36 = vpack.c.bf16 %v8077_v35, %v8076_v33  ;;  %v8075_v40 = vld [vmem:[%s20210_s19 + $0x18] sm:$0xff] }
0x14ad   : > { %16498 = vmatpush3.msra.mxu0 %v7015_v38  ;;  %16499 = vmatprep.mubr.msk.f32.mxu0 %vm18129_vm0, %v18130_v12  ;;  %v8074_v38 = vld [vmem:[%s20210_s19 + $0x10] sm:$0xff]  ;;  %v8107_v33 = vld [vmem:[%s20213_s24 + $0x78] sm:$0xff] }
0x14ae   : > { %v17943_v42 = vpop.eup %17942  ;;  %16507 = vmatprep.subr.mxu0 %v18130_v12  ;;  %v17561_v35 = vpack.c.bf16 %v8107_v33, %v8106_v15  ;;  %v14898_v33 = vld [vmem:[%s20217_s27] ss:$0 sm:$0xff] }
0x14af   : > { %v7441_v43 = vmul.f32 %v17943_v42, %v17935_v27  ;;  %v8079_v42 = vld [vmem:[%s20210_s19 + $0x38] sm:$0xff] }
0x14b1   : > { %16495 = vmatmul.mubr.msk.f32.vlgmr.msra.gmra.mrb[68].mxu1 %vm2623_vm5, %v7441_v43  ;;  %v17519_v43 = vpack.c.bf16 %v8075_v40, %v8074_v38 }
0x14b2   : > { %v17945_v45 = vpop.eup %17944  ;;  %16503 = vmatpush3.msra.mxu1 %v7085_v44  ;;  %16504 = vmatprep.mubr.msk.f32.mxu1 %vm18129_vm0, %v18130_v12  ;;  %v17525_v44 = vpack.c.bf16 %v8079_v42, %v8078_v41 }
0x14b3   : > { %v7442_v47 = vmul.f32 %v17945_v45, %v17937_v29  ;;  %16512 = vmatprep.subr.mxu1 %v18130_v12 }
0x14b5   : > { %16500 = vmatmul.mubr.msk.f32.vlgmr.msra.gmra.mrb[74].mxu0 %vm2623_vm5, %v7442_v47 }
0x14b6   : > { %v17947_v48 = vpop.eup %17946  ;;  %16509 = vmatprep.mubr.msk.f32.mxu0 %vm18129_vm0, %v18130_v12  ;;  %16508 = vmatpush3.msra.mxu0 %v6168_v46 }
0x14b7   : > { %v7443_v49 = vmul.f32 %v17947_v48, %v17939_v30  ;;  %16517 = vmatprep.subr.mxu0 %v18130_v12 }
0x14b9   : > { %16505 = vmatmul.mubr.msk.f32.vlgmr.msra.gmra.mrb[70].mxu1 %vm2623_vm5, %v7443_v49 }
0x14ba   : > { %16514 = vmatprep.mubr.msk.f32.mxu1 %vm18129_vm0, %v18130_v12  ;;  %16513 = vmatpush3.msra.mxu1 %v6169_v37 }
0x14bb   : > { %16522 = vmatprep.subr.mxu1 %v18130_v12 }
0x157f   : > { %v7513_v52 = vpop.f32.mrb[72].mxu0 }
0x1580   : > { %v16491_v53 = vpop.f32.mrb[73].mxu0  ;;  %16510 = vmatmul.mubr.msk.f32.vlgmr.msra.gmra.mrb[76].mxu0 %vm2623_vm5, %v7513_v52  ;;  %v14880_v52 = vld [vmem:[%s20211_s13] ss:$0 sm:$0xff] }
0x1581   : > { %16518 = vmatpush3.msra.mxu0 %v6170_v51  ;;  %16519 = vmatprep.mubr.msk.f32.mxu0 %vm18129_vm0, %v18130_v12  ;;  %v8080_v53 = vld [vmem:[%s20210_s19 + $0x40] sm:$0xff] }
0x1582   : > { %17515 = vmatprep.subr.bf16.mxu0 %v18128_v4 }
0x1584   : > { %v7586_v55 = vpop.f32.mrb[68].mxu1 }
0x1585   : > { %v16496_v56 = vpop.f32.mrb[69].mxu1  ;;  %16515 = vmatmul.mubr.msk.f32.vlgmr.msra.gmra.mrb[72].mxu1 %vm2623_vm5, %v7586_v55  ;;  %v8081_v55 = vld [vmem:[%s20210_s19 + $0x48] sm:$0xff] }
0x1586   : > { %16523 = vmatpush3.msra.mxu1 %v6171_v54  ;;  %16524 = vmatprep.mubr.msk.f32.mxu1 %vm18129_vm0, %v18130_v12  ;;  %v8084_v56 = vld [vmem:[%s20210_s19 + $0x60] sm:$0xff] }
0x1587   : > { %17521 = vmatprep.subr.bf16.mxu1 %v18128_v4 }
0x1588   : > { %v7659_v57 = vpop.f32.mrb[74].mxu0 }
0x1589   : > { %v16501_v39 = vpop.f32.mrb[75].mxu0  ;;  %16520 = vmatmul.mubr.msk.f32.vlgmr.msra.gmra.mrb[78].mxu0 %vm2623_vm5, %v7659_v57  ;;  %v8085_v57 = vld [vmem:[%s20210_s19 + $0x68] sm:$0xff] }
0x158a   : > { %16535 = vmatprep.mubr.msk.f32.mxu0 %vm18129_vm0, %v18130_v12  ;;  %17517 = vmatpush3.bf16.msra.mxu0 %v17516_v34  ;;  %v14881_v39 = vld [vmem:[%s20212_s20] ss:$0 sm:$0xff] }
0x158b   : > { %17518 = vmatprep.subr.bf16.mxu0 %v18128_v4 }
0x158c   : > { %v7732_v58 = vpop.f32.mrb[70].mxu1 }
0x158d   : > { %v16506_v60 = vpop.f32.mrb[71].mxu1  ;;  %16525 = vmatmul.mubr.msk.f32.vlgmr.msra.gmra.mrb[74].mxu1 %vm2623_vm5, %v7732_v58 }
0x158e   : > { %16546 = vmatprep.mubr.msk.f32.mxu1 %vm18129_vm0, %v18130_v12  ;;  %17523 = vmatpush3.bf16.msra.mxu1 %v17522_v36  ;;  %v17528_v60 = vpack.c.bf16 %v8081_v55, %v8080_v53 }
0x158f   : > { %17524 = vmatprep.subr.bf16.mxu1 %v18128_v4  ;;  %17520 = vmatpush3.bf16.msra.mxu0 %v17519_v43 }
0x1590   : > { %17527 = vmatprep.subr.bf16.mxu0 %v18128_v4 }
0x1592   : > { %17526 = vmatpush3.bf16.msra.mxu1 %v17525_v44 }
0x1593   : > { %17533 = vmatprep.subr.bf16.mxu1 %v18128_v4 }
0x1653   : > { %v7805_v20 = vpop.f32.mrb[76].mxu0 }
0x1654   : > { %v16511_v61 = vpop.f32.mrb[77].mxu0  ;;  %v8028_v62 = vsel %vm1731_vm4, %v7805_v20, 0.0  ;;  %v17534_v20 = vpack.c.bf16 %v8085_v57, %v8084_v56 }
0x1655   : > { %v8082_v61 = vld [vmem:[%s20210_s19 + $0x50] sm:$0xff] }
0x1658   : > { %v7878_v21 = vpop.f32.mrb[72].mxu1 }
0x1659   : > { %v8029_v0 = vsel %vm1731_vm4, %v7878_v21, 0.0  ;;  %v16516_v1 = vpop.f32.mrb[73].mxu1 }
0x165a   : > { %v8030_v2 = vadd.f32 %v8029_v0, %v8028_v62  ;;  %v8083_v62 = vld [vmem:[%s20210_s19 + $0x58] sm:$0xff]  ;;  %v8086_v0 = vld [vmem:[%s20210_s19 + $0x70] sm:$0xff] }
0x165b   : > { %v8087_v1 = vld [vmem:[%s20210_s19 + $0x78] sm:$0xff] }
0x165c   : > { %v7951_v3 = vpop.f32.mrb[78].mxu0 }
0x165d   : > { %v8031_v5 = vsel %vm1731_vm4, %v7951_v3, 0.0  ;;  %v16521_v6 = vpop.f32.mrb[79].mxu0  ;;  %v17537_v3 = vpack.c.bf16 %v8087_v1, %v8086_v0 }
0x165e   : > { %v8032_v8 = vadd.f32 %v8031_v5, %v8030_v2  ;;  %v17531_v2 = vpack.c.bf16 %v8083_v62, %v8082_v61  ;;  %v8092_v5 = vld [vmem:[%s20213_s24] sm:$0xff]  ;;  %v8093_v6 = vld [vmem:[%s20213_s24 + $0x8] sm:$0xff] }
0x1660   : > { %v8024_v9 = vpop.f32.mrb[74].mxu1 }
0x1661   : > { %v8033_v13 = vsel %vm1731_vm4, %v8024_v9, 0.0  ;;  %v16526_v14 = vpop.f32.mrb[75].mxu1  ;;  %v8097_v9 = vld [vmem:[%s20213_s24 + $0x28] sm:$0xff] }
0x1662   : > { %v8034_v16 = vadd.f32 %v8033_v13, %v8032_v8  ;;  %v8096_v8 = vld [vmem:[%s20213_s24 + $0x20] sm:$0xff]  ;;  %v8094_v14 = vld [vmem:[%s20213_s24 + $0x10] sm:$0xff] }
0x1663   : > { %v17546_v13 = vpack.c.bf16 %v8097_v9, %v8096_v8 }
0x1664   : > { %v8041_v19 = vadd.f32 %v14879_v11, %v8034_v16  ;;  %v17540_v11 = vpack.c.bf16 %v8093_v6, %v8092_v5 }
0x1666   : > { %v8042_v22 = vadd.f32 %v8041_v19, %v19051_v63  ;;  %v8098_v19 = vld [vmem:[%s20213_s24 + $0x30] sm:$0xff] }
0x1668   : > { %v8045_v23 = vsel %vm1731_vm4, %v8042_v22, 0.0 }
0x1669   : > { %8046 = vadd.xlane.f32.xlu1 %v8045_v23  ;;  %v14835_v23 = vld [vmem:[%s20196_s17 + $0x1] ss:$0 sm:$0xff]  ;;  %s20214_s17 = sld [smem:[#allocation44_spill]] }
0x166d   : > { %5985 = vadd.xlane.f32.xlu1 %v5984_v25 }
0x166f   : > { %v8112_v36 = vld [vmem:[%s20214_s17] sm:$0xff]  ;;  %v8113_v38 = vld [vmem:[%s20214_s17 + $0x8] sm:$0xff]  ;;  %v8114_v44 = vld [vmem:[%s20214_s17 + $0x10] sm:$0xff] }
0x1670   : > { %v8116_v40 = vld [vmem:[%s20214_s17 + $0x20] sm:$0xff]  ;;  %v8117_v41 = vld [vmem:[%s20214_s17 + $0x28] sm:$0xff]  ;;  %v17564_v42 = vpack.c.bf16 %v8113_v38, %v8112_v36  ;;  %v8122_v56 = vld [vmem:[%s20214_s17 + $0x50] sm:$0xff] }
0x1671   : > { %v17570_v43 = vpack.c.bf16 %v8117_v41, %v8116_v40  ;;  %v8125_v53 = vld [vmem:[%s20214_s17 + $0x68] sm:$0xff]  ;;  %v8123_v57 = vld [vmem:[%s20214_s17 + $0x58] sm:$0xff] }
0x16f6   : > { %v8047_v26 = vpop.xlane.xlu1 %8046 }
0x16f7   : > { %v8048_v27 = vmul.f32 0.03125, %v8047_v26  ;;  %v8100_v26 = vld [vmem:[%s20213_s24 + $0x40] sm:$0xff] }
0x16f9   : > { %v8049_v28 = vsub.f32 %v8042_v22, %v8048_v27  ;;  %v8099_v22 = vld [vmem:[%s20213_s24 + $0x38] sm:$0xff] }
0x16fa   : > { %v5986_v29 = vpop.xlane.xlu1 %5985  ;;  %v17549_v25 = vpack.c.bf16 %v8099_v22, %v8098_v19 }
0x16fb   : > { %v5987_v59 = vmul.f32 0.03125, %v5986_v29  ;;  %v8050_v17 = vmul.f32 %v8049_v28, %v8049_v28  ;;  %v8104_v29 = vld [vmem:[%s20213_s24 + $0x60] sm:$0xff] }
0x16fd   : > { %v19259_v63 = vsub.f32 %v5979_v24, %v5987_v59  ;;  %v8051_v30 = vsel %vm1731_vm4, %v8050_v17, 0.0  ;;  %v17543_v24 = vpack.c.bf16 %v8095_v18, %v8094_v14  ;;  %v8105_v59 = vld [vmem:[%s20213_s24 + $0x68] sm:$0xff]  ;;  %v14836_v17 = vld [vmem:[%s20197_s21 + $0x1] ss:$0 sm:$0xff]  ;;  %s20215_s21 = sld [smem:[#allocation43_spill]] }
0x16fe   : > { %8052 = vadd.xlane.f32.xlu1 %v8051_v30  ;;  %v17558_v30 = vpack.c.bf16 %v8105_v59, %v8104_v29  ;;  %v14883_v14 = vld [vmem:[%s20216_s25 + $0x1] ss:$0 sm:$0xff]  ;;  %v14884_v29 = vld [vmem:[%s20216_s25 + $0x2] ss:$0 sm:$0xff]  ;;  %v14885_v59 = vld [vmem:[%s20216_s25 + $0x3] ss:$0 sm:$0xff] }
0x16ff   : > { %v5989_v7 = vmul.f32 %v19259_v63, %v19259_v63 }
0x1701   : > { %v5990_v31 = vsel %vm1731_vm4, %v5989_v7, 0.0  ;;  %v8102_v7 = vld [vmem:[%s20213_s24 + $0x50] sm:$0xff] }
0x1702   : > { %5991 = vadd.xlane.f32.xlu1 %v5990_v31  ;;  %v17555_v34 = vpack.c.bf16 %v8103_v32, %v8102_v7 }
0x1703   : > { %v14890_v8 = vld [vmem:[%s20215_s21] ss:$0 sm:$0xff]  ;;  %v14891_v9 = vld [vmem:[%s20215_s21 + $0x1] ss:$0 sm:$0xff] }
0x178b   : > { %v8053_v45 = vpop.xlane.xlu1 %8052 }
0x178c   : > { %v8054_v47 = vmul.f32 0.03125, %v8053_v45  ;;  %v8115_v45 = vld [vmem:[%s20214_s17 + $0x18] sm:$0xff] }
0x178e   : > { %v8055_v48 = vadd.f32 1e-05, %v8054_v47  ;;  %v8118_v47 = vld [vmem:[%s20214_s17 + $0x30] sm:$0xff] }
0x178f   : > { %v5992_v49 = vpop.xlane.xlu1 %5991 }
0x1790   : > { %17948 = vrsqrt.f32 %v8055_v48  ;;  %v5993_v46 = vmul.f32 0.03125, %v5992_v49  ;;  %v8119_v48 = vld [vmem:[%s20214_s17 + $0x38] sm:$0xff]  ;;  %v17567_v49 = vpack.c.bf16 %v8115_v45, %v8114_v44 }
0x1792   : > { %v5994_v37 = vadd.f32 1e-05, %v5993_v46  ;;  %v17573_v46 = vpack.c.bf16 %v8119_v48, %v8118_v47 }
0x1794   : > { %17950 = vrsqrt.f32 %v5994_v37  ;;  %v8120_v37 = vld [vmem:[%s20214_s17 + $0x40] sm:$0xff] }
0x179a   : > { %v17949_v51 = vpop.eup %17948 }
0x179b   : > { %v8057_v54 = vmul.f32 %v17949_v51, %v8049_v28  ;;  %v8101_v28 = vld [vmem:[%s20213_s24 + $0x48] sm:$0xff] }
0x179c   : > { %v8121_v51 = vld [vmem:[%s20214_s17 + $0x48] sm:$0xff] }
0x179d   : > { %v8064_v58 = vmul.f32 %v14880_v52, %v8057_v54  ;;  %v8124_v52 = vld [vmem:[%s20214_s17 + $0x60] sm:$0xff]  ;;  %v17576_v54 = vpack.c.bf16 %v8121_v51, %v8120_v37 }
0x179e   : > { %v17951_v10 = vpop.eup %17950  ;;  %v17582_v55 = vpack.c.bf16 %v8125_v53, %v8124_v52  ;;  %v18010_v53 = vld [vmem:[%s18640_s10] ss:$0 sm:$0xff] }
0x179f   : > { %v19284_v21 = vadd.f32 %v14881_v39, %v8064_v58  ;;  %v5996_v16 = vmul.f32 %v17951_v10, %v19259_v63  ;;  %v17552_v63 = vpack.c.bf16 %v8101_v28, %v8100_v26  ;;  %v8126_v39 = vld [vmem:[%s20214_s17 + $0x70] sm:$0xff]  ;;  %v8127_v58 = vld [vmem:[%s20214_s17 + $0x78] sm:$0xff]  ;;  %v14893_v26 = vld [vmem:[%s20215_s21 + $0x3] ss:$0 sm:$0xff] }
0x17a1   : > { %16536 = vmatmul.mubr.msk.f32.vlgmr.msra.gmra.mrb[80].mxu0 %vm1731_vm4, %v19284_v21  ;;  %16547 = vmatmul.mubr.msk.f32.vlgmr.msra.gmra.mrb[76].mxu1 %vm1731_vm4, %v19284_v21  ;;  %v6003_v27 = vmul.f32 %v14835_v23, %v5996_v16 }
0x17a2   : > { %17529 = vmatpush3.bf16.msra.mxu0 %v17528_v60  ;;  %17535 = vmatpush3.bf16.msra.mxu1 %v17534_v20  ;;  %v17579_v60 = vpack.c.bf16 %v8123_v57, %v8122_v56  ;;  %v17585_v20 = vpack.c.bf16 %v8127_v58, %v8126_v39 }
0x17a3   : > { %17530 = vmatprep.subr.bf16.mxu0 %v18128_v4  ;;  %17536 = vmatprep.subr.bf16.mxu1 %v18128_v4  ;;  %v19327_v31 = vadd.f32 %v14836_v17, %v6003_v27 }
0x17a4   : > { %16557 = vmatprep.mubr.msk.f32.mxu0 %vm18129_vm0, %v18130_v12  ;;  %16568 = vmatprep.mubr.msk.f32.mxu1 %vm18129_vm0, %v18130_v12 }
0x17a6   : > { %17532 = vmatpush3.bf16.msra.mxu0 %v17531_v2  ;;  %17538 = vmatpush3.bf16.msra.mxu1 %v17537_v3 }
0x17a7   : > { %17539 = vmatprep.subr.bf16.mxu0 %v18128_v4  ;;  %17545 = vmatprep.subr.bf16.mxu1 %v18128_v4 }
0x17a9   : > { %16558 = vmatmul.mubr.msk.f32.vlgmr.msra.gmra.mrb[82].mxu0 %vm1731_vm4, %v19284_v21  ;;  %16569 = vmatmul.mubr.msk.f32.vlgmr.msra.gmra.mrb[78].mxu1 %vm1731_vm4, %v19284_v21 }
0x17aa   : > { %17541 = vmatpush3.bf16.msra.mxu0 %v17540_v11  ;;  %17547 = vmatpush3.bf16.msra.mxu1 %v17546_v13  ;;  %v14882_v13 = vld [vmem:[%s20216_s25] ss:$0 sm:$0xff] }
0x17ab   : > { %17542 = vmatprep.subr.bf16.mxu0 %v18128_v4  ;;  %17548 = vmatprep.subr.bf16.mxu1 %v18128_v4 }
0x17ac   : > { %16579 = vmatprep.mubr.msk.f32.mxu0 %vm18129_vm0, %v18130_v12  ;;  %16590 = vmatprep.mubr.msk.f32.mxu1 %vm18129_vm0, %v18130_v12 }
0x17ae   : > { %17544 = vmatpush3.bf16.msra.mxu0 %v17543_v24  ;;  %17550 = vmatpush3.bf16.msra.mxu1 %v17549_v25  ;;  %v14892_v25 = vld [vmem:[%s20215_s21 + $0x2] ss:$0 sm:$0xff] }
0x17af   : > { %17551 = vmatprep.subr.bf16.mxu0 %v18128_v4  ;;  %17557 = vmatprep.subr.bf16.mxu1 %v18128_v4 }
0x17b1   : > { %16580 = vmatmul.mubr.msk.f32.vlgmr.msra.gmra.mrb[84].mxu0 %vm1731_vm4, %v19327_v31  ;;  %16591 = vmatmul.mubr.msk.f32.vlgmr.msra.gmra.mrb[80].mxu1 %vm1731_vm4, %v19327_v31 }
0x17b2   : > { %17553 = vmatpush3.bf16.msra.mxu0 %v17552_v63  ;;  %17559 = vmatpush3.bf16.msra.mxu1 %v17558_v30 }
0x17b3   : > { %17554 = vmatprep.subr.bf16.mxu0 %v18128_v4  ;;  %17560 = vmatprep.subr.bf16.mxu1 %v18128_v4 }
0x17b4   : > { %16601 = vmatprep.mubr.msk.f32.mxu0 %vm18129_vm0, %v18130_v12  ;;  %16612 = vmatprep.mubr.msk.f32.mxu1 %vm18129_vm0, %v18130_v12 }
0x17b6   : > { %17556 = vmatpush3.bf16.msra.mxu0 %v17555_v34  ;;  %17562 = vmatpush3.bf16.msra.mxu1 %v17561_v35  ;;  %v14899_v34 = vld [vmem:[%s20217_s27 + $0x1] ss:$0 sm:$0xff] }
0x17b7   : > { %17563 = vmatprep.subr.bf16.mxu0 %v18128_v4  ;;  %17569 = vmatprep.subr.bf16.mxu1 %v18128_v4 }
0x17b9   : > { %16602 = vmatmul.mubr.msk.f32.vlgmr.msra.gmra.mrb[86].mxu0 %vm1731_vm4, %v19327_v31  ;;  %16613 = vmatmul.mubr.msk.f32.vlgmr.msra.gmra.mrb[82].mxu1 %vm1731_vm4, %v19327_v31 }
0x17ba   : > { %17565 = vmatpush3.bf16.msra.mxu0 %v17564_v42  ;;  %17571 = vmatpush3.bf16.msra.mxu1 %v17570_v43 }
0x17bb   : > { %17566 = vmatprep.subr.bf16.mxu0 %v18128_v4  ;;  %17572 = vmatprep.subr.bf16.mxu1 %v18128_v4 }
0x17bc   : > { %16623 = vmatprep.mubr.msk.f32.mxu0 %vm18129_vm0, %v18130_v12  ;;  %16634 = vmatprep.mubr.msk.f32.mxu1 %vm18129_vm0, %v18130_v12 }
0x17be   : > { %17568 = vmatpush3.bf16.msra.mxu0 %v17567_v49  ;;  %17574 = vmatpush3.bf16.msra.mxu1 %v17573_v46 }
0x17bf   : > { %17575 = vmatprep.subr.bf16.mxu0 %v18128_v4  ;;  %17581 = vmatprep.subr.bf16.mxu1 %v18128_v4 }
0x17c1   : > { %16624 = vmatmul.mubr.msk.f32.vlgmr.msra.gmra.mrb[88].mxu0 %vm1731_vm4, %v19327_v31  ;;  %16635 = vmatmul.mubr.msk.f32.vlgmr.msra.gmra.mrb[84].mxu1 %vm1731_vm4, %v19327_v31 }
0x17c2   : > { %17577 = vmatpush3.bf16.msra.mxu0 %v17576_v54  ;;  %17583 = vmatpush3.bf16.msra.mxu1 %v17582_v55 }
0x17c3   : > { %17578 = vmatprep.subr.bf16.mxu0 %v18128_v4  ;;  %17584 = vmatprep.subr.bf16.mxu1 %v18128_v4 }
0x17c4   : > { %16645 = vmatprep.mubr.msk.f32.mxu0 %vm18129_vm0, %v18130_v12  ;;  %16656 = vmatprep.mubr.msk.f32.mxu1 %vm18129_vm0, %v18130_v12 }
0x17c6   : > { %17580 = vmatpush3.bf16.msra.mxu0 %v17579_v60  ;;  %17586 = vmatpush3.bf16.msra.mxu1 %v17585_v20 }
0x17c7   : > { %16659 = vmatprep.subr.mxu0 %v18130_v12  ;;  %16664 = vmatprep.subr.mxu1 %v18130_v12 }
0x17c9   : > { %16646 = vmatmul.mubr.msk.f32.vlgmr.msra.gmra.mrb[90].mxu0 %vm1731_vm4, %v19327_v31  ;;  %16657 = vmatmul.mubr.msk.f32.vlgmr.msra.gmra.mrb[86].mxu1 %vm1731_vm4, %v19327_v31 }
0x17ca   : > { %16661 = vmatprep.mubr.msk.f32.mxu0 %vm18129_vm0, %v18130_v12  ;;  %16666 = vmatprep.mubr.msk.f32.mxu1 %vm18129_vm0, %v18130_v12 }
0x1874   : > { %v8230_v61 = vpop.f32.mrb[80].mxu0  ;;  %v8300_v62 = vpop.f32.mrb[76].mxu1 }
0x1875   : > { %v16537_v0 = vpop.f32.mrb[81].mxu0  ;;  %v16548_v1 = vpop.f32.mrb[77].mxu1  ;;  %v8231_v23 = vadd.f32 %v14882_v13, %v8230_v61  ;;  %v8301_v24 = vadd.f32 %v14883_v14, %v8300_v62 }
0x187c   : > { %v8370_v2 = vpop.f32.mrb[82].mxu0  ;;  %v8440_v3 = vpop.f32.mrb[78].mxu1 }
0x187d   : > { %v16559_v5 = vpop.f32.mrb[83].mxu0  ;;  %v16570_v6 = vpop.f32.mrb[79].mxu1  ;;  %v8371_v32 = vadd.f32 %v14884_v29, %v8370_v2  ;;  %v8441_v15 = vadd.f32 %v14885_v59, %v8440_v3 }
0x1884   : > { %v8537_v10 = vpop.f32.mrb[84].mxu0  ;;  %v8607_v11 = vpop.f32.mrb[80].mxu1 }
0x1885   : > { %v8538_v16 = vadd.f32 %v14890_v8, %v8537_v10  ;;  %v8608_v18 = vadd.f32 %v14891_v9, %v8607_v11  ;;  %v16581_v19 = vpop.f32.mrb[85].mxu0  ;;  %v16592_v22 = vpop.f32.mrb[81].mxu1 }
0x1887   : > { %16660 = vmatpush3.xpose.msk.msra.mxu0 %vm2623_vm5, %v8538_v16  ;;  %16665 = vmatpush3.xpose.msk.msra.mxu1 %vm2623_vm5, %v8608_v18 }
0x1888   : > { %16669 = vmatprep.subr.mxu0 %v18130_v12  ;;  %16674 = vmatprep.subr.mxu1 %v18130_v12 }
0x188a   : > { %16662 = vmatmul.mubr.msk.f32.vlgmr.msra.gmra.mrb[92].mxu0 %vm2623_vm5, %v8231_v23  ;;  %16667 = vmatmul.mubr.msk.f32.vlgmr.msra.gmra.mrb[88].mxu1 %vm2623_vm5, %v8301_v24 }
0x188b   : > { %16671 = vmatprep.mubr.msk.f32.mxu0 %vm18129_vm0, %v18130_v12  ;;  %16676 = vmatprep.mubr.msk.f32.mxu1 %vm18129_vm0, %v18130_v12 }
0x188c   : > { %v8677_v27 = vpop.f32.mrb[86].mxu0  ;;  %v8747_v28 = vpop.f32.mrb[82].mxu1 }
0x188d   : > { %v8678_v17 = vadd.f32 %v14892_v25, %v8677_v27  ;;  %v8748_v63 = vadd.f32 %v14893_v26, %v8747_v28  ;;  %v16603_v30 = vpop.f32.mrb[87].mxu0  ;;  %v16614_v7 = vpop.f32.mrb[83].mxu1 }
0x188f   : > { %16670 = vmatpush3.xpose.msk.msra.mxu0 %vm2623_vm5, %v8678_v17  ;;  %16675 = vmatpush3.xpose.msk.msra.mxu1 %vm2623_vm5, %v8748_v63 }
0x1890   : > { %16679 = vmatprep.subr.mxu0 %v18130_v12  ;;  %16684 = vmatprep.subr.mxu1 %v18130_v12 }
0x1892   : > { %16672 = vmatmul.mubr.msk.f32.vlgmr.msra.gmra.mrb[94].mxu0 %vm2623_vm5, %v8371_v32  ;;  %16677 = vmatmul.mubr.msk.f32.vlgmr.msra.gmra.mrb[90].mxu1 %vm2623_vm5, %v8441_v15  ;;  %v14900_v32 = vld [vmem:[%s20217_s27 + $0x2] ss:$0 sm:$0xff] }
0x1893   : > { %16681 = vmatprep.mubr.msk.f32.mxu0 %vm18129_vm0, %v18130_v12  ;;  %16686 = vmatprep.mubr.msk.f32.mxu1 %vm18129_vm0, %v18130_v12 }
0x1894   : > { %v8841_v35 = vpop.f32.mrb[88].mxu0  ;;  %v8911_v36 = vpop.f32.mrb[84].mxu1 }
0x1895   : > { %v8842_v38 = vadd.f32 %v14898_v33, %v8841_v35  ;;  %v8912_v40 = vadd.f32 %v14899_v34, %v8911_v36  ;;  %v16625_v41 = vpop.f32.mrb[89].mxu0  ;;  %v16636_v42 = vpop.f32.mrb[85].mxu1  ;;  %v14901_v35 = vld [vmem:[%s20217_s27 + $0x3] ss:$0 sm:$0xff] }
0x1897   : > { %16680 = vmatpush3.msra.mxu0 %v8842_v38  ;;  %16685 = vmatpush3.msra.mxu1 %v8912_v40 }
0x1898   : > { %16689 = vmatprep.subr.mxu0 %v18130_v12  ;;  %16694 = vmatprep.subr.mxu1 %v18130_v12 }
0x189c   : > { %v19426_v43 = vpop.f32.mrb[90].mxu0  ;;  %v19428_v44 = vpop.f32.mrb[86].mxu1 }
0x189d   : > { %v16647_v45 = vpop.f32.mrb[91].mxu0  ;;  %v16658_v47 = vpop.f32.mrb[87].mxu1  ;;  %v8982_v34 = vadd.f32 %v14900_v32, %v19426_v43  ;;  %v9052_v40 = vadd.f32 %v14901_v35, %v19428_v44  ;;  %v8132_v44 = vld [vmem:[%s20218_s30] sm:$0xff]  ;;  %v10051_v35 = vld [vmem:[%s20222_s16 + $0x38] sm:$0xff] }
0x189e   : > { %v8133_v47 = vld [vmem:[%s20218_s30 + $0x8] sm:$0xff]  ;;  %v10048_v32 = vld [vmem:[%s20222_s16 + $0x20] sm:$0xff] }
0x195d   : > { %v9127_v48 = vpop.f32.mrb[92].mxu0  ;;  %v9203_v49 = vpop.f32.mrb[88].mxu1 }
0x195e   : > { %v9359_v46 = vmul.f32 0.35355338, %v9127_v48  ;;  %v9360_v37 = vmul.f32 0.35355338, %v9203_v49  ;;  %v16663_v51 = vpop.f32.mrb[93].mxu0  ;;  %v16668_v52 = vpop.f32.mrb[89].mxu1 }
0x195f   : > { %v8134_v48 = vld [vmem:[%s20218_s30 + $0x10] sm:$0xff] }
0x1960   : > { %v9363_v54 = vadd.f32 %v18010_v53, %v9359_v46  ;;  %v9364_v55 = vadd.f32 %v18010_v53, %v9360_v37  ;;  %v8135_v37 = vld [vmem:[%s20218_s30 + $0x18] sm:$0xff] }
0x1962   : > { %v9367_v56 = vsel %vm2623_vm5, %v9363_v54, -inf  ;;  %v9370_v58 = vsel %vm2623_vm5, %v9364_v55, -inf }
0x1963   : > { %9368 = vmax.xlane.f32.xlu1 %v9367_v56 }
0x1965   : > { %v9279_v57 = vpop.f32.mrb[94].mxu0  ;;  %v9355_v39 = vpop.f32.mrb[90].mxu1 }
0x1966   : > { %v9361_v60 = vmul.f32 0.35355338, %v9279_v57  ;;  %v9362_v20 = vmul.f32 0.35355338, %v9355_v39  ;;  %v16673_v61 = vpop.f32.mrb[95].mxu0  ;;  %v16678_v62 = vpop.f32.mrb[91].mxu1 }
0x1967   : > { %9371 = vmax.xlane.f32.xlu1 %v9370_v58 }
0x1968   : > { %v9366_v0 = vadd.f32 %v18010_v53, %v9362_v20  ;;  %v9365_v1 = vadd.f32 %v18010_v53, %v9361_v60 }
0x196a   : > { %v9376_v2 = vsel %vm2623_vm5, %v9366_v0, -inf  ;;  %v9373_v3 = vsel %vm2623_vm5, %v9365_v1, -inf }
0x196b   : > { %9377 = vmax.xlane.f32.xlu1 %v9376_v2  ;;  %9374 = vmax.xlane.f32.xlu0 %v9373_v3 }
0x19f0   : > { %v9369_v5 = vpop.xlane.xlu1 %9368 }
0x19f1   : > { %v9379_v6 = vsub.f32 %v9363_v54, %v9369_v5 }
0x19f3   : > { %v9383_v8 = vmul.f32 1.442695, %v9379_v6 }
0x19f4   : > { %v9372_v9 = vpop.xlane.xlu1 %9371 }
0x19f5   : > { %17952 = vpow2.f32 %v9383_v8  ;;  %v9380_v10 = vsub.f32 %v9364_v55, %v9372_v9  ;;  %v14922_v8 = vld [vmem:[%s20219_s11] ss:$0 sm:$0xff] }
0x19f7   : > { %v9385_v11 = vmul.f32 1.442695, %v9380_v10 }
0x19f8   : > { %v9378_v13 = vpop.xlane.xlu1 %9377  ;;  %v9375_v14 = vpop.xlane.xlu0 %9374 }
0x19f9   : > { %17954 = vpow2.f32 %v9385_v11  ;;  %v9382_v16 = vsub.f32 %v9366_v0, %v9378_v13  ;;  %v9381_v18 = vsub.f32 %v9365_v1, %v9375_v14 }
0x19fb   : > { %v9389_v19 = vmul.f32 1.442695, %v9382_v16  ;;  %v9387_v22 = vmul.f32 1.442695, %v9381_v18 }
0x19fd   : > { %17956 = vpow2.f32 %v9389_v19 }
0x19fe   : > { %17958 = vpow2.f32 %v9387_v22 }
0x19ff   : > { %v17953_v23 = vpop.eup %17952 }
0x1a00   : > { %v9391_v24 = vsel %vm2623_vm5, %v17953_v23, 0.0 }
0x1a01   : > { %9392 = vadd.xlane.f32.xlu0 %v9391_v24  ;;  %v10039_v24 = vld [vmem:[%s20220_s26] sm:$0xff]  ;;  %s20223_s26 = sld [smem:[#allocation48_spill]] }
0x1a03   : > { %v17955_v25 = vpop.eup %17954 }
0x1a04   : > { %v9394_v26 = vsel %vm2623_vm5, %v17955_v25, 0.0 }
0x1a05   : > { %9395 = vadd.xlane.f32.xlu1 %v9394_v26 }
0x1a07   : > { %v17957_v27 = vpop.eup %17956  ;;  %s20224_s15 = smov %s20223_s26 }
0x1a08   : > { %v17959_v28 = vpop.eup %17958  ;;  %v9400_v29 = vsel %vm2623_vm5, %v17957_v27, 0.0 }
0x1a09   : > { %9401 = vadd.xlane.f32.xlu1 %v9400_v29  ;;  %v9397_v59 = vsel %vm2623_vm5, %v17959_v28, 0.0  ;;  %v10044_v29 = vld [vmem:[%s20222_s16] sm:$0xff] }
0x1a0a   : > { %9398 = vadd.xlane.f32.xlu0 %v9397_v59  ;;  %v10045_v59 = vld [vmem:[%s20222_s16 + $0x8] sm:$0xff] }
0x1a8e   : > { %v9393_v17 = vpop.xlane.xlu0 %9392 }
0x1a8f   : > { %17960 = vrcp.f32 %v9393_v17  ;;  %v10046_v17 = vld [vmem:[%s20222_s16 + $0x10] sm:$0xff] }
0x1a92   : > { %v9396_v63 = vpop.xlane.xlu1 %9395 }
0x1a93   : > { %17962 = vrcp.f32 %v9396_v63  ;;  %v17594_v63 = vpack.c.bf16 %v10045_v59, %v10044_v29 }
0x1a96   : > { %v9402_v30 = vpop.xlane.xlu1 %9401 }
0x1a97   : > { %17964 = vrcp.f32 %v9402_v30  ;;  %v9399_v7 = vpop.xlane.xlu0 %9398  ;;  %v10047_v30 = vld [vmem:[%s20222_s16 + $0x18] sm:$0xff] }
0x1a98   : > { %17966 = vrcp.f32 %v9399_v7  ;;  %v17597_v7 = vpack.c.bf16 %v10047_v30, %v10046_v17 }
0x1a99   : > { %v17961_v15 = vpop.eup %17960 }
0x1a9a   : > { %v9407_v33 = vmul.f32 %v17961_v15, %v17953_v23  ;;  %v10049_v15 = vld [vmem:[%s20222_s16 + $0x28] sm:$0xff] }
0x1a9c   : > { %16682 = vmatmul.mubr.msk.f32.vlgmr.msra.gmra.mrb[96].mxu0 %vm2623_vm5, %v9407_v33  ;;  %v17600_v33 = vpack.c.bf16 %v10049_v15, %v10048_v32  ;;  %v14934_v32 = vld [vmem:[%s20201_s6 + $0xa0] sm:$0xff] }
0x1a9d   : > { %v17963_v36 = vpop.eup %17962  ;;  %16690 = vmatpush3.msra.mxu0 %v8982_v34  ;;  %16691 = vmatprep.mubr.msk.f32.mxu0 %vm18129_vm0, %v18130_v12  ;;  %v10050_v34 = vld [vmem:[%s20222_s16 + $0x30] sm:$0xff] }
0x1a9e   : > { %v9408_v38 = vmul.f32 %v17963_v36, %v17955_v25  ;;  %16699 = vmatprep.subr.mxu0 %v18130_v12  ;;  %v10040_v25 = vld [vmem:[%s20221_s2 + $0x8] sm:$0xff]  ;;  %v17603_v36 = vpack.c.bf16 %v10051_v35, %v10050_v34  ;;  %v14958_v34 = vld [vmem:[%s20203_s18 + $0xc0] sm:$0xff] }
0x1a9f   : > { %v17588_v26 = vpack.c.bf16 %v10040_v25, %v10039_v24  ;;  %v14932_v25 = vld [vmem:[%s20201_s6 + $0x90] sm:$0xff]  ;;  %v14959_v35 = vld [vmem:[%s20203_s18 + $0xc8] sm:$0xff] }
0x1aa0   : > { %16687 = vmatmul.mubr.msk.f32.vlgmr.msra.gmra.mrb[92].mxu1 %vm2623_vm5, %v9408_v38  ;;  %v10052_v38 = vld [vmem:[%s20222_s16 + $0x40] sm:$0xff] }
0x1aa1   : > { %v17965_v41 = vpop.eup %17964  ;;  %16695 = vmatpush3.msra.mxu1 %v9052_v40  ;;  %16696 = vmatprep.mubr.msk.f32.mxu1 %vm18129_vm0, %v18130_v12  ;;  %v10053_v40 = vld [vmem:[%s20222_s16 + $0x48] sm:$0xff] }
0x1aa2   : > { %v17967_v42 = vpop.eup %17966  ;;  %v9410_v43 = vmul.f32 %v17965_v41, %v17957_v27  ;;  %16704 = vmatprep.subr.mxu1 %v18130_v12  ;;  %v10042_v27 = vld [vmem:[%s20221_s2 + $0x18] sm:$0xff]  ;;  %v17606_v41 = vpack.c.bf16 %v10053_v40, %v10052_v38 }
0x1aa3   : > { %v9409_v45 = vmul.f32 %v17967_v42, %v17959_v28  ;;  %v10054_v42 = vld [vmem:[%s20222_s16 + $0x50] sm:$0xff] }
0x1aa4   : > { %16697 = vmatmul.mubr.msk.f32.vlgmr.msra.gmra.mrb[94].mxu1 %vm2623_vm5, %v9410_v43  ;;  %v10055_v43 = vld [vmem:[%s20222_s16 + $0x58] sm:$0xff] }
0x1aa5   : > { %16692 = vmatmul.mubr.msk.f32.vlgmr.msra.gmra.mrb[98].mxu0 %vm2623_vm5, %v9409_v45  ;;  %16706 = vmatprep.mubr.msk.f32.mxu1 %vm18129_vm0, %v18130_v12  ;;  %v17609_v45 = vpack.c.bf16 %v10055_v43, %v10054_v42  ;;  %v14936_v42 = vld [vmem:[%s20201_s6 + $0xb0] sm:$0xff] }
0x1aa6   : > { %16701 = vmatprep.mubr.msk.f32.mxu0 %vm18129_vm0, %v18130_v12  ;;  %16700 = vmatpush3.msra.mxu0 %v8132_v44  ;;  %v10056_v44 = vld [vmem:[%s20222_s16 + $0x60] sm:$0xff] }
0x1aa7   : > { %16709 = vmatprep.subr.mxu0 %v18130_v12  ;;  %16705 = vmatpush3.msra.mxu1 %v8133_v47  ;;  %v10057_v47 = vld [vmem:[%s20222_s16 + $0x68] sm:$0xff] }
0x1aa8   : > { %16714 = vmatprep.subr.mxu1 %v18130_v12 }
0x1b6f   : > { %v9480_v49 = vpop.f32.mrb[96].mxu0 }
0x1b70   : > { %v16683_v46 = vpop.f32.mrb[97].mxu0  ;;  %16702 = vmatmul.mubr.msk.f32.vlgmr.msra.gmra.mrb[100].mxu0 %vm2623_vm5, %v9480_v49 }
0x1b71   : > { %16710 = vmatpush3.msra.mxu0 %v8134_v48  ;;  %16711 = vmatprep.mubr.msk.f32.mxu0 %vm18129_vm0, %v18130_v12  ;;  %v17612_v48 = vpack.c.bf16 %v10057_v47, %v10056_v44  ;;  %v14960_v44 = vld [vmem:[%s20203_s18 + $0xd0] sm:$0xff]  ;;  %v14961_v47 = vld [vmem:[%s20203_s18 + $0xd8] sm:$0xff] }
0x1b72   : > { %17587 = vmatprep.subr.bf16.mxu0 %v18128_v4 }
0x1b73   : > { %v9553_v51 = vpop.f32.mrb[92].mxu1 }
0x1b74   : > { %v16688_v52 = vpop.f32.mrb[93].mxu1  ;;  %16707 = vmatmul.mubr.msk.f32.vlgmr.msra.gmra.mrb[96].mxu1 %vm2623_vm5, %v9553_v51 }
0x1b75   : > { %16715 = vmatpush3.msra.mxu1 %v8135_v37  ;;  %16716 = vmatprep.mubr.msk.f32.mxu1 %vm18129_vm0, %v18130_v12  ;;  %v14923_v52 = vld [vmem:[%s20223_s26] ss:$0 sm:$0xff]  ;;  %s20232_s26 = sld [smem:[#allocation58_spill]] }
0x1b76   : > { %17593 = vmatprep.subr.bf16.mxu1 %v18128_v4 }
0x1b77   : > { %v9699_v53 = vpop.f32.mrb[94].mxu1 }
0x1b78   : > { %v9626_v54 = vpop.f32.mrb[98].mxu0  ;;  %v16698_v55 = vpop.f32.mrb[95].mxu1  ;;  %16717 = vmatmul.mubr.msk.f32.vlgmr.msra.gmra.mrb[98].mxu1 %vm2623_vm5, %v9699_v53 }
0x1b79   : > { %v16693_v56 = vpop.f32.mrb[99].mxu0  ;;  %16712 = vmatmul.mubr.msk.f32.vlgmr.msra.gmra.mrb[102].mxu0 %vm2623_vm5, %v9626_v54  ;;  %16762 = vmatprep.mubr.msk.f32.mxu1 %vm18129_vm0, %v18130_v12  ;;  %v14924_v54 = vld [vmem:[%s20225_s22] ss:$0 sm:$0xff]  ;;  %s20229_s22 = sld [smem:[#allocation12_spill]] }
0x1b7a   : > { %16727 = vmatprep.mubr.msk.f32.mxu0 %vm18129_vm0, %v18130_v12  ;;  %17589 = vmatpush3.bf16.msra.mxu0 %v17588_v26  ;;  %v14933_v26 = vld [vmem:[%s20201_s6 + $0x98] sm:$0xff] }
0x1b7b   : > { %17590 = vmatprep.subr.bf16.mxu0 %v18128_v4  ;;  %17595 = vmatpush3.bf16.msra.mxu1 %v17594_v63 }
0x1b7c   : > { %17596 = vmatprep.subr.bf16.mxu1 %v18128_v4 }
0x1b7f   : > { %17598 = vmatpush3.bf16.msra.mxu1 %v17597_v7  ;;  %v14928_v7 = vld [vmem:[%s20167_s4] ss:$0 sm:$0xff] }
0x1b80   : > { %17599 = vmatprep.subr.bf16.mxu1 %v18128_v4 }
0x1b83   : > { %17601 = vmatpush3.bf16.msra.mxu1 %v17600_v33  ;;  %v14935_v33 = vld [vmem:[%s20201_s6 + $0xa8] sm:$0xff] }
0x1b84   : > { %17602 = vmatprep.subr.bf16.mxu1 %v18128_v4  ;;  %v17624_v40 = vpack.c.bf16 %v14935_v33, %v14934_v32  ;;  %v14985_v33 = vld [vmem:[%s20204_s12 + $0xf8] sm:$0xff] }
0x1b87   : > { %17604 = vmatpush3.bf16.msra.mxu1 %v17603_v36  ;;  %v14929_v36 = vld [vmem:[%s18392_s9] ss:$0 sm:$0xff] }
0x1b88   : > { %17605 = vmatprep.subr.bf16.mxu1 %v18128_v4 }
0x1b8b   : > { %17607 = vmatpush3.bf16.msra.mxu1 %v17606_v41  ;;  %v17654_v41 = vpack.c.bf16 %v14959_v35, %v14958_v34  ;;  %v15003_v35 = vld [vmem:[%s20205_s1 + $0x4] ss:$0 sm:$0xff] }
0x1b8c   : > { %17608 = vmatprep.subr.bf16.mxu1 %v18128_v4 }
0x1b8f   : > { %17610 = vmatpush3.bf16.msra.mxu1 %v17609_v45  ;;  %v14937_v45 = vld [vmem:[%s20201_s6 + $0xb8] sm:$0xff] }
0x1b90   : > { %17611 = vmatprep.subr.bf16.mxu1 %v18128_v4 }
0x1b93   : > { %17613 = vmatpush3.bf16.msra.mxu1 %v17612_v48  ;;  %v17627_v48 = vpack.c.bf16 %v14937_v45, %v14936_v42 }
0x1b94   : > { %17614 = vmatprep.subr.bf16.mxu1 %v18128_v4 }
0x1c43   : > { %v9772_v57 = vpop.f32.mrb[100].mxu0 }
0x1c44   : > { %v16703_v39 = vpop.f32.mrb[101].mxu0  ;;  %v9995_v60 = vsel %vm1731_vm4, %v9772_v57, 0.0  ;;  %v10058_v57 = vld [vmem:[%s20222_s16 + $0x70] sm:$0xff] }
0x1c45   : > { %v10059_v39 = vld [vmem:[%s20222_s16 + $0x78] sm:$0xff] }
0x1c47   : > { %v9845_v58 = vpop.f32.mrb[96].mxu1 }
0x1c48   : > { %v9996_v20 = vsel %vm1731_vm4, %v9845_v58, 0.0  ;;  %v16708_v61 = vpop.f32.mrb[97].mxu1  ;;  %v17615_v58 = vpack.c.bf16 %v10059_v39, %v10058_v57  ;;  %v14972_v57 = vld [vmem:[%s20204_s12 + $0x90] sm:$0xff]  ;;  %v14973_v39 = vld [vmem:[%s20204_s12 + $0x98] sm:$0xff] }
0x1c49   : > { %v9997_v62 = vadd.f32 %v9996_v20, %v9995_v60  ;;  %v14925_v60 = vld [vmem:[%s20227_s28] ss:$0 sm:$0xff]  ;;  %s20231_s28 = sld [smem:[#allocation13_spill]] }
0x1c4a   : > { %17616 = vmatpush3.bf16.msra.mxu1 %v17615_v58 }
0x1c4b   : > { %v9991_v0 = vpop.f32.mrb[98].mxu1  ;;  %17641 = vmatprep.subr.bf16.mxu1 %v18128_v4 }
0x1c4c   : > { %v9918_v1 = vpop.f32.mrb[102].mxu0  ;;  %v16718_v2 = vpop.f32.mrb[99].mxu1  ;;  %v10000_v9 = vsel %vm1731_vm4, %v9991_v0, 0.0 }
0x1c4d   : > { %v9998_v3 = vsel %vm1731_vm4, %v9918_v1, 0.0  ;;  %v16713_v5 = vpop.f32.mrb[103].mxu0  ;;  %v14927_v1 = vld [vmem:[%s18382_s29] ss:$0 sm:$0xff] }
0x1c4e   : > { %v9999_v6 = vadd.f32 %v9998_v3, %v9997_v62 }
0x1c50   : > { %v10001_v10 = vadd.f32 %v10000_v9, %v9999_v6 }
0x1c52   : > { %v10008_v11 = vadd.f32 %v14922_v8, %v10001_v10 }
0x1c54   : > { %v10009_v13 = vadd.f32 %v10008_v11, %v19284_v21  ;;  %v10041_v21 = vld [vmem:[%s20221_s2 + $0x10] sm:$0xff] }
0x1c55   : > { %v17591_v28 = vpack.c.bf16 %v10042_v27, %v10041_v21  ;;  %v14952_v21 = vld [vmem:[%s20203_s18 + $0x90] sm:$0xff]  ;;  %v17621_v27 = vpack.c.bf16 %v14933_v26, %v14932_v25  ;;  %v14965_v26 = vld [vmem:[%s20203_s18 + $0xf8] sm:$0xff] }
0x1c56   : > { %v10012_v14 = vsel %vm1731_vm4, %v10009_v13, 0.0  ;;  %v14964_v25 = vld [vmem:[%s20203_s18 + $0xf0] sm:$0xff] }
0x1c57   : > { %10013 = vadd.xlane.f32.xlu0 %v10012_v14  ;;  %17592 = vmatpush3.bf16.msra.mxu0 %v17591_v28  ;;  %v14953_v28 = vld [vmem:[%s20203_s18 + $0x98] sm:$0xff] }
0x1c58   : > { %17617 = vmatprep.subr.bf16.mxu0 %v18128_v4  ;;  %v17645_v29 = vpack.c.bf16 %v14953_v28, %v14952_v21  ;;  %v17663_v21 = vpack.c.bf16 %v14965_v26, %v14964_v25  ;;  %v14975_v28 = vld [vmem:[%s20204_s12 + $0xa8] sm:$0xff] }
0x1ce4   : > { %v10014_v16 = vpop.xlane.xlu0 %10013 }
0x1ce5   : > { %v10015_v18 = vmul.f32 0.03125, %v10014_v16  ;;  %v14930_v16 = vld [vmem:[%s20201_s6 + $0x80] sm:$0xff] }
0x1ce7   : > { %v10016_v19 = vsub.f32 %v10009_v13, %v10015_v18  ;;  %v14931_v18 = vld [vmem:[%s20201_s6 + $0x88] sm:$0xff] }
0x1ce9   : > { %v10017_v22 = vmul.f32 %v10016_v19, %v10016_v19 }
0x1ceb   : > { %v10018_v23 = vsel %vm1731_vm4, %v10017_v22, 0.0  ;;  %v17618_v22 = vpack.c.bf16 %v14931_v18, %v14930_v16  ;;  %v14956_v16 = vld [vmem:[%s20203_s18 + $0xb0] sm:$0xff]  ;;  %v14957_v18 = vld [vmem:[%s20203_s18 + $0xb8] sm:$0xff] }
0x1cec   : > { %10019 = vadd.xlane.f32.xlu1 %v10018_v23  ;;  %v14951_v23 = vld [vmem:[%s20203_s18 + $0x88] sm:$0xff] }
0x1d79   : > { %v10020_v49 = vpop.xlane.xlu1 %10019 }
0x1d7a   : > { %v10021_v46 = vmul.f32 0.03125, %v10020_v49  ;;  %v17657_v49 = vpack.c.bf16 %v14961_v47, %v14960_v44  ;;  %v15005_v47 = vld [vmem:[%s20205_s1 + $0x6] ss:$0 sm:$0xff] }
0x1d7c   : > { %v10022_v37 = vadd.f32 1e-05, %v10021_v46  ;;  %v14938_v46 = vld [vmem:[%s20201_s6 + $0xc0] sm:$0xff] }
0x1d7e   : > { %17968 = vrsqrt.f32 %v10022_v37  ;;  %v14939_v37 = vld [vmem:[%s20201_s6 + $0xc8] sm:$0xff] }
0x1d88   : > { %v17969_v51 = vpop.eup %17968 }
0x1d89   : > { %v10024_v53 = vmul.f32 %v17969_v51, %v10016_v19  ;;  %v14950_v19 = vld [vmem:[%s20203_s18 + $0x80] sm:$0xff] }
0x1d8a   : > { %v17642_v24 = vpack.c.bf16 %v14951_v23, %v14950_v19  ;;  %v14970_v51 = vld [vmem:[%s20204_s12 + $0x80] sm:$0xff]  ;;  %v17651_v19 = vpack.c.bf16 %v14957_v18, %v14956_v16  ;;  %v14963_v23 = vld [vmem:[%s20203_s18 + $0xe8] sm:$0xff] }
0x1d8b   : > { %v10031_v55 = vmul.f32 %v14923_v52, %v10024_v53  ;;  %v14971_v52 = vld [vmem:[%s20204_s12 + $0x88] sm:$0xff]  ;;  %v17630_v53 = vpack.c.bf16 %v14939_v37, %v14938_v46  ;;  %v15012_v16 = vld [vmem:[%s20207_s5 + $0x5] ss:$0 sm:$0xff] }
0x1d8d   : > { %v10038_v56 = vadd.f32 %v14924_v54, %v10031_v55  ;;  %v17666_v54 = vpack.c.bf16 %v14971_v52, %v14970_v51  ;;  %v14940_v55 = vld [vmem:[%s20201_s6 + $0xd0] sm:$0xff]  ;;  %v14997_v52 = vld [vmem:[%s20206_s3 + $0x6] ss:$0 sm:$0xff] }
0x1d8f   : > { %16728 = vmatmul.mubr.msk.f32.vlgmr.msra.gmra.mrb[104].mxu0 %vm1731_vm4, %v10038_v56 }
0x1d90   : > { %16773 = vmatprep.mubr.msk.f32.mxu0 %vm18129_vm0, %v18130_v12  ;;  %17619 = vmatpush3.bf16.msra.mxu0 %v17618_v22  ;;  %v14962_v22 = vld [vmem:[%s20203_s18 + $0xe0] sm:$0xff] }
0x1d91   : > { %17620 = vmatprep.subr.bf16.mxu0 %v18128_v4 }
0x1d94   : > { %17622 = vmatpush3.bf16.msra.mxu0 %v17621_v27  ;;  %v14974_v27 = vld [vmem:[%s20204_s12 + $0xa0] sm:$0xff] }
0x1d95   : > { %17623 = vmatprep.subr.bf16.mxu0 %v18128_v4 }
0x1e62   : > { %v10136_v20 = vpop.f32.mrb[104].mxu0 }
0x1e63   : > { %v10137_v61 = vadd.f32 %v14925_v60, %v10136_v20  ;;  %v16729_v62 = vpop.f32.mrb[105].mxu0  ;;  %v17669_v60 = vpack.c.bf16 %v14973_v39, %v14972_v57  ;;  %v14942_v20 = vld [vmem:[%s20201_s6 + $0xe0] sm:$0xff] }
0x1e64   : > { %v14978_v62 = vld [vmem:[%s20204_s12 + $0xc0] sm:$0xff] }
0x1e65   : > { %v10140_v0 = vmax.f32 %v10137_v61, 0.0  ;;  %v14943_v61 = vld [vmem:[%s20201_s6 + $0xe8] sm:$0xff] }
0x1e67   : > { %16763 = vmatmul.mubr.f32.vlgmr.msra.gmra.mrb[100].mxu1 %v10140_v0  ;;  %v14979_v0 = vld [vmem:[%s20204_s12 + $0xc8] sm:$0xff] }
0x1e68   : > { %16817 = vmatprep.mubr.msk.f32.mxu1 %vm18129_vm0, %v18130_v12  ;;  %17643 = vmatpush3.bf16.msra.mxu1 %v17642_v24  ;;  %v17660_v24 = vpack.c.bf16 %v14963_v23, %v14962_v22 }
0x1e69   : > { %17644 = vmatprep.subr.bf16.mxu1 %v18128_v4 }
0x1e6c   : > { %17646 = vmatpush3.bf16.msra.mxu1 %v17645_v29  ;;  %v17672_v29 = vpack.c.bf16 %v14975_v28, %v14974_v27 }
0x1e6d   : > { %17653 = vmatprep.subr.bf16.mxu1 %v18128_v4 }
0x1f3a   : > { %v10213_v2 = vpop.f32.mrb[100].mxu1 }
0x1f3b   : > { %v10214_v3 = vadd.f32 %v14927_v1, %v10213_v2  ;;  %v16764_v5 = vpop.f32.mrb[101].mxu1  ;;  %v17636_v1 = vpack.c.bf16 %v14943_v61, %v14942_v20  ;;  %v17678_v2 = vpack.c.bf16 %v14979_v0, %v14978_v62  ;;  %v15004_v0 = vld [vmem:[%s20205_s1 + $0x5] ss:$0 sm:$0xff] }
0x1f3c   : > { %v14945_v5 = vld [vmem:[%s20201_s6 + $0xf8] sm:$0xff] }
0x1f3d   : > { %v10217_v6 = vadd.f32 %v10214_v3, %v10038_v56  ;;  %v14941_v56 = vld [vmem:[%s20201_s6 + $0xd8] sm:$0xff]  ;;  %v14944_v3 = vld [vmem:[%s20201_s6 + $0xf0] sm:$0xff] }
0x1f3e   : > { %v17633_v58 = vpack.c.bf16 %v14941_v56, %v14940_v55 }
0x1f3f   : > { %v10220_v8 = vsel %vm1731_vm4, %v10217_v6, 0.0 }
0x1f40   : > { %10221 = vadd.xlane.f32.xlu0 %v10220_v8  ;;  %v14981_v8 = vld [vmem:[%s20204_s12 + $0xd8] sm:$0xff] }
0x1fcd   : > { %v10222_v9 = vpop.xlane.xlu0 %10221 }
0x1fce   : > { %v10223_v10 = vmul.f32 0.03125, %v10222_v9  ;;  %v17639_v9 = vpack.c.bf16 %v14945_v5, %v14944_v3 }
0x1fd0   : > { %v10224_v11 = vsub.f32 %v10217_v6, %v10223_v10  ;;  %v14980_v6 = vld [vmem:[%s20204_s12 + $0xd0] sm:$0xff] }
0x1fd1   : > { %v17681_v10 = vpack.c.bf16 %v14981_v8, %v14980_v6  ;;  %v15006_v8 = vld [vmem:[%s20205_s1 + $0x7] ss:$0 sm:$0xff]  ;;  %s1531_s1 = sand.u32 1, %s18066_s23  }
0x1fd2   : > { %v10225_v13 = vmul.f32 %v10224_v11, %v10224_v11 }
0x1fd4   : > { %v10226_v14 = vsel %vm1731_vm4, %v10225_v13, 0.0  ;;  %v14955_v13 = vld [vmem:[%s20203_s18 + $0xa8] sm:$0xff] }
0x1fd5   : > { %10227 = vadd.xlane.f32.xlu1 %v10226_v14 }
0x2062   : > { %v10228_v59 = vpop.xlane.xlu1 %10227 }
0x2063   : > { %v10229_v17 = vmul.f32 0.03125, %v10228_v59  ;;  %v14976_v59 = vld [vmem:[%s20204_s12 + $0xb0] sm:$0xff] }
0x2065   : > { %v10230_v63 = vadd.f32 1e-05, %v10229_v17  ;;  %v14977_v17 = vld [vmem:[%s20204_s12 + $0xb8] sm:$0xff] }
0x2067   : > { %17970 = vrsqrt.f32 %v10230_v63  ;;  %v17675_v63 = vpack.c.bf16 %v14977_v17, %v14976_v59 }
0x2071   : > { %v17971_v30 = vpop.eup %17970 }
0x2072   : > { %v10232_v15 = vmul.f32 %v17971_v30, %v10224_v11  ;;  %v14954_v11 = vld [vmem:[%s20203_s18 + $0xa0] sm:$0xff] }
0x2073   : > { %v17648_v14 = vpack.c.bf16 %v14955_v13, %v14954_v11  ;;  %v14982_v30 = vld [vmem:[%s20204_s12 + $0xe0] sm:$0xff] }
0x2074   : > { %v10239_v38 = vmul.f32 %v14928_v7, %v10232_v15  ;;  %v14983_v7 = vld [vmem:[%s20204_s12 + $0xe8] sm:$0xff]  ;;  %v14984_v15 = vld [vmem:[%s20204_s12 + $0xf0] sm:$0xff] }
0x2075   : > { %v17684_v32 = vpack.c.bf16 %v14983_v7, %v14982_v30  ;;  %v17687_v34 = vpack.c.bf16 %v14985_v33, %v14984_v15 }
0x2076   : > { %v19545_v43 = vadd.f32 %v14929_v36, %v10239_v38 }
0x2078   : > { %16774 = vmatmul.mubr.msk.f32.vlgmr.msra.gmra.mrb[106].mxu0 %vm1731_vm4, %v19545_v43  ;;  %16818 = vmatmul.mubr.msk.f32.vlgmr.msra.gmra.mrb[102].mxu1 %vm1731_vm4, %v19545_v43 }
0x2079   : > { %17625 = vmatpush3.bf16.msra.mxu0 %v17624_v40  ;;  %17655 = vmatpush3.bf16.msra.mxu1 %v17654_v41  ;;  %v14995_v40 = vld [vmem:[%s20206_s3 + $0x4] ss:$0 sm:$0xff] }
0x207a   : > { %17626 = vmatprep.subr.bf16.mxu0 %v18128_v4  ;;  %17656 = vmatprep.subr.bf16.mxu1 %v18128_v4 }
0x207b   : > { %16784 = vmatprep.mubr.msk.f32.mxu0 %vm18129_vm0, %v18130_v12  ;;  %16839 = vmatprep.mubr.msk.f32.mxu1 %vm18129_vm0, %v18130_v12 }
0x207d   : > { %17628 = vmatpush3.bf16.msra.mxu0 %v17627_v48  ;;  %17658 = vmatpush3.bf16.msra.mxu1 %v17657_v49 }
0x207e   : > { %17629 = vmatprep.subr.bf16.mxu0 %v18128_v4  ;;  %17665 = vmatprep.subr.bf16.mxu1 %v18128_v4 }
0x2080   : > { %16785 = vmatmul.mubr.msk.f32.vlgmr.msra.gmra.mrb[108].mxu0 %vm1731_vm4, %v19545_v43  ;;  %16840 = vmatmul.mubr.msk.f32.vlgmr.msra.gmra.mrb[104].mxu1 %vm1731_vm4, %v19545_v43 }
0x2081   : > { %17631 = vmatpush3.bf16.msra.mxu0 %v17630_v53  ;;  %17667 = vmatpush3.bf16.msra.mxu1 %v17666_v54  ;;  %v15011_v53 = vld [vmem:[%s20207_s5 + $0x4] ss:$0 sm:$0xff] }
0x2082   : > { %17632 = vmatprep.subr.bf16.mxu0 %v18128_v4  ;;  %17668 = vmatprep.subr.bf16.mxu1 %v18128_v4 }
0x2083   : > { %16795 = vmatprep.mubr.msk.f32.mxu0 %vm18129_vm0, %v18130_v12  ;;  %16861 = vmatprep.mubr.msk.f32.mxu1 %vm18129_vm0, %v18130_v12 }
0x2085   : > { %17634 = vmatpush3.bf16.msra.mxu0 %v17633_v58  ;;  %17670 = vmatpush3.bf16.msra.mxu1 %v17669_v60 }
0x2086   : > { %17635 = vmatprep.subr.bf16.mxu0 %v18128_v4  ;;  %17677 = vmatprep.subr.bf16.mxu1 %v18128_v4 }
0x2088   : > { %16796 = vmatmul.mubr.msk.f32.vlgmr.msra.gmra.mrb[110].mxu0 %vm1731_vm4, %v19545_v43  ;;  %16862 = vmatmul.mubr.msk.f32.vlgmr.msra.gmra.mrb[106].mxu1 %vm1731_vm4, %v19545_v43 }
0x2089   : > { %17637 = vmatpush3.bf16.msra.mxu0 %v17636_v1  ;;  %17679 = vmatpush3.bf16.msra.mxu1 %v17678_v2  ;;  %v14996_v2 = vld [vmem:[%s20206_s3 + $0x5] ss:$0 sm:$0xff] }
0x208a   : > { %17638 = vmatprep.subr.bf16.mxu0 %v18128_v4  ;;  %17680 = vmatprep.subr.bf16.mxu1 %v18128_v4 }
0x208b   : > { %16806 = vmatprep.mubr.msk.f32.mxu0 %vm18129_vm0, %v18130_v12  ;;  %16883 = vmatprep.mubr.msk.f32.mxu1 %vm18129_vm0, %v18130_v12 }
0x208d   : > { %17640 = vmatpush3.bf16.msra.mxu0 %v17639_v9  ;;  %17682 = vmatpush3.bf16.msra.mxu1 %v17681_v10  ;;  %v14998_v10 = vld [vmem:[%s20206_s3 + $0x7] ss:$0 sm:$0xff]  ;;  %s15182_s3 = sshll.u32 %s20232_s26, 7 }
0x208e   : > { %17647 = vmatprep.subr.bf16.mxu0 %v18128_v4  ;;  %16897 = vmatprep.subr.mxu1 %v18130_v12 }
0x2090   : > { %16807 = vmatmul.mubr.msk.f32.vlgmr.msra.gmra.mrb[112].mxu0 %vm1731_vm4, %v19545_v43  ;;  %16884 = vmatmul.mubr.msk.f32.vlgmr.msra.gmra.mrb[108].mxu1 %vm1731_vm4, %v19545_v43 }
0x2091   : > { %17649 = vmatpush3.bf16.msra.mxu0 %v17648_v14  ;;  %16828 = vmatprep.mubr.msk.f32.mxu0 %vm18129_vm0, %v18130_v12 }
0x2092   : > { %17650 = vmatprep.subr.bf16.mxu0 %v18128_v4  ;;  %16899 = vmatprep.mubr.msk.f32.mxu1 %vm18129_vm0, %v18130_v12 }
0x2095   : > { %17652 = vmatpush3.bf16.msra.mxu0 %v17651_v19 }
0x2096   : > { %17659 = vmatprep.subr.bf16.mxu0 %v18128_v4 }
0x2098   : > { %16829 = vmatmul.mubr.msk.f32.vlgmr.msra.gmra.mrb[114].mxu0 %vm1731_vm4, %v19545_v43 }
0x2099   : > { %17661 = vmatpush3.bf16.msra.mxu0 %v17660_v24  ;;  %16850 = vmatprep.mubr.msk.f32.mxu0 %vm18129_vm0, %v18130_v12 }
0x209a   : > { %17662 = vmatprep.subr.bf16.mxu0 %v18128_v4 }
0x209d   : > { %17664 = vmatpush3.bf16.msra.mxu0 %v17663_v21 }
0x209e   : > { %17671 = vmatprep.subr.bf16.mxu0 %v18128_v4 }
0x20a0   : > { %16851 = vmatmul.mubr.msk.f32.vlgmr.msra.gmra.mrb[116].mxu0 %vm1731_vm4, %v19545_v43 }
0x20a1   : > { %17673 = vmatpush3.bf16.msra.mxu0 %v17672_v29  ;;  %16872 = vmatprep.mubr.msk.f32.mxu0 %vm18129_vm0, %v18130_v12 }
0x20a2   : > { %17674 = vmatprep.subr.bf16.mxu0 %v18128_v4 }
0x20a5   : > { %17676 = vmatpush3.bf16.msra.mxu0 %v17675_v63 }
0x20a6   : > { %17683 = vmatprep.subr.bf16.mxu0 %v18128_v4 }
0x20a8   : > { %16873 = vmatmul.mubr.msk.f32.vlgmr.msra.gmra.mrb[118].mxu0 %vm1731_vm4, %v19545_v43 }
0x20a9   : > { %17685 = vmatpush3.bf16.msra.mxu0 %v17684_v32  ;;  %16894 = vmatprep.mubr.msk.f32.mxu0 %vm18129_vm0, %v18130_v12 }
0x20aa   : > { %17686 = vmatprep.subr.bf16.mxu0 %v18128_v4 }
0x20ad   : > { %17688 = vmatpush3.bf16.msra.mxu0 %v17687_v34 }
0x20ae   : > { %16907 = vmatprep.subr.mxu0 %v18130_v12 }
0x20b0   : > { %16895 = vmatmul.mubr.msk.f32.vlgmr.msra.gmra.mrb[120].mxu0 %vm1731_vm4, %v19545_v43 }
0x20b1   : > { %16909 = vmatprep.mubr.msk.f32.mxu0 %vm18129_vm0, %v18130_v12 }
0x214b   : > { %v10413_v36 = vpop.f32.mrb[106].mxu0  ;;  %v10717_v38 = vpop.f32.mrb[102].mxu1 }
0x214c   : > { %v10718_v41 = vadd.f32 %v15003_v35, %v10717_v38  ;;  %v16775_v42 = vpop.f32.mrb[107].mxu0  ;;  %v16819_v45 = vpop.f32.mrb[103].mxu1  ;;  %v10414_v44 = vadd.f32 %v14995_v40, %v10413_v36 }
0x214e   : > { %16898 = vmatpush3.xpose.msk.msra.mxu1 %vm2623_vm5, %v10718_v41 }
0x214f   : > { %16902 = vmatprep.subr.mxu1 %v18130_v12 }
0x2151   : > { %16900 = vmatmul.mubr.msk.f32.vlgmr.msra.gmra.mrb[110].mxu1 %vm2623_vm5, %v10414_v44 }
0x2152   : > { %16904 = vmatprep.mubr.msk.f32.mxu1 %vm18129_vm0, %v18130_v12 }
0x2153   : > { %v10483_v48 = vpop.f32.mrb[108].mxu0  ;;  %v10857_v49 = vpop.f32.mrb[104].mxu1 }
0x2154   : > { %v10858_v46 = vadd.f32 %v15005_v47, %v10857_v49  ;;  %v16786_v37 = vpop.f32.mrb[109].mxu0  ;;  %v16841_v51 = vpop.f32.mrb[105].mxu1  ;;  %v10484_v6 = vadd.f32 %v14996_v2, %v10483_v48 }
0x2156   : > { %16908 = vmatpush3.xpose.msk.msra.mxu0 %vm2623_vm5, %v10858_v46 }
0x2157   : > { %16917 = vmatprep.subr.mxu0 %v18130_v12 }
0x215b   : > { %v10553_v54 = vpop.f32.mrb[110].mxu0  ;;  %v11021_v55 = vpop.f32.mrb[106].mxu1 }
0x215c   : > { %v10554_v56 = vadd.f32 %v14997_v52, %v10553_v54  ;;  %v11022_v57 = vadd.f32 %v15011_v53, %v11021_v55  ;;  %v16797_v39 = vpop.f32.mrb[111].mxu0  ;;  %v16863_v58 = vpop.f32.mrb[107].mxu1 }
0x215e   : > { %16910 = vmatmul.mubr.msk.f32.vlgmr.msra.gmra.mrb[122].mxu0 %vm2623_vm5, %v10554_v56 }
0x215f   : > { %16918 = vmatpush3.msra.mxu0 %v11022_v57  ;;  %16919 = vmatprep.mubr.msk.f32.mxu0 %vm18129_vm0, %v18130_v12 }
0x2160   : > { %16927 = vmatprep.subr.mxu0 %v18130_v12 }
0x2163   : > { %v10623_v60 = vpop.f32.mrb[112].mxu0  ;;  %v19666_v20 = vpop.f32.mrb[108].mxu1 }
0x2164   : > { %v16808_v61 = vpop.f32.mrb[113].mxu0  ;;  %v16885_v62 = vpop.f32.mrb[109].mxu1  ;;  %v10624_v14 = vadd.f32 %v14998_v10, %v10623_v60  ;;  %v15014_v10 = vld [vmem:[%s20207_s5 + $0x7] ss:$0 sm:$0xff] }
0x216b   : > { %v10787_v1 = vpop.f32.mrb[114].mxu0 }
0x216c   : > { %v10788_v3 = vadd.f32 %v15004_v0, %v10787_v1  ;;  %v16830_v5 = vpop.f32.mrb[115].mxu0  ;;  %v15013_v0 = vld [vmem:[%s20207_s5 + $0x6] ss:$0 sm:$0xff] }
0x216e   : > { %16903 = vmatpush3.xpose.msk.msra.mxu1 %vm2623_vm5, %v10788_v3  ;;  %v11162_v3 = vadd.f32 %v15013_v0, %v19666_v20  ;;  %v15047_v0 = vld [vmem:[%s20210_s19 + $0xb8] sm:$0xff] }
0x216f   : > { %16912 = vmatprep.subr.mxu1 %v18130_v12 }
0x2171   : > { %16905 = vmatmul.mubr.msk.f32.vlgmr.msra.gmra.mrb[112].mxu1 %vm2623_vm5, %v10484_v6 }
0x2172   : > { %16914 = vmatprep.mubr.msk.f32.mxu1 %vm18129_vm0, %v18130_v12 }
0x2173   : > { %v10927_v9 = vpop.f32.mrb[116].mxu0 }
0x2174   : > { %v10928_v11 = vadd.f32 %v15006_v8, %v10927_v9  ;;  %v16852_v13 = vpop.f32.mrb[117].mxu0 }
0x2176   : > { %16913 = vmatpush3.xpose.msk.msra.mxu1 %vm2623_vm5, %v10928_v11 }
0x2177   : > { %16922 = vmatprep.subr.mxu1 %v18130_v12 }
0x2179   : > { %16915 = vmatmul.mubr.msk.f32.vlgmr.msra.gmra.mrb[114].mxu1 %vm2623_vm5, %v10624_v14 }
0x217a   : > { %16924 = vmatprep.mubr.msk.f32.mxu1 %vm18129_vm0, %v18130_v12 }
0x217b   : > { %v11091_v18 = vpop.f32.mrb[118].mxu0 }
0x217c   : > { %v11092_v19 = vadd.f32 %v15012_v16, %v11091_v18  ;;  %v16874_v22 = vpop.f32.mrb[119].mxu0 }
0x217d   : > { %v14991_v22 = vld [vmem:[%s20208_s7 + $0x28] sm:$0xff] }
0x217e   : > { %16923 = vmatpush3.msra.mxu1 %v11092_v19  ;;  %v14990_v19 = vld [vmem:[%s20208_s7 + $0x20] sm:$0xff] }
0x217f   : > { %16932 = vmatprep.subr.mxu1 %v18130_v12 }
0x2183   : > { %v19684_v23 = vpop.f32.mrb[120].mxu0 }
0x2184   : > { %v16896_v24 = vpop.f32.mrb[121].mxu0  ;;  %v11232_v14 = vadd.f32 %v15014_v10, %v19684_v23  ;;  %v14992_v23 = vld [vmem:[%s20208_s7 + $0x30] sm:$0xff]  ;;  %v15049_v10 = vld [vmem:[%s20210_s19 + $0xc8] sm:$0xff] }
0x2224   : > { %v11307_v25 = vpop.f32.mrb[110].mxu1 }
0x2225   : > { %v11539_v26 = vmul.f32 0.35355338, %v11307_v25  ;;  %v16901_v21 = vpop.f32.mrb[111].mxu1 }
0x2227   : > { %v11543_v27 = vadd.f32 %v11539_v26, %v19196_v50 }
0x2229   : > { %v11547_v28 = vsel %vm2623_vm5, %v11543_v27, -inf }
0x222a   : > { %11548 = vmax.xlane.f32.xlu0 %v11547_v28 }
0x2231   : > { %v11459_v29 = vpop.f32.mrb[122].mxu0 }
0x2232   : > { %v11541_v59 = vmul.f32 0.35355338, %v11459_v29  ;;  %v16911_v17 = vpop.f32.mrb[123].mxu0 }
0x2234   : > { %v11545_v63 = vadd.f32 %v11541_v59, %v19196_v50 }
0x2236   : > { %v11553_v30 = vsel %vm2623_vm5, %v11545_v63, -inf }
0x2237   : > { %11554 = vmax.xlane.f32.xlu0 %v11553_v30 }
0x2244   : > { %v11383_v7 = vpop.f32.mrb[112].mxu1 }
0x2245   : > { %v11540_v32 = vmul.f32 0.35355338, %v11383_v7  ;;  %v16906_v15 = vpop.f32.mrb[113].mxu1 }
0x2247   : > { %v11544_v33 = vadd.f32 %v11540_v32, %v19196_v50 }
0x2249   : > { %v11550_v34 = vsel %vm2623_vm5, %v11544_v33, -inf }
0x224a   : > { %11551 = vmax.xlane.f32.xlu1 %v11550_v34 }
0x224c   : > { %v11535_v35 = vpop.f32.mrb[114].mxu1 }
0x224d   : > { %v11542_v36 = vmul.f32 0.35355338, %v11535_v35  ;;  %v16916_v38 = vpop.f32.mrb[115].mxu1 }
0x224f   : > { %v11546_v40 = vadd.f32 %v11542_v36, %v19196_v50 }
0x2251   : > { %v11556_v41 = vsel %vm2623_vm5, %v11546_v40, -inf }
0x2252   : > { %11557 = vmax.xlane.f32.xlu1 %v11556_v41 }
0x22b7   : > { %v11549_v42 = vpop.xlane.xlu0 %11548 }
0x22b8   : > { %v11559_v45 = vsub.f32 %v11543_v27, %v11549_v42  ;;  %v14993_v27 = vld [vmem:[%s20208_s7 + $0x38] sm:$0xff]  ;;  %v15035_v42 = vld [vmem:[%s20209_s14 + $0x1] ss:$0 sm:$0xff] }
0x22ba   : > { %v11563_v44 = vmul.f32 1.442695, %v11559_v45 }
0x22bc   : > { %17972 = vpow2.f32 %v11563_v44 }
0x22c4   : > { %v11555_v47 = vpop.xlane.xlu0 %11554 }
0x22c5   : > { %v11561_v48 = vsub.f32 %v11545_v63, %v11555_v47 }
0x22c6   : > { %v17973_v49 = vpop.eup %17972 }
0x22c7   : > { %v11567_v46 = vmul.f32 1.442695, %v11561_v48  ;;  %v11571_v37 = vsel %vm2623_vm5, %v17973_v49, 0.0 }
0x22c8   : > { %11572 = vadd.xlane.f32.xlu0 %v11571_v37 }
0x22c9   : > { %17974 = vpow2.f32 %v11567_v46 }
0x22d3   : > { %v17975_v51 = vpop.eup %17974 }
0x22d4   : > { %v11577_v52 = vsel %vm2623_vm5, %v17975_v51, 0.0 }
0x22d5   : > { %11578 = vadd.xlane.f32.xlu0 %v11577_v52 }
0x22d7   : > { %v11552_v50 = vpop.xlane.xlu1 %11551 }
0x22d8   : > { %v11560_v53 = vsub.f32 %v11544_v33, %v11552_v50 }
0x22da   : > { %v11565_v54 = vmul.f32 1.442695, %v11560_v53 }
0x22dc   : > { %17976 = vpow2.f32 %v11565_v54  ;;  %v15040_v54 = vld [vmem:[%s20210_s19 + $0x80] sm:$0xff] }
0x22df   : > { %v11558_v55 = vpop.xlane.xlu1 %11557 }
0x22e0   : > { %v11562_v56 = vsub.f32 %v11546_v40, %v11558_v55  ;;  %v15041_v55 = vld [vmem:[%s20210_s19 + $0x88] sm:$0xff] }
0x22e2   : > { %v11569_v57 = vmul.f32 1.442695, %v11562_v56  ;;  %v15044_v56 = vld [vmem:[%s20210_s19 + $0xa0] sm:$0xff] }
0x22e4   : > { %17978 = vpow2.f32 %v11569_v57  ;;  %v17690_v57 = vpack.c.bf16 %v15041_v55, %v15040_v54 }
0x22e6   : > { %v17977_v39 = vpop.eup %17976 }
0x22e7   : > { %v11574_v58 = vsel %vm2623_vm5, %v17977_v39, 0.0 }
0x22e8   : > { %11575 = vadd.xlane.f32.xlu1 %v11574_v58  ;;  %v15042_v58 = vld [vmem:[%s20210_s19 + $0x90] sm:$0xff] }
0x22ee   : > { %v17979_v60 = vpop.eup %17978 }
0x22ef   : > { %v11580_v61 = vsel %vm2623_vm5, %v17979_v60, 0.0 }
0x22f0   : > { %11581 = vadd.xlane.f32.xlu1 %v11580_v61  ;;  %v15046_v61 = vld [vmem:[%s20210_s19 + $0xb0] sm:$0xff] }
0x2355   : > { %v11573_v62 = vpop.xlane.xlu0 %11572 }
0x2356   : > { %17980 = vrcp.f32 %v11573_v62 }
0x2360   : > { %v17981_v1 = vpop.eup %17980 }
0x2361   : > { %v11587_v2 = vmul.f32 %v17981_v1, %v17973_v49  ;;  %v17699_v1 = vpack.c.bf16 %v15047_v0, %v15046_v61  ;;  %v15088_v61 = vld [vmem:[%s20214_s17 + $0xc0] sm:$0xff] }
0x2362   : > { %v11579_v5 = vpop.xlane.xlu0 %11578  ;;  %v15092_v0 = vld [vmem:[%s20214_s17 + $0xe0] sm:$0xff] }
0x2363   : > { %17982 = vrcp.f32 %v11579_v5  ;;  %16920 = vmatmul.mubr.msk.f32.vlgmr.msra.gmra.mrb[124].mxu0 %vm2623_vm5, %v11587_v2 }
0x2364   : > { %16928 = vmatpush3.msra.mxu0 %v11162_v3  ;;  %16929 = vmatprep.mubr.msk.f32.mxu0 %vm18129_vm0, %v18130_v12 }
0x2365   : > { %16937 = vmatprep.subr.mxu0 %v18130_v12 }
0x236d   : > { %v17983_v6 = vpop.eup %17982 }
0x236e   : > { %v11589_v8 = vmul.f32 %v17983_v6, %v17975_v51 }
0x2370   : > { %16930 = vmatmul.mubr.msk.f32.vlgmr.msra.gmra.mrb[126].mxu0 %vm2623_vm5, %v11589_v8  ;;  %v15038_v8 = vld [vmem:[%s20211_s13 + $0x1] ss:$0 sm:$0xff] }
0x2371   : > { %16939 = vmatprep.mubr.msk.f32.mxu0 %vm18129_vm0, %v18130_v12  ;;  %16938 = vmatpush3.msra.mxu0 %v14990_v19 }
0x2372   : > { %16947 = vmatprep.subr.mxu0 %v18130_v12 }
0x2375   : > { %v11576_v9 = vpop.xlane.xlu1 %11575 }
0x2376   : > { %17984 = vrcp.f32 %v11576_v9  ;;  %v15048_v9 = vld [vmem:[%s20210_s19 + $0xc0] sm:$0xff] }
0x237d   : > { %v11582_v20 = vpop.xlane.xlu1 %11581 }
0x237e   : > { %17986 = vrcp.f32 %v11582_v20 }
0x2380   : > { %v17985_v11 = vpop.eup %17984 }
0x2381   : > { %v11588_v13 = vmul.f32 %v17985_v11, %v17977_v39  ;;  %v15045_v39 = vld [vmem:[%s20210_s19 + $0xa8] sm:$0xff]  ;;  %v15052_v11 = vld [vmem:[%s20210_s19 + $0xe0] sm:$0xff] }
0x2383   : > { %16925 = vmatmul.mubr.msk.f32.vlgmr.msra.gmra.mrb[116].mxu1 %vm2623_vm5, %v11588_v13  ;;  %v15053_v13 = vld [vmem:[%s20210_s19 + $0xe8] sm:$0xff] }
0x2384   : > { %16933 = vmatpush3.msra.mxu1 %v11232_v14  ;;  %16934 = vmatprep.mubr.msk.f32.mxu1 %vm18129_vm0, %v18130_v12  ;;  %v15039_v14 = vld [vmem:[%s20212_s20 + $0x1] ss:$0 sm:$0xff]  ;;  %v17708_v19 = vpack.c.bf16 %v15053_v13, %v15052_v11 }
0x2385   : > { %16942 = vmatprep.subr.mxu1 %v18130_v12 }
0x2388   : > { %v17987_v16 = vpop.eup %17986 }
0x2389   : > { %v11590_v18 = vmul.f32 %v17987_v16, %v17979_v60  ;;  %v15043_v60 = vld [vmem:[%s20210_s19 + $0x98] sm:$0xff] }
0x238a   : > { %v17693_v62 = vpack.c.bf16 %v15043_v60, %v15042_v58 }
0x238b   : > { %16935 = vmatmul.mubr.msk.f32.vlgmr.msra.gmra.mrb[118].mxu1 %vm2623_vm5, %v11590_v18  ;;  %v17702_v18 = vpack.c.bf16 %v15049_v10, %v15048_v9  ;;  %v15095_v9 = vld [vmem:[%s20214_s17 + $0xf8] sm:$0xff] }
0x238c   : > { %16944 = vmatprep.mubr.msk.f32.mxu1 %vm18129_vm0, %v18130_v12  ;;  %16943 = vmatpush3.msra.mxu1 %v14991_v22  ;;  %v15050_v22 = vld [vmem:[%s20210_s19 + $0xd0] sm:$0xff] }
0x238d   : > { %16952 = vmatprep.subr.mxu1 %v18130_v12 }
0x2436   : > { %v11660_v24 = vpop.f32.mrb[124].mxu0 }
0x2437   : > { %v16921_v25 = vpop.f32.mrb[125].mxu0  ;;  %16940 = vmatmul.mubr.msk.f32.vlgmr.msra.gmra.mrb[128].mxu0 %vm2623_vm5, %v11660_v24  ;;  %v15051_v24 = vld [vmem:[%s20210_s19 + $0xd8] sm:$0xff] }
0x2438   : > { %16948 = vmatpush3.msra.mxu0 %v14992_v23  ;;  %16949 = vmatprep.mubr.msk.f32.mxu0 %vm18129_vm0, %v18130_v12  ;;  %v15054_v25 = vld [vmem:[%s20210_s19 + $0xf0] sm:$0xff] }
0x2439   : > { %17689 = vmatprep.subr.bf16.mxu0 %v18128_v4 }
0x2443   : > { %v11806_v26 = vpop.f32.mrb[126].mxu0 }
0x2444   : > { %v16931_v21 = vpop.f32.mrb[127].mxu0  ;;  %16950 = vmatmul.mubr.msk.f32.vlgmr.msra.gmra.mrb[130].mxu0 %vm2623_vm5, %v11806_v26  ;;  %v15055_v26 = vld [vmem:[%s20210_s19 + $0xf8] sm:$0xff] }
0x2445   : > { %16965 = vmatprep.mubr.msk.f32.mxu0 %vm18129_vm0, %v18130_v12  ;;  %17691 = vmatpush3.bf16.msra.mxu0 %v17690_v57  ;;  %v17705_v21 = vpack.c.bf16 %v15051_v24, %v15050_v22  ;;  %v15083_v57 = vld [vmem:[%s20214_s17 + $0x98] sm:$0xff] }
0x2446   : > { %17692 = vmatprep.subr.bf16.mxu0 %v18128_v4 }
0x2449   : > { %17694 = vmatpush3.bf16.msra.mxu0 %v17693_v62  ;;  %v15089_v62 = vld [vmem:[%s20214_s17 + $0xc8] sm:$0xff] }
0x244a   : > { %17701 = vmatprep.subr.bf16.mxu0 %v18128_v4 }
0x2456   : > { %v11733_v28 = vpop.f32.mrb[116].mxu1 }
0x2457   : > { %v16926_v29 = vpop.f32.mrb[117].mxu1  ;;  %16945 = vmatmul.mubr.msk.f32.vlgmr.msra.gmra.mrb[120].mxu1 %vm2623_vm5, %v11733_v28  ;;  %v15060_v28 = vld [vmem:[%s20213_s24 + $0x80] sm:$0xff] }
0x2458   : > { %16953 = vmatpush3.msra.mxu1 %v14993_v27  ;;  %16954 = vmatprep.mubr.msk.f32.mxu1 %vm18129_vm0, %v18130_v12  ;;  %v17711_v27 = vpack.c.bf16 %v15055_v26, %v15054_v25  ;;  %v15061_v29 = vld [vmem:[%s20213_s24 + $0x88] sm:$0xff]  ;;  %v15113_v25 = vld [vmem:[%s20215_s21 + $0x4] ss:$0 sm:$0xff]  ;;  %v15114_v26 = vld [vmem:[%s20215_s21 + $0x5] ss:$0 sm:$0xff] }
0x2459   : > { %17695 = vmatprep.subr.bf16.mxu1 %v18128_v4 }
0x245e   : > { %v11879_v59 = vpop.f32.mrb[118].mxu1 }
0x245f   : > { %v16936_v17 = vpop.f32.mrb[119].mxu1  ;;  %16955 = vmatmul.mubr.msk.f32.vlgmr.msra.gmra.mrb[122].mxu1 %vm2623_vm5, %v11879_v59  ;;  %v15064_v59 = vld [vmem:[%s20213_s24 + $0xa0] sm:$0xff] }
0x2460   : > { %16976 = vmatprep.mubr.msk.f32.mxu1 %vm18129_vm0, %v18130_v12  ;;  %v15065_v17 = vld [vmem:[%s20213_s24 + $0xa8] sm:$0xff] }
0x250a   : > { %v11952_v63 = vpop.f32.mrb[128].mxu0 }
0x250b   : > { %v16941_v30 = vpop.f32.mrb[129].mxu0  ;;  %v12175_v33 = vsel %vm1731_vm4, %v11952_v63, 0.0  ;;  %v17714_v63 = vpack.c.bf16 %v15061_v29, %v15060_v28  ;;  %v15106_v28 = vld [vmem:[%s20216_s25 + $0x5] ss:$0 sm:$0xff] }
0x250c   : > { %v17720_v30 = vpack.c.bf16 %v15065_v17, %v15064_v59 }
0x2517   : > { %v12098_v7 = vpop.f32.mrb[130].mxu0 }
0x2518   : > { %v16951_v32 = vpop.f32.mrb[131].mxu0  ;;  %v12178_v38 = vsel %vm1731_vm4, %v12098_v7, 0.0  ;;  %v15062_v7 = vld [vmem:[%s20213_s24 + $0x90] sm:$0xff] }
0x2519   : > { %v15063_v32 = vld [vmem:[%s20213_s24 + $0x98] sm:$0xff] }
0x252a   : > { %v12025_v15 = vpop.f32.mrb[120].mxu1 }
0x252b   : > { %v12176_v34 = vsel %vm1731_vm4, %v12025_v15, 0.0  ;;  %v16946_v35 = vpop.f32.mrb[121].mxu1  ;;  %v15066_v15 = vld [vmem:[%s20213_s24 + $0xb0] sm:$0xff] }
0x252c   : > { %v12177_v36 = vadd.f32 %v12176_v34, %v12175_v33  ;;  %v15067_v33 = vld [vmem:[%s20213_s24 + $0xb8] sm:$0xff]  ;;  %v17717_v34 = vpack.c.bf16 %v15063_v32, %v15062_v7  ;;  %v15115_v32 = vld [vmem:[%s20215_s21 + $0x6] ss:$0 sm:$0xff] }
0x252d   : > { %v17723_v35 = vpack.c.bf16 %v15067_v33, %v15066_v15  ;;  %v15116_v15 = vld [vmem:[%s20215_s21 + $0x7] ss:$0 sm:$0xff] }
0x252e   : > { %v12179_v40 = vadd.f32 %v12178_v38, %v12177_v36  ;;  %v15068_v36 = vld [vmem:[%s20213_s24 + $0xc0] sm:$0xff]  ;;  %v15069_v38 = vld [vmem:[%s20213_s24 + $0xc8] sm:$0xff] }
0x2532   : > { %v12171_v41 = vpop.f32.mrb[122].mxu1 }
0x2533   : > { %v12180_v45 = vsel %vm1731_vm4, %v12171_v41, 0.0  ;;  %v16956_v44 = vpop.f32.mrb[123].mxu1  ;;  %v15073_v41 = vld [vmem:[%s20213_s24 + $0xe8] sm:$0xff] }
0x2534   : > { %v12181_v47 = vadd.f32 %v12180_v45, %v12179_v40  ;;  %v15072_v40 = vld [vmem:[%s20213_s24 + $0xe0] sm:$0xff]  ;;  %v15070_v44 = vld [vmem:[%s20213_s24 + $0xd0] sm:$0xff] }
0x2535   : > { %v17732_v45 = vpack.c.bf16 %v15073_v41, %v15072_v40 }
0x2536   : > { %v12188_v48 = vadd.f32 %v15035_v42, %v12181_v47  ;;  %v17726_v42 = vpack.c.bf16 %v15069_v38, %v15068_v36  ;;  %v15071_v47 = vld [vmem:[%s20213_s24 + $0xd8] sm:$0xff]  ;;  %v15108_v36 = vld [vmem:[%s20216_s25 + $0x7] ss:$0 sm:$0xff] }
0x2538   : > { %v12189_v49 = vadd.f32 %v12188_v48, %v19545_v43  ;;  %v17696_v43 = vpack.c.bf16 %v15045_v39, %v15044_v56  ;;  %v15074_v48 = vld [vmem:[%s20213_s24 + $0xf0] sm:$0xff] }
0x2539   : > { %v15082_v56 = vld [vmem:[%s20214_s17 + $0x90] sm:$0xff] }
0x253a   : > { %v12194_v46 = vsel %vm1731_vm4, %v12189_v49, 0.0  ;;  %17697 = vmatpush3.bf16.msra.mxu1 %v17696_v43  ;;  %v15086_v39 = vld [vmem:[%s20214_s17 + $0xb0] sm:$0xff]  ;;  %v15087_v43 = vld [vmem:[%s20214_s17 + $0xb8] sm:$0xff]  ;;  %v17741_v58 = vpack.c.bf16 %v15083_v57, %v15082_v56 }
0x253b   : > { %12195 = vadd.xlane.f32.xlu0 %v12194_v46  ;;  %17698 = vmatprep.subr.bf16.mxu1 %v18128_v4  ;;  %v17729_v46 = vpack.c.bf16 %v15071_v47, %v15070_v44  ;;  %v17747_v60 = vpack.c.bf16 %v15087_v43, %v15086_v39  ;;  %v15121_v47 = vld [vmem:[%s20217_s27 + $0x4] ss:$0 sm:$0xff] }
0x253e   : > { %17700 = vmatpush3.bf16.msra.mxu1 %v17699_v1  ;;  %v15093_v1 = vld [vmem:[%s20214_s17 + $0xe8] sm:$0xff] }
0x253f   : > { %17707 = vmatprep.subr.bf16.mxu1 %v18128_v4 }
0x25c8   : > { %v12196_v37 = vpop.xlane.xlu0 %12195 }
0x25c9   : > { %v12197_v51 = vmul.f32 0.03125, %v12196_v37 }
0x25cb   : > { %v12198_v52 = vsub.f32 %v12189_v49, %v12197_v51  ;;  %v15075_v49 = vld [vmem:[%s20213_s24 + $0xf8] sm:$0xff]  ;;  %v15080_v51 = vld [vmem:[%s20214_s17 + $0x80] sm:$0xff] }
0x25cc   : > { %v17735_v37 = vpack.c.bf16 %v15075_v49, %v15074_v48  ;;  %v15122_v48 = vld [vmem:[%s20217_s27 + $0x5] ss:$0 sm:$0xff] }
0x25cd   : > { %v12199_v50 = vmul.f32 %v12198_v52, %v12198_v52 }
0x25cf   : > { %v12200_v53 = vsel %vm1731_vm4, %v12199_v50, 0.0  ;;  %v15084_v50 = vld [vmem:[%s20214_s17 + $0xa0] sm:$0xff] }
0x25d0   : > { %12201 = vadd.xlane.f32.xlu1 %v12200_v53  ;;  %v15085_v53 = vld [vmem:[%s20214_s17 + $0xa8] sm:$0xff] }
0x25d1   : > { %v17744_v55 = vpack.c.bf16 %v15085_v53, %v15084_v50 }
0x265d   : > { %v12202_v2 = vpop.xlane.xlu1 %12201 }
0x265e   : > { %v12203_v3 = vmul.f32 0.03125, %v12202_v2  ;;  %v17750_v2 = vpack.c.bf16 %v15089_v62, %v15088_v61  ;;  %v18011_v62 = vld [vmem:[%s18640_s10] ss:$0 sm:$0xff]  ;;  %s20230_s10 = smov %s20229_s22 }
0x2660   : > { %v12204_v5 = vadd.f32 1e-05, %v12203_v3  ;;  %v17756_v3 = vpack.c.bf16 %v15093_v1, %v15092_v0 }
0x2662   : > { %17988 = vrsqrt.f32 %v12204_v5  ;;  %v15090_v5 = vld [vmem:[%s20214_s17 + $0xd0] sm:$0xff] }
0x266c   : > { %v17989_v6 = vpop.eup %17988 }
0x266d   : > { %v12206_v20 = vmul.f32 %v17989_v6, %v12198_v52  ;;  %v15081_v52 = vld [vmem:[%s20214_s17 + $0x88] sm:$0xff]  ;;  %v15091_v6 = vld [vmem:[%s20214_s17 + $0xd8] sm:$0xff] }
0x266e   : > { %v17738_v54 = vpack.c.bf16 %v15081_v52, %v15080_v51 }
0x266f   : > { %v12213_v16 = vmul.f32 %v15038_v8, %v12206_v20  ;;  %v15094_v8 = vld [vmem:[%s20214_s17 + $0xf0] sm:$0xff]  ;;  %v17753_v20 = vpack.c.bf16 %v15091_v6, %v15090_v5 }
0x2670   : > { %v17759_v10 = vpack.c.bf16 %v15095_v9, %v15094_v8 }
0x2671   : > { %v19763_v23 = vadd.f32 %v15039_v14, %v12213_v16 }
0x2673   : > { %16966 = vmatmul.mubr.msk.f32.vlgmr.msra.gmra.mrb[132].mxu0 %vm1731_vm4, %v19763_v23  ;;  %16977 = vmatmul.mubr.msk.f32.vlgmr.msra.gmra.mrb[124].mxu1 %vm1731_vm4, %v19763_v23 }
0x2674   : > { %17703 = vmatpush3.bf16.msra.mxu0 %v17702_v18  ;;  %17709 = vmatpush3.bf16.msra.mxu1 %v17708_v19 }
0x2675   : > { %17704 = vmatprep.subr.bf16.mxu0 %v18128_v4  ;;  %17710 = vmatprep.subr.bf16.mxu1 %v18128_v4 }
0x2676   : > { %16987 = vmatprep.mubr.msk.f32.mxu0 %vm18129_vm0, %v18130_v12  ;;  %16998 = vmatprep.mubr.msk.f32.mxu1 %vm18129_vm0, %v18130_v12 }
0x2678   : > { %17706 = vmatpush3.bf16.msra.mxu0 %v17705_v21  ;;  %17712 = vmatpush3.bf16.msra.mxu1 %v17711_v27  ;;  %v15105_v27 = vld [vmem:[%s20216_s25 + $0x4] ss:$0 sm:$0xff] }
0x2679   : > { %17713 = vmatprep.subr.bf16.mxu0 %v18128_v4  ;;  %17719 = vmatprep.subr.bf16.mxu1 %v18128_v4 }
0x267b   : > { %16988 = vmatmul.mubr.msk.f32.vlgmr.msra.gmra.mrb[134].mxu0 %vm1731_vm4, %v19763_v23  ;;  %16999 = vmatmul.mubr.msk.f32.vlgmr.msra.gmra.mrb[126].mxu1 %vm1731_vm4, %v19763_v23 }
0x267c   : > { %17715 = vmatpush3.bf16.msra.mxu0 %v17714_v63  ;;  %17721 = vmatpush3.bf16.msra.mxu1 %v17720_v30 }
0x267d   : > { %17716 = vmatprep.subr.bf16.mxu0 %v18128_v4  ;;  %17722 = vmatprep.subr.bf16.mxu1 %v18128_v4 }
0x267e   : > { %17009 = vmatprep.mubr.msk.f32.mxu0 %vm18129_vm0, %v18130_v12  ;;  %17020 = vmatprep.mubr.msk.f32.mxu1 %vm18129_vm0, %v18130_v12 }
0x2680   : > { %17718 = vmatpush3.bf16.msra.mxu0 %v17717_v34  ;;  %17724 = vmatpush3.bf16.msra.mxu1 %v17723_v35  ;;  %v15107_v35 = vld [vmem:[%s20216_s25 + $0x6] ss:$0 sm:$0xff] }
0x2681   : > { %17725 = vmatprep.subr.bf16.mxu0 %v18128_v4  ;;  %17731 = vmatprep.subr.bf16.mxu1 %v18128_v4 }
0x2683   : > { %17010 = vmatmul.mubr.msk.f32.vlgmr.msra.gmra.mrb[136].mxu0 %vm1731_vm4, %v19327_v31  ;;  %17021 = vmatmul.mubr.msk.f32.vlgmr.msra.gmra.mrb[128].mxu1 %vm1731_vm4, %v19327_v31 }
0x2684   : > { %17727 = vmatpush3.bf16.msra.mxu0 %v17726_v42  ;;  %17733 = vmatpush3.bf16.msra.mxu1 %v17732_v45 }
0x2685   : > { %17728 = vmatprep.subr.bf16.mxu0 %v18128_v4  ;;  %17734 = vmatprep.subr.bf16.mxu1 %v18128_v4 }
0x2686   : > { %17031 = vmatprep.mubr.msk.f32.mxu0 %vm18129_vm0, %v18130_v12  ;;  %17042 = vmatprep.mubr.msk.f32.mxu1 %vm18129_vm0, %v18130_v12 }
0x2688   : > { %17730 = vmatpush3.bf16.msra.mxu0 %v17729_v46  ;;  %17736 = vmatpush3.bf16.msra.mxu1 %v17735_v37 }
0x2689   : > { %17737 = vmatprep.subr.bf16.mxu0 %v18128_v4  ;;  %17743 = vmatprep.subr.bf16.mxu1 %v18128_v4 }
0x268b   : > { %17032 = vmatmul.mubr.msk.f32.vlgmr.msra.gmra.mrb[138].mxu0 %vm1731_vm4, %v19327_v31  ;;  %17043 = vmatmul.mubr.msk.f32.vlgmr.msra.gmra.mrb[130].mxu1 %vm1731_vm4, %v19327_v31 }
0x268c   : > { %17739 = vmatpush3.bf16.msra.mxu0 %v17738_v54  ;;  %17745 = vmatpush3.bf16.msra.mxu1 %v17744_v55 }
0x268d   : > { %17740 = vmatprep.subr.bf16.mxu0 %v18128_v4  ;;  %17746 = vmatprep.subr.bf16.mxu1 %v18128_v4 }
0x268e   : > { %17053 = vmatprep.mubr.msk.f32.mxu0 %vm18129_vm0, %v18130_v12  ;;  %17064 = vmatprep.mubr.msk.f32.mxu1 %vm18129_vm0, %v18130_v12 }
0x2690   : > { %17742 = vmatpush3.bf16.msra.mxu0 %v17741_v58  ;;  %17748 = vmatpush3.bf16.msra.mxu1 %v17747_v60 }
0x2691   : > { %17749 = vmatprep.subr.bf16.mxu0 %v18128_v4  ;;  %17755 = vmatprep.subr.bf16.mxu1 %v18128_v4 }
0x2693   : > { %17054 = vmatmul.mubr.msk.f32.vlgmr.msra.gmra.mrb[140].mxu0 %vm1731_vm4, %v19327_v31  ;;  %17065 = vmatmul.mubr.msk.f32.vlgmr.msra.gmra.mrb[132].mxu1 %vm1731_vm4, %v19327_v31 }
0x2694   : > { %17751 = vmatpush3.bf16.msra.mxu0 %v17750_v2  ;;  %17757 = vmatpush3.bf16.msra.mxu1 %v17756_v3 }
0x2695   : > { %17752 = vmatprep.subr.bf16.mxu0 %v18128_v4  ;;  %17758 = vmatprep.subr.bf16.mxu1 %v18128_v4 }
0x2696   : > { %17075 = vmatprep.mubr.msk.f32.mxu0 %vm18129_vm0, %v18130_v12  ;;  %17086 = vmatprep.mubr.msk.f32.mxu1 %vm18129_vm0, %v18130_v12 }
0x2698   : > { %17754 = vmatpush3.bf16.msra.mxu0 %v17753_v20  ;;  %17760 = vmatpush3.bf16.msra.mxu1 %v17759_v10 }
0x2699   : > { %17089 = vmatprep.subr.mxu0 %v18130_v12  ;;  %17094 = vmatprep.subr.mxu1 %v18130_v12 }
0x269b   : > { %17076 = vmatmul.mubr.msk.f32.vlgmr.msra.gmra.mrb[142].mxu0 %vm1731_vm4, %v19327_v31  ;;  %17087 = vmatmul.mubr.msk.f32.vlgmr.msra.gmra.mrb[134].mxu1 %vm1731_vm4, %v19327_v31 }
0x269c   : > { %17091 = vmatprep.mubr.msk.f32.mxu0 %vm18129_vm0, %v18130_v12  ;;  %17096 = vmatprep.mubr.msk.f32.mxu1 %vm18129_vm0, %v18130_v12 }
0x2746   : > { %v12387_v11 = vpop.f32.mrb[132].mxu0  ;;  %v12457_v13 = vpop.f32.mrb[124].mxu1 }
0x2747   : > { %v16967_v14 = vpop.f32.mrb[133].mxu0  ;;  %v16978_v16 = vpop.f32.mrb[125].mxu1  ;;  %v12388_v30 = vadd.f32 %v15105_v27, %v12387_v11  ;;  %v12458_v7 = vadd.f32 %v15106_v28, %v12457_v13 }
0x274e   : > { %v12527_v18 = vpop.f32.mrb[134].mxu0  ;;  %v12597_v19 = vpop.f32.mrb[126].mxu1 }
0x274f   : > { %v16989_v22 = vpop.f32.mrb[135].mxu0  ;;  %v17000_v24 = vpop.f32.mrb[127].mxu1  ;;  %v12528_v45 = vadd.f32 %v15107_v35, %v12527_v18  ;;  %v12598_v44 = vadd.f32 %v15108_v36, %v12597_v19 }
0x2756   : > { %v12691_v21 = vpop.f32.mrb[136].mxu0  ;;  %v12761_v31 = vpop.f32.mrb[128].mxu1 }
0x2757   : > { %v12692_v29 = vadd.f32 %v15113_v25, %v12691_v21  ;;  %v12762_v59 = vadd.f32 %v15114_v26, %v12761_v31  ;;  %v17011_v17 = vpop.f32.mrb[137].mxu0  ;;  %v17022_v63 = vpop.f32.mrb[129].mxu1 }
0x2759   : > { %17090 = vmatpush3.xpose.msk.msra.mxu0 %vm2623_vm5, %v12692_v29  ;;  %17095 = vmatpush3.xpose.msk.msra.mxu1 %vm2623_vm5, %v12762_v59 }
0x275a   : > { %17099 = vmatprep.subr.mxu0 %v18130_v12  ;;  %17104 = vmatprep.subr.mxu1 %v18130_v12 }
0x275c   : > { %17092 = vmatmul.mubr.msk.f32.vlgmr.msra.gmra.mrb[144].mxu0 %vm2623_vm5, %v12388_v30  ;;  %17097 = vmatmul.mubr.msk.f32.vlgmr.msra.gmra.mrb[136].mxu1 %vm2623_vm5, %v12458_v7 }
0x275d   : > { %17101 = vmatprep.mubr.msk.f32.mxu0 %vm18129_vm0, %v18130_v12  ;;  %17106 = vmatprep.mubr.msk.f32.mxu1 %vm18129_vm0, %v18130_v12 }
0x275e   : > { %v12831_v33 = vpop.f32.mrb[138].mxu0  ;;  %v12901_v34 = vpop.f32.mrb[130].mxu1 }
0x275f   : > { %v12832_v38 = vadd.f32 %v15115_v32, %v12831_v33  ;;  %v12902_v40 = vadd.f32 %v15116_v15, %v12901_v34  ;;  %v17033_v41 = vpop.f32.mrb[139].mxu0  ;;  %v17044_v42 = vpop.f32.mrb[131].mxu1 }
0x2760   : > { %v15124_v41 = vld [vmem:[%s20217_s27 + $0x7] ss:$0 sm:$0xff] }
0x2761   : > { %17100 = vmatpush3.xpose.msk.msra.mxu0 %vm2623_vm5, %v12832_v38  ;;  %17105 = vmatpush3.xpose.msk.msra.mxu1 %vm2623_vm5, %v12902_v40 }
0x2762   : > { %17109 = vmatprep.subr.mxu0 %v18130_v12  ;;  %17114 = vmatprep.subr.mxu1 %v18130_v12 }
0x2764   : > { %17102 = vmatmul.mubr.msk.f32.vlgmr.msra.gmra.mrb[146].mxu0 %vm2623_vm5, %v12528_v45  ;;  %17107 = vmatmul.mubr.msk.f32.vlgmr.msra.gmra.mrb[138].mxu1 %vm2623_vm5, %v12598_v44  ;;  %v15123_v45 = vld [vmem:[%s20217_s27 + $0x6] ss:$0 sm:$0xff] }
0x2765   : > { %17111 = vmatprep.mubr.msk.f32.mxu0 %vm18129_vm0, %v18130_v12  ;;  %17116 = vmatprep.mubr.msk.f32.mxu1 %vm18129_vm0, %v18130_v12 }
0x2766   : > { %v12995_v49 = vpop.f32.mrb[140].mxu0  ;;  %v13065_v46 = vpop.f32.mrb[132].mxu1 }
0x2767   : > { %v12996_v37 = vadd.f32 %v15121_v47, %v12995_v49  ;;  %v13066_v51 = vadd.f32 %v15122_v48, %v13065_v46  ;;  %v17055_v52 = vpop.f32.mrb[141].mxu0  ;;  %v17066_v50 = vpop.f32.mrb[133].mxu1 }
0x2769   : > { %17110 = vmatpush3.msra.mxu0 %v12996_v37  ;;  %17115 = vmatpush3.msra.mxu1 %v13066_v51 }
0x276a   : > { %17119 = vmatprep.subr.mxu0 %v18130_v12  ;;  %17124 = vmatprep.subr.mxu1 %v18130_v12 }
0x276e   : > { %v19900_v53 = vpop.f32.mrb[142].mxu0  ;;  %v19902_v54 = vpop.f32.mrb[134].mxu1 }
0x276f   : > { %v17077_v55 = vpop.f32.mrb[143].mxu0  ;;  %v17088_v56 = vpop.f32.mrb[135].mxu1  ;;  %v13206_v48 = vadd.f32 %v15124_v41, %v19902_v54  ;;  %v13136_v46 = vadd.f32 %v15123_v45, %v19900_v53  ;;  %v15100_v53 = vld [vmem:[%s20218_s30 + $0x20] sm:$0xff]  ;;  %v15101_v54 = vld [vmem:[%s20218_s30 + $0x28] sm:$0xff]  ;;  %v15162_v45 = vld [vmem:[%s20222_s16 + $0xb8] sm:$0xff] }
0x2770   : > { %v15103_v55 = vld [vmem:[%s20218_s30 + $0x38] sm:$0xff] }
0x282f   : > { %v13281_v57 = vpop.f32.mrb[144].mxu0  ;;  %v13357_v39 = vpop.f32.mrb[136].mxu1 }
0x2830   : > { %v13513_v43 = vmul.f32 0.35355338, %v13281_v57  ;;  %v13514_v58 = vmul.f32 0.35355338, %v13357_v39  ;;  %v17093_v60 = vpop.f32.mrb[145].mxu0  ;;  %v17098_v61 = vpop.f32.mrb[137].mxu1 }
0x2831   : > { %v15102_v57 = vld [vmem:[%s20218_s30 + $0x30] sm:$0xff] }
0x2832   : > { %v13518_v0 = vadd.f32 %v18011_v62, %v13514_v58  ;;  %v13517_v1 = vadd.f32 %v18011_v62, %v13513_v43 }
0x2834   : > { %v13524_v2 = vsel %vm2623_vm5, %v13518_v0, -inf  ;;  %v13521_v3 = vsel %vm2623_vm5, %v13517_v1, -inf }
0x2835   : > { %13525 = vmax.xlane.f32.xlu1 %v13524_v2  ;;  %13522 = vmax.xlane.f32.xlu0 %v13521_v3 }
0x2837   : > { %v13433_v5 = vpop.f32.mrb[146].mxu0  ;;  %v13509_v6 = vpop.f32.mrb[138].mxu1 }
0x2838   : > { %v13515_v8 = vmul.f32 0.35355338, %v13433_v5  ;;  %v13516_v9 = vmul.f32 0.35355338, %v13509_v6  ;;  %v17103_v20 = vpop.f32.mrb[147].mxu0  ;;  %v17108_v10 = vpop.f32.mrb[139].mxu1 }
0x283a   : > { %v13520_v11 = vadd.f32 %v18011_v62, %v13516_v9  ;;  %v13519_v13 = vadd.f32 %v18011_v62, %v13515_v8 }
0x283c   : > { %v13530_v14 = vsel %vm2623_vm5, %v13520_v11, -inf  ;;  %v13527_v16 = vsel %vm2623_vm5, %v13519_v13, -inf }
0x283d   : > { %13531 = vmax.xlane.f32.xlu1 %v13530_v14  ;;  %13528 = vmax.xlane.f32.xlu0 %v13527_v16 }
0x28c2   : > { %v13526_v18 = vpop.xlane.xlu1 %13525  ;;  %v13523_v19 = vpop.xlane.xlu0 %13522 }
0x28c3   : > { %v13534_v22 = vsub.f32 %v13518_v0, %v13526_v18  ;;  %v13533_v24 = vsub.f32 %v13517_v1, %v13523_v19  ;;  %v15145_v18 = vld [vmem:[%s20219_s11 + $0x1] ss:$0 sm:$0xff] }
0x28c5   : > { %v13539_v25 = vmul.f32 1.442695, %v13534_v22  ;;  %v13537_v26 = vmul.f32 1.442695, %v13533_v24 }
0x28c7   : > { %17990 = vpow2.f32 %v13539_v25 }
0x28c8   : > { %17992 = vpow2.f32 %v13537_v26 }
0x28ca   : > { %v13532_v21 = vpop.xlane.xlu1 %13531  ;;  %v13529_v31 = vpop.xlane.xlu0 %13528 }
0x28cb   : > { %v13536_v27 = vsub.f32 %v13520_v11, %v13532_v21  ;;  %v13535_v28 = vsub.f32 %v13519_v13, %v13529_v31 }
0x28cd   : > { %v13543_v29 = vmul.f32 1.442695, %v13536_v27  ;;  %v13541_v59 = vmul.f32 1.442695, %v13535_v28 }
0x28cf   : > { %17994 = vpow2.f32 %v13543_v29 }
0x28d0   : > { %17996 = vpow2.f32 %v13541_v59  ;;  %v15150_v59 = vld [vmem:[%s20221_s2 + $0x20] sm:$0xff] }
0x28d1   : > { %v17991_v17 = vpop.eup %17990 }
0x28d2   : > { %v17993_v63 = vpop.eup %17992  ;;  %v13548_v30 = vsel %vm2623_vm5, %v17991_v17, 0.0 }
0x28d3   : > { %13549 = vadd.xlane.f32.xlu1 %v13548_v30  ;;  %v13545_v7 = vsel %vm2623_vm5, %v17993_v63, 0.0  ;;  %v15153_v30 = vld [vmem:[%s20221_s2 + $0x38] sm:$0xff] }
0x28d4   : > { %13546 = vadd.xlane.f32.xlu0 %v13545_v7 }
0x28d9   : > { %v17995_v32 = vpop.eup %17994 }
0x28da   : > { %v17997_v15 = vpop.eup %17996  ;;  %v13554_v33 = vsel %vm2623_vm5, %v17995_v32, 0.0 }
0x28db   : > { %13555 = vadd.xlane.f32.xlu1 %v13554_v33  ;;  %v13551_v34 = vsel %vm2623_vm5, %v17997_v15, 0.0  ;;  %v15157_v33 = vld [vmem:[%s20222_s16 + $0x90] sm:$0xff] }
0x28dc   : > { %13552 = vadd.xlane.f32.xlu0 %v13551_v34 }
0x2960   : > { %v13550_v35 = vpop.xlane.xlu1 %13549 }
0x2961   : > { %17998 = vrcp.f32 %v13550_v35  ;;  %v13547_v36 = vpop.xlane.xlu0 %13546  ;;  %v15158_v35 = vld [vmem:[%s20222_s16 + $0x98] sm:$0xff] }
0x2962   : > { %18000 = vrcp.f32 %v13547_v36  ;;  %v17771_v36 = vpack.c.bf16 %v15158_v35, %v15157_v33 }
0x2968   : > { %v13556_v38 = vpop.xlane.xlu1 %13555 }
0x2969   : > { %18002 = vrcp.f32 %v13556_v38  ;;  %v13553_v40 = vpop.xlane.xlu0 %13552  ;;  %v15159_v38 = vld [vmem:[%s20222_s16 + $0xa0] sm:$0xff] }
0x296a   : > { %18004 = vrcp.f32 %v13553_v40  ;;  %v15160_v40 = vld [vmem:[%s20222_s16 + $0xa8] sm:$0xff] }
0x296b   : > { %v17999_v42 = vpop.eup %17998  ;;  %v17774_v41 = vpack.c.bf16 %v15160_v40, %v15159_v38 }
0x296c   : > { %v18001_v44 = vpop.eup %18000  ;;  %v13562_v47 = vmul.f32 %v17999_v42, %v17991_v17  ;;  %v15151_v17 = vld [vmem:[%s20221_s2 + $0x28] sm:$0xff]  ;;  %v15161_v42 = vld [vmem:[%s20222_s16 + $0xb0] sm:$0xff] }
0x296d   : > { %v13561_v49 = vmul.f32 %v18001_v44, %v17993_v63  ;;  %v17762_v63 = vpack.c.bf16 %v15151_v17, %v15150_v59  ;;  %v17777_v44 = vpack.c.bf16 %v15162_v45, %v15161_v42 }
0x296e   : > { %17117 = vmatmul.mubr.msk.f32.vlgmr.msra.gmra.mrb[140].mxu1 %vm2623_vm5, %v13562_v47  ;;  %v15163_v47 = vld [vmem:[%s20222_s16 + $0xc0] sm:$0xff] }
0x296f   : > { %17112 = vmatmul.mubr.msk.f32.vlgmr.msra.gmra.mrb[148].mxu0 %vm2623_vm5, %v13561_v49  ;;  %17125 = vmatpush3.msra.mxu1 %v13206_v48  ;;  %v15164_v48 = vld [vmem:[%s20222_s16 + $0xc8] sm:$0xff] }
0x2970   : > { %17120 = vmatpush3.msra.mxu0 %v13136_v46  ;;  %17121 = vmatprep.mubr.msk.f32.mxu0 %vm18129_vm0, %v18130_v12  ;;  %v17780_v49 = vpack.c.bf16 %v15164_v48, %v15163_v47  ;;  %v15165_v46 = vld [vmem:[%s20222_s16 + $0xd0] sm:$0xff] }
0x2971   : > { %17126 = vmatprep.mubr.msk.f32.mxu1 %vm18129_vm0, %v18130_v12  ;;  %17129 = vmatprep.subr.mxu0 %v18130_v12 }
0x2972   : > { %17134 = vmatprep.subr.mxu1 %v18130_v12 }
0x2973   : > { %v18003_v37 = vpop.eup %18002 }
0x2974   : > { %v18005_v51 = vpop.eup %18004  ;;  %v13564_v52 = vmul.f32 %v18003_v37, %v17995_v32  ;;  %v15155_v32 = vld [vmem:[%s20222_s16 + $0x80] sm:$0xff]  ;;  %v15166_v37 = vld [vmem:[%s20222_s16 + $0xd8] sm:$0xff] }
0x2975   : > { %v13563_v50 = vmul.f32 %v18005_v51, %v17997_v15  ;;  %v15156_v15 = vld [vmem:[%s20222_s16 + $0x88] sm:$0xff]  ;;  %v17783_v51 = vpack.c.bf16 %v15166_v37, %v15165_v46 }
0x2976   : > { %17127 = vmatmul.mubr.msk.f32.vlgmr.msra.gmra.mrb[142].mxu1 %vm2623_vm5, %v13564_v52  ;;  %v17768_v34 = vpack.c.bf16 %v15156_v15, %v15155_v32  ;;  %v15167_v52 = vld [vmem:[%s20222_s16 + $0xe0] sm:$0xff] }
0x2977   : > { %17122 = vmatmul.mubr.msk.f32.vlgmr.msra.gmra.mrb[150].mxu0 %vm2623_vm5, %v13563_v50  ;;  %17136 = vmatprep.mubr.msk.f32.mxu1 %vm18129_vm0, %v18130_v12  ;;  %v15168_v50 = vld [vmem:[%s20222_s16 + $0xe8] sm:$0xff] }
0x2978   : > { %17131 = vmatprep.mubr.msk.f32.mxu0 %vm18129_vm0, %v18130_v12  ;;  %17130 = vmatpush3.msra.mxu0 %v15100_v53  ;;  %v17786_v53 = vpack.c.bf16 %v15168_v50, %v15167_v52 }
0x2979   : > { %17135 = vmatpush3.msra.mxu1 %v15101_v54  ;;  %17139 = vmatprep.subr.mxu0 %v18130_v12 }
0x297a   : > { %17144 = vmatprep.subr.mxu1 %v18130_v12 }
0x2a41   : > { %v13707_v56 = vpop.f32.mrb[140].mxu1 }
0x2a42   : > { %v13634_v39 = vpop.f32.mrb[148].mxu0  ;;  %v17118_v43 = vpop.f32.mrb[141].mxu1  ;;  %17137 = vmatmul.mubr.msk.f32.vlgmr.msra.gmra.mrb[144].mxu1 %vm2623_vm5, %v13707_v56 }
0x2a43   : > { %v17113_v58 = vpop.f32.mrb[149].mxu0  ;;  %17132 = vmatmul.mubr.msk.f32.vlgmr.msra.gmra.mrb[152].mxu0 %vm2623_vm5, %v13634_v39  ;;  %17145 = vmatpush3.msra.mxu1 %v15103_v55  ;;  %v15148_v39 = vld [vmem:[%s20224_s15 + $0x1] ss:$0 sm:$0xff] }
0x2a44   : > { %17140 = vmatpush3.msra.mxu0 %v15102_v57  ;;  %17141 = vmatprep.mubr.msk.f32.mxu0 %vm18129_vm0, %v18130_v12  ;;  %v15149_v58 = vld [vmem:[%s20226_s8 + $0x1] ss:$0 sm:$0xff] }
0x2a45   : > { %17146 = vmatprep.mubr.msk.f32.mxu1 %vm18129_vm0, %v18130_v12  ;;  %17761 = vmatprep.subr.bf16.mxu0 %v18128_v4 }
0x2a46   : > { %17767 = vmatprep.subr.bf16.mxu1 %v18128_v4 }
0x2a49   : > { %v13853_v60 = vpop.f32.mrb[142].mxu1 }
0x2a4a   : > { %v13780_v61 = vpop.f32.mrb[150].mxu0  ;;  %v17128_v62 = vpop.f32.mrb[143].mxu1  ;;  %17147 = vmatmul.mubr.msk.f32.vlgmr.msra.gmra.mrb[146].mxu1 %vm2623_vm5, %v13853_v60 }
0x2a4b   : > { %v17123_v0 = vpop.f32.mrb[151].mxu0  ;;  %17142 = vmatmul.mubr.msk.f32.vlgmr.msra.gmra.mrb[154].mxu0 %vm2623_vm5, %v13780_v61  ;;  %17192 = vmatprep.mubr.msk.f32.mxu1 %vm18129_vm0, %v18130_v12  ;;  %v15169_v62 = vld [vmem:[%s20222_s16 + $0xf0] sm:$0xff] }
0x2a4c   : > { %17157 = vmatprep.mubr.msk.f32.mxu0 %vm18129_vm0, %v18130_v12  ;;  %17763 = vmatpush3.bf16.msra.mxu0 %v17762_v63  ;;  %v15170_v0 = vld [vmem:[%s20222_s16 + $0xf8] sm:$0xff]  ;;  %v15177_v63 = vld [vmem:[%s20167_s4 + $0x1] ss:$0 sm:$0xff]  ;;  %s14495_s4 = scalar_lea.sflag [#allocation3], %s1531_s1 }
0x2a4d   : > { %17764 = vmatprep.subr.bf16.mxu0 %v18128_v4  ;;  %17769 = vmatpush3.bf16.msra.mxu1 %v17768_v34 }
0x2a4e   : > { %17770 = vmatprep.subr.bf16.mxu1 %v18128_v4 }
0x2a51   : > { %17772 = vmatpush3.bf16.msra.mxu1 %v17771_v36 }
0x2a52   : > { %17773 = vmatprep.subr.bf16.mxu1 %v18128_v4 }
0x2a55   : > { %17775 = vmatpush3.bf16.msra.mxu1 %v17774_v41 }
0x2a56   : > { %17776 = vmatprep.subr.bf16.mxu1 %v18128_v4 }
0x2a59   : > { %17778 = vmatpush3.bf16.msra.mxu1 %v17777_v44 }
0x2a5a   : > { %17779 = vmatprep.subr.bf16.mxu1 %v18128_v4 }
0x2a5d   : > { %17781 = vmatpush3.bf16.msra.mxu1 %v17780_v49 }
0x2a5e   : > { %17782 = vmatprep.subr.bf16.mxu1 %v18128_v4 }
0x2a61   : > { %17784 = vmatpush3.bf16.msra.mxu1 %v17783_v51 }
0x2a62   : > { %17785 = vmatprep.subr.bf16.mxu1 %v18128_v4 }
0x2a65   : > { %17787 = vmatpush3.bf16.msra.mxu1 %v17786_v53 }
0x2a66   : > { %17788 = vmatprep.subr.bf16.mxu1 %v18128_v4 }
0x2b15   : > { %v13999_v1 = vpop.f32.mrb[144].mxu1 }
0x2b16   : > { %v13926_v2 = vpop.f32.mrb[152].mxu0  ;;  %v14150_v3 = vsel %vm1731_vm4, %v13999_v1, 0.0  ;;  %v17138_v5 = vpop.f32.mrb[145].mxu1  ;;  %v17789_v1 = vpack.c.bf16 %v15170_v0, %v15169_v62 }
0x2b17   : > { %v14149_v6 = vsel %vm1731_vm4, %v13926_v2, 0.0  ;;  %v17133_v8 = vpop.f32.mrb[153].mxu0  ;;  %v15172_v2 = vld [vmem:[%s20228_s0 + $0x1] ss:$0 sm:$0xff]  ;;  %s20233_s0 = sld [smem:[#allocation54_spill]] }
0x2b18   : > { %v14151_v9 = vadd.f32 %v14150_v3, %v14149_v6  ;;  %17790 = vmatpush3.bf16.msra.mxu1 %v17789_v1 }
0x2b1d   : > { %v14145_v20 = vpop.f32.mrb[146].mxu1  ;;  %s20009_s7 = scalar_lea.hbm %s20233_s0, %s15182_s3 }
0x2b1e   : > { %v14072_v10 = vpop.f32.mrb[154].mxu0  ;;  %v17148_v11 = vpop.f32.mrb[147].mxu1  ;;  %v14154_v19 = vsel %vm1731_vm4, %v14145_v20, 0.0 }
0x2b1f   : > { %v14152_v13 = vsel %vm1731_vm4, %v14072_v10, 0.0  ;;  %v17143_v14 = vpop.f32.mrb[155].mxu0 }
0x2b20   : > { %v14153_v16 = vadd.f32 %v14152_v13, %v14151_v9  ;;  %v15174_v9 = vld [vmem:[%s18382_s29 + $0x1] ss:$0 sm:$0xff] }
0x2b22   : > { %v14155_v22 = vadd.f32 %v14154_v19, %v14153_v16 }
0x2b24   : > { %v14162_v24 = vadd.f32 %v15145_v18, %v14155_v22 }
0x2b26   : > { %v14163_v25 = vadd.f32 %v14162_v24, %v19763_v23  ;;  %v15152_v23 = vld [vmem:[%s20221_s2 + $0x30] sm:$0xff]  ;;  %v14409_v24 = vld [vmem:[%s20229_s22] sm:$0xff]  ;;  %s14643_s2 = sshll.u32 %s1531_s1, 3 }
0x2b27   : > { %v17765_v7 = vpack.c.bf16 %v15153_v30, %v15152_v23  ;;  %v15178_v30 = vld [vmem:[%s18392_s9 + $0x1] ss:$0 sm:$0xff]  ;;  %s1533_s5 = scalar_lea.vmem [#allocation2], %s14643_s2 }
0x2b28   : > { %v14168_v26 = vsel %vm1731_vm4, %v14163_v25, 0.0  ;;  %s14508_s6 = sshll.u32 %s1533_s5, 4  ;;  %s20011_s6 = int_to_ptr.vmem [resolvable:$true] %s14508_s6 }
0x2b29   : > { %14169 = vadd.xlane.f32.xlu0 %v14168_v26  ;;  %17766 = vmatpush3.bf16.msra.mxu0 %v17765_v7  ;;  %s18012_s8 = scalar_lea.vmem %s20011_s6, 128 }
0x2b2a   : > { %17791 = vmatprep.subr.bf16.mxu0 %v18128_v4  ;;  %p18013_p11 = scmp.ne.s32.totalorder %s20011_s6, %s18012_s8 }
0x2b2c   : > { %p18014_p12 = pnand %p18013_p11, %p18437_p5 }
0x2b2e   : > { %p18015_p13 = pneg %p18014_p12 }
0x2bb6   : > { %v14170_v21 = vpop.xlane.xlu0 %14169 }
0x2bb7   : > { %v14171_v31 = vmul.f32 0.03125, %v14170_v21  ;;  %v14411_v21 = vld [vmem:[%s20230_s10 + $0x10] sm:$0xff] }
0x2bb9   : > { %v14172_v27 = vsub.f32 %v14163_v25, %v14171_v31  ;;  %v14410_v25 = vld [vmem:[%s20230_s10 + $0x8] sm:$0xff]  ;;  %v14412_v31 = vld [vmem:[%s20230_s10 + $0x18] sm:$0xff] }
0x2bba   : > { %v17792_v26 = vpack.c.bf16 %v14410_v25, %v14409_v24 }
0x2bbb   : > { %v14173_v28 = vmul.f32 %v14172_v27, %v14172_v27 }
0x2bbd   : > { %v14174_v29 = vsel %vm1731_vm4, %v14173_v28, 0.0 }
0x2bbe   : > { %14175 = vadd.xlane.f32.xlu1 %v14174_v29 }
0x2c4b   : > { %v14176_v54 = vpop.xlane.xlu1 %14175 }
0x2c4c   : > { %v14177_v55 = vmul.f32 0.03125, %v14176_v54 }
0x2c4e   : > { %v14178_v56 = vadd.f32 1e-05, %v14177_v55 }
0x2c50   : > { %18006 = vrsqrt.f32 %v14178_v56 }
0x2c5a   : > { %v18007_v57 = vpop.eup %18006 }
0x2c5b   : > { %v14180_v43 = vmul.f32 %v18007_v57, %v14172_v27  ;;  %v17795_v27 = vpack.c.bf16 %v14412_v31, %v14411_v21 }
0x2c5d   : > { %v14187_v60 = vmul.f32 %v15148_v39, %v14180_v43 }
0x2c5f   : > { %v14194_v61 = vadd.f32 %v15149_v58, %v14187_v60 }
0x2c61   : > { %17158 = vmatmul.mubr.msk.f32.vlgmr.msra.gmra.mrb[156].mxu0 %vm1731_vm4, %v14194_v61 }
0x2c62   : > { %17203 = vmatprep.mubr.msk.f32.mxu0 %vm18129_vm0, %v18130_v12  ;;  %17793 = vmatpush3.bf16.msra.mxu0 %v17792_v26 }
0x2c63   : > { %17794 = vmatprep.subr.bf16.mxu0 %v18128_v4  ;;  %v15179_v4 = vld [vmem:[%s20231_s28] ss:$0 sm:$0xff]  ;;  %s18133_s28 = smov [#allocation2]  }
0x2c64   : > { %s18016_s2 = sshll.u32 %s18133_s28, 4  ;;  %s18017_s2 = int_to_ptr.vmem [resolvable:$false] %s18016_s2 }
0x2c65   : > { %s18018_s26 = scalar_lea.vmem %s18017_s2, 256  ;;  %p18019_p0 = scmp.lt.s32.totalorder %s20011_s6, %s18017_s2 }
0x2c66   : > { %17796 = vmatpush3.bf16.msra.mxu0 %v17795_v27  ;;  %p18020_p1 = scmp.lt.s32.totalorder %s18018_s26, %s18012_s8 }
0x2c68   : > { %p18021_p2 = por %p18020_p1, %p18019_p0 }
0x2c6a   : > { %p18022_p3 = pnand %p18021_p2, %p18015_p13 }
0x2d34   : > { %v14296_v3 = vpop.f32.mrb[156].mxu0 }
0x2d35   : > { %v14297_v5 = vadd.f32 %v15172_v2, %v14296_v3  ;;  %v17159_v6 = vpop.f32.mrb[157].mxu0 }
0x2d37   : > { %v14300_v8 = vmax.f32 %v14297_v5, 0.0 }
0x2d39   : > { %17193 = vmatmul.mubr.f32.vlgmr.msra.gmra.mrb[148].mxu1 %v14300_v8 }
0x2e0c   : > { %v14373_v20 = vpop.f32.mrb[148].mxu1 }
0x2e0d   : > { %v14374_v10 = vadd.f32 %v15174_v9, %v14373_v20  ;;  %v17194_v11 = vpop.f32.mrb[149].mxu1 }
0x2e0f   : > { %v14377_v13 = vadd.f32 %v14374_v10, %v14194_v61 }
0x2e11   : > { %v14382_v12 = vsel %vm1731_vm4, %v14377_v13, 0.0 }
0x2e12   : > { %14383 = vadd.xlane.f32.xlu0 %v14382_v12 }
0x2e9f   : > { %v14384_v14 = vpop.xlane.xlu0 %14383 }
0x2ea0   : > { %v14385_v16 = vmul.f32 0.03125, %v14384_v14 }
0x2ea2   : > { %v14386_v18 = vsub.f32 %v14377_v13, %v14385_v16 }
0x2ea4   : > { %v14387_v19 = vmul.f32 %v14386_v18, %v14386_v18 }
0x2ea6   : > { %v14388_v22 = vsel %vm1731_vm4, %v14387_v19, 0.0 }
0x2ea7   : > { %14389 = vadd.xlane.f32.xlu1 %v14388_v22 }
0x2f34   : > { %v14390_v28 = vpop.xlane.xlu1 %14389 }
0x2f35   : > { %v14391_v29 = vmul.f32 0.03125, %v14390_v28 }
0x2f37   : > { %v14392_v59 = vadd.f32 1e-05, %v14391_v29 }
0x2f39   : > { %18008 = vrsqrt.f32 %v14392_v59 }
0x2f43   : > { %v18009_v17 = vpop.eup %18008 }
0x2f44   : > { %v14394_v23 = vmul.f32 %v18009_v17, %v14386_v18 }
0x2f46   : > { %v14401_v7 = vmul.f32 %v15177_v63, %v14394_v23 }
0x2f48   : > { %v14408_v32 = vadd.f32 %v15178_v30, %v14401_v7 }
0x2f4a   : > { %17204 = vmatmul.mubr.msk.f32.vlgmr.msra.gmra.mrb[158].mxu0 %vm1731_vm4, %v14408_v32 }
0x301d   : > { %v14489_v15 = vpop.f32.mrb[158].mxu0 }
0x301e   : > { %v14490_v33 = vadd.f32 %v15179_v4, %v14489_v15  ;;  %v17205_v34 = vpop.f32.mrb[159].mxu0 }
0x3020   : > { %14493 = vst [vmem:[%s1533_s5] sm:$0xff] %v14490_v33 }
0x3021   : > { %18025 = shalt.err (!%p18022_p3)
}
0x3022   : > { %s18026_s5 = scalar_lea.hbm %s20009_s7, 128  ;;  %s18030_s3 = scalar_lea.hbm %s20233_s0, 256 }
0x3023   : > { %p18027_p4 = scmp.ne.s32.totalorder %s20009_s7, %s18026_s5  ;;  %p18031_p9 = scmp.lt.u32.totalorder %s20009_s7, %s20233_s0 }
0x3024   : > { %p18032_p10 = scmp.lt.u32.totalorder %s18030_s3, %s18026_s5  ;;  %p18034_p12 = scmp.lt.u32.totalorder %s18026_s5, %s20009_s7 }
0x3025   : > { %p18028_p7 = pnand %p18027_p4, %p18437_p5 }
0x3026   : > { %p18033_p11 = por %p18032_p10, %p18031_p9 }
0x3027   : > { %p18029_p8 = pneg %p18028_p7 }
0x3028   : > { %p18035_p0 = por %p18034_p12, %p18033_p11 }
0x302a   : > { %p18036_p13 = pnand %p18035_p0, %p18029_p8 }
0x302c   : > { %18039 = shalt.err (!%p18036_p13)
}
0x302d   : > { %17797 = dma.vmem_to_hbm [thread:$0]  (%p18437_p5), %s20011_s6, 128, %s20009_s7, %s14495_s4  }
0x302e PF: > { %s20235_s8 = sld [smem:[#allocation57_spill]]  ;;  %s20236_s1 = sld [smem:[#allocation55_spill]] }
0x3034   : > { %p17803_p1 = scmp.ge.s32.totalorder %s20235_s8, 2  ;;  %s14520_s2 = sand.u32 1, %s20236_s1  }
0x3035   : > { %s14521_s26 = scalar_lea.sflag [#allocation3], %s14520_s2 }
0x3036   : > { %p17800_p2 = pnand %p17803_p1, %p18441_p6 }
0x3038   : > { %18057 = dma.done.wait (!%p17800_p2), %s14521_s26, 128  }
0x3039   : > { %18059 = vsyncadd (!%p17800_p2), %s14521_s26, 4294967168  ;;  %s20238_s28 = sld [smem:[#allocation59_spill]]  ;;  %s20239_s5 = sld [smem:[#allocation56_spill]] }
0x303a   : > { %s20240_s26 = sld [smem:[#allocation60_spill]]  ;;  %s20241_s22 = smov %s18066_s23 }
0x303f   : > { %p113_p3 = scmp.ge.s32.totalorder %s20238_s28, 4   ;;  %s20242_s23 = smov %s20239_s5 }
0x3041   :  { %115 = sbr.rel (!%p113_p3) target bundleno = 111 (0x6f), region = 358 }
0x3048   :  { %14526 = vsyncpa [#allocation3], 1 }
0x3049   :  { %14528 = vsyncpa [#allocation3 + $0x1], 1 }

</bundles_post_ra>
